<compile_context>
chip_gen: v5e
topology: v5e:2x2
jax: 0.10.0
libtpu: 0.0.40
codegen_flags: <defaults>
</compile_context>

<pallas_src>
import functools

import jax
import jax.numpy as jnp
from jax import lax
from jax.experimental import pallas as pl
from jax.experimental.pallas import tpu as pltpu


def _silu(x):
    return x * jax.nn.sigmoid(x)


# ----------------------------------------------------------------------------
# Fused SPPF kernel
# ----------------------------------------------------------------------------
def sppf_fused_kernel(x_ref, mask_ref, w1_ref, b1_ref, w2_ref, b2_ref, o_ref,
                      pool_ref, cat_ref, col_ref, *, H, W, depth):
    # x_ref    (1, d_i, Pq)     zero-padded input on the flat padded grid
    # mask_ref (1, Pq)          1.0 at interior grid positions, 0.0 on border
    # w1_ref   (d_h, d_i)       BN-folded 1x1 conv weight
    # b1_ref   (d_h, 1)         BN-folded 1x1 conv bias
    # w2_ref   (d_o, 9*c_cat)   BN-folded 3x3 conv weight, (ky,kx,cin) flat
    # b2_ref   (d_o, 1)         BN-folded 3x3 conv bias
    # o_ref    (1, d_o, H*W)    lane-dense output tile
    # pool_ref (d_h, M+Pq+M)    VMEM scratch: margin-padded pool grid
    # cat_ref  (c_cat, M+Pq+M)  VMEM scratch: margin-padded concat grid
    # col_ref  (9*c_cat, Pq)    VMEM scratch: transposed im2col matrix
    d_i = x_ref.shape[1]
    d_h = w1_ref.shape[0]
    d_o = o_ref.shape[1]
    c_cat = cat_ref.shape[0]
    Hq, Wq = H + 4, W + 4
    Pq = Hq * Wq
    M = (pool_ref.shape[1] - Pq) // 2        # lane margin (128, group aligned)
    neg = float("-inf")

    interior = mask_ref[...] != 0.0          # (1, Pq), broadcast over sublanes

    # ---- conv1: 1x1 conv + folded BN + SiLU ---------------------------------
    x = x_ref[0].astype(jnp.float32)         # (d_i, Pq)
    w1 = w1_ref[...]
    if d_i >= 64:
        # Deep enough reduction to be worth the MXU.
        y = jnp.dot(w1, x, preferred_element_type=jnp.float32)
    else:
        # Tiny K: d_i broadcast multiply-adds on the VPU.               [6]
        y = w1[:, 0:1] * x[0:1, :]
        for cc in range(1, d_i):
            y = y + w1[:, cc:cc + 1] * x[cc:cc + 1, :]
    y = _silu(y + b1_ref[...])               # (d_h, Pq); border masked below

    # concat stage 0 (zero border for the 3x3 conv): aligned full-width store.
    cat_ref[0:d_h, M:M + Pq] = jnp.where(interior, y, 0.0)          # [3][4]

    # ---- depth x (5x5, stride 1, pad 2 max-pool), separable on the flat grid
    cur = y
    for s in range(depth):
        # Stage input with -inf on the 2-wide border ring (PyTorch padding).
        pool_ref[:, M:M + Pq] = jnp.where(interior, cur, neg)
        # Column (W) pass: 5 lane-shifted reads of the margin-padded grid. [5]
        rm = pool_ref[:, M - 2:M - 2 + Pq]
        for dx in (-1, 0, 1, 2):
            rm = jnp.maximum(rm, pool_ref[:, M + dx:M + dx + Pq])
        pool_ref[:, M:M + Pq] = rm
        # Row (H) pass: shifts of +-Wq, +-2*Wq on the same flat lane axis.
        pm = pool_ref[:, M - 2 * Wq:M - 2 * Wq + Pq]
        for dy in (-1, 0, 1, 2):
            off = dy * Wq
            pm = jnp.maximum(pm, pool_ref[:, M + off:M + off + Pq])
        cat_ref[(s + 1) * d_h:(s + 2) * d_h, M:M + Pq] = (
            jnp.where(interior, pm, 0.0))
        cur = pm

    # ---- conv2: 3x3 conv as ONE big-K matmul over the transposed im2col ----
    # Each tap is a lane-shifted copy of the concat grid; writes land at
    # 8-aligned sublane offsets with full lane rows.                    [2]
    for tap in range(9):
        ky, kx = tap // 3, tap % 3
        off = (ky - 1) * Wq + (kx - 1)
        col_ref[tap * c_cat:(tap + 1) * c_cat, :] = (
            cat_ref[:, M + off:M + off + Pq].astype(col_ref.dtype))

    y2 = jnp.dot(w2_ref[...], col_ref[...],
                 preferred_element_type=jnp.float32)                 # (d_o, Pq)
    # Drop the padded-grid border columns, then bias + SiLU on the lane-dense
    # (d_o, H*W) result.                                               [1]
    y2 = y2.reshape(d_o, Hq, Wq)[:, 2:2 + H, 2:2 + W].reshape(d_o, H * W)
    o_ref[0] = _silu(y2 + b2_ref[...]).astype(o_ref.dtype)


def sppf_pallas(x_nchw, params, depth, matmul_dtype=jnp.float32):
    N, d_i, H, W = x_nchw.shape
    w1, b1, w2r, b2 = params["w1"], params["b1"], params["w2r"], params["b2"]
    d_h = w1.shape[0]
    d_o = w2r.shape[0]
    c_cat = (depth + 1) * d_h
    Hq, Wq = H + 4, W + 4
    Pq = Hq * Wq
    M = 128                                  # lane-group-aligned scratch margin

    # Layout prep only (no transposes): spatial zero-pad of the few-channel
    # input + free reshape onto the flat padded grid.                   [1]
    xq = jnp.pad(x_nchw, ((0, 0), (0, 0), (2, 2), (2, 2))).reshape(N, d_i, Pq)

    # Interior mask of the padded grid (becomes a jit-time constant).
    r_ok = (jnp.arange(Hq) >= 2) & (jnp.arange(Hq) < 2 + H)
    c_ok = (jnp.arange(Wq) >= 2) & (jnp.arange(Wq) < 2 + W)
    mask = (r_ok[:, None] & c_ok[None, :]).reshape(1, Pq).astype(jnp.float32)

    kernel = functools.partial(sppf_fused_kernel, H=H, W=W, depth=depth)
    out = pl.pallas_call(
        kernel,
        out_shape=jax.ShapeDtypeStruct((N, d_o, H * W), x_nchw.dtype),
        grid=(N,),
        in_specs=[
            pl.BlockSpec((1, d_i, Pq), lambda n: (n, 0, 0)),
            pl.BlockSpec((1, Pq), lambda n: (0, 0)),
            pl.BlockSpec((d_h, d_i), lambda n: (0, 0)),
            pl.BlockSpec((d_h, 1), lambda n: (0, 0)),
            pl.BlockSpec((d_o, 9 * c_cat), lambda n: (0, 0)),
            pl.BlockSpec((d_o, 1), lambda n: (0, 0)),
        ],
        out_specs=pl.BlockSpec((1, d_o, H * W), lambda n: (n, 0, 0)),
        scratch_shapes=[
            pltpu.VMEM((d_h, M + Pq + M), jnp.float32),       # pool grid
            pltpu.VMEM((c_cat, M + Pq + M), jnp.float32),     # concat grid
            pltpu.VMEM((9 * c_cat, Pq), matmul_dtype),        # transposed col
        ],
        compiler_params=pltpu.CompilerParams(
            dimension_semantics=("parallel",),
            vmem_limit_bytes=32 * 1024 * 1024,
        ),
    )(xq, mask, w1, b1.reshape(d_h, 1),
      w2r.astype(matmul_dtype), b2.reshape(d_o, 1))
    return out.reshape(N, d_o, H, W)


# ----------------------------------------------------------------------------
# Parameter construction (deterministic) + BatchNorm folding
# ----------------------------------------------------------------------------
def make_params(key, d_i, d_o, depth):
    d_h = d_o // 2
    c_cat = (depth + 1) * d_h
    ks = jax.random.split(key, 10)
    eps = 1e-5

    # conv1: 1x1, d_i -> d_h   (PyTorch weight layout (Cout, Cin, 1, 1))
    w1 = jax.random.normal(ks[0], (d_h, d_i, 1, 1), jnp.float32) * 0.1
    b1 = jax.random.normal(ks[1], (d_h,), jnp.float32) * 0.1
    g1 = 1.0 + 0.1 * jax.random.normal(ks[2], (d_h,), jnp.float32)
    beta1 = 0.1 * jax.random.normal(ks[3], (d_h,), jnp.float32)
    mean1 = 0.1 * jax.random.normal(ks[4], (d_h,), jnp.float32)
    var1 = jnp.abs(jax.random.normal(ks[5], (d_h,), jnp.float32)) + 0.5

    s1 = g1 / jnp.sqrt(var1 + eps)
    w1_eff = w1[:, :, 0, 0] * s1[:, None]            # (d_h, d_i)
    b1_eff = (b1 - mean1) * s1 + beta1               # (d_h,)

    # conv2: 3x3, c_cat -> d_o  (PyTorch weight layout (Cout, Cin, 3, 3))
    w2 = jax.random.normal(ks[6], (d_o, c_cat, 3, 3), jnp.float32) * 0.05
    b2 = jax.random.normal(ks[7], (d_o,), jnp.float32) * 0.1
    g2 = 1.0 + 0.1 * jax.random.normal(ks[8], (d_o,), jnp.float32)
    beta2 = 0.1 * jax.random.normal(ks[9], (d_o,), jnp.float32)
    mean2 = jnp.zeros((d_o,), jnp.float32)
    var2 = jnp.ones((d_o,), jnp.float32)

    s2 = g2 / jnp.sqrt(var2 + eps)
    w2_eff = w2 * s2[:, None, None, None]            # (d_o, c_cat, 3, 3)
    b2_eff = (b2 - mean2) * s2 + beta2

    # (ky, kx, cin)-major flattening matching the transposed im2col rows.
    w2r = jnp.transpose(w2_eff, (0, 2, 3, 1)).reshape(d_o, 9 * c_cat)
    # HWIO copy used only by the pure-JAX reference.
    w2_hwio = jnp.transpose(w2_eff, (2, 3, 1, 0))

    return dict(w1=w1_eff, b1=b1_eff, w2r=w2r, b2=b2_eff, w2_hwio=w2_hwio)


# ----------------------------------------------------------------------------
# SPPF forward (Pallas) — input/output NCHW like the PyTorch module
# ----------------------------------------------------------------------------
@functools.partial(jax.jit, static_argnames=("depth",))
def sppf_forward(x_nchw, params, depth=2):
    return sppf_pallas(x_nchw, params, depth)


# ----------------------------------------------------------------------------
# Pure-JAX reference for correctness checking
# ----------------------------------------------------------------------------
def sppf_reference(x_nchw, params, depth=2):
    x = jnp.transpose(x_nchw, (0, 2, 3, 1))
    y0 = _silu(jnp.einsum("nhwc,oc->nhwo", x, params["w1"]) + params["b1"])
    ys = [y0]
    for _ in range(depth):
        ys.append(lax.reduce_window(
            ys[-1], -jnp.inf, lax.max,
            (1, 5, 5, 1), (1, 1, 1, 1),
            padding=((0, 0), (2, 2), (2, 2), (0, 0))))
    cat = jnp.concatenate(ys, axis=-1)
    conv = lax.conv_general_dilated(
        cat, params["w2_hwio"], (1, 1), ((1, 1), (1, 1)),
        dimension_numbers=("NHWC", "HWIO", "NHWC"))
    out = _silu(conv + params["b2"])
    return jnp.transpose(out, (0, 3, 1, 2))


if __name__ == "__main__":
    N, d_i, d_o, H, W = 2, 4, 32, 16, 16
    depth = 2

    key = jax.random.PRNGKey(0)
    kx, kp = jax.random.split(key)
    x = jax.random.normal(kx, (N, d_i, H, W), jnp.float32)
    params = make_params(kp, d_i, d_o, depth)

    out = sppf_forward(x, params, depth=depth)
    jax.block_until_ready(out)

    ref = sppf_reference(x, params, depth=depth)
    assert out.shape == (N, d_o, H, W), out.shape
    assert jnp.allclose(out, ref, atol=1e-4, rtol=1e-4), \
        float(jnp.max(jnp.abs(out - ref)))

    print("KERNEL_OK")
</pallas_src>

<mosaic_0001>
module attributes {stable_mosaic.version = 11 : i64} {
  func.func @sppf_fused_kernel(%arg0: i32, %arg1: memref<1x4x400xf32, #tpu.memory_space<vmem>>, %arg2: memref<1x400xf32, #tpu.memory_space<vmem>>, %arg3: memref<16x4xf32, #tpu.memory_space<vmem>>, %arg4: memref<16x1xf32, #tpu.memory_space<vmem>>, %arg5: memref<32x432xf32, #tpu.memory_space<vmem>>, %arg6: memref<32x1xf32, #tpu.memory_space<vmem>>, %arg7: memref<1x32x256xf32, #tpu.memory_space<vmem>>, %arg8: memref<16x656xf32, #tpu.memory_space<vmem>>, %arg9: memref<48x656xf32, #tpu.memory_space<vmem>>, %arg10: memref<432x400xf32, #tpu.memory_space<vmem>>) attributes {dimension_semantics = [#tpu.dimension_semantics<parallel>], iteration_bounds = array<i64: 2>, scalar_prefetch = 0 : i64, scratch_operands = 3 : i64, tpu.core_type = #tpu.core_type<tc>, window_params = [{transform_indices = @transform_0, window_bounds = array<i64: 1, 4, 400>}, {pipeline_mode = #tpu.pipeline_mode<synchronous>, transform_indices = @transform_1, window_bounds = array<i64: 1, 400>}, {pipeline_mode = #tpu.pipeline_mode<synchronous>, transform_indices = @transform_2, window_bounds = array<i64: 16, 4>}, {pipeline_mode = #tpu.pipeline_mode<synchronous>, transform_indices = @transform_3, window_bounds = array<i64: 16, 1>}, {pipeline_mode = #tpu.pipeline_mode<synchronous>, transform_indices = @transform_4, window_bounds = array<i64: 32, 432>}, {pipeline_mode = #tpu.pipeline_mode<synchronous>, transform_indices = @transform_5, window_bounds = array<i64: 32, 1>}, {transform_indices = @transform_6, window_bounds = array<i64: 1, 32, 256>}]} {
    %c0 = arith.constant 0 : index
    %c0_0 = arith.constant 0 : index
    %0 = vector.load %arg2[%c0, %c0_0] : memref<1x400xf32, #tpu.memory_space<vmem>>, vector<1x400xf32>
    %cst = arith.constant 0.000000e+00 : f32
    %1 = vector.broadcast %cst : f32 to vector<1x400xf32>
    %2 = arith.cmpf one, %0, %1 : vector<1x400xf32>
    %c0_1 = arith.constant 0 : index
    %c0_2 = arith.constant 0 : index
    %c0_3 = arith.constant 0 : index
    %3 = vector.load %arg1[%c0_1, %c0_2, %c0_3] : memref<1x4x400xf32, #tpu.memory_space<vmem>>, vector<1x4x400xf32>
    %4 = vector.shape_cast %3 : vector<1x4x400xf32> to vector<4x400xf32>
    %c0_4 = arith.constant 0 : index
    %c0_5 = arith.constant 0 : index
    %5 = vector.load %arg3[%c0_4, %c0_5] : memref<16x4xf32, #tpu.memory_space<vmem>>, vector<16x4xf32>
    %6 = vector.extract_strided_slice %5 {offsets = [0, 0], sizes = [16, 1], strides = [1, 1]} : vector<16x4xf32> to vector<16x1xf32>
    %7 = vector.extract_strided_slice %4 {offsets = [0, 0], sizes = [1, 400], strides = [1, 1]} : vector<4x400xf32> to vector<1x400xf32>
    %8 = vector.broadcast %6 : vector<16x1xf32> to vector<16x400xf32>
    %9 = vector.broadcast %7 : vector<1x400xf32> to vector<16x400xf32>
    %10 = arith.mulf %8, %9 : vector<16x400xf32>
    %11 = vector.extract_strided_slice %5 {offsets = [0, 1], sizes = [16, 1], strides = [1, 1]} : vector<16x4xf32> to vector<16x1xf32>
    %12 = vector.extract_strided_slice %4 {offsets = [1, 0], sizes = [1, 400], strides = [1, 1]} : vector<4x400xf32> to vector<1x400xf32>
    %13 = vector.broadcast %11 : vector<16x1xf32> to vector<16x400xf32>
    %14 = vector.broadcast %12 : vector<1x400xf32> to vector<16x400xf32>
    %15 = arith.mulf %13, %14 : vector<16x400xf32>
    %16 = arith.addf %10, %15 : vector<16x400xf32>
    %17 = vector.extract_strided_slice %5 {offsets = [0, 2], sizes = [16, 1], strides = [1, 1]} : vector<16x4xf32> to vector<16x1xf32>
    %18 = vector.extract_strided_slice %4 {offsets = [2, 0], sizes = [1, 400], strides = [1, 1]} : vector<4x400xf32> to vector<1x400xf32>
    %19 = vector.broadcast %17 : vector<16x1xf32> to vector<16x400xf32>
    %20 = vector.broadcast %18 : vector<1x400xf32> to vector<16x400xf32>
    %21 = arith.mulf %19, %20 : vector<16x400xf32>
    %22 = arith.addf %16, %21 : vector<16x400xf32>
    %23 = vector.extract_strided_slice %5 {offsets = [0, 3], sizes = [16, 1], strides = [1, 1]} : vector<16x4xf32> to vector<16x1xf32>
    %24 = vector.extract_strided_slice %4 {offsets = [3, 0], sizes = [1, 400], strides = [1, 1]} : vector<4x400xf32> to vector<1x400xf32>
    %25 = vector.broadcast %23 : vector<16x1xf32> to vector<16x400xf32>
    %26 = vector.broadcast %24 : vector<1x400xf32> to vector<16x400xf32>
    %27 = arith.mulf %25, %26 : vector<16x400xf32>
    %28 = arith.addf %22, %27 : vector<16x400xf32>
    %c0_6 = arith.constant 0 : index
    %c0_7 = arith.constant 0 : index
    %29 = vector.load %arg4[%c0_6, %c0_7] : memref<16x1xf32, #tpu.memory_space<vmem>>, vector<16x1xf32>
    %30 = vector.broadcast %29 : vector<16x1xf32> to vector<16x400xf32>
    %31 = arith.addf %28, %30 : vector<16x400xf32>
    %32 = arith.negf %31 : vector<16x400xf32>
    %33 = math.exp %32 : vector<16x400xf32>
    %cst_8 = arith.constant 1.000000e+00 : f32
    %34 = vector.broadcast %cst_8 : f32 to vector<16x400xf32>
    %35 = arith.addf %34, %33 : vector<16x400xf32>
    %36 = arith.divf %34, %35 : vector<16x400xf32>
    %37 = arith.mulf %31, %36 : vector<16x400xf32>
    %cst_9 = arith.constant 0.000000e+00 : f32
    %38 = vector.shape_cast %2 : vector<1x400xi1> to vector<1x400xi1>
    %39 = vector.broadcast %38 : vector<1x400xi1> to vector<16x400xi1>
    %40 = vector.broadcast %cst_9 : f32 to vector<16x400xf32>
    %41 = arith.select %39, %37, %40 : vector<16x400xi1>, vector<16x400xf32>
    %c0_10 = arith.constant 0 : index
    %c128 = arith.constant 128 : index
    %42 = vector.load %arg9[%c0_10, %c128] : memref<48x656xf32, #tpu.memory_space<vmem>>, vector<16x400xf32>
    tpu.vector_store %arg9[%c0_10, %c128], %41 {strides = array<i32>} : memref<48x656xf32, #tpu.memory_space<vmem>>, vector<16x400xf32>,
    %cst_11 = arith.constant 0xFF800000 : f32
    %43 = vector.shape_cast %2 : vector<1x400xi1> to vector<1x400xi1>
    %44 = vector.broadcast %43 : vector<1x400xi1> to vector<16x400xi1>
    %45 = vector.broadcast %cst_11 : f32 to vector<16x400xf32>
    %46 = arith.select %44, %37, %45 : vector<16x400xi1>, vector<16x400xf32>
    %c0_12 = arith.constant 0 : index
    %c128_13 = arith.constant 128 : index
    %47 = vector.load %arg8[%c0_12, %c128_13] : memref<16x656xf32, #tpu.memory_space<vmem>>, vector<16x400xf32>
    tpu.vector_store %arg8[%c0_12, %c128_13], %46 {strides = array<i32>} : memref<16x656xf32, #tpu.memory_space<vmem>>, vector<16x400xf32>,
    %c0_14 = arith.constant 0 : index
    %c126 = arith.constant 126 : index
    %48 = vector.load %arg8[%c0_14, %c126] : memref<16x656xf32, #tpu.memory_space<vmem>>, vector<16x400xf32>
    %c0_15 = arith.constant 0 : index
    %c127 = arith.constant 127 : index
    %49 = vector.load %arg8[%c0_15, %c127] : memref<16x656xf32, #tpu.memory_space<vmem>>, vector<16x400xf32>
    %50 = arith.maximumf %48, %49 : vector<16x400xf32>
    %c0_16 = arith.constant 0 : index
    %c128_17 = arith.constant 128 : index
    %51 = vector.load %arg8[%c0_16, %c128_17] : memref<16x656xf32, #tpu.memory_space<vmem>>, vector<16x400xf32>
    %52 = arith.maximumf %50, %51 : vector<16x400xf32>
    %c0_18 = arith.constant 0 : index
    %c129 = arith.constant 129 : index
    %53 = vector.load %arg8[%c0_18, %c129] : memref<16x656xf32, #tpu.memory_space<vmem>>, vector<16x400xf32>
    %54 = arith.maximumf %52, %53 : vector<16x400xf32>
    %c0_19 = arith.constant 0 : index
    %c130 = arith.constant 130 : index
    %55 = vector.load %arg8[%c0_19, %c130] : memref<16x656xf32, #tpu.memory_space<vmem>>, vector<16x400xf32>
    %56 = arith.maximumf %54, %55 : vector<16x400xf32>
    %c0_20 = arith.constant 0 : index
    %c128_21 = arith.constant 128 : index
    %57 = vector.load %arg8[%c0_20, %c128_21] : memref<16x656xf32, #tpu.memory_space<vmem>>, vector<16x400xf32>
    tpu.vector_store %arg8[%c0_20, %c128_21], %56 {strides = array<i32>} : memref<16x656xf32, #tpu.memory_space<vmem>>, vector<16x400xf32>,
    %c0_22 = arith.constant 0 : index
    %c88 = arith.constant 88 : index
    %58 = vector.load %arg8[%c0_22, %c88] : memref<16x656xf32, #tpu.memory_space<vmem>>, vector<16x400xf32>
    %c0_23 = arith.constant 0 : index
    %c108 = arith.constant 108 : index
    %59 = vector.load %arg8[%c0_23, %c108] : memref<16x656xf32, #tpu.memory_space<vmem>>, vector<16x400xf32>
    %60 = arith.maximumf %58, %59 : vector<16x400xf32>
    %c0_24 = arith.constant 0 : index
    %c128_25 = arith.constant 128 : index
    %61 = vector.load %arg8[%c0_24, %c128_25] : memref<16x656xf32, #tpu.memory_space<vmem>>, vector<16x400xf32>
    %62 = arith.maximumf %60, %61 : vector<16x400xf32>
    %c0_26 = arith.constant 0 : index
    %c148 = arith.constant 148 : index
    %63 = vector.load %arg8[%c0_26, %c148] : memref<16x656xf32, #tpu.memory_space<vmem>>, vector<16x400xf32>
    %64 = arith.maximumf %62, %63 : vector<16x400xf32>
    %c0_27 = arith.constant 0 : index
    %c168 = arith.constant 168 : index
    %65 = vector.load %arg8[%c0_27, %c168] : memref<16x656xf32, #tpu.memory_space<vmem>>, vector<16x400xf32>
    %66 = arith.maximumf %64, %65 : vector<16x400xf32>
    %cst_28 = arith.constant 0.000000e+00 : f32
    %67 = vector.shape_cast %2 : vector<1x400xi1> to vector<1x400xi1>
    %68 = vector.broadcast %67 : vector<1x400xi1> to vector<16x400xi1>
    %69 = vector.broadcast %cst_28 : f32 to vector<16x400xf32>
    %70 = arith.select %68, %66, %69 : vector<16x400xi1>, vector<16x400xf32>
    %c16 = arith.constant 16 : index
    %c128_29 = arith.constant 128 : index
    %71 = vector.load %arg9[%c16, %c128_29] : memref<48x656xf32, #tpu.memory_space<vmem>>, vector<16x400xf32>
    tpu.vector_store %arg9[%c16, %c128_29], %70 {strides = array<i32>} : memref<48x656xf32, #tpu.memory_space<vmem>>, vector<16x400xf32>,
    %cst_30 = arith.constant 0xFF800000 : f32
    %72 = vector.shape_cast %2 : vector<1x400xi1> to vector<1x400xi1>
    %73 = vector.broadcast %72 : vector<1x400xi1> to vector<16x400xi1>
    %74 = vector.broadcast %cst_30 : f32 to vector<16x400xf32>
    %75 = arith.select %73, %66, %74 : vector<16x400xi1>, vector<16x400xf32>
    %c0_31 = arith.constant 0 : index
    %c128_32 = arith.constant 128 : index
    %76 = vector.load %arg8[%c0_31, %c128_32] : memref<16x656xf32, #tpu.memory_space<vmem>>, vector<16x400xf32>
    tpu.vector_store %arg8[%c0_31, %c128_32], %75 {strides = array<i32>} : memref<16x656xf32, #tpu.memory_space<vmem>>, vector<16x400xf32>,
    %c0_33 = arith.constant 0 : index
    %c126_34 = arith.constant 126 : index
    %77 = vector.load %arg8[%c0_33, %c126_34] : memref<16x656xf32, #tpu.memory_space<vmem>>, vector<16x400xf32>
    %c0_35 = arith.constant 0 : index
    %c127_36 = arith.constant 127 : index
    %78 = vector.load %arg8[%c0_35, %c127_36] : memref<16x656xf32, #tpu.memory_space<vmem>>, vector<16x400xf32>
    %79 = arith.maximumf %77, %78 : vector<16x400xf32>
    %c0_37 = arith.constant 0 : index
    %c128_38 = arith.constant 128 : index
    %80 = vector.load %arg8[%c0_37, %c128_38] : memref<16x656xf32, #tpu.memory_space<vmem>>, vector<16x400xf32>
    %81 = arith.maximumf %79, %80 : vector<16x400xf32>
    %c0_39 = arith.constant 0 : index
    %c129_40 = arith.constant 129 : index
    %82 = vector.load %arg8[%c0_39, %c129_40] : memref<16x656xf32, #tpu.memory_space<vmem>>, vector<16x400xf32>
    %83 = arith.maximumf %81, %82 : vector<16x400xf32>
    %c0_41 = arith.constant 0 : index
    %c130_42 = arith.constant 130 : index
    %84 = vector.load %arg8[%c0_41, %c130_42] : memref<16x656xf32, #tpu.memory_space<vmem>>, vector<16x400xf32>
    %85 = arith.maximumf %83, %84 : vector<16x400xf32>
    %c0_43 = arith.constant 0 : index
    %c128_44 = arith.constant 128 : index
    %86 = vector.load %arg8[%c0_43, %c128_44] : memref<16x656xf32, #tpu.memory_space<vmem>>, vector<16x400xf32>
    tpu.vector_store %arg8[%c0_43, %c128_44], %85 {strides = array<i32>} : memref<16x656xf32, #tpu.memory_space<vmem>>, vector<16x400xf32>,
    %c0_45 = arith.constant 0 : index
    %c88_46 = arith.constant 88 : index
    %87 = vector.load %arg8[%c0_45, %c88_46] : memref<16x656xf32, #tpu.memory_space<vmem>>, vector<16x400xf32>
    %c0_47 = arith.constant 0 : index
    %c108_48 = arith.constant 108 : index
    %88 = vector.load %arg8[%c0_47, %c108_48] : memref<16x656xf32, #tpu.memory_space<vmem>>, vector<16x400xf32>
    %89 = arith.maximumf %87, %88 : vector<16x400xf32>
    %c0_49 = arith.constant 0 : index
    %c128_50 = arith.constant 128 : index
    %90 = vector.load %arg8[%c0_49, %c128_50] : memref<16x656xf32, #tpu.memory_space<vmem>>, vector<16x400xf32>
    %91 = arith.maximumf %89, %90 : vector<16x400xf32>
    %c0_51 = arith.constant 0 : index
    %c148_52 = arith.constant 148 : index
    %92 = vector.load %arg8[%c0_51, %c148_52] : memref<16x656xf32, #tpu.memory_space<vmem>>, vector<16x400xf32>
    %93 = arith.maximumf %91, %92 : vector<16x400xf32>
    %c0_53 = arith.constant 0 : index
    %c168_54 = arith.constant 168 : index
    %94 = vector.load %arg8[%c0_53, %c168_54] : memref<16x656xf32, #tpu.memory_space<vmem>>, vector<16x400xf32>
    %95 = arith.maximumf %93, %94 : vector<16x400xf32>
    %cst_55 = arith.constant 0.000000e+00 : f32
    %96 = vector.shape_cast %2 : vector<1x400xi1> to vector<1x400xi1>
    %97 = vector.broadcast %96 : vector<1x400xi1> to vector<16x400xi1>
    %98 = vector.broadcast %cst_55 : f32 to vector<16x400xf32>
    %99 = arith.select %97, %95, %98 : vector<16x400xi1>, vector<16x400xf32>
    %c32 = arith.constant 32 : index
    %c128_56 = arith.constant 128 : index
    %100 = vector.load %arg9[%c32, %c128_56] : memref<48x656xf32, #tpu.memory_space<vmem>>, vector<16x400xf32>
    tpu.vector_store %arg9[%c32, %c128_56], %99 {strides = array<i32>} : memref<48x656xf32, #tpu.memory_space<vmem>>, vector<16x400xf32>,
    %c0_57 = arith.constant 0 : index
    %c107 = arith.constant 107 : index
    %101 = vector.load %arg9[%c0_57, %c107] : memref<48x656xf32, #tpu.memory_space<vmem>>, vector<48x400xf32>
    %c0_58 = arith.constant 0 : index
    %c0_59 = arith.constant 0 : index
    %102 = vector.load %arg10[%c0_58, %c0_59] : memref<432x400xf32, #tpu.memory_space<vmem>>, vector<48x400xf32>
    tpu.vector_store %arg10[%c0_58, %c0_59], %101 {strides = array<i32>} : memref<432x400xf32, #tpu.memory_space<vmem>>, vector<48x400xf32>,
    %c0_60 = arith.constant 0 : index
    %c108_61 = arith.constant 108 : index
    %103 = vector.load %arg9[%c0_60, %c108_61] : memref<48x656xf32, #tpu.memory_space<vmem>>, vector<48x400xf32>
    %c48 = arith.constant 48 : index
    %c0_62 = arith.constant 0 : index
    %104 = vector.load %arg10[%c48, %c0_62] : memref<432x400xf32, #tpu.memory_space<vmem>>, vector<48x400xf32>
    tpu.vector_store %arg10[%c48, %c0_62], %103 {strides = array<i32>} : memref<432x400xf32, #tpu.memory_space<vmem>>, vector<48x400xf32>,
    %c0_63 = arith.constant 0 : index
    %c109 = arith.constant 109 : index
    %105 = vector.load %arg9[%c0_63, %c109] : memref<48x656xf32, #tpu.memory_space<vmem>>, vector<48x400xf32>
    %c96 = arith.constant 96 : index
    %c0_64 = arith.constant 0 : index
    %106 = vector.load %arg10[%c96, %c0_64] : memref<432x400xf32, #tpu.memory_space<vmem>>, vector<48x400xf32>
    tpu.vector_store %arg10[%c96, %c0_64], %105 {strides = array<i32>} : memref<432x400xf32, #tpu.memory_space<vmem>>, vector<48x400xf32>,
    %c0_65 = arith.constant 0 : index
    %c127_66 = arith.constant 127 : index
    %107 = vector.load %arg9[%c0_65, %c127_66] : memref<48x656xf32, #tpu.memory_space<vmem>>, vector<48x400xf32>
    %c144 = arith.constant 144 : index
    %c0_67 = arith.constant 0 : index
    %108 = vector.load %arg10[%c144, %c0_67] : memref<432x400xf32, #tpu.memory_space<vmem>>, vector<48x400xf32>
    tpu.vector_store %arg10[%c144, %c0_67], %107 {strides = array<i32>} : memref<432x400xf32, #tpu.memory_space<vmem>>, vector<48x400xf32>,
    %c0_68 = arith.constant 0 : index
    %c128_69 = arith.constant 128 : index
    %109 = vector.load %arg9[%c0_68, %c128_69] : memref<48x656xf32, #tpu.memory_space<vmem>>, vector<48x400xf32>
    %c192 = arith.constant 192 : index
    %c0_70 = arith.constant 0 : index
    %110 = vector.load %arg10[%c192, %c0_70] : memref<432x400xf32, #tpu.memory_space<vmem>>, vector<48x400xf32>
    tpu.vector_store %arg10[%c192, %c0_70], %109 {strides = array<i32>} : memref<432x400xf32, #tpu.memory_space<vmem>>, vector<48x400xf32>,
    %c0_71 = arith.constant 0 : index
    %c129_72 = arith.constant 129 : index
    %111 = vector.load %arg9[%c0_71, %c129_72] : memref<48x656xf32, #tpu.memory_space<vmem>>, vector<48x400xf32>
    %c240 = arith.constant 240 : index
    %c0_73 = arith.constant 0 : index
    %112 = vector.load %arg10[%c240, %c0_73] : memref<432x400xf32, #tpu.memory_space<vmem>>, vector<48x400xf32>
    tpu.vector_store %arg10[%c240, %c0_73], %111 {strides = array<i32>} : memref<432x400xf32, #tpu.memory_space<vmem>>, vector<48x400xf32>,
    %c0_74 = arith.constant 0 : index
    %c147 = arith.constant 147 : index
    %113 = vector.load %arg9[%c0_74, %c147] : memref<48x656xf32, #tpu.memory_space<vmem>>, vector<48x400xf32>
    %c288 = arith.constant 288 : index
    %c0_75 = arith.constant 0 : index
    %114 = vector.load %arg10[%c288, %c0_75] : memref<432x400xf32, #tpu.memory_space<vmem>>, vector<48x400xf32>
    tpu.vector_store %arg10[%c288, %c0_75], %113 {strides = array<i32>} : memref<432x400xf32, #tpu.memory_space<vmem>>, vector<48x400xf32>,
    %c0_76 = arith.constant 0 : index
    %c148_77 = arith.constant 148 : index
    %115 = vector.load %arg9[%c0_76, %c148_77] : memref<48x656xf32, #tpu.memory_space<vmem>>, vector<48x400xf32>
    %c336 = arith.constant 336 : index
    %c0_78 = arith.constant 0 : index
    %116 = vector.load %arg10[%c336, %c0_78] : memref<432x400xf32, #tpu.memory_space<vmem>>, vector<48x400xf32>
    tpu.vector_store %arg10[%c336, %c0_78], %115 {strides = array<i32>} : memref<432x400xf32, #tpu.memory_space<vmem>>, vector<48x400xf32>,
    %c0_79 = arith.constant 0 : index
    %c149 = arith.constant 149 : index
    %117 = vector.load %arg9[%c0_79, %c149] : memref<48x656xf32, #tpu.memory_space<vmem>>, vector<48x400xf32>
    %c384 = arith.constant 384 : index
    %c0_80 = arith.constant 0 : index
    %118 = vector.load %arg10[%c384, %c0_80] : memref<432x400xf32, #tpu.memory_space<vmem>>, vector<48x400xf32>
    tpu.vector_store %arg10[%c384, %c0_80], %117 {strides = array<i32>} : memref<432x400xf32, #tpu.memory_space<vmem>>, vector<48x400xf32>,
    %c0_81 = arith.constant 0 : index
    %c0_82 = arith.constant 0 : index
    %119 = vector.load %arg5[%c0_81, %c0_82] : memref<32x432xf32, #tpu.memory_space<vmem>>, vector<32x432xf32>
    %c0_83 = arith.constant 0 : index
    %c0_84 = arith.constant 0 : index
    %120 = vector.load %arg10[%c0_83, %c0_84] : memref<432x400xf32, #tpu.memory_space<vmem>>, vector<432x400xf32>
    %cst_85 = arith.constant dense<0.000000e+00> : vector<32x400xf32>
    %121 = tpu.matmul %119, %120, %cst_85 {dimension_numbers = #tpu.dot_dimension_numbers<[1], [0], [0], [1], [0, 0, 1, 1], [], []>} : vector<32x432xf32>, vector<432x400xf32>, vector<32x400xf32> -> vector<32x400xf32>
    %122 = vector.shape_cast %121 : vector<32x400xf32> to vector<32x20x20xf32>
    %123 = vector.extract_strided_slice %122 {offsets = [0, 2, 2], sizes = [32, 16, 16], strides = [1, 1, 1]} : vector<32x20x20xf32> to vector<32x16x16xf32>
    %124 = vector.shape_cast %123 : vector<32x16x16xf32> to vector<32x256xf32>
    %c0_86 = arith.constant 0 : index
    %c0_87 = arith.constant 0 : index
    %125 = vector.load %arg6[%c0_86, %c0_87] : memref<32x1xf32, #tpu.memory_space<vmem>>, vector<32x1xf32>
    %126 = vector.broadcast %125 : vector<32x1xf32> to vector<32x256xf32>
    %127 = arith.addf %124, %126 : vector<32x256xf32>
    %128 = arith.negf %127 : vector<32x256xf32>
    %129 = math.exp %128 : vector<32x256xf32>
    %cst_88 = arith.constant 1.000000e+00 : f32
    %130 = vector.broadcast %cst_88 : f32 to vector<32x256xf32>
    %131 = arith.addf %130, %129 : vector<32x256xf32>
    %132 = arith.divf %130, %131 : vector<32x256xf32>
    %133 = arith.mulf %127, %132 : vector<32x256xf32>
    %c0_89 = arith.constant 0 : index
    %c0_90 = arith.constant 0 : index
    %c0_91 = arith.constant 0 : index
    %134 = vector.load %arg7[%c0_89, %c0_90, %c0_91] : memref<1x32x256xf32, #tpu.memory_space<vmem>>, vector<1x32x256xf32>
    %135 = vector.shape_cast %134 : vector<1x32x256xf32> to vector<32x256xf32>
    %136 = vector.shape_cast %133 : vector<32x256xf32> to vector<1x32x256xf32>
    tpu.vector_store %arg7[%c0_89, %c0_90, %c0_91], %136 {strides = array<i32>} : memref<1x32x256xf32, #tpu.memory_space<vmem>>, vector<1x32x256xf32>,
    return
  }
  func.func @transform_0(%arg0: i32) -> (i32, i32, i32) {
    %c0_i32 = arith.constant 0 : i32
    %c0_i32_0 = arith.constant 0 : i32
    %c0_i32_1 = arith.constant 0 : i32
    return %arg0, %c0_i32, %c0_i32_0 : i32, i32, i32
  }
  func.func @transform_1(%arg0: i32) -> (i32, i32) {
    %c0_i32 = arith.constant 0 : i32
    %c0_i32_0 = arith.constant 0 : i32
    %c0_i32_1 = arith.constant 0 : i32
    return %c0_i32, %c0_i32_0 : i32, i32
  }
  func.func @transform_2(%arg0: i32) -> (i32, i32) {
    %c0_i32 = arith.constant 0 : i32
    %c0_i32_0 = arith.constant 0 : i32
    %c0_i32_1 = arith.constant 0 : i32
    return %c0_i32, %c0_i32_0 : i32, i32
  }
  func.func @transform_3(%arg0: i32) -> (i32, i32) {
    %c0_i32 = arith.constant 0 : i32
    %c0_i32_0 = arith.constant 0 : i32
    %c0_i32_1 = arith.constant 0 : i32
    return %c0_i32, %c0_i32_0 : i32, i32
  }
  func.func @transform_4(%arg0: i32) -> (i32, i32) {
    %c0_i32 = arith.constant 0 : i32
    %c0_i32_0 = arith.constant 0 : i32
    %c0_i32_1 = arith.constant 0 : i32
    return %c0_i32, %c0_i32_0 : i32, i32
  }
  func.func @transform_5(%arg0: i32) -> (i32, i32) {
    %c0_i32 = arith.constant 0 : i32
    %c0_i32_0 = arith.constant 0 : i32
    %c0_i32_1 = arith.constant 0 : i32
    return %c0_i32, %c0_i32_0 : i32, i32
  }
  func.func @transform_6(%arg0: i32) -> (i32, i32, i32) {
    %c0_i32 = arith.constant 0 : i32
    %c0_i32_0 = arith.constant 0 : i32
    %c0_i32_1 = arith.constant 0 : i32
    return %arg0, %c0_i32, %c0_i32_0 : i32, i32, i32
  }
}

</mosaic_0001>

<bundles_post_ra>
// kernel: sppf_forward.1
= control target key start
LH: loop header
LB: loop body
LE: loop exit
PB: predicated region body
PF: predicated region fallthrough
CT: control target
= control target key end

     0   :  { %s7237_s21 = smov 0   ;;  %s12382_s0 = inlined_call_operand.vmem [shape: f32[2,4,400], index: 0, kind: input, shape index: {}]   ;;  %s12383_s1 = inlined_call_operand.vmem [shape: f32[1,400], index: 1, kind: input, shape index: {}]   ;;  %s12384_s2 = inlined_call_operand.vmem [shape: f32[16,4], index: 2, kind: input, shape index: {}]   ;;  %s12385_s3 = inlined_call_operand.vmem [shape: f32[16,1], index: 3, kind: input, shape index: {}]   ;;  %s12386_s4 = inlined_call_operand.vmem [shape: f32[32,432], index: 4, kind: input, shape index: {}]   ;;  %s12387_s5 = inlined_call_operand.vmem [shape: f32[32,1], index: 5, kind: input, shape index: {}]   ;;  %s12388_s6 = inlined_call_operand.vmem [shape: f32[2,32,256], index: 6, kind: output, shape index: {}]  }
   0x1 LB: > { %s6970_s22 = sadd.s32 4294967295, %s7161_s21   ;;  %p6974_p0 = scmp.ge.s32.totalorder %s7161_s21, 1  ;;  %s7161_s21 = sphi %s7237_s21, %s16_s21  }
   0x2   : > { %p212_p1 = scmp.lt.s32.totalorder %s7161_s21, 3 }
   0x4   : > { %p213_p2 = pnand %p6974_p0, %p212_p1 }
   0x6   : > { %216 = sbr.rel (%p213_p2) target bundleno = 2739 (0xab3), region = 44 }
   0xb   : > { %v256_v0 = vld [vmem:[%s12384_s2] sm:$0xff]  ;;  %v7163_v1 = vmov 3   ;;  %v7164_v2 = vmov 1   ;;  %v7165_v3 = vmov 2   ;;  %v257_v4 = vld [vmem:[%s12384_s2 + $0x8] sm:$0xff]  ;;  %v7166_v5 = vmov 0  }
   0xc   : > { %7064 = vset.pattern.permute.xlu0 %v7163_v1  ;;  %7062 = vset.pattern.permute.xlu1 %v7164_v2  ;;  %v398_v6 = vld [vmem:[%s12385_s3] sm:$0xff]  ;;  %v399_v7 = vld [vmem:[%s12385_s3 + $0x8] sm:$0xff]  ;;  %v625_v9 = vld [vmem:[#allocation2 + $0x30] sm:$0xff]  ;;  %p242_p3 = scmp.lt.s32.totalorder %s6970_s22, 1  ;;  %s7167_s7 = smov 127  }
   0xd   : > { %363 = vperm.xlu0 %7064, %v256_v0   ;;  %291 = vperm.xlu1 %7062, %v256_v0   ;;  %v7260_v8 = vld [vmem:[#allocation2] sm:$0xff]  ;;  %s7168_s8 = smov 108   ;;  %s7169_s15 = smov 21  }
   0xe   : > { %7063 = vset.pattern.permute.xlu2 %v7165_v3  ;;  %s12909_s22 = smov (!%p242_p3, %s6970_s22), 1  ;;  %s7170_s16 = smov 126  }
   0xf   : > { %327 = vperm.xlu2 %7063, %v256_v0   ;;  %s7013_s9 = sshll.u32 %s12909_s22, 4  ;;  %s7171_s17 = smov 125  }
  0x10   : > { %s246_s12 = scalar_lea.vmem %s12382_s0, %s7013_s9  ;;  %s7172_s18 = smov 124  }
  0x11   : > { %v254_v11 = vld [vmem:[%s246_s12] sm:$0xff]  ;;  %v255_v12 = vld [vmem:[%s246_s12 + $0x8] sm:$0xff]  ;;  %s7173_s19 = smov 20   ;;  %s7174_s20 = smov 19  }
  0x12   : > { %v298_v15 = vperm.slane %v254_v11, 1  ;;  %v299_v16 = vperm.slane %v254_v11, 5  ;;  %v300_v17 = vperm.slane %v255_v12, 1  ;;  %v301_v18 = vperm.slane %v255_v12, 5  ;;  %s7175_s23 = smov 1   ;;  %s7176_s24 = smov 2  }
  0x13   : > { %v270_v19 = vperm.slane %v254_v11, 0  ;;  %v271_v20 = vperm.slane %v254_v11, 4  ;;  %v272_v21 = vperm.slane %v255_v12, 0  ;;  %v273_v22 = vperm.slane %v255_v12, 4  ;;  %s7177_s25 = smov 109   ;;  %s7178_s26 = smov 88  }
  0x14   : > { %v334_v23 = vperm.slane %v254_v11, 2  ;;  %v335_v24 = vperm.slane %v254_v11, 6  ;;  %v336_v25 = vperm.slane %v255_v12, 2  ;;  %v337_v26 = vperm.slane %v255_v12, 6  ;;  %s7179_s27 = smov 68   ;;  %s7180_s28 = smov 48  }
  0x15   : > { %7065 = vset.pattern.permute.xlu0 %v7166_v5  ;;  %295 = vperm.xlu1 %7062, %v257_v4   ;;  %v370_v27 = vperm.slane %v254_v11, 3  ;;  %v371_v28 = vperm.slane %v254_v11, 7  ;;  %v372_v29 = vperm.slane %v255_v12, 3  ;;  %v373_v30 = vperm.slane %v255_v12, 7  ;;  %s7181_s29 = smov 40   ;;  %s7182_s30 = smov 107  }
  0x16   : > { %260 = vperm.xlu0 %7065, %v256_v0   ;;  %v306_v31 = vperm.slane %v298_v15, 1  ;;  %v307_v32 = vperm.slane %v299_v16, 1  ;;  %v308_v33 = vperm.slane %v300_v17, 1  ;;  %v309_v34 = vperm.slane %v301_v18, 1  ;;  %s7184_s9 = smov 28   ;;  %s7188_s10 = smov 56  }
  0x17   : > { %331 = vperm.xlu2 %7063, %v257_v4   ;;  %v278_v35 = vperm.slane %v270_v19, 0  ;;  %v279_v36 = vperm.slane %v271_v20, 0  ;;  %v280_v37 = vperm.slane %v272_v21, 0  ;;  %v281_v38 = vperm.slane %v273_v22, 0  ;;  %s7189_s11 = smov 76   ;;  %s7190_s12 = smov 16  }
  0x18   : > { %v342_v39 = vperm.slane %v334_v23, 2  ;;  %v343_v40 = vperm.slane %v335_v24, 2  ;;  %v7281_v41 = vperm.slane %v336_v25, 2  ;;  %v7283_v42 = vperm.slane %v337_v26, 2  ;;  %s7191_s13 = smov 64   ;;  %s7192_s14 = smov 84  }
  0x19   : > { %v378_v43 = vperm.slane %v370_v27, 3  ;;  %v7285_v44 = vperm.slane %v371_v28, 3  ;;  %v7287_v45 = vperm.slane %v372_v29, 3  ;;  %v7289_v46 = vperm.slane %v373_v30, 3 }
  0x1d   : > { %7066 = vset.pattern.permute.xlu1 %v7163_v1 }
  0x1e   : > { %265 = vperm.xlu0 %7065, %v257_v4   ;;  %367 = vperm.xlu1 %7066, %v257_v4  }
  0x1f   : > { %7067 = vset.pattern.permute.xlu2 %v7166_v5 }
  0x20   : > { %402 = vperm.xlu2 %7067, %v398_v6  }
  0x26   : > { %7068 = vset.pattern.permute.xlu1 %v7166_v5 }
  0x27   : > { %407 = vperm.xlu1 %7068, %v399_v7  }
  0x28   : > { %640 = vrot.lane.b32.xlu2 %v7260_v8, %s7167_s7 }
  0x2f   : > { %650 = vrot.lane.b32.xlu1 %v625_v9, %s7167_s7 }
  0x30   : > { %897 = vrot.lane.b32.xlu2 %v625_v9, %s7168_s8 }
  0x37   : > { %889 = vrot.lane.b32.xlu1 %v7260_v8, %s7168_s8 }
  0x38   : > { %1140 = vrot.lane.b32.xlu2 %v7260_v8, %s7167_s7 }
  0x3f   : > { %1150 = vrot.lane.b32.xlu1 %v625_v9, %s7167_s7 }
  0x40   : > { %1392 = vrot.lane.b32.xlu2 %v625_v9, %s7168_s8 }
  0x47   : > { %1384 = vrot.lane.b32.xlu1 %v7260_v8, %s7168_s8 }
  0x69   : > { %v328_v10 = vpop.permute.xlu2 %327 }
  0x6a   : > { %v346_v58 = vmul.f32 %v342_v39, %v328_v10  ;;  %v347_v59 = vmul.f32 %v343_v40, %v328_v10  ;;  %v348_v60 = vmul.f32 %v7281_v41, %v328_v10  ;;  %v349_v61 = vmul.f32 %v7283_v42, %v328_v10 }
  0x71   : > { %v332_v47 = vpop.permute.xlu2 %331 }
  0x72   : > { %v351_v15 = vmul.f32 %v343_v40, %v332_v47 }
  0x7a   : > { %v403_v16 = vpop.permute.xlu2 %402 }
  0x7f   : > { %v364_v13 = vpop.permute.xlu0 %363  ;;  %v292_v14 = vpop.permute.xlu1 %291 }
  0x80   : > { %v310_v48 = vmul.f32 %v306_v31, %v292_v14  ;;  %v311_v49 = vmul.f32 %v307_v32, %v292_v14  ;;  %v312_v50 = vmul.f32 %v308_v33, %v292_v14  ;;  %v313_v51 = vmul.f32 %v309_v34, %v292_v14 }
  0x81   : > { %v382_v2 = vmul.f32 %v378_v43, %v364_v13  ;;  %v383_v3 = vmul.f32 %v7285_v44, %v364_v13  ;;  %v384_v4 = vmul.f32 %v7287_v45, %v364_v13  ;;  %v385_v6 = vmul.f32 %v7289_v46, %v364_v13 }
  0x82   : > { %v350_v14 = vmul.f32 %v342_v39, %v332_v47 }
  0x87   : > { %v296_v52 = vpop.permute.xlu1 %295 }
  0x88   : > { %v261_v53 = vpop.permute.xlu0 %260  ;;  %v314_v20 = vmul.f32 %v306_v31, %v296_v52  ;;  %v315_v21 = vmul.f32 %v307_v32, %v296_v52  ;;  %v316_v22 = vmul.f32 %v308_v33, %v296_v52  ;;  %v317_v23 = vmul.f32 %v309_v34, %v296_v52 }
  0x89   : > { %v282_v54 = vmul.f32 %v278_v35, %v261_v53  ;;  %v283_v55 = vmul.f32 %v279_v36, %v261_v53  ;;  %v284_v56 = vmul.f32 %v280_v37, %v261_v53  ;;  %v285_v57 = vmul.f32 %v281_v38, %v261_v53 }
  0x8b   : > { %v318_v62 = vadd.f32 %v310_v48, %v282_v54  ;;  %v319_v63 = vadd.f32 %v311_v49, %v283_v55  ;;  %v320_v0 = vadd.f32 %v312_v50, %v284_v56  ;;  %v321_v1 = vadd.f32 %v313_v51, %v285_v57 }
  0x8c   : > { %v353_v51 = vmul.f32 %v7283_v42, %v332_v47 }
  0x8d   : > { %v354_v7 = vadd.f32 %v346_v58, %v318_v62  ;;  %v355_v9 = vadd.f32 %v347_v59, %v319_v63  ;;  %v356_v11 = vadd.f32 %v348_v60, %v320_v0  ;;  %v357_v12 = vadd.f32 %v349_v61, %v321_v1  ;;  %v7323_v59 = vld [vmem:[#allocation3] sm:$0xff] }
  0x8e   : > { %1642 = vrot.lane.b32.xlu2 %v7323_v59, %s7169_s15 }
  0x8f   : > { %v390_v17 = vadd.f32 %v382_v2, %v354_v7  ;;  %v391_v10 = vadd.f32 %v383_v3, %v355_v9  ;;  %v392_v18 = vadd.f32 %v384_v4, %v356_v11  ;;  %v393_v19 = vadd.f32 %v385_v6, %v357_v12 }
  0x90   : > { %v266_v24 = vpop.permute.xlu0 %265  ;;  %v368_v25 = vpop.permute.xlu1 %367 }
  0x91   : > { %v286_v26 = vmul.f32 %v278_v35, %v266_v24  ;;  %v287_v27 = vmul.f32 %v279_v36, %v266_v24  ;;  %v288_v13 = vmul.f32 %v280_v37, %v266_v24  ;;  %v289_v28 = vmul.f32 %v281_v38, %v266_v24 }
  0x92   : > { %v7299_v29 = vadd.f32 %v403_v16, %v390_v17  ;;  %v7301_v30 = vadd.f32 %v403_v16, %v391_v10  ;;  %v7303_v39 = vadd.f32 %v403_v16, %v392_v18  ;;  %v7305_v40 = vadd.f32 %v403_v16, %v393_v19 }
  0x93   : > { %v322_v48 = vadd.f32 %v314_v20, %v286_v26  ;;  %v323_v49 = vadd.f32 %v315_v21, %v287_v27  ;;  %v324_v31 = vadd.f32 %v316_v22, %v288_v13  ;;  %v325_v32 = vadd.f32 %v317_v23, %v289_v28 }
  0x94   : > { %v6979_v33 = vmul.f32 -1.442695, %v7299_v29  ;;  %v6980_v34 = vmul.f32 -1.442695, %v7301_v30  ;;  %v6981_v35 = vmul.f32 -1.442695, %v7303_v39  ;;  %v386_v36 = vmul.f32 %v378_v43, %v368_v25 }
  0x95   : > { %v352_v37 = vmul.f32 %v7281_v41, %v332_v47  ;;  %v6982_v38 = vmul.f32 -1.442695, %v7305_v40  ;;  %v387_v50 = vmul.f32 %v7285_v44, %v368_v25  ;;  %v358_v52 = vadd.f32 %v350_v14, %v322_v48  ;;  %v252_v43 = vld [vmem:[%s12383_s1] sm:$0xf]  ;;  %v7321_v47 = vld [vmem:[#allocation3 + $0x30] sm:$0xff] }
  0x96   : > { %7069 = vpow2.f32 %v6979_v33  ;;  %v359_v53 = vadd.f32 %v351_v15, %v323_v49  ;;  %v388_v54 = vmul.f32 %v7287_v45, %v368_v25  ;;  %v389_v55 = vmul.f32 %v7289_v46, %v368_v25  ;;  %v7325_v45 = vld [vmem:[#allocation3 + $0x60] sm:$0xff]  ;;  %1650 = vrot.lane.b32.xlu0 %v7321_v47, %s7169_s15 }
  0x97   : > { %7071 = vpow2.f32 %v6980_v34  ;;  %v360_v41 = vadd.f32 %v352_v37, %v324_v31  ;;  %v361_v56 = vadd.f32 %v353_v51, %v325_v32  ;;  %v394_v57 = vadd.f32 %v386_v36, %v358_v52  ;;  %1658 = vrot.lane.b32.xlu1 %v7325_v45, %s7169_s15 }
  0x98   : > { %7073 = vpow2.f32 %v6981_v35  ;;  %v395_v58 = vadd.f32 %v387_v50, %v359_v53  ;;  %vm253_vm0 = vcmp.ne.f32.partialorder %v252_v43, 0.0  ;;  %v12481_v31 = vmov 0 }
  0x99   : > { %7075 = vpow2.f32 %v6982_v38  ;;  %v408_v44 = vpop.permute.xlu1 %407  ;;  %v396_v60 = vadd.f32 %v388_v54, %v360_v41  ;;  %v397_v61 = vadd.f32 %v389_v55, %v361_v56  ;;  %v578_v3 = vsel %vm253_vm0, 1, %v7166_v5 }
  0x9a   : > { %v7319_v42 = vadd.f32 %v408_v44, %v394_v57  ;;  %v7334_v1 = vadd.f32 %v408_v44, %v395_v58  ;;  %v579_v14 = vperm.slane %v578_v3, 0  ;;  %v580_v15 = vperm.slane %v578_v3, 1 }
  0x9b   : > { %v7348_v11 = vadd.f32 %v408_v44, %v396_v60  ;;  %v7350_v12 = vadd.f32 %v408_v44, %v397_v61  ;;  %v581_v16 = vperm.slane %v578_v3, 2  ;;  %v582_v18 = vperm.slane %v578_v3, 3 }
  0x9c   : > { %v7070_v46 = vpop.eup %7069  ;;  %v6983_v62 = vmul.f32 -1.442695, %v7319_v42  ;;  %v6984_v5 = vmul.f32 -1.442695, %v7334_v1  ;;  %vm7372_vm5 = vcmp.eq.s32.totalorder %v579_v14, 1  ;;  %vm7382_vm7 = vcmp.eq.s32.totalorder %v580_v15, 1 }
  0x9d   : > { %v7072_v63 = vpop.eup %7071  ;;  %v7332_v0 = vadd.f32 1.0, %v7070_v46  ;;  %v6985_v23 = vmul.f32 -1.442695, %v7348_v11  ;;  %v6986_v24 = vmul.f32 -1.442695, %v7350_v12  ;;  %v12482_v31 = vsel %vm7372_vm5, 4294967295, %v12481_v31 }
  0x9e   : > { %v7074_v2 = vpop.eup %7073  ;;  %v7340_v4 = vadd.f32 1.0, %v7072_v63  ;;  %7077 = vpow2.f32 %v6983_v62  ;;  %12483 = vst [vmem:[#allocation5_spill] sm:$0xff] %v12482_v31  ;;  %v12486_v36 = vmov 0  ;;  %vm7392_vm10 = vcmp.eq.s32.totalorder %v581_v16, 1 }
  0x9f   : > { %v7076_v6 = vpop.eup %7075  ;;  %v7342_v7 = vadd.f32 1.0, %v7074_v2  ;;  %7079 = vrcp.f32 %v7332_v0  ;;  %v459_v17 = vand.u32 2147483647, %v7332_v0  ;;  %v461_v10 = vand.u32 2147483648, %v7332_v0 }
  0xa0   : > { %v7345_v9 = vadd.f32 1.0, %v7076_v6  ;;  %7081 = vrcp.f32 %v7340_v4  ;;  %v474_v19 = vand.u32 2147483647, %v7340_v4  ;;  %v476_v20 = vand.u32 2147483648, %v7340_v4 }
  0xa1   : > { %7083 = vrcp.f32 %v7342_v7  ;;  %v489_v22 = vand.u32 2147483647, %v7342_v7  ;;  %vm455_vm1 = vweird.f32 %v7332_v0  ;;  %vm470_vm2 = vweird.f32 %v7340_v4 }
  0xa2   : > { %7085 = vrcp.f32 %v7345_v9  ;;  %vm7367_vm3 = vcmp.eq.f32.partialorder %v459_v17, 8.507059e+37  ;;  %v462_v48 = vor.u32 1.1754944e-38, %v461_v10  ;;  %vm7377_vm6 = vcmp.eq.f32.partialorder %v474_v19, 8.507059e+37 }
  0xa3   : > { %7087 = vpow2.f32 %v6984_v5  ;;  %v477_v34 = vor.u32 1.1754944e-38, %v476_v20  ;;  %v491_v35 = vand.u32 2147483648, %v7342_v7  ;;  %v12487_v36 = vsel %vm7382_vm7, 4294967295, %v12486_v36 }
  0xa4   : > { %v7078_v21 = vpop.eup %7077  ;;  %12488 = vst [vmem:[#allocation6_spill] sm:$0xff] %v12487_v36  ;;  %vm7387_vm8 = vcmp.eq.f32.partialorder %v489_v22, 8.507059e+37  ;;  %7089 = vpow2.f32 %v6985_v23  ;;  %v12491_v52 = vmov 0  ;;  %v504_v54 = vand.u32 2147483647, %v7345_v9 }
  0xa5   : > { %v7080_v25 = vpop.eup %7079  ;;  %v7364_v26 = vadd.f32 1.0, %v7078_v21  ;;  %v12492_v52 = vsel %vm7392_vm10, 4294967295, %v12491_v52  ;;  %v506_v55 = vand.u32 2147483648, %v7345_v9  ;;  %vm7400_vm12 = vcmp.eq.s32.totalorder %v582_v18, 1 }
  0xa6   : > { %v7082_v27 = vpop.eup %7081  ;;  %v451_v13 = vmul.f32 %v7080_v25, %v7332_v0  ;;  %12493 = vst [vmem:[#allocation7_spill] sm:$0xff] %v12492_v52  ;;  %vm456_vm11 = vweird.f32 %v7080_v25  ;;  %v12494_v44 = vmov 0  ;;  %v492_v2 = vor.u32 1.1754944e-38, %v491_v35 }
  0xa7   : > { %v7084_v49 = vpop.eup %7083  ;;  %v466_v32 = vmul.f32 %v7082_v27, %v7340_v4  ;;  %7091 = vrcp.f32 %v7364_v26  ;;  %v12495_v44 = vsel %vm7400_vm12, 4294967295, %v12494_v44  ;;  %vm471_vm13 = vweird.f32 %v7082_v27  ;;  %vm457_vm0 = vmor %vm455_vm1, %vm456_vm11 }
  0xa8   : > { %v452_v37 = vsub.f32 1.0, %v451_v13  ;;  %v481_v38 = vmul.f32 %v7084_v49, %v7342_v7  ;;  %v7086_v51 = vpop.eup %7085  ;;  %12496 = vst [vmem:[#allocation8_spill] sm:$0xff] %v12495_v44  ;;  %vm486_vm14 = vweird.f32 %v7084_v49  ;;  %7093 = vpow2.f32 %v6986_v24  ;;  %vm472_vm15 = vmor %vm470_vm2, %vm471_vm13 }
  0xa9   : > { %v467_v53 = vsub.f32 1.0, %v466_v32  ;;  %v496_v56 = vmul.f32 %v7086_v51, %v7345_v9  ;;  %v7088_v57 = vpop.eup %7087  ;;  %vm7408_vm9 = vcmp.eq.f32.partialorder %v504_v54, 8.507059e+37  ;;  %v507_v6 = vor.u32 1.1754944e-38, %v506_v55 }
  0xaa   : > { %v453_v43 = vmul.f32 %v7080_v25, %v452_v37  ;;  %v482_v41 = vsub.f32 1.0, %v481_v38  ;;  %v7404_v62 = vadd.f32 1.0, %v7088_v57  ;;  %v7090_v14 = vpop.eup %7089  ;;  %vm501_vm4 = vweird.f32 %v7086_v51 }
  0xab   : > { %v468_v58 = vmul.f32 %v7082_v27, %v467_v53  ;;  %v497_v61 = vsub.f32 1.0, %v496_v56  ;;  %vm12499_vm1 = vweird.f32 %v7342_v7  ;;  %v521_v18 = vand.u32 2147483648, %v7364_v26 }
  0xac   : > { %v454_v46 = vadd.f32 %v7080_v25, %v453_v43  ;;  %v483_v60 = vmul.f32 %v7084_v49, %v482_v41  ;;  %vm487_vm11 = vmor %vm12499_vm1, %vm486_vm14  ;;  %7095 = vrcp.f32 %v7404_v62  ;;  %vm12500_vm2 = vweird.f32 %v7345_v9 }
  0xad   : > { %v469_v63 = vadd.f32 %v7082_v27, %v468_v58  ;;  %v498_v16 = vmul.f32 %v7086_v51, %v497_v61  ;;  %v7092_v17 = vpop.eup %7091  ;;  %v7430_v24 = vadd.f32 1.0, %v7090_v14  ;;  %v522_v54 = vor.u32 1.1754944e-38, %v521_v18 }
  0xae   : > { %v458_v5 = vsel %vm457_vm0, %v7080_v25, %v454_v46  ;;  %v484_v15 = vadd.f32 %v7084_v49, %v483_v60  ;;  %v7094_v22 = vpop.eup %7093  ;;  %v511_v25 = vmul.f32 %v7092_v17, %v7364_v26  ;;  %v536_v41 = vand.u32 2147483648, %v7404_v62 }
  0xaf   : > { %v463_v0 = vsel %vm7367_vm3, %v462_v48, %v458_v5  ;;  %v473_v10 = vsel %vm472_vm15, %v7082_v27, %v469_v63  ;;  %v499_v20 = vadd.f32 %v7086_v51, %v498_v16  ;;  %vm502_vm3 = vmor %vm12500_vm2, %vm501_vm4  ;;  %vm516_vm4 = vweird.f32 %v7092_v17 }
  0xb0   : > { %v478_v4 = vsel %vm7377_vm6, %v477_v34, %v473_v10  ;;  %v488_v19 = vsel %vm487_vm11, %v7084_v49, %v484_v15  ;;  %v570_v21 = vmul.f32 %v463_v0, %v7299_v29  ;;  %v512_v48 = vsub.f32 1.0, %v511_v25 }
  0xb1   : > { %v493_v23 = vsel %vm7387_vm8, %v492_v2, %v488_v19  ;;  %v571_v7 = vmul.f32 %v478_v4, %v7301_v30  ;;  %v503_v27 = vsel %vm502_vm3, %v7086_v51, %v499_v20  ;;  %v7465_v34 = vadd.f32 1.0, %v7094_v22 }
  0xb2   : > { %v572_v13 = vmul.f32 %v493_v23, %v7303_v39  ;;  %v7436_v28 = vsel %vm7372_vm5, %v570_v21, 0.0  ;;  %v7440_v29 = vsel %vm7372_vm5, %v570_v21, -inf  ;;  %v508_v9 = vsel %vm7408_vm9, %v507_v6, %v503_v27  ;;  %v7096_v35 = vpop.eup %7095 }
  0xb3   : > { %12501 = vst [vmem:[#allocation9_spill] sm:$0xff] %v7436_v28  ;;  %v7446_v30 = vsel %vm7382_vm7, %v571_v7, 0.0  ;;  %v7451_v39 = vsel %vm7382_vm7, %v571_v7, -inf  ;;  %642 = vrot.lane.b32.xlu0 %v7440_v29, %s7167_s7  ;;  %v573_v49 = vmul.f32 %v508_v9, %v7305_v40  ;;  %v513_v37 = vmul.f32 %v7092_v17, %v512_v48 }
  0xb4   : > { %595 = vst [vmem:[#allocation3 + $0x8] sm:$0xff] %v7436_v28  ;;  %v7458_v32 = vsel %vm7392_vm10, %v572_v13, 0.0  ;;  %v7463_v33 = vsel %vm7392_vm10, %v572_v13, -inf  ;;  %644 = vrot.lane.b32.xlu1 %v7451_v39, %s7167_s7  ;;  %v519_v40 = vand.u32 2147483647, %v7364_v26  ;;  %7097 = vrcp.f32 %v7430_v24 }
  0xb5   : > { %596 = vst [vmem:[#allocation3 + $0x10] sm:$0xff] %v7446_v30  ;;  %646 = vrot.lane.b32.xlu2 %v7463_v33, %s7167_s7  ;;  %v590_v38 = vsel %vm7400_vm12, %v573_v49, 0.0  ;;  %v607_v50 = vsel %vm7400_vm12, %v573_v49, -inf  ;;  %v526_v51 = vmul.f32 %v7096_v35, %v7404_v62  ;;  %vm12502_vm6 = vcmask 130048  }
  0xb6   : > { %597 = vst [vmem:[#allocation3 + $0x18] sm:$0xff] %v7458_v32  ;;  %v514_v53 = vadd.f32 %v7092_v17, %v513_v37  ;;  %vm515_vm8 = vweird.f32 %v7364_v26  ;;  %vm12503_vm9 = vmmov %vm12502_vm6  ;;  %7099 = vrcp.f32 %v7465_v34  ;;  %vm520_vm14 = vcmp.eq.f32.partialorder %v519_v40, 8.507059e+37 }
  0xb7   : > { %599 = vst.msk [vmem:[#allocation3 + $0x20] sm:$0xff] %vm12502_vm6, %v590_v38  ;;  %vm517_vm13 = vmor %vm515_vm8, %vm516_vm4  ;;  %v527_v55 = vsub.f32 1.0, %v526_v51  ;;  %vm531_vm15 = vweird.f32 %v7096_v35  ;;  %v534_v58 = vand.u32 2147483647, %v7404_v62  ;;  %vm530_vm0 = vweird.f32 %v7404_v62 }
  0xb8   : > { %615 = vst.msk [vmem:[#allocation2 + $0x20] sm:$0xff] %vm12503_vm9, %v607_v50  ;;  %v518_v43 = vsel %vm517_vm13, %v7092_v17, %v514_v53  ;;  %vm532_vm1 = vmor %vm530_vm0, %vm531_vm15  ;;  %v537_v6 = vor.u32 1.1754944e-38, %v536_v41  ;;  %v551_v0 = vand.u32 2147483648, %v7430_v24  ;;  %v549_v19 = vand.u32 2147483647, %v7430_v24  ;;  %v7567_v41 = vpop.permute.xlu2 %640 }
  0xb9   : > { %v523_v56 = vsel %vm520_vm14, %v522_v54, %v518_v43  ;;  %v528_v57 = vmul.f32 %v7096_v35, %v527_v55  ;;  %vm535_vm11 = vcmp.eq.f32.partialorder %v534_v58, 8.507059e+37  ;;  %vm12504_vm2 = vmmov %vm12502_vm6  ;;  %vm545_vm4 = vweird.f32 %v7430_v24  ;;  %v7587_v58 = vpop.permute.xlu1 %650 }
  0xba   : > { %v7098_v60 = vpop.eup %7097  ;;  %v574_v26 = vmul.f32 %v523_v56, %v7319_v42  ;;  %v566_v23 = vand.u32 2147483648, %v7465_v34  ;;  %v552_v25 = vor.u32 1.1754944e-38, %v551_v0  ;;  %v564_v13 = vand.u32 2147483647, %v7465_v34  ;;  %vm12506_vm0 = vmmov %vm12504_vm2 }
  0xbb   : > { %v2276_v46 = vld [vmem:[#allocation3 + $0x8] sm:$0xff]  ;;  %v529_v63 = vadd.f32 %v7096_v35, %v528_v57  ;;  %v541_v2 = vmul.f32 %v7098_v60, %v7430_v24  ;;  %vm546_vm3 = vweird.f32 %v7098_v60  ;;  %vm550_vm9 = vcmp.eq.f32.partialorder %v549_v19, 8.507059e+37 }
  0xbc   : > { %2300 = vst [vmem:[#allocation4 + $0x300] sm:$0xff] %v2276_v46  ;;  %v2277_v61 = vld [vmem:[#allocation3 + $0x10] sm:$0xff]  ;;  %v7490_v14 = vsel %vm7372_vm5, %v574_v26, 0.0  ;;  %v7494_v5 = vsel %vm7372_vm5, %v574_v26, -inf  ;;  %v7100_v42 = vpop.eup %7099  ;;  %vm547_vm6 = vmor %vm545_vm4, %vm546_vm3  ;;  %vm560_vm13 = vweird.f32 %v7465_v34  ;;  %v567_v49 = vor.u32 1.1754944e-38, %v566_v23 }
  0xbd   : > { %2301 = vst [vmem:[#allocation4 + $0x308] sm:$0xff] %v2277_v61  ;;  %v2278_v3 = vld [vmem:[#allocation3 + $0x18] sm:$0xff]  ;;  %v533_v15 = vsel %vm532_vm1, %v7096_v35, %v529_v63  ;;  %v542_v16 = vsub.f32 1.0, %v541_v2  ;;  %652 = vrot.lane.b32.xlu2 %v7494_v5, %s7167_s7  ;;  %v556_v10 = vmul.f32 %v7100_v42, %v7465_v34  ;;  %vm561_vm8 = vweird.f32 %v7100_v42  ;;  %vm12507_vm1 = vmmov %vm12506_vm0  ;;  %v7615_v63 = vld [vmem:[#allocation3 + $0xc0] sm:$0xff] }
  0xbe   : > { %2302 = vst [vmem:[#allocation4 + $0x310] sm:$0xff] %v2278_v3  ;;  %v2279_v62 = vld [vmem:[#allocation3 + $0x20] sm:$0xff]  ;;  %v538_v17 = vsel %vm535_vm11, %v537_v6, %v533_v15  ;;  %vm562_vm14 = vmor %vm560_vm13, %vm561_vm8  ;;  %vm565_vm15 = vcmp.eq.f32.partialorder %v564_v13, 8.507059e+37  ;;  %v7627_v6 = vld [vmem:[#allocation3 + $0xf0] sm:$0xff]  ;;  %vm12427_vm3 = vcmask 1039360   ;;  %vm705_vm4 = vcmask 1031168  }
  0xbf   : > { %600 = vst [vmem:[#allocation3 + $0x38] sm:$0xff] %v7490_v14  ;;  %v7501_v18 = vld [vmem:[#allocation2 + $0x20] sm:$0xff]  ;;  %v543_v4 = vmul.f32 %v7098_v60, %v542_v16  ;;  %v575_v20 = vmul.f32 %v538_v17, %v7334_v1  ;;  %v557_v21 = vsub.f32 1.0, %v556_v10  ;;  %vm12508_vm11 = vmmov %vm12506_vm0  ;;  %v7647_v17 = vld [vmem:[#allocation3 + $0x90] sm:$0xff]  ;;  %vm12403_vm8 = vcmask 1014784  }
  0xc0   : > { %2303 = vst.msk [vmem:[#allocation4 + $0x318] sm:$0xff] %vm12504_vm2, %v2279_v62  ;;  %648 = vrot.lane.b32.xlu0 %v7501_v18, %s7167_s7  ;;  %v7575_v56 = vpop.permute.xlu2 %897  ;;  %vm12517_vm2 = vmmov %vm12506_vm0 }
  0xc1   : > { %v544_v22 = vadd.f32 %v7098_v60, %v543_v4  ;;  %v7512_v7 = vsel %vm7382_vm7, %v575_v20, 0.0  ;;  %v558_v27 = vmul.f32 %v7100_v42, %v557_v21  ;;  %v7520_v40 = vsel %vm7382_vm7, %v575_v20, -inf  ;;  %12509 = vst [vmem:[#allocation11_spill] sm:$0xff] %v7575_v56  ;;  %vm12520_vm13 = vmmov %vm12506_vm0 }
  0xc2   : > { %601 = vst [vmem:[#allocation3 + $0x40] sm:$0xff] %v7512_v7 }
  0xc3   : > { %v548_v1 = vsel %vm547_vm6, %v7098_v60, %v544_v22  ;;  %v559_v48 = vadd.f32 %v7100_v42, %v558_v27  ;;  %v7601_v60 = vpop.permute.xlu1 %889  ;;  %vm12404_vm6 = vcmask 1022976  }
  0xc4   : > { %v553_v9 = vsel %vm550_vm9, %v552_v25, %v548_v1  ;;  %12512 = vst [vmem:[#allocation14_spill] sm:$0xff] %v7601_v60  ;;  %vm1690_vm9 = vcmask 171008  }
  0xc5   : > { %v576_v35 = vmul.f32 %v553_v9, %v7348_v11  ;;  %v563_v37 = vsel %vm562_vm14, %v7100_v42, %v559_v48  ;;  %vm12521_vm14 = vmmov %vm12506_vm0 }
  0xc6   : > { %v2280_v24 = vld [vmem:[#allocation3 + $0x38] sm:$0xff]  ;;  %v568_v38 = vsel %vm565_vm15, %v567_v49, %v563_v37  ;;  %vm1853_vm15 = vcmask 162816  }
  0xc7   : > { %2304 = vst [vmem:[#allocation4 + $0x320] sm:$0xff] %v2280_v24  ;;  %v7524_v50 = vsel %vm7392_vm10, %v576_v35, 0.0  ;;  %v7528_v34 = vsel %vm7392_vm10, %v576_v35, -inf  ;;  %v577_v11 = vmul.f32 %v568_v38, %v7350_v12 }
  0xc8   : > { %12505 = vst [vmem:[#allocation10_spill] sm:$0xff] %v7524_v50  ;;  %654 = vrot.lane.b32.xlu0 %v7520_v40, %s7167_s7  ;;  %656 = vrot.lane.b32.xlu1 %v7528_v34, %s7167_s7  ;;  %v7585_v57 = vpop.permute.xlu2 %1140 }
  0xc9   : > { %602 = vst [vmem:[#allocation3 + $0x48] sm:$0xff] %v7524_v50  ;;  %v2281_v51 = vld [vmem:[#allocation3 + $0x40] sm:$0xff]  ;;  %v594_v53 = vsel %vm7400_vm12, %v577_v11, 0.0  ;;  %v611_v54 = vsel %vm7400_vm12, %v577_v11, -inf }
  0xca   : > { %2305 = vst [vmem:[#allocation4 + $0x328] sm:$0xff] %v2281_v51 }
  0xcb   : > { %603 = vst.msk [vmem:[#allocation3 + $0x50] sm:$0xff] %vm12506_vm0, %v594_v53  ;;  %v7611_v61 = vpop.permute.xlu1 %1150 }
  0xcc   : > { %619 = vst.msk [vmem:[#allocation2 + $0x50] sm:$0xff] %vm12507_vm1, %v611_v54  ;;  %vm12525_vm1 = vmmov %vm12506_vm0 }
  0xcd   : > { %12510 = vst [vmem:[#allocation12_spill] sm:$0xff] %v7585_v57 }
  0xce   : > { %12513 = vst [vmem:[#allocation15_spill] sm:$0xff] %v7611_v61 }
  0xd0   : > { %689 = vrot.lane.b32.xlu0 %v7440_v29, %s7170_s16  ;;  %v2282_v12 = vld [vmem:[#allocation3 + $0x48] sm:$0xff]  ;;  %691 = vrot.lane.b32.xlu1 %v7451_v39, %s7170_s16  ;;  %v7595_v46 = vpop.permute.xlu2 %1392 }
  0xd1   : > { %2306 = vst [vmem:[#allocation4 + $0x330] sm:$0xff] %v2282_v12 }
  0xd2   : > { %v2283_v55 = vld [vmem:[#allocation3 + $0x50] sm:$0xff]  ;;  %12511 = vst [vmem:[#allocation13_spill] sm:$0xff] %v7595_v46  ;;  %v7749_v46 = vld [vmem:[#allocation3 + $0x20] sm:$0xff] }
  0xd3   : > { %v7546_v43 = vld [vmem:[#allocation2 + $0x50] sm:$0xff]  ;;  %2307 = vst.msk [vmem:[#allocation4 + $0x338] sm:$0xff] %vm12508_vm11, %v2283_v55  ;;  %v7625_v3 = vpop.permute.xlu1 %1384  ;;  %vm2016_vm11 = vcmask 154624  }
  0xd4   : > { %658 = vrot.lane.b32.xlu2 %v7546_v43, %s7167_s7  ;;  %12514 = vst [vmem:[#allocation16_spill] sm:$0xff] %v7625_v3 }
  0xd5   : > { %12516 = vst [vmem:[#allocation18_spill] sm:$0xff] %v7749_v46 }
  0xd8   : > { %695 = vrot.lane.b32.xlu0 %v7501_v18, %s7170_s16  ;;  %697 = vrot.lane.b32.xlu1 %v7494_v5, %s7170_s16 }
  0xdc   : > { %693 = vrot.lane.b32.xlu2 %v7463_v33, %s7170_s16 }
  0xe0   : > { %701 = vrot.lane.b32.xlu0 %v7528_v34, %s7170_s16  ;;  %703 = vrot.lane.b32.xlu1 %v7546_v43, %s7170_s16 }
  0xe4   : > { %699 = vrot.lane.b32.xlu2 %v7520_v40, %s7170_s16 }
  0xe8   : > { %734 = vrot.lane.b32.xlu0 %v7451_v39, %s7171_s17  ;;  %736 = vrot.lane.b32.xlu1 %v7463_v33, %s7171_s17  ;;  %v7609_v26 = vpop.permute.xlu2 %1642 }
  0xec   : > { %732 = vrot.lane.b32.xlu2 %v7440_v29, %s7171_s17 }
  0xf0   : > { %740 = vrot.lane.b32.xlu0 %v7494_v5, %s7171_s17  ;;  %742 = vrot.lane.b32.xlu1 %v7520_v40, %s7171_s17 }
  0xf4   : > { %738 = vrot.lane.b32.xlu2 %v7501_v18, %s7171_s17 }
  0xf8   : > { %746 = vrot.lane.b32.xlu0 %v7546_v43, %s7171_s17  ;;  %775 = vrot.lane.b32.xlu1 %v7440_v29, %s7172_s18 }
  0xfc   : > { %744 = vrot.lane.b32.xlu2 %v7528_v34, %s7171_s17 }
 0x100   : > { %779 = vrot.lane.b32.xlu0 %v7463_v33, %s7172_s18  ;;  %781 = vrot.lane.b32.xlu1 %v7501_v18, %s7172_s18 }
 0x104   : > { %777 = vrot.lane.b32.xlu2 %v7451_v39, %s7172_s18 }
 0x108   : > { %785 = vrot.lane.b32.xlu0 %v7520_v40, %s7172_s18  ;;  %787 = vrot.lane.b32.xlu1 %v7528_v34, %s7172_s18  ;;  %v7629_v42 = vpop.permute.xlu0 %1650 }
 0x109   : > { %v7639_v16 = vpop.permute.xlu1 %1658 }
 0x10a   : > { %12515 = vst [vmem:[#allocation17_spill] sm:$0xff] %v7639_v16 }
 0x10c   : > { %783 = vrot.lane.b32.xlu2 %v7494_v5, %s7172_s18 }
 0x10f   : > { %v7621_v2 = vpop.permute.xlu2 %646 }
 0x110   : > { %1644 = vrot.lane.b32.xlu0 %v7436_v28, %s7169_s15  ;;  %1646 = vrot.lane.b32.xlu1 %v7446_v30, %s7169_s15 }
 0x114   : > { %789 = vrot.lane.b32.xlu2 %v7546_v43, %s7172_s18 }
 0x117   : > { %v7637_v15 = vpop.permute.xlu2 %652 }
 0x118   : > { %1674 = vrot.lane.b32.xlu0 %v7615_v63, %s7169_s15  ;;  %1652 = vrot.lane.b32.xlu1 %v7490_v14, %s7169_s15 }
 0x11c   : > { %1648 = vrot.lane.b32.xlu2 %v7458_v32, %s7169_s15 }
 0x120   : > { %1656 = vrot.lane.b32.xlu0 %v7524_v50, %s7169_s15  ;;  %1682 = vrot.lane.b32.xlu1 %v7627_v6, %s7169_s15 }
 0x124   : > { %1654 = vrot.lane.b32.xlu2 %v7512_v7, %s7169_s15 }
 0x125   : > { %v7643_v62 = vpop.permute.xlu0 %642 }
 0x126   : > { %v7657_v10 = vpop.permute.xlu1 %644 }
 0x128   : > { %1807 = vrot.lane.b32.xlu0 %v7436_v28, %s7173_s19  ;;  %1809 = vrot.lane.b32.xlu1 %v7446_v30, %s7173_s19 }
 0x12c   : > { %1666 = vrot.lane.b32.xlu2 %v7647_v17, %s7169_s15 }
 0x12e   : > { %v7651_v0 = vpop.permute.xlu2 %658 }
 0x130   : > { %1813 = vrot.lane.b32.xlu0 %v7321_v47, %s7173_s19  ;;  %1815 = vrot.lane.b32.xlu1 %v7490_v14, %s7173_s19 }
 0x132   : > { %v7659_v4 = vpop.permute.xlu0 %648 }
 0x133   : > { %v683_v57 = vmax.f32 %v7501_v18, %v7659_v4  ;;  %v688_v18 = vmax.f32 %v7546_v43, %v7651_v0 }
 0x134   : > { %1805 = vrot.lane.b32.xlu2 %v7323_v59, %s7173_s19 }
 0x136   : > { %v7663_v19 = vpop.permute.xlu2 %693 }
 0x138   : > { %1819 = vrot.lane.b32.xlu0 %v7524_v50, %s7173_s19  ;;  %1821 = vrot.lane.b32.xlu1 %v7325_v45, %s7173_s19 }
 0x13a   : > { %v7669_v20 = vpop.permute.xlu0 %654  ;;  %v7671_v21 = vpop.permute.xlu1 %656 }
 0x13c   : > { %1811 = vrot.lane.b32.xlu2 %v7458_v32, %s7173_s19 }
 0x13e   : > { %v7675_v22 = vpop.permute.xlu2 %699 }
 0x140   : > { %1837 = vrot.lane.b32.xlu0 %v7615_v63, %s7173_s19  ;;  %1845 = vrot.lane.b32.xlu1 %v7627_v6, %s7173_s19 }
 0x142   : > { %v7681_v23 = vpop.permute.xlu0 %689  ;;  %v7683_v25 = vpop.permute.xlu1 %691 }
 0x143   : > { %v706_v56 = vsel %vm705_vm4, %v7681_v23, %v7683_v25 }
 0x144   : > { %1817 = vrot.lane.b32.xlu2 %v7512_v7, %s7173_s19 }
 0x146   : > { %v7687_v27 = vpop.permute.xlu2 %732 }
 0x148   : > { %1970 = vrot.lane.b32.xlu0 %v7436_v28, %s7174_s20  ;;  %1972 = vrot.lane.b32.xlu1 %v7446_v30, %s7174_s20 }
 0x14a   : > { %v7693_v13 = vpop.permute.xlu0 %695  ;;  %v7695_v1 = vpop.permute.xlu1 %697 }
 0x14b   : > { %v726_v36 = vmax.f32 %v683_v57, %v7693_v13  ;;  %v662_v57 = vsel %vm12427_vm3, %v7643_v62, %v7657_v10 }
 0x14c   : > { %1829 = vrot.lane.b32.xlu2 %v7647_v17, %s7173_s19  ;;  %v680_v43 = vmax.f32 %v7440_v29, %v662_v57 }
 0x14e   : > { %v7699_v9 = vpop.permute.xlu2 %738 }
 0x150   : > { %1976 = vrot.lane.b32.xlu0 %v7321_v47, %s7174_s20  ;;  %1978 = vrot.lane.b32.xlu1 %v7490_v14, %s7174_s20 }
 0x152   : > { %v7705_v48 = vpop.permute.xlu0 %701  ;;  %v7707_v24 = vpop.permute.xlu1 %703 }
 0x154   : > { %1968 = vrot.lane.b32.xlu2 %v7323_v59, %s7174_s20 }
 0x156   : > { %v7711_v49 = vpop.permute.xlu2 %744 }
 0x158   : > { %1982 = vrot.lane.b32.xlu0 %v7524_v50, %s7174_s20  ;;  %1984 = vrot.lane.b32.xlu1 %v7325_v45, %s7174_s20 }
 0x15a   : > { %v7717_v35 = vpop.permute.xlu0 %734  ;;  %v7719_v37 = vpop.permute.xlu1 %736 }
 0x15c   : > { %1974 = vrot.lane.b32.xlu2 %v7458_v32, %s7174_s20 }
 0x15e   : > { %v7723_v38 = vpop.permute.xlu2 %777 }
 0x160   : > { %2000 = vrot.lane.b32.xlu0 %v7615_v63, %s7174_s20  ;;  %2008 = vrot.lane.b32.xlu1 %v7627_v6, %s7174_s20 }
 0x162   : > { %v7729_v11 = vpop.permute.xlu0 %740  ;;  %v7731_v51 = vpop.permute.xlu1 %742 }
 0x164   : > { %1980 = vrot.lane.b32.xlu2 %v7512_v7, %s7174_s20 }
 0x166   : > { %v7735_v53 = vpop.permute.xlu2 %783 }
 0x168   : > { %2145 = vrot.lane.b32.xlu0 %v7436_v28, %s7175_s23  ;;  %2147 = vrot.lane.b32.xlu1 %v7446_v30, %s7175_s23 }
 0x16a   : > { %v7741_v54 = vpop.permute.xlu0 %746  ;;  %v7743_v12 = vpop.permute.xlu1 %775 }
 0x16c   : > { %1992 = vrot.lane.b32.xlu2 %v7647_v17, %s7174_s20 }
 0x16e   : > { %v7747_v55 = vpop.permute.xlu2 %789 }
 0x170   : > { %2151 = vrot.lane.b32.xlu0 %v7749_v46, %s7175_s23  ;;  %2153 = vrot.lane.b32.xlu1 %v7321_v47, %s7175_s23 }
 0x172   : > { %v7755_v3 = vpop.permute.xlu0 %779  ;;  %v7757_v61 = vpop.permute.xlu1 %781 }
 0x174   : > { %2143 = vrot.lane.b32.xlu2 %v7323_v59, %s7175_s23  ;;  %v769_v59 = vmax.f32 %v726_v36, %v7699_v9  ;;  %v731_v36 = vmax.f32 %v688_v18, %v7707_v24  ;;  %v661_v18 = vsel %vm12427_vm3, %v7567_v41, %v7643_v62 }
 0x175   : > { %v679_v41 = vmax.f32 %v7260_v8, %v661_v18 }
 0x176   : > { %v1649_v16 = vpop.permute.xlu2 %1648  ;;  %v812_v52 = vmax.f32 %v769_v59, %v7757_v61  ;;  %v749_v59 = vsel %vm12404_vm6, %v7687_v27, %v7717_v35  ;;  %v774_v60 = vmax.f32 %v731_v36, %v7741_v54 }
 0x177   : > { %1736 = vst.msk [vmem:[#allocation4 + $0x18] sm:$0xff] %vm12517_vm2, %v1649_v16  ;;  %vm12528_vm2 = vmmov %vm12506_vm0 }
 0x178   : > { %2157 = vrot.lane.b32.xlu0 %v7512_v7, %s7175_s23  ;;  %2159 = vrot.lane.b32.xlu1 %v7524_v50, %s7175_s23 }
 0x17a   : > { %v7769_v47 = vpop.permute.xlu0 %785  ;;  %v7771_v31 = vpop.permute.xlu1 %787 }
 0x17c   : > { %2149 = vrot.lane.b32.xlu2 %v7458_v32, %s7175_s23 }
 0x17e   : > { %v7782_v44 = vpop.permute.xlu2 %1654 }
 0x180   : > { %2163 = vrot.lane.b32.xlu0 %v7325_v45, %s7175_s23  ;;  %836 = vrot.lane.b32.xlu1 %v812_v52, %s7176_s24  ;;  %v723_v45 = vmax.f32 %v680_v43, %v706_v56  ;;  %v792_v52 = vsel %vm12403_vm8, %v7743_v12, %v7723_v38  ;;  %v667_v56 = vsel %vm12427_vm3, %v7669_v20, %v7671_v21 }
 0x181   : > { %v686_v8 = vmax.f32 %v7520_v40, %v667_v56 }
 0x182   : > { %v1645_v50 = vpop.permute.xlu0 %1644  ;;  %v1647_v46 = vpop.permute.xlu1 %1646  ;;  %v766_v36 = vmax.f32 %v723_v45, %v749_v59  ;;  %v796_v45 = vsel %vm12403_vm8, %v7769_v47, %v7771_v31 }
 0x183   : > { %v1691_v29 = vsel %vm1690_vm9, %v7609_v26, %v1645_v50  ;;  %v1693_v57 = vsel %vm1690_vm9, %v1647_v46, %v1649_v16  ;;  %v1692_v28 = vsel %vm1690_vm9, %v1645_v50, %v1647_v46  ;;  %v817_v26 = vmax.f32 %v774_v60, %v7747_v55 }
 0x184   : > { %1733 = vst [vmem:[#allocation4] sm:$0xff] %v1691_v29  ;;  %2155 = vrot.lane.b32.xlu2 %v7490_v14, %s7175_s23  ;;  %v809_v16 = vmax.f32 %v766_v36, %v792_v52  ;;  %v722_v50 = vmax.f32 %v679_v41, %v7681_v23  ;;  %v710_v46 = vsel %vm705_vm4, %v7675_v22, %v7705_v48  ;;  %v7837_v29 = vld [vmem:[#allocation3 + $0x50] sm:$0xff] }
 0x185   : > { %1735 = vst [vmem:[#allocation4 + $0x10] sm:$0xff] %v1693_v57  ;;  %v753_v60 = vsel %vm12404_vm6, %v7731_v51, %v7711_v49  ;;  %v707_v23 = vsel %vm705_vm4, %v7683_v25, %v7663_v19  ;;  %v729_v59 = vmax.f32 %v686_v8, %v710_v46  ;;  %v664_v25 = vsel %vm12427_vm3, %v7621_v2, %v7659_v4 }
 0x186   : > { %1734 = vst [vmem:[#allocation4 + $0x8] sm:$0xff] %v1692_v28  ;;  %v7813_v62 = vpop.permute.xlu2 %1666  ;;  %v663_v28 = vsel %vm12427_vm3, %v7657_v10, %v7621_v2  ;;  %v765_v40 = vmax.f32 %v722_v50, %v7687_v27  ;;  %v750_v27 = vsel %vm12404_vm6, %v7717_v35, %v7719_v37  ;;  %v665_v2 = vsel %vm12427_vm3, %v7587_v58, %v7637_v15  ;;  %v7868_v50 = vld [vmem:[#allocation2 + $0x30] sm:$0xff] }
 0x187   : > { %v681_v57 = vmax.f32 %v7451_v39, %v663_v28  ;;  %v772_v36 = vmax.f32 %v729_v59, %v753_v60  ;;  %v708_v39 = vsel %vm705_vm4, %v7663_v19, %v7693_v13  ;;  %v682_v4 = vmax.f32 %v7463_v33, %v664_v25 }
 0x188   : > { %846 = vrot.lane.b32.xlu0 %v817_v26, %s7176_s24  ;;  %830 = vrot.lane.b32.xlu1 %v809_v16, %s7176_s24  ;;  %v793_v35 = vsel %vm12403_vm8, %v7723_v38, %v7755_v3  ;;  %v684_v58 = vmax.f32 %v7868_v50, %v665_v2  ;;  %v794_v33 = vsel %vm12403_vm8, %v7755_v3, %v7757_v61  ;;  %v12526_v2 = vld [vmem:[#allocation18_spill] sm:$0xff] }
 0x189   : > { %v724_v41 = vmax.f32 %v681_v57, %v707_v23  ;;  %v815_v26 = vmax.f32 %v772_v36, %v796_v45  ;;  %v725_v19 = vmax.f32 %v682_v4, %v708_v39  ;;  %v709_v61 = vsel %vm705_vm4, %v7695_v1, %v7675_v22 }
 0x18a   : > { %v7828_v43 = vpop.permute.xlu0 %1674  ;;  %v1653_v18 = vpop.permute.xlu1 %1652  ;;  %v727_v28 = vmax.f32 %v684_v58, %v7695_v1 }
 0x18b   : > { %12518 = vst [vmem:[#allocation19_spill] sm:$0xff] %v7828_v43  ;;  %v1694_v10 = vsel %vm1690_vm9, %v7629_v42, %v1653_v18  ;;  %v1695_v52 = vsel %vm1690_vm9, %v1653_v18, %v7782_v44  ;;  %v808_v42 = vmax.f32 %v765_v40, %v7743_v12  ;;  %v751_v12 = vsel %vm12404_vm6, %v7719_v37, %v7699_v9 }
 0x18c   : > { %2161 = vrot.lane.b32.xlu2 %v7837_v29, %s7175_s23  ;;  %1737 = vst [vmem:[#allocation4 + $0x20] sm:$0xff] %v1694_v10  ;;  %v767_v16 = vmax.f32 %v724_v41, %v750_v27  ;;  %v768_v9 = vmax.f32 %v725_v19, %v751_v12  ;;  %v666_v37 = vsel %vm12427_vm3, %v7637_v15, %v7669_v20  ;;  %v12527_v19 = vld [vmem:[#allocation10_spill] sm:$0xff] }
 0x18d   : > { %1738 = vst [vmem:[#allocation4 + $0x28] sm:$0xff] %v1695_v52  ;;  %v770_v3 = vmax.f32 %v727_v28, %v7729_v11  ;;  %v685_v23 = vmax.f32 %v7494_v5, %v666_v37  ;;  %v752_v15 = vsel %vm12404_vm6, %v7729_v11, %v7731_v51  ;;  %v668_v20 = vsel %vm12427_vm3, %v7671_v21, %v7651_v0 }
 0x18e   : > { %v1806_v56 = vpop.permute.xlu2 %1805  ;;  %v810_v38 = vmax.f32 %v767_v16, %v793_v35  ;;  %v811_v60 = vmax.f32 %v768_v9, %v794_v33  ;;  %v795_v5 = vsel %vm12403_vm8, %v7735_v53, %v7769_v47  ;;  %v687_v21 = vmax.f32 %v7528_v34, %v668_v20 }
 0x18f   : > { %v728_v22 = vmax.f32 %v685_v23, %v709_v61  ;;  %v813_v59 = vmax.f32 %v770_v3, %v7735_v53  ;;  %v754_v53 = vsel %vm12404_vm6, %v7711_v49, %v7741_v54  ;;  %vm12538_vm6 = vcmask 130048  }
 0x190   : > { %828 = vrot.lane.b32.xlu0 %v808_v42, %s7176_s24  ;;  %842 = vrot.lane.b32.xlu1 %v815_v26, %s7176_s24  ;;  %v12524_v42 = vld [vmem:[#allocation9_spill] sm:$0xff] }
 0x191   : > { %v771_v11 = vmax.f32 %v728_v22, %v752_v15 }
 0x192   : > { %v1657_v13 = vpop.permute.xlu0 %1656  ;;  %v7874_v46 = vpop.permute.xlu1 %1682 }
 0x193   : > { %12519 = vst [vmem:[#allocation20_spill] sm:$0xff] %v7874_v46  ;;  %v1696_v8 = vsel %vm1690_vm9, %v7782_v44, %v1657_v13  ;;  %v814_v47 = vmax.f32 %v771_v11, %v795_v5  ;;  %v2656_v46 = vld [vmem:[#allocation3 + $0x50] sm:$0xff] }
 0x194   : > { %1740 = vst.msk [vmem:[#allocation4 + $0x38] sm:$0xff] %vm12520_vm13, %v1657_v13  ;;  %832 = vrot.lane.b32.xlu2 %v810_v38, %s7176_s24  ;;  %vm2203_vm13 = vcmask 7168  }
 0x195   : > { %1739 = vst [vmem:[#allocation4 + $0x30] sm:$0xff] %v1696_v8 }
 0x196   : > { %v1812_v44 = vpop.permute.xlu2 %1811 }
 0x197   : > { %1899 = vst.msk [vmem:[#allocation4 + $0xd8] sm:$0xff] %vm12521_vm14, %v1812_v44  ;;  %vm12531_vm14 = vmmov %vm12506_vm0 }
 0x198   : > { %834 = vrot.lane.b32.xlu0 %v811_v60, %s7176_s24  ;;  %2183 = vrot.lane.b32.xlu1 %v7615_v63, %s7175_s23  ;;  %v711_v63 = vsel %vm705_vm4, %v7705_v48, %v7707_v24  ;;  %v797_v48 = vsel %vm12403_vm8, %v7771_v31, %v7747_v55  ;;  %vm12406_vm8 = vcmask 556032  }
 0x199   : > { %v730_v45 = vmax.f32 %v687_v21, %v711_v63 }
 0x19a   : > { %v1808_v1 = vpop.permute.xlu0 %1807  ;;  %v1810_v18 = vpop.permute.xlu1 %1809 }
 0x19b   : > { %v1854_v40 = vsel %vm1853_vm15, %v1806_v56, %v1808_v1  ;;  %v1856_v51 = vsel %vm1853_vm15, %v1810_v18, %v1812_v44  ;;  %v1855_v0 = vsel %vm1853_vm15, %v1808_v1, %v1810_v18  ;;  %v773_v24 = vmax.f32 %v730_v45, %v754_v53 }
 0x19c   : > { %1896 = vst [vmem:[#allocation4 + $0xc0] sm:$0xff] %v1854_v40  ;;  %838 = vrot.lane.b32.xlu2 %v813_v59, %s7176_s24 }
 0x19d   : > { %1898 = vst [vmem:[#allocation4 + $0xd0] sm:$0xff] %v1856_v51  ;;  %v816_v52 = vmax.f32 %v773_v24, %v797_v48 }
 0x19e   : > { %1897 = vst [vmem:[#allocation4 + $0xc8] sm:$0xff] %v1855_v0  ;;  %v1818_v10 = vpop.permute.xlu2 %1817 }
 0x1a0   : > { %840 = vrot.lane.b32.xlu0 %v814_v47, %s7176_s24  ;;  %2376 = vrot.lane.b32.xlu1 %v7458_v32, %s7167_s7 }
 0x1a2   : > { %v1814_v34 = vpop.permute.xlu0 %1813  ;;  %v1816_v57 = vpop.permute.xlu1 %1815 }
 0x1a3   : > { %v1858_v25 = vsel %vm1853_vm15, %v1816_v57, %v1818_v10  ;;  %v1857_v49 = vsel %vm1853_vm15, %v1814_v34, %v1816_v57 }
 0x1a4   : > { %844 = vrot.lane.b32.xlu2 %v816_v52, %s7176_s24  ;;  %1901 = vst [vmem:[#allocation4 + $0xe8] sm:$0xff] %v1858_v25 }
 0x1a5   : > { %1900 = vst [vmem:[#allocation4 + $0xe0] sm:$0xff] %v1857_v49 }
 0x1a6   : > { %v7923_v54 = vpop.permute.xlu2 %1829 }
 0x1a8   : > { %2193 = vrot.lane.b32.xlu0 %v7627_v6, %s7175_s23  ;;  %2382 = vrot.lane.b32.xlu1 %v7512_v7, %s7167_s7 }
 0x1aa   : > { %v1820_v31 = vpop.permute.xlu0 %1819  ;;  %v7929_v55 = vpop.permute.xlu1 %1821 }
 0x1ab   : > { %v1859_v36 = vsel %vm1853_vm15, %v1818_v10, %v1820_v31  ;;  %1903 = vst.msk [vmem:[#allocation4 + $0xf8] sm:$0xff] %vm12506_vm0, %v1820_v31 }
 0x1ac   : > { %1902 = vst [vmem:[#allocation4 + $0xf0] sm:$0xff] %v1859_v36  ;;  %2173 = vrot.lane.b32.xlu2 %v7647_v17, %s7175_s23 }
 0x1ae   : > { %v1969_v27 = vpop.permute.xlu2 %1968 }
 0x1b0   : > { %2374 = vrot.lane.b32.xlu0 %v7446_v30, %s7167_s7  ;;  %2538 = vrot.lane.b32.xlu1 %v7458_v32, %s7177_s25 }
 0x1b2   : > { %v7939_v7 = vpop.permute.xlu0 %1837  ;;  %v7941_v6 = vpop.permute.xlu1 %1845 }
 0x1b3   : > { %12522 = vst [vmem:[#allocation21_spill] sm:$0xff] %v7939_v7 }
 0x1b4   : > { %12523 = vst [vmem:[#allocation22_spill] sm:$0xff] %v7941_v6  ;;  %2372 = vrot.lane.b32.xlu2 %v12524_v42, %s7167_s7 }
 0x1b6   : > { %v1975_v41 = vpop.permute.xlu2 %1974 }
 0x1b7   : > { %2062 = vst.msk [vmem:[#allocation4 + $0x198] sm:$0xff] %vm12525_vm1, %v1975_v41  ;;  %vm12402_vm1 = vcmask 15360  }
 0x1b8   : > { %2380 = vrot.lane.b32.xlu0 %v7490_v14, %s7167_s7 }
 0x1ba   : > { %v1971_v17 = vpop.permute.xlu0 %1970  ;;  %v1973_v39 = vpop.permute.xlu1 %1972 }
 0x1bb   : > { %v2017_v56 = vsel %vm2016_vm11, %v1969_v27, %v1971_v17  ;;  %v2019_v32 = vsel %vm2016_vm11, %v1973_v39, %v1975_v41  ;;  %v2018_v26 = vsel %vm2016_vm11, %v1971_v17, %v1973_v39 }
 0x1bc   : > { %2059 = vst [vmem:[#allocation4 + $0x180] sm:$0xff] %v2017_v56  ;;  %2378 = vrot.lane.b32.xlu2 %v12526_v2, %s7167_s7 }
 0x1bd   : > { %2061 = vst [vmem:[#allocation4 + $0x190] sm:$0xff] %v2019_v32 }
 0x1be   : > { %2060 = vst [vmem:[#allocation4 + $0x188] sm:$0xff] %v2018_v26  ;;  %v1981_v4 = vpop.permute.xlu2 %1980 }
 0x1c0   : > { %2386 = vrot.lane.b32.xlu0 %v7837_v29, %s7167_s7 }
 0x1c2   : > { %v1977_v14 = vpop.permute.xlu0 %1976  ;;  %v1979_v35 = vpop.permute.xlu1 %1978 }
 0x1c3   : > { %v2021_v12 = vsel %vm2016_vm11, %v1979_v35, %v1981_v4  ;;  %v2020_v16 = vsel %vm2016_vm11, %v1977_v14, %v1979_v35 }
 0x1c4   : > { %2384 = vrot.lane.b32.xlu2 %v12527_v19, %s7167_s7  ;;  %2064 = vst [vmem:[#allocation4 + $0x1a8] sm:$0xff] %v2021_v12 }
 0x1c5   : > { %2063 = vst [vmem:[#allocation4 + $0x1a0] sm:$0xff] %v2020_v16 }
 0x1c6   : > { %v7959_v13 = vpop.permute.xlu2 %1992 }
 0x1c8   : > { %2536 = vrot.lane.b32.xlu0 %v7446_v30, %s7177_s25 }
 0x1ca   : > { %v1983_v58 = vpop.permute.xlu0 %1982  ;;  %v7963_v33 = vpop.permute.xlu1 %1984 }
 0x1cb   : > { %v2022_v38 = vsel %vm2016_vm11, %v1981_v4, %v1983_v58  ;;  %2066 = vst.msk [vmem:[#allocation4 + $0x1b8] sm:$0xff] %vm12528_vm2, %v1983_v58  ;;  %vm12532_vm2 = vmmov %vm12506_vm0 }
 0x1cc   : > { %2065 = vst [vmem:[#allocation4 + $0x1b0] sm:$0xff] %v2022_v38  ;;  %2534 = vrot.lane.b32.xlu2 %v12524_v42, %s7177_s25 }
 0x1ce   : > { %v2144_v8 = vpop.permute.xlu2 %2143 }
 0x1d2   : > { %v7969_v9 = vpop.permute.xlu0 %2000  ;;  %v7971_v37 = vpop.permute.xlu1 %2008 }
 0x1d3   : > { %12529 = vst [vmem:[#allocation9_spill] sm:$0xff] %v7969_v9 }
 0x1d4   : > { %12530 = vst [vmem:[#allocation18_spill] sm:$0xff] %v7971_v37 }
 0x1d6   : > { %v2150_v28 = vpop.permute.xlu2 %2149 }
 0x1da   : > { %v2146_v60 = vpop.permute.xlu0 %2145  ;;  %v2148_v30 = vpop.permute.xlu1 %2147 }
 0x1db   : > { %v2204_v61 = vsel %vm2203_vm13, %v2144_v8, %v2146_v60  ;;  %v2206_v3 = vsel %vm2203_vm13, %v2148_v30, %v2150_v28  ;;  %v2205_v44 = vsel %vm2203_vm13, %v2146_v60, %v2148_v30 }
 0x1dc   : > { %2252 = vst [vmem:[#allocation4 + $0x240] sm:$0xff] %v2204_v61 }
 0x1dd   : > { %2254 = vst [vmem:[#allocation4 + $0x250] sm:$0xff] %v2206_v3 }
 0x1de   : > { %2253 = vst [vmem:[#allocation4 + $0x248] sm:$0xff] %v2205_v44  ;;  %v2156_v23 = vpop.permute.xlu2 %2155 }
 0x1e2   : > { %v2152_v15 = vpop.permute.xlu0 %2151  ;;  %v2154_v20 = vpop.permute.xlu1 %2153 }
 0x1e3   : > { %v2207_v22 = vsel %vm2203_vm13, %v2150_v28, %v2152_v15  ;;  %v2208_v1 = vsel %vm2203_vm13, %v2154_v20, %v2156_v23 }
 0x1e4   : > { %2255 = vst.msk [vmem:[#allocation4 + $0x258] sm:$0xff] %vm12531_vm14, %v2207_v22  ;;  %vm12534_vm14 = vmmov %vm12506_vm0 }
 0x1e5   : > { %2256 = vst [vmem:[#allocation4 + $0x260] sm:$0xff] %v2208_v1  ;;  %v8079_v1 = vld [vmem:[#allocation3 + $0x48] sm:$0xff] }
 0x1e6   : > { %v2162_v5 = vpop.permute.xlu2 %2161 }
 0x1ea   : > { %v2158_v59 = vpop.permute.xlu0 %2157  ;;  %v2160_v18 = vpop.permute.xlu1 %2159 }
 0x1eb   : > { %v2209_v40 = vsel %vm2203_vm13, %v2156_v23, %v2158_v59  ;;  %v2211_v63 = vsel %vm2203_vm13, %v2160_v18, %v2162_v5  ;;  %v2210_v11 = vsel %vm2203_vm13, %v2158_v59, %v2160_v18  ;;  %v8081_v5 = vld [vmem:[#allocation3 + $0x40] sm:$0xff]  ;;  %v8087_v59 = vld [vmem:[#allocation3 + $0x38] sm:$0xff] }
 0x1ec   : > { %2257 = vst [vmem:[#allocation4 + $0x268] sm:$0xff] %v2209_v40  ;;  %v8093_v40 = vld [vmem:[#allocation3 + $0x8] sm:$0xff] }
 0x1ed   : > { %2259 = vst.msk [vmem:[#allocation4 + $0x278] sm:$0xff] %vm12506_vm0, %v2211_v63  ;;  %v8095_v63 = vld [vmem:[#allocation3 + $0x18] sm:$0xff] }
 0x1ee   : > { %2258 = vst [vmem:[#allocation4 + $0x270] sm:$0xff] %v2210_v11  ;;  %v833_v51 = vpop.permute.xlu2 %832 }
 0x1f2   : > { %v7983_v0 = vpop.permute.xlu0 %2163  ;;  %v837_v21 = vpop.permute.xlu1 %836 }
 0x1f6   : > { %v839_v53 = vpop.permute.xlu2 %838 }
 0x1fa   : > { %v847_v47 = vpop.permute.xlu0 %846  ;;  %v831_v45 = vpop.permute.xlu1 %830 }
 0x1fb   : > { %v7986_v10 = vsel %vm12402_vm1, %v831_v45, %v833_v51 }
 0x1fc   : > { %893 = vrot.lane.b32.xlu0 %v7986_v10, %s7168_s8 }
 0x1fe   : > { %v845_v48 = vpop.permute.xlu2 %844 }
 0x1ff   : > { %v856_v24 = vsel %vm12402_vm1, %v845_v48, %v847_v47 }
 0x200   : > { %872 = vst.msk [vmem:[#allocation2 + $0x50] sm:$0xff] %vm12532_vm2, %v856_v24  ;;  %vm12536_vm2 = vmmov %vm12506_vm0 }
 0x202   : > { %v829_v34 = vpop.permute.xlu0 %828  ;;  %v843_v52 = vpop.permute.xlu1 %842 }
 0x203   : > { %v7993_v57 = vsel %vm12402_vm1, %v829_v34, %v831_v45  ;;  %v8000_v31 = vsel %vm12402_vm1, %v843_v52, %v845_v48 }
 0x204   : > { %891 = vrot.lane.b32.xlu2 %v7993_v57, %s7168_s8 }
 0x206   : > { %v7997_v25 = vpop.permute.xlu2 %2173 }
 0x207   : > { %v929_v30 = vld [vmem:[#allocation2 + $0x50] sm:$0xff] }
 0x20a   : > { %v835_v49 = vpop.permute.xlu0 %834  ;;  %v8002_v36 = vpop.permute.xlu1 %2183 }
 0x20b   : > { %12533 = vst [vmem:[#allocation10_spill] sm:$0xff] %v8002_v36  ;;  %v8005_v27 = vsel %vm12402_vm1, %v833_v51, %v835_v49  ;;  %v852_v42 = vsel %vm12402_vm1, %v835_v49, %v837_v21  ;;  %v8109_v51 = vld [vmem:[#allocation3 + $0x10] sm:$0xff] }
 0x20c   : > { %868 = vst.msk [vmem:[#allocation2 + $0x20] sm:$0xff] %vm12534_vm14, %v852_v42  ;;  %903 = vrot.lane.b32.xlu2 %v8000_v31, %s7168_s8  ;;  %895 = vrot.lane.b32.xlu1 %v8005_v27, %s7168_s8  ;;  %vm12426_vm14 = vcmask 891904  }
 0x20e   : > { %v2373_v41 = vpop.permute.xlu2 %2372 }
 0x212   : > { %v841_v17 = vpop.permute.xlu0 %840  ;;  %v2377_v39 = vpop.permute.xlu1 %2376 }
 0x213   : > { %v8014_v56 = vsel %vm12402_vm1, %v839_v53, %v841_v17  ;;  %v8017_v32 = vsel %vm12402_vm1, %v841_v17, %v843_v52  ;;  %v928_v8 = vld [vmem:[#allocation2 + $0x20] sm:$0xff]  ;;  %vm12407_vm1 = vcmask 719872  }
 0x214   : > { %936 = vrot.lane.b32.xlu2 %v8005_v27, %s7178_s26  ;;  %901 = vrot.lane.b32.xlu1 %v8017_v32, %s7168_s8 }
 0x215   : > { %899 = vrot.lane.b32.xlu0 %v8014_v56, %s7168_s8 }
 0x216   : > { %v2379_v26 = vpop.permute.xlu2 %2378 }
 0x217   : > { %v2422_v4 = vsel %vm12427_vm3, %v2377_v39, %v2379_v26  ;;  %2465 = vst.msk [vmem:[#allocation4 + $0x3d8] sm:$0xff] %vm12506_vm0, %v2379_v26 }
 0x218   : > { %2464 = vst [vmem:[#allocation4 + $0x3d0] sm:$0xff] %v2422_v4 }
 0x21a   : > { %v8027_v14 = vpop.permute.xlu0 %2193  ;;  %v2383_v35 = vpop.permute.xlu1 %2382 }
 0x21b   : > { %12535 = vst [vmem:[#allocation23_spill] sm:$0xff] %v8027_v14  ;;  %v12537_v14 = vld [vmem:[#allocation14_spill] sm:$0xff] }
 0x21c   : > { %942 = vrot.lane.b32.xlu2 %v8017_v32, %s7178_s26  ;;  %934 = vrot.lane.b32.xlu1 %v7986_v10, %s7178_s26 }
 0x21d   : > { %932 = vrot.lane.b32.xlu0 %v7993_v57, %s7178_s26 }
 0x21e   : > { %v2385_v12 = vpop.permute.xlu2 %2384 }
 0x21f   : > { %v2424_v16 = vsel %vm12427_vm3, %v2383_v35, %v2385_v12 }
 0x220   : > { %2467 = vst [vmem:[#allocation4 + $0x3e8] sm:$0xff] %v2424_v16 }
 0x222   : > { %v2375_v19 = vpop.permute.xlu0 %2374  ;;  %v2539_v44 = vpop.permute.xlu1 %2538 }
 0x223   : > { %v2420_v58 = vsel %vm12427_vm3, %v2373_v41, %v2375_v19  ;;  %v2421_v38 = vsel %vm12427_vm3, %v2375_v19, %v2377_v39 }
 0x224   : > { %971 = vrot.lane.b32.xlu2 %v7993_v57, %s7179_s27  ;;  %940 = vrot.lane.b32.xlu1 %v8014_v56, %s7178_s26  ;;  %2463 = vst [vmem:[#allocation4 + $0x3c8] sm:$0xff] %v2421_v38 }
 0x225   : > { %938 = vrot.lane.b32.xlu0 %v928_v8, %s7178_s26 }
 0x226   : > { %v2535_v23 = vpop.permute.xlu2 %2534 }
 0x22a   : > { %v2381_v28 = vpop.permute.xlu0 %2380 }
 0x22b   : > { %v2423_v60 = vsel %vm12427_vm3, %v2381_v28, %v2383_v35 }
 0x22c   : > { %977 = vrot.lane.b32.xlu2 %v928_v8, %s7179_s27  ;;  %946 = vrot.lane.b32.xlu1 %v929_v30, %s7178_s26 }
 0x22d   : > { %944 = vrot.lane.b32.xlu0 %v8000_v31, %s7178_s26  ;;  %3247 = vmatpush.msra.mxu1 %v2423_v60 }
 0x22f   : > { %3248 = vmatpush.msra.mxu1 %v2420_v58 }
 0x232   : > { %v2387_v61 = vpop.permute.xlu0 %2386 }
 0x233   : > { %v2425_v3 = vsel %vm12427_vm3, %v2385_v12, %v2387_v61  ;;  %2469 = vst.msk [vmem:[#allocation4 + $0x3f8] sm:$0xff] %vm12536_vm2, %v2387_v61  ;;  %vm12408_vm2 = vcmask 883712  }
 0x234   : > { %2468 = vst [vmem:[#allocation4 + $0x3f0] sm:$0xff] %v2425_v3  ;;  %983 = vrot.lane.b32.xlu2 %v8000_v31, %s7179_s27  ;;  %975 = vrot.lane.b32.xlu1 %v8005_v27, %s7179_s27 }
 0x235   : > { %973 = vrot.lane.b32.xlu0 %v7986_v10, %s7179_s27 }
 0x23a   : > { %v2537_v15 = vpop.permute.xlu0 %2536 }
 0x23b   : > { %v2583_v20 = vsel %vm12426_vm14, %v2535_v23, %v2537_v15  ;;  %v2584_v22 = vsel %vm12426_vm14, %v2537_v15, %v2539_v44 }
 0x23c   : > { %2625 = vst [vmem:[#allocation4 + $0x480] sm:$0xff] %v2583_v20  ;;  %1012 = vrot.lane.b32.xlu2 %v7986_v10, %s7180_s28  ;;  %981 = vrot.lane.b32.xlu1 %v8017_v32, %s7179_s27 }
 0x23d   : > { %2626 = vst [vmem:[#allocation4 + $0x488] sm:$0xff] %v2584_v22  ;;  %979 = vrot.lane.b32.xlu0 %v8014_v56, %s7179_s27 }
 0x244   : > { %1018 = vrot.lane.b32.xlu2 %v8014_v56, %s7180_s28  ;;  %1010 = vrot.lane.b32.xlu1 %v7993_v57, %s7180_s28 }
 0x245   : > { %985 = vrot.lane.b32.xlu0 %v929_v30, %s7179_s27 }
 0x24c   : > { %1024 = vrot.lane.b32.xlu2 %v929_v30, %s7180_s28  ;;  %1016 = vrot.lane.b32.xlu1 %v928_v8, %s7180_s28 }
 0x24d   : > { %1014 = vrot.lane.b32.xlu0 %v8005_v27, %s7180_s28 }
 0x254   : > { %2540 = vrot.lane.b32.xlu2 %v12526_v2, %s7177_s25  ;;  %1022 = vrot.lane.b32.xlu1 %v8000_v31, %s7180_s28 }
 0x255   : > { %1020 = vrot.lane.b32.xlu0 %v8017_v32, %s7180_s28 }
 0x25c   : > { %2546 = vrot.lane.b32.xlu2 %v8079_v1, %s7177_s25  ;;  %2544 = vrot.lane.b32.xlu1 %v8081_v5, %s7177_s25 }
 0x25d   : > { %2542 = vrot.lane.b32.xlu0 %v8087_v59, %s7177_s25 }
 0x25e   : > { %v8091_v18 = vpop.permute.xlu2 %891 }
 0x25f   : > { %v906_v9 = vsel %vm12408_vm2, %v12537_v14, %v8091_v18 }
 0x264   : > { %2697 = vrot.lane.b32.xlu2 %v8093_v40, %s7168_s8  ;;  %2701 = vrot.lane.b32.xlu1 %v8095_v63, %s7168_s8 }
 0x265   : > { %2548 = vrot.lane.b32.xlu0 %v7837_v29, %s7177_s25 }
 0x266   : > { %v8103_v11 = vpop.permute.xlu2 %903 }
 0x26c   : > { %2703 = vrot.lane.b32.xlu2 %v12526_v2, %s7168_s8  ;;  %2707 = vrot.lane.b32.xlu1 %v8081_v5, %s7168_s8 }
 0x26d   : > { %2699 = vrot.lane.b32.xlu0 %v8109_v51, %s7168_s8 }
 0x26e   : > { %v937_v21 = vpop.permute.xlu2 %936  ;;  %v8119_v45 = vpop.permute.xlu0 %893 }
 0x275   : > { %2705 = vrot.lane.b32.xlu0 %v8087_v59, %s7168_s8 }
 0x276   : > { %v8115_v53 = vpop.permute.xlu2 %942 }
 0x27e   : > { %v896_v29 = vpop.permute.xlu1 %895  ;;  %v8117_v47 = vpop.permute.xlu2 %971 }
 0x27f   : > { %v908_v61 = vsel %vm12408_vm2, %v8119_v45, %v896_v29  ;;  %v923_v15 = vmax.f32 %v8005_v27, %v896_v29 }
 0x280   : > { %v922_v23 = vmax.f32 %v7986_v10, %v908_v61 }
 0x286   : > { %v978_v2 = vpop.permute.xlu2 %977  ;;  %v8121_v48 = vpop.permute.xlu1 %901 }
 0x287   : > { %v8123_v24 = vpop.permute.xlu0 %899 }
 0x288   : > { %v910_v27 = vsel %vm12408_vm2, %v8123_v24, %v8121_v48 }
 0x28e   : > { %v8125_v34 = vpop.permute.xlu2 %983  ;;  %v8127_v52 = vpop.permute.xlu1 %934 }
 0x28f   : > { %v8129_v49 = vpop.permute.xlu0 %932  ;;  %v950_v3 = vsel %vm12407_vm1, %v8127_v52, %v937_v21 }
 0x296   : > { %v8131_v42 = vpop.permute.xlu2 %1012  ;;  %v8133_v41 = vpop.permute.xlu1 %940 }
 0x297   : > { %v939_v17 = vpop.permute.xlu0 %938 }
 0x29e   : > { %v8135_v39 = vpop.permute.xlu2 %1018  ;;  %v947_v26 = vpop.permute.xlu1 %946 }
 0x29f   : > { %v8137_v4 = vpop.permute.xlu0 %944 }
 0x2a6   : > { %v1025_v35 = vpop.permute.xlu2 %1024  ;;  %v976_v12 = vpop.permute.xlu1 %975 }
 0x2a7   : > { %v8139_v16 = vpop.permute.xlu0 %973  ;;  %v990_v20 = vsel %vm12406_vm8, %v976_v12, %v978_v2 }
 0x2a8   : > { %v989_v22 = vsel %vm12406_vm8, %v8139_v16, %v976_v12  ;;  %v954_v12 = vsel %vm12407_vm1, %v8137_v4, %v947_v26 }
 0x2ae   : > { %v2541_v19 = vpop.permute.xlu2 %2540  ;;  %v8141_v58 = vpop.permute.xlu1 %981 }
 0x2af   : > { %v2585_v38 = vsel %vm12426_vm14, %v2539_v44, %v2541_v19  ;;  %2628 = vst.msk [vmem:[#allocation4 + $0x498] sm:$0xff] %vm12506_vm0, %v2541_v19  ;;  %v8145_v8 = vpop.permute.xlu0 %979  ;;  %v951_v44 = vsel %vm12407_vm1, %v937_v21, %v939_v17  ;;  %v965_v19 = vmax.f32 %v922_v23, %v950_v3  ;;  %vm12405_vm0 = vcmask 392192   ;;  %v8172_v17 = vld [vmem:[#allocation2] sm:$0xff] }
 0x2b0   : > { %2627 = vst [vmem:[#allocation4 + $0x490] sm:$0xff] %v2585_v38  ;;  %v966_v38 = vmax.f32 %v923_v15, %v951_v44  ;;  %v920_v14 = vmax.f32 %v8172_v17, %v906_v9  ;;  %v927_v44 = vmax.f32 %v8000_v31, %v8103_v11  ;;  %v952_v23 = vsel %vm12407_vm1, %v8133_v41, %v8115_v53 }
 0x2b1   : > { %v1004_v21 = vmax.f32 %v965_v19, %v989_v22  ;;  %v925_v15 = vmax.f32 %v8014_v56, %v910_v27  ;;  %v991_v31 = vsel %vm12406_vm8, %v8145_v8, %v8141_v58  ;;  %v907_v56 = vsel %vm12408_vm2, %v8091_v18, %v8119_v45 }
 0x2b2   : > { %v1005_v36 = vmax.f32 %v966_v38, %v990_v20  ;;  %v970_v9 = vmax.f32 %v927_v44, %v954_v12  ;;  %v911_v27 = vsel %vm12408_vm2, %v8121_v48, %v8103_v11  ;;  %v949_v18 = vsel %vm12407_vm1, %v8129_v49, %v8127_v52 }
 0x2b3   : > { %v921_v12 = vmax.f32 %v7993_v57, %v907_v56  ;;  %v926_v11 = vmax.f32 %v8017_v32, %v911_v27  ;;  %v988_v48 = vsel %vm12406_vm8, %v8117_v47, %v8139_v16  ;;  %v992_v57 = vsel %vm12406_vm8, %v8141_v58, %v8125_v34 }
 0x2b5   : > { %v964_v52 = vmax.f32 %v921_v12, %v949_v18 }
 0x2b6   : > { %v8147_v28 = vpop.permute.xlu2 %2546  ;;  %v8149_v60 = vpop.permute.xlu1 %1010 }
 0x2b7   : > { %v986_v30 = vpop.permute.xlu0 %985  ;;  %v1027_v32 = vsel %vm12405_vm0, %v8149_v60, %v8131_v42 }
 0x2b8   : > { %v993_v20 = vsel %vm12406_vm8, %v8125_v34, %v986_v30  ;;  %vm12543_vm8 = vmmov %vm12538_vm6 }
 0x2b9   : > { %v1009_v26 = vmax.f32 %v970_v9, %v993_v20 }
 0x2be   : > { %v8164_v7 = vpop.permute.xlu2 %2697  ;;  %v1017_v43 = vpop.permute.xlu1 %1016 }
 0x2bf   : > { %v1015_v10 = vpop.permute.xlu0 %1014 }
 0x2c0   : > { %v1028_v29 = vsel %vm12405_vm0, %v8131_v42, %v1015_v10  ;;  %v1029_v2 = vsel %vm12405_vm0, %v1015_v10, %v1017_v43  ;;  %v963_v43 = vmax.f32 %v920_v14, %v8129_v49  ;;  %v12539_v49 = vld [vmem:[#allocation11_spill] sm:$0xff] }
 0x2c1   : > { %v1043_v61 = vmax.f32 %v1004_v21, %v1028_v29  ;;  %v1044_v3 = vmax.f32 %v1005_v36, %v1029_v2  ;;  %v968_v36 = vmax.f32 %v925_v15, %v952_v23 }
 0x2c2   : > { %v1002_v30 = vmax.f32 %v963_v43, %v8117_v47 }
 0x2c3   : > { %1063 = vrot.lane.b32.xlu0 %v1044_v3, %s7181_s29  ;;  %1061 = vrot.lane.b32.xlu2 %v1043_v61, %s7181_s29  ;;  %v1007_v38 = vmax.f32 %v968_v36, %v991_v31  ;;  %v1003_v61 = vmax.f32 %v964_v52, %v988_v48 }
 0x2c4   : > { %v1041_v45 = vmax.f32 %v1002_v30, %v8149_v60 }
 0x2c5   : > { %v1042_v58 = vmax.f32 %v1003_v61, %v1027_v32 }
 0x2c6   : > { %v2704_v22 = vpop.permute.xlu2 %2703  ;;  %v1023_v19 = vpop.permute.xlu1 %1022 }
 0x2c7   : > { %2790 = vst.msk [vmem:[#allocation4 + $0x558] sm:$0xff] %vm12538_vm6, %v2704_v22  ;;  %v1032_v21 = vsel %vm12405_vm0, %v1023_v19, %v1025_v35  ;;  %v1021_v10 = vpop.permute.xlu0 %1020  ;;  %v953_v35 = vsel %vm12407_vm1, %v8115_v53, %v8137_v4  ;;  %v909_v53 = vsel %vm12408_vm2, %v12539_v49, %v8123_v24  ;;  %vm12544_vm1 = vmmov %vm12538_vm6 }
 0x2c8   : > { %v1048_v29 = vmax.f32 %v1009_v26, %v1032_v21  ;;  %v1030_v2 = vsel %vm12405_vm0, %v8135_v39, %v1021_v10  ;;  %v969_v4 = vmax.f32 %v926_v11, %v953_v35  ;;  %v1031_v47 = vsel %vm12405_vm0, %v1021_v10, %v1023_v19 }
 0x2c9   : > { %v1046_v14 = vmax.f32 %v1007_v38, %v1030_v2  ;;  %v924_v34 = vmax.f32 %v7868_v50, %v909_v53  ;;  %vm1073_vm0 = vcmask 326656  }
 0x2ca   : > { %1071 = vrot.lane.b32.xlu1 %v1048_v29, %s7181_s29  ;;  %v1008_v3 = vmax.f32 %v969_v4, %v992_v57 }
 0x2cb   : > { %1057 = vrot.lane.b32.xlu0 %v1041_v45, %s7181_s29  ;;  %1067 = vrot.lane.b32.xlu2 %v1046_v14, %s7181_s29  ;;  %v967_v43 = vmax.f32 %v924_v34, %v8133_v41 }
 0x2cc   : > { %v1047_v15 = vmax.f32 %v1008_v3, %v1031_v47 }
 0x2cd   : > { %v1006_v42 = vmax.f32 %v967_v43, %v8145_v8 }
 0x2ce   : > { %v2545_v16 = vpop.permute.xlu1 %2544 }
 0x2cf   : > { %v2587_v44 = vsel %vm12426_vm14, %v2545_v16, %v8147_v28  ;;  %v2543_v23 = vpop.permute.xlu0 %2542  ;;  %v1045_v50 = vmax.f32 %v1006_v42, %v8135_v39 }
 0x2d0   : > { %2630 = vst [vmem:[#allocation4 + $0x4a8] sm:$0xff] %v2587_v44  ;;  %v2586_v24 = vsel %vm12426_vm14, %v2543_v23, %v2545_v16 }
 0x2d1   : > { %2629 = vst [vmem:[#allocation4 + $0x4a0] sm:$0xff] %v2586_v24 }
 0x2d2   : > { %1059 = vrot.lane.b32.xlu1 %v1042_v58, %s7181_s29 }
 0x2d3   : > { %1069 = vrot.lane.b32.xlu0 %v1047_v15, %s7181_s29 }
 0x2d6   : > { %v2702_v60 = vpop.permute.xlu1 %2701 }
 0x2d7   : > { %v2747_v20 = vsel %vm12408_vm2, %v2702_v60, %v2704_v22  ;;  %v2549_v9 = vpop.permute.xlu0 %2548 }
 0x2d8   : > { %2789 = vst [vmem:[#allocation4 + $0x550] sm:$0xff] %v2747_v20  ;;  %v2588_v31 = vsel %vm12426_vm14, %v8147_v28, %v2549_v9 }
 0x2d9   : > { %2631 = vst [vmem:[#allocation4 + $0x4b0] sm:$0xff] %v2588_v31 }
 0x2da   : > { %2632 = vst.msk [vmem:[#allocation4 + $0x4b8] sm:$0xff] %vm12538_vm6, %v2549_v9  ;;  %1065 = vrot.lane.b32.xlu1 %v1045_v50, %s7181_s29 }
 0x2de   : > { %v8244_v26 = vpop.permute.xlu1 %2707 }
 0x2df   : > { %v2700_v41 = vpop.permute.xlu0 %2699  ;;  %12540 = vst [vmem:[#allocation14_spill] sm:$0xff] %v8244_v26 }
 0x2e0   : > { %v2745_v36 = vsel %vm12408_vm2, %v8164_v7, %v2700_v41  ;;  %v2746_v8 = vsel %vm12408_vm2, %v2700_v41, %v2702_v60 }
 0x2e1   : > { %2787 = vst [vmem:[#allocation4 + $0x540] sm:$0xff] %v2745_v36 }
 0x2e2   : > { %2788 = vst [vmem:[#allocation4 + $0x548] sm:$0xff] %v2746_v8 }
 0x2e7   : > { %v2706_v39 = vpop.permute.xlu0 %2705 }
 0x2e8   : > { %v2748_v22 = vsel %vm12408_vm2, %v2706_v39, %v8244_v26  ;;  %vm12545_vm2 = vmmov %vm12544_vm1 }
 0x2e9   : > { %2791 = vst [vmem:[#allocation4 + $0x560] sm:$0xff] %v2748_v22 }
 0x31d   : > { %v1062_v28 = vpop.permute.xlu2 %1061 }
 0x325   : > { %v1068_v49 = vpop.permute.xlu2 %1067 }
 0x335   : > { %v1064_v19 = vpop.permute.xlu0 %1063 }
 0x336   : > { %v8249_v56 = vsel %vm1073_vm0, %v1062_v28, %v1064_v19  ;;  %v1091_v7 = vsel %vm7400_vm12, %v1064_v19, 0.0  ;;  %v1107_v30 = vsel %vm7400_vm12, %v1064_v19, -inf }
 0x337   : > { %v8258_v10 = vsel %vm7392_vm10, %v8249_v56, 0.0  ;;  %1099 = vst.msk [vmem:[#allocation3 + $0x80] sm:$0xff] %vm12538_vm6, %v1091_v7  ;;  %v8352_v36 = vsel %vm7392_vm10, %v8249_v56, -inf  ;;  %vm12555_vm6 = vmmov %vm12544_vm1 }
 0x338   : > { %1098 = vst [vmem:[#allocation3 + $0x78] sm:$0xff] %v8258_v10 }
 0x339   : > { %1115 = vst.msk [vmem:[#allocation2 + $0x20] sm:$0xff] %vm12543_vm8, %v1107_v30  ;;  %vm12546_vm8 = vmmov %vm12544_vm1 }
 0x33c   : > { %v1072_v27 = vpop.permute.xlu1 %1071 }
 0x33d   : > { %v1095_v29 = vsel %vm7400_vm12, %v1072_v27, 0.0  ;;  %v1111_v2 = vsel %vm7400_vm12, %v1072_v27, -inf  ;;  %v1058_v18 = vpop.permute.xlu0 %1057 }
 0x33e   : > { %1103 = vst.msk [vmem:[#allocation3 + $0xb0] sm:$0xff] %vm12544_vm1, %v1095_v29  ;;  %v2287_v45 = vld [vmem:[#allocation3 + $0x80] sm:$0xff] }
 0x33f   : > { %1119 = vst.msk [vmem:[#allocation2 + $0x50] sm:$0xff] %vm12545_vm2, %v1111_v2  ;;  %v2286_v14 = vld [vmem:[#allocation3 + $0x78] sm:$0xff]  ;;  %v8319_v20 = vld [vmem:[#allocation3 + $0x80] sm:$0xff]  ;;  %vm12553_vm2 = vmmov %vm12544_vm1 }
 0x340   : > { %v8269_v12 = vld [vmem:[#allocation2 + $0x20] sm:$0xff]  ;;  %2310 = vst [vmem:[#allocation4 + $0x350] sm:$0xff] %v2286_v14 }
 0x341   : > { %1148 = vrot.lane.b32.xlu0 %v8269_v12, %s7167_s7  ;;  %2311 = vst.msk [vmem:[#allocation4 + $0x358] sm:$0xff] %vm12546_vm8, %v2287_v45  ;;  %vm12557_vm8 = vmmov %vm12544_vm1 }
 0x344   : > { %v1060_v35 = vpop.permute.xlu1 %1059 }
 0x345   : > { %v1074_v11 = vsel %vm1073_vm0, %v1058_v18, %v1060_v35  ;;  %v1075_v48 = vsel %vm1073_vm0, %v1060_v35, %v1062_v28  ;;  %v1070_v52 = vpop.permute.xlu0 %1069  ;;  %v2291_v57 = vld [vmem:[#allocation3 + $0xb0] sm:$0xff] }
 0x346   : > { %v8278_v4 = vsel %vm7372_vm5, %v1074_v11, 0.0  ;;  %v8282_v61 = vsel %vm7382_vm7, %v1075_v48, 0.0  ;;  %v8284_v47 = vld [vmem:[#allocation2 + $0x50] sm:$0xff]  ;;  %2315 = vst.msk [vmem:[#allocation4 + $0x378] sm:$0xff] %vm12544_vm1, %v2291_v57  ;;  %v1078_v16 = vsel %vm1073_vm0, %v1068_v49, %v1070_v52  ;;  %v1079_v3 = vsel %vm1073_vm0, %v1070_v52, %v1072_v27 }
 0x347   : > { %1096 = vst [vmem:[#allocation3 + $0x68] sm:$0xff] %v8278_v4  ;;  %1202 = vrot.lane.b32.xlu1 %v8284_v47, %s7170_s16  ;;  %1158 = vrot.lane.b32.xlu2 %v8284_v47, %s7167_s7  ;;  %v8297_v44 = vsel %vm7382_vm7, %v1078_v16, 0.0  ;;  %v8301_v23 = vsel %vm7392_vm10, %v1079_v3, 0.0  ;;  %v8325_v50 = vld [vmem:[#allocation3 + $0xb0] sm:$0xff]  ;;  %v8335_v31 = vsel %vm7372_vm5, %v1074_v11, -inf  ;;  %v8345_v41 = vsel %vm7382_vm7, %v1078_v16, -inf }
 0x348   : > { %1097 = vst [vmem:[#allocation3 + $0x70] sm:$0xff] %v8282_v61  ;;  %v8356_v8 = vsel %vm7382_vm7, %v1075_v48, -inf  ;;  %v8366_v39 = vsel %vm7392_vm10, %v1079_v3, -inf }
 0x349   : > { %1101 = vst [vmem:[#allocation3 + $0xa0] sm:$0xff] %v8297_v44  ;;  %1194 = vrot.lane.b32.xlu0 %v8269_v12, %s7170_s16 }
 0x34a   : > { %1102 = vst [vmem:[#allocation3 + $0xa8] sm:$0xff] %v8301_v23 }
 0x34b   : > { %12549 = vst [vmem:[#allocation11_spill] sm:$0xff] %v8345_v41 }
 0x34c   : > { %v1066_v34 = vpop.permute.xlu1 %1065  ;;  %12550 = vst [vmem:[#allocation24_spill] sm:$0xff] %v8356_v8 }
 0x34d   : > { %v1077_v58 = vsel %vm1073_vm0, %v1066_v34, %v1068_v49  ;;  %12551 = vst [vmem:[#allocation25_spill] sm:$0xff] %v8366_v39 }
 0x34e   : > { %v8310_v24 = vsel %vm7372_vm5, %v1077_v58, 0.0  ;;  %v2284_v15 = vld [vmem:[#allocation3 + $0x68] sm:$0xff]  ;;  %v8370_v22 = vsel %vm7372_vm5, %v1077_v58, -inf }
 0x34f   : > { %1100 = vst [vmem:[#allocation3 + $0x98] sm:$0xff] %v8310_v24  ;;  %1278 = vrot.lane.b32.xlu1 %v8269_v12, %s7172_s18  ;;  %1236 = vrot.lane.b32.xlu2 %v8269_v12, %s7171_s17  ;;  %v2285_v43 = vld [vmem:[#allocation3 + $0x70] sm:$0xff] }
 0x350   : > { %2308 = vst [vmem:[#allocation4 + $0x340] sm:$0xff] %v2284_v15  ;;  %v2289_v42 = vld [vmem:[#allocation3 + $0xa0] sm:$0xff] }
 0x351   : > { %1244 = vrot.lane.b32.xlu0 %v8284_v47, %s7171_s17  ;;  %2313 = vst [vmem:[#allocation4 + $0x368] sm:$0xff] %v2289_v42  ;;  %v2290_v60 = vld [vmem:[#allocation3 + $0xa8] sm:$0xff] }
 0x352   : > { %2309 = vst [vmem:[#allocation4 + $0x348] sm:$0xff] %v2285_v43 }
 0x353   : > { %2314 = vst [vmem:[#allocation4 + $0x370] sm:$0xff] %v2290_v60 }
 0x356   : > { %v2288_v9 = vld [vmem:[#allocation3 + $0x98] sm:$0xff] }
 0x357   : > { %1286 = vrot.lane.b32.xlu2 %v8284_v47, %s7172_s18  ;;  %2171 = vrot.lane.b32.xlu1 %v8319_v20, %s7175_s23  ;;  %2312 = vst [vmem:[#allocation4 + $0x360] sm:$0xff] %v2288_v9 }
 0x359   : > { %2181 = vrot.lane.b32.xlu0 %v8325_v50, %s7175_s23 }
 0x35f   : > { %2402 = vrot.lane.b32.xlu2 %v8325_v50, %s7167_s7  ;;  %2394 = vrot.lane.b32.xlu1 %v8319_v20, %s7167_s7 }
 0x361   : > { %1142 = vrot.lane.b32.xlu0 %v8335_v31, %s7167_s7 }
 0x367   : > { %2564 = vrot.lane.b32.xlu2 %v8325_v50, %s7177_s25  ;;  %2556 = vrot.lane.b32.xlu1 %v8319_v20, %s7177_s25 }
 0x369   : > { %1154 = vrot.lane.b32.xlu0 %v8345_v41, %s7167_s7 }
 0x36f   : > { %1144 = vrot.lane.b32.xlu1 %v8356_v8, %s7167_s7  ;;  %1146 = vrot.lane.b32.xlu2 %v8352_v36, %s7167_s7 }
 0x371   : > { %1188 = vrot.lane.b32.xlu0 %v8335_v31, %s7170_s16 }
 0x377   : > { %1152 = vrot.lane.b32.xlu2 %v8370_v22, %s7167_s7  ;;  %1156 = vrot.lane.b32.xlu1 %v8366_v39, %s7167_s7 }
 0x379   : > { %1200 = vrot.lane.b32.xlu0 %v8366_v39, %s7170_s16 }
 0x37f   : > { %1192 = vrot.lane.b32.xlu2 %v8352_v36, %s7170_s16  ;;  %1190 = vrot.lane.b32.xlu1 %v8356_v8, %s7170_s16 }
 0x381   : > { %1232 = vrot.lane.b32.xlu0 %v8356_v8, %s7171_s17 }
 0x387   : > { %1196 = vrot.lane.b32.xlu1 %v8370_v22, %s7170_s16  ;;  %1198 = vrot.lane.b32.xlu2 %v8345_v41, %s7170_s16 }
 0x389   : > { %1238 = vrot.lane.b32.xlu0 %v8370_v22, %s7171_s17 }
 0x38f   : > { %1234 = vrot.lane.b32.xlu1 %v8352_v36, %s7171_s17  ;;  %1230 = vrot.lane.b32.xlu2 %v8335_v31, %s7171_s17 }
 0x391   : > { %1276 = vrot.lane.b32.xlu0 %v8352_v36, %s7172_s18 }
 0x397   : > { %1240 = vrot.lane.b32.xlu1 %v8345_v41, %s7171_s17  ;;  %1242 = vrot.lane.b32.xlu2 %v8366_v39, %s7171_s17  ;;  %s7194_s17 = smov 4  }
 0x399   : > { %1282 = vrot.lane.b32.xlu0 %v8345_v41, %s7172_s18 }
 0x39f   : > { %1272 = vrot.lane.b32.xlu1 %v8335_v31, %s7172_s18  ;;  %1274 = vrot.lane.b32.xlu2 %v8356_v8, %s7172_s18 }
 0x3a1   : > { %1662 = vrot.lane.b32.xlu0 %v8282_v61, %s7169_s15  ;;  %v8408_v28 = vpop.permute.xlu2 %1158 }
 0x3a7   : > { %1284 = vrot.lane.b32.xlu1 %v8366_v39, %s7172_s18  ;;  %1280 = vrot.lane.b32.xlu2 %v8370_v22, %s7172_s18 }
 0x3a9   : > { %1668 = vrot.lane.b32.xlu0 %v8310_v24, %s7169_s15  ;;  %v8416_v19 = vpop.permute.xlu2 %1236 }
 0x3af   : > { %1664 = vrot.lane.b32.xlu1 %v8258_v10, %s7169_s15  ;;  %1660 = vrot.lane.b32.xlu2 %v8278_v4, %s7169_s15 }
 0x3b1   : > { %1825 = vrot.lane.b32.xlu0 %v8282_v61, %s7173_s19  ;;  %v8424_v56 = vpop.permute.xlu2 %1286 }
 0x3b3   : > { %v8426_v7 = vpop.permute.xlu0 %1148 }
 0x3b7   : > { %1672 = vrot.lane.b32.xlu2 %v8301_v23, %s7169_s15  ;;  %1670 = vrot.lane.b32.xlu1 %v8297_v44, %s7169_s15 }
 0x3b9   : > { %1831 = vrot.lane.b32.xlu0 %v8310_v24, %s7173_s19  ;;  %v8434_v30 = vpop.permute.xlu1 %1202  ;;  %v8436_v27 = vpop.permute.xlu2 %2402 }
 0x3ba   : > { %12552 = vst [vmem:[#allocation26_spill] sm:$0xff] %v8436_v27 }
 0x3bb   : > { %2477 = vst.msk [vmem:[#allocation4 + $0x438] sm:$0xff] %vm12553_vm2, %v8436_v27  ;;  %v8440_v29 = vpop.permute.xlu0 %1194  ;;  %vm12564_vm2 = vmmov %vm12544_vm1 }
 0x3bf   : > { %1823 = vrot.lane.b32.xlu2 %v8278_v4, %s7173_s19  ;;  %1827 = vrot.lane.b32.xlu1 %v8258_v10, %s7173_s19 }
 0x3c1   : > { %1988 = vrot.lane.b32.xlu0 %v8282_v61, %s7174_s20  ;;  %v8448_v2 = vpop.permute.xlu1 %1278  ;;  %v8450_v18 = vpop.permute.xlu2 %2564 }
 0x3c2   : > { %12554 = vst [vmem:[#allocation27_spill] sm:$0xff] %v8450_v18 }
 0x3c3   : > { %2640 = vst.msk [vmem:[#allocation4 + $0x4f8] sm:$0xff] %vm12555_vm6, %v8450_v18  ;;  %v8454_v45 = vpop.permute.xlu0 %1244  ;;  %vm12566_vm6 = vmmov %vm12544_vm1 }
 0x3c7   : > { %1835 = vrot.lane.b32.xlu2 %v8301_v23, %s7173_s19  ;;  %1833 = vrot.lane.b32.xlu1 %v8297_v44, %s7173_s19 }
 0x3c9   : > { %1994 = vrot.lane.b32.xlu0 %v8310_v24, %s7174_s20  ;;  %v8462_v14 = vpop.permute.xlu1 %2171  ;;  %v8464_v35 = vpop.permute.xlu2 %1146 }
 0x3cb   : > { %v8466_v11 = vpop.permute.xlu0 %2181 }
 0x3cf   : > { %1986 = vrot.lane.b32.xlu2 %v8278_v4, %s7174_s20  ;;  %1990 = vrot.lane.b32.xlu1 %v8258_v10, %s7174_s20 }
 0x3d1   : > { %2169 = vrot.lane.b32.xlu0 %v8258_v10, %s7175_s23  ;;  %v8474_v48 = vpop.permute.xlu1 %2394  ;;  %v8476_v52 = vpop.permute.xlu2 %1152 }
 0x3d2   : > { %12556 = vst [vmem:[#allocation28_spill] sm:$0xff] %v8474_v48 }
 0x3d3   : > { %2473 = vst.msk [vmem:[#allocation4 + $0x418] sm:$0xff] %vm12557_vm8, %v8474_v48  ;;  %v8480_v57 = vpop.permute.xlu0 %1142  ;;  %vm12567_vm8 = vmmov %vm12544_vm1 }
 0x3d7   : > { %1998 = vrot.lane.b32.xlu2 %v8301_v23, %s7174_s20  ;;  %1996 = vrot.lane.b32.xlu1 %v8297_v44, %s7174_s20 }
 0x3d9   : > { %2175 = vrot.lane.b32.xlu0 %v8310_v24, %s7175_s23  ;;  %v8488_v49 = vpop.permute.xlu1 %2556  ;;  %v8490_v16 = vpop.permute.xlu2 %1192 }
 0x3da   : > { %12558 = vst [vmem:[#allocation29_spill] sm:$0xff] %v8488_v49 }
 0x3db   : > { %2636 = vst.msk [vmem:[#allocation4 + $0x4d8] sm:$0xff] %vm12544_vm1, %v8488_v49  ;;  %v8494_v3 = vpop.permute.xlu0 %1154  ;;  %v12562_v49 = vld [vmem:[#allocation17_spill] sm:$0xff] }
 0x3df   : > { %2167 = vrot.lane.b32.xlu2 %v8282_v61, %s7175_s23  ;;  %2165 = vrot.lane.b32.xlu1 %v8278_v4, %s7175_s23 }
 0x3e1   : > { %2392 = vrot.lane.b32.xlu0 %v8258_v10, %s7167_s7  ;;  %v8502_v34 = vpop.permute.xlu1 %1144  ;;  %v8504_v58 = vpop.permute.xlu2 %1198 }
 0x3e3   : > { %v8506_v15 = vpop.permute.xlu0 %1188 }
 0x3e7   : > { %2179 = vrot.lane.b32.xlu2 %v8301_v23, %s7175_s23  ;;  %2177 = vrot.lane.b32.xlu1 %v8297_v44, %s7175_s23 }
 0x3e9   : > { %2398 = vrot.lane.b32.xlu0 %v8297_v44, %s7167_s7  ;;  %v8514_v43 = vpop.permute.xlu1 %1156  ;;  %v8516_v42 = vpop.permute.xlu2 %1230 }
 0x3eb   : > { %v8518_v60 = vpop.permute.xlu0 %1200 }
 0x3ec   : > { %12559 = vst [vmem:[#allocation30_spill] sm:$0xff] %v8518_v60 }
 0x3ef   : > { %2390 = vrot.lane.b32.xlu2 %v8282_v61, %s7167_s7  ;;  %2388 = vrot.lane.b32.xlu1 %v8278_v4, %s7167_s7 }
 0x3f1   : > { %2554 = vrot.lane.b32.xlu0 %v8258_v10, %s7177_s25  ;;  %v8526_v9 = vpop.permute.xlu1 %1190  ;;  %v8528_v37 = vpop.permute.xlu2 %1242 }
 0x3f2   : > { %12560 = vst [vmem:[#allocation31_spill] sm:$0xff] %v8528_v37 }
 0x3f3   : > { %v8530_v6 = vpop.permute.xlu0 %1232 }
 0x3f7   : > { %2396 = vrot.lane.b32.xlu2 %v8310_v24, %s7167_s7  ;;  %2400 = vrot.lane.b32.xlu1 %v8301_v23, %s7167_s7 }
 0x3f9   : > { %2711 = vrot.lane.b32.xlu0 %v2656_v46, %s7168_s8  ;;  %v8537_v32 = vpop.permute.xlu1 %1196  ;;  %v8539_v53 = vpop.permute.xlu2 %1274 }
 0x3fb   : > { %v8541_v21 = vpop.permute.xlu0 %1238 }
 0x3ff   : > { %2552 = vrot.lane.b32.xlu2 %v8282_v61, %s7177_s25  ;;  %2550 = vrot.lane.b32.xlu1 %v8278_v4, %s7177_s25 }
 0x401   : > { %2560 = vrot.lane.b32.xlu0 %v8297_v44, %s7177_s25  ;;  %v8549_v38 = vpop.permute.xlu1 %1234  ;;  %v8551_v18 = vpop.permute.xlu2 %1280 }
 0x402   : > { %12561 = vst [vmem:[#allocation32_spill] sm:$0xff] %v8551_v18 }
 0x403   : > { %v8553_v27 = vpop.permute.xlu0 %1276 }
 0x407   : > { %2558 = vrot.lane.b32.xlu2 %v8310_v24, %s7177_s25  ;;  %2562 = vrot.lane.b32.xlu1 %v8301_v23, %s7177_s25 }
 0x409   : > { %2717 = vrot.lane.b32.xlu0 %v8258_v10, %s7168_s8  ;;  %v8561_v26 = vpop.permute.xlu1 %1240  ;;  %v1661_v39 = vpop.permute.xlu2 %1660 }
 0x40a   : > { %v1697_v37 = vsel %vm1690_vm9, %v12562_v49, %v1661_v39 }
 0x40b   : > { %1741 = vst [vmem:[#allocation4 + $0x40] sm:$0xff] %v1697_v37  ;;  %v8565_v60 = vpop.permute.xlu0 %1282 }
 0x40c   : > { %12563 = vst [vmem:[#allocation17_spill] sm:$0xff] %v8565_v60 }
 0x40f   : > { %2709 = vrot.lane.b32.xlu2 %v8079_v1, %s7168_s8  ;;  %2713 = vrot.lane.b32.xlu1 %v8278_v4, %s7168_s8 }
 0x411   : > { %2723 = vrot.lane.b32.xlu0 %v8297_v44, %s7168_s8  ;;  %v8573_v18 = vpop.permute.xlu1 %1272  ;;  %v1673_v41 = vpop.permute.xlu2 %1672 }
 0x412   : > { %1748 = vst.msk [vmem:[#allocation4 + $0x78] sm:$0xff] %vm12564_vm2, %v1673_v41  ;;  %vm12568_vm2 = vmmov %vm12544_vm1 }
 0x413   : > { %v1663_v8 = vpop.permute.xlu0 %1662 }
 0x414   : > { %v1698_v49 = vsel %vm1690_vm9, %v1661_v39, %v1663_v8 }
 0x415   : > { %1742 = vst [vmem:[#allocation4 + $0x48] sm:$0xff] %v1698_v49 }
 0x417   : > { %2715 = vrot.lane.b32.xlu2 %v8282_v61, %s7168_s8  ;;  %2719 = vrot.lane.b32.xlu1 %v8319_v20, %s7168_s8 }
 0x419   : > { %2861 = vrot.lane.b32.xlu0 %v8109_v51, %s7182_s30  ;;  %v8583_v37 = vpop.permute.xlu1 %1284  ;;  %v1824_v1 = vpop.permute.xlu2 %1823 }
 0x41a   : > { %12565 = vst [vmem:[#allocation33_spill] sm:$0xff] %v8583_v37  ;;  %v1860_v60 = vsel %vm1853_vm15, %v7929_v55, %v1824_v1 }
 0x41b   : > { %1904 = vst [vmem:[#allocation4 + $0x100] sm:$0xff] %v1860_v60  ;;  %v1669_v48 = vpop.permute.xlu0 %1668 }
 0x41c   : > { %v1700_v39 = vsel %vm1690_vm9, %v7813_v62, %v1669_v48 }
 0x41d   : > { %1745 = vst [vmem:[#allocation4 + $0x60] sm:$0xff] %v1700_v39 }
 0x41f   : > { %2721 = vrot.lane.b32.xlu2 %v8310_v24, %s7168_s8  ;;  %2725 = vrot.lane.b32.xlu1 %v8301_v23, %s7168_s8 }
 0x421   : > { %2867 = vrot.lane.b32.xlu0 %v8087_v59, %s7182_s30  ;;  %v1665_v51 = vpop.permute.xlu1 %1664  ;;  %v1836_v49 = vpop.permute.xlu2 %1835 }
 0x422   : > { %v1699_v37 = vsel %vm1690_vm9, %v1663_v8, %v1665_v51  ;;  %1744 = vst.msk [vmem:[#allocation4 + $0x58] sm:$0xff] %vm12566_vm6, %v1665_v51  ;;  %vm12570_vm6 = vmmov %vm12544_vm1 }
 0x423   : > { %1743 = vst [vmem:[#allocation4 + $0x50] sm:$0xff] %v1699_v37  ;;  %v1826_v55 = vpop.permute.xlu0 %1825 }
 0x424   : > { %1911 = vst.msk [vmem:[#allocation4 + $0x138] sm:$0xff] %vm12567_vm8, %v1836_v49  ;;  %v1861_v62 = vsel %vm1853_vm15, %v1824_v1, %v1826_v55  ;;  %vm12571_vm8 = vmmov %vm12544_vm1 }
 0x425   : > { %1905 = vst [vmem:[#allocation4 + $0x108] sm:$0xff] %v1861_v62 }
 0x427   : > { %2727 = vrot.lane.b32.xlu2 %v8325_v50, %s7168_s8  ;;  %2863 = vrot.lane.b32.xlu1 %v8095_v63, %s7182_s30 }
 0x429   : > { %2873 = vrot.lane.b32.xlu0 %v2656_v46, %s7182_s30  ;;  %v1987_v59 = vpop.permute.xlu2 %1986  ;;  %v1671_v60 = vpop.permute.xlu1 %1670 }
 0x42a   : > { %v2023_v8 = vsel %vm2016_vm11, %v7963_v33, %v1987_v59  ;;  %v1701_v37 = vsel %vm1690_vm9, %v1669_v48, %v1671_v60  ;;  %v1702_v39 = vsel %vm1690_vm9, %v1671_v60, %v1673_v41  ;;  %v2814_v41 = vld [vmem:[#allocation3 + $0x20] sm:$0xff] }
 0x42b   : > { %v1832_v51 = vpop.permute.xlu0 %1831  ;;  %1746 = vst [vmem:[#allocation4 + $0x68] sm:$0xff] %v1701_v37  ;;  %v12569_v37 = vld [vmem:[#allocation12_spill] sm:$0xff] }
 0x42c   : > { %v1863_v1 = vsel %vm1853_vm15, %v7923_v54, %v1832_v51  ;;  %1747 = vst [vmem:[#allocation4 + $0x70] sm:$0xff] %v1702_v39  ;;  %v2817_v39 = vld [vmem:[#allocation3 + $0x48] sm:$0xff] }
 0x42d   : > { %1908 = vst [vmem:[#allocation4 + $0x120] sm:$0xff] %v1863_v1 }
 0x42f   : > { %2859 = vrot.lane.b32.xlu2 %v8093_v40, %s7182_s30  ;;  %2869 = vrot.lane.b32.xlu1 %v8081_v5, %s7182_s30  ;;  %v1187_v5 = vmax.f32 %v8284_v47, %v8408_v28 }
 0x431   : > { %2879 = vrot.lane.b32.xlu0 %v8258_v10, %s7182_s30  ;;  %v8616_v46 = vpop.permute.xlu2 %1998  ;;  %v1828_v33 = vpop.permute.xlu1 %1827  ;;  %v1229_v10 = vmax.f32 %v1187_v5, %v8434_v30 }
 0x432   : > { %2074 = vst.msk [vmem:[#allocation4 + $0x1f8] sm:$0xff] %vm12544_vm1, %v8616_v46  ;;  %v1862_v63 = vsel %vm1853_vm15, %v1826_v55, %v1828_v33 }
 0x433   : > { %1906 = vst [vmem:[#allocation4 + $0x110] sm:$0xff] %v1862_v63  ;;  %v1989_v54 = vpop.permute.xlu0 %1988  ;;  %v1271_v60 = vmax.f32 %v1229_v10, %v8454_v45 }
 0x434   : > { %1907 = vst.msk [vmem:[#allocation4 + $0x118] sm:$0xff] %vm12568_vm2, %v1828_v33  ;;  %v2024_v40 = vsel %vm2016_vm11, %v1987_v59, %v1989_v54  ;;  %v3042_v33 = vld [vmem:[#allocation4 + $0x1a0] sm:$0xff]  ;;  %vm12572_vm2 = vcmask 1022976  }
 0x435   : > { %2068 = vst [vmem:[#allocation4 + $0x1c8] sm:$0xff] %v2024_v40  ;;  %v1313_v1 = vmax.f32 %v1271_v60, %v8424_v56 }
 0x437   : > { %2865 = vrot.lane.b32.xlu2 %v2814_v41, %s7182_s30  ;;  %2875 = vrot.lane.b32.xlu1 %v8278_v4, %s7182_s30  ;;  %v1163_v41 = vsel %vm12427_vm3, %v8464_v35, %v8426_v7 }
 0x439   : > { %2885 = vrot.lane.b32.xlu0 %v8297_v44, %s7182_s30  ;;  %v8631_v48 = vpop.permute.xlu2 %2167  ;;  %v1834_v55 = vpop.permute.xlu1 %1833  ;;  %v1160_v44 = vsel %vm12427_vm3, %v12569_v37, %v8480_v57 }
 0x43a   : > { %v1864_v62 = vsel %vm1853_vm15, %v1832_v51, %v1834_v55  ;;  %v1865_v59 = vsel %vm1853_vm15, %v1834_v55, %v1836_v49  ;;  %v1178_v49 = vmax.f32 %v8172_v17, %v1160_v44  ;;  %v1206_v55 = vsel %vm705_vm4, %v8490_v16, %v8440_v29 }
 0x43b   : > { %1909 = vst [vmem:[#allocation4 + $0x128] sm:$0xff] %v1864_v62  ;;  %v1995_v47 = vpop.permute.xlu0 %1994 }
 0x43c   : > { %1910 = vst [vmem:[#allocation4 + $0x130] sm:$0xff] %v1865_v59  ;;  %v2026_v4 = vsel %vm2016_vm11, %v7959_v13, %v1995_v47  ;;  %v1181_v59 = vmax.f32 %v8352_v36, %v1163_v41  ;;  %v1161_v36 = vsel %vm12427_vm3, %v8480_v57, %v8502_v34  ;;  %v1205_v41 = vsel %vm705_vm4, %v8526_v9, %v8490_v16 }
 0x43d   : > { %3218 = vmatpush.msra.mxu0 %v2026_v4 }
 0x43f   : > { %2871 = vrot.lane.b32.xlu2 %v2817_v39, %s7182_s30  ;;  %2881 = vrot.lane.b32.xlu1 %v8319_v20, %s7182_s30  ;;  %v1220_v20 = vmax.f32 %v1178_v49, %v8506_v15  ;;  %v1165_v39 = vsel %vm12427_vm3, %v8476_v52, %v8494_v3 }
 0x440   : > { %3219 = vmatpush.msra.mxu0 %v2023_v8  ;;  %v3038_v8 = vld [vmem:[#allocation4 + $0x180] sm:$0xff] }
 0x441   : > { %1342 = vrot.lane.b32.xlu0 %v1313_v1, %s7176_s24  ;;  %v8647_v51 = vpop.permute.xlu2 %2179  ;;  %v1991_v13 = vpop.permute.xlu1 %1990  ;;  %v1262_v10 = vmax.f32 %v1220_v20, %v8516_v42  ;;  %v1204_v1 = vsel %vm705_vm4, %v8506_v15, %v8526_v9 }
 0x442   : > { %v2219_v63 = vsel %vm2203_vm13, %v8647_v51, %v8466_v11  ;;  %v2025_v40 = vsel %vm2016_vm11, %v1989_v54, %v1991_v13  ;;  %2070 = vst.msk [vmem:[#allocation4 + $0x1d8] sm:$0xff] %vm12570_vm6, %v1991_v13  ;;  %3220 = vmatpush.msra.mxu0 %v3042_v33  ;;  %v1182_v54 = vmax.f32 %v8269_v12, %v8426_v7  ;;  %vm12573_vm6 = vcmask 1014784  }
 0x443   : > { %2267 = vst.msk [vmem:[#allocation4 + $0x2b8] sm:$0xff] %vm12571_vm8, %v2219_v63  ;;  %v2170_v17 = vpop.permute.xlu0 %2169  ;;  %v1304_v60 = vmax.f32 %v1262_v10, %v8573_v18  ;;  %v1248_v12 = vsel %vm12572_vm2, %v8549_v38, %v8416_v19  ;;  %v1223_v7 = vmax.f32 %v1181_v59, %v1206_v55  ;;  %v1290_v49 = vsel %vm12573_vm6, %v8553_v27, %v8448_v2  ;;  %vm12574_vm8 = vmmov %vm12572_vm2  ;;  %v12582_v59 = vld [vmem:[#allocation32_spill] sm:$0xff] }
 0x444   : > { %2069 = vst [vmem:[#allocation4 + $0x1d0] sm:$0xff] %v2025_v40  ;;  %v2214_v5 = vsel %vm2203_vm13, %v8631_v48, %v2170_v17  ;;  %v2215_v11 = vsel %vm2203_vm13, %v2170_v17, %v8462_v14  ;;  %3221 = vmatpush.msra.mxu0 %v3038_v8  ;;  %v1224_v62 = vmax.f32 %v1182_v54, %v8440_v29  ;;  %v12579_v54 = vld [vmem:[#allocation11_spill] sm:$0xff] }
 0x445   : > { %2262 = vst [vmem:[#allocation4 + $0x290] sm:$0xff] %v2214_v5  ;;  %v1265_v37 = vmax.f32 %v1223_v7, %v1248_v12  ;;  %v1184_v13 = vmax.f32 %v8370_v22, %v1165_v39  ;;  %v12577_v5 = vld [vmem:[#allocation28_spill] sm:$0xff]  ;;  %v12584_v12 = vld [vmem:[#allocation30_spill] sm:$0xff] }
 0x446   : > { %2263 = vst.msk [vmem:[#allocation4 + $0x298] sm:$0xff] %vm12544_vm1, %v2215_v11  ;;  %vm12575_vm1 = vmmov %vm12572_vm2  ;;  %v12578_v11 = vld [vmem:[#allocation24_spill] sm:$0xff]  ;;  %v1208_v7 = vsel %vm705_vm4, %v8504_v58, %v12584_v12 }
 0x447   : > { %2877 = vrot.lane.b32.xlu2 %v8282_v61, %s7182_s30  ;;  %2887 = vrot.lane.b32.xlu1 %v8301_v23, %s7182_s30  ;;  %v1266_v23 = vmax.f32 %v1224_v62, %v8416_v19  ;;  %v1207_v19 = vsel %vm705_vm4, %v8537_v32, %v8504_v58  ;;  %v1307_v33 = vmax.f32 %v1265_v37, %v1290_v49  ;;  %vm12576_vm2 = vmmov %vm12573_vm6  ;;  %v12581_v62 = vld [vmem:[#allocation17_spill] sm:$0xff] }
 0x448   : > { %v1226_v22 = vmax.f32 %v1184_v13, %v1207_v19  ;;  %v1288_v20 = vsel %vm12576_vm2, %v8573_v18, %v8539_v53  ;;  %vm12580_vm6 = vmmov %vm12575_vm1  ;;  %v12587_v37 = vld [vmem:[#allocation33_spill] sm:$0xff] }
 0x449   : > { %1324 = vrot.lane.b32.xlu0 %v1304_v60, %s7176_s24  ;;  %v8681_v14 = vpop.permute.xlu2 %2390  ;;  %v1997_v29 = vpop.permute.xlu1 %1996  ;;  %v1247_v55 = vsel %vm12580_vm6, %v8530_v6, %v8549_v38  ;;  %v1292_v39 = vsel %vm12576_vm2, %v12581_v62, %v12587_v37  ;;  %vm12588_vm6 = vmmov %vm12576_vm2 }
 0x44a   : > { %v2027_v4 = vsel %vm2016_vm11, %v1995_v47, %v1997_v29  ;;  %v2028_v61 = vsel %vm2016_vm11, %v1997_v29, %v8616_v46  ;;  %v1308_v47 = vmax.f32 %v1266_v23, %v8448_v2  ;;  %v1179_v46 = vmax.f32 %v8335_v31, %v1161_v36  ;;  %v12585_v29 = vld [vmem:[#allocation31_spill] sm:$0xff] }
 0x44b   : > { %2072 = vst [vmem:[#allocation4 + $0x1e8] sm:$0xff] %v2027_v4  ;;  %v2176_v44 = vpop.permute.xlu0 %2175  ;;  %v1162_v31 = vsel %vm12427_vm3, %v8502_v34, %v8464_v35  ;;  %v1166_v2 = vsel %vm12427_vm3, %v8494_v3, %v8514_v43  ;;  %v12586_v23 = vld [vmem:[#allocation15_spill] sm:$0xff] }
 0x44c   : > { %2073 = vst [vmem:[#allocation4 + $0x1f0] sm:$0xff] %v2028_v61  ;;  %v2216_v57 = vsel %vm2203_vm13, %v7997_v25, %v2176_v44  ;;  %v1221_v15 = vmax.f32 %v1179_v46, %v1204_v1  ;;  %v1249_v25 = vsel %vm12574_vm8, %v8541_v21, %v8561_v26  ;;  %v1185_v10 = vmax.f32 %v12579_v54, %v1166_v2  ;;  %vm12583_vm8 = vmmov %vm12576_vm2 }
 0x44d   : > { %2264 = vst [vmem:[#allocation4 + $0x2a0] sm:$0xff] %v2216_v57  ;;  %v1268_v17 = vmax.f32 %v1226_v22, %v1249_v25  ;;  %v1291_v16 = vsel %vm12583_vm8, %v12582_v59, %v12581_v62  ;;  %v12590_v22 = vld [vmem:[#allocation25_spill] sm:$0xff]  ;;  %vm12591_vm8 = vmmov %vm12575_vm1 }
 0x44e   : > { %v1227_v38 = vmax.f32 %v1185_v10, %v1208_v7 }
 0x44f   : > { %2883 = vrot.lane.b32.xlu2 %v8310_v24, %s7182_s30  ;;  %1332 = vrot.lane.b32.xlu1 %v1308_v47, %s7176_s24  ;;  %v1246_v24 = vsel %vm12575_vm1, %v8516_v42, %v8530_v6  ;;  %v1310_v60 = vmax.f32 %v1268_v17, %v1291_v16  ;;  %v1250_v6 = vsel %vm12575_vm1, %v8561_v26, %v12585_v29  ;;  %vm12592_vm1 = vmmov %vm12576_vm2  ;;  %vm12594_vm2 = vcmask 883712   ;;  %v12595_v17 = vld [vmem:[#allocation26_spill] sm:$0xff] }
 0x450   : > { %v1263_v3 = vmax.f32 %v1221_v15, %v1246_v24  ;;  %v1269_v26 = vmax.f32 %v1227_v38, %v1250_v6  ;;  %v1289_v47 = vsel %vm12588_vm6, %v8539_v53, %v8553_v27  ;;  %v1167_v53 = vsel %vm12427_vm3, %v8514_v43, %v8408_v28 }
 0x451   : > { %1330 = vrot.lane.b32.xlu0 %v1307_v33, %s7176_s24  ;;  %v2397_v63 = vpop.permute.xlu2 %2396  ;;  %v2166_v40 = vpop.permute.xlu1 %2165  ;;  %v1209_v28 = vsel %vm705_vm4, %v12584_v12, %v8434_v30  ;;  %vm12596_vm4 = vmmov %vm12594_vm2  ;;  %vm12597_vm6 = vcmask 130048  }
 0x452   : > { %v2212_v35 = vsel %vm2203_vm13, %v7983_v0, %v2166_v40  ;;  %v2213_v34 = vsel %vm2203_vm13, %v2166_v40, %v8631_v48  ;;  %v1180_v0 = vmax.f32 %v12578_v11, %v1162_v31  ;;  %v1305_v48 = vmax.f32 %v1263_v3, %v1288_v20 }
 0x453   : > { %2260 = vst [vmem:[#allocation4 + $0x280] sm:$0xff] %v2212_v35  ;;  %v2393_v8 = vpop.permute.xlu0 %2392  ;;  %v1311_v13 = vmax.f32 %v1269_v26, %v1292_v39  ;;  %v1293_v20 = vsel %vm12592_vm1, %v12587_v37, %v8424_v56  ;;  %v12593_v35 = vld [vmem:[#allocation14_spill] sm:$0xff]  ;;  %vm12600_vm1 = vmmov %vm12597_vm6 }
 0x454   : > { %2261 = vst [vmem:[#allocation4 + $0x288] sm:$0xff] %v2213_v34  ;;  %v2427_v42 = vsel %vm12427_vm3, %v8681_v14, %v2393_v8  ;;  %v2428_v18 = vsel %vm12427_vm3, %v2393_v8, %v12577_v5  ;;  %v1222_v9 = vmax.f32 %v1180_v0, %v1205_v41 }
 0x455   : > { %2471 = vst [vmem:[#allocation4 + $0x408] sm:$0xff] %v2427_v42 }
 0x456   : > { %2472 = vst [vmem:[#allocation4 + $0x410] sm:$0xff] %v2428_v18  ;;  %v1264_v36 = vmax.f32 %v1222_v9, %v1247_v55  ;;  %v12598_v55 = vld [vmem:[#allocation27_spill] sm:$0xff] }
 0x457   : > { %2889 = vrot.lane.b32.xlu2 %v8325_v50, %s7182_s30  ;;  %1326 = vrot.lane.b32.xlu1 %v1305_v48, %s7176_s24  ;;  %v1164_v50 = vsel %vm12427_vm3, %v12586_v23, %v8476_v52  ;;  %v8768_v52 = vld [vmem:[#allocation2 + $0x30] sm:$0xff] }
 0x458   : > { %v1183_v19 = vmax.f32 %v8768_v52, %v1164_v50  ;;  %v1306_v49 = vmax.f32 %v1264_v36, %v1289_v47 }
 0x459   : > { %1336 = vrot.lane.b32.xlu0 %v1310_v60, %s7176_s24  ;;  %v2553_v4 = vpop.permute.xlu2 %2552  ;;  %v2178_v61 = vpop.permute.xlu1 %2177 }
 0x45a   : > { %v2217_v58 = vsel %vm2203_vm13, %v2176_v44, %v2178_v61  ;;  %v2218_v1 = vsel %vm2203_vm13, %v2178_v61, %v8647_v51  ;;  %v1225_v44 = vmax.f32 %v1183_v19, %v8537_v32  ;;  %v12589_v32 = vld [vmem:[#allocation29_spill] sm:$0xff] }
 0x45b   : > { %2265 = vst [vmem:[#allocation4 + $0x2a8] sm:$0xff] %v2217_v58  ;;  %v2399_v57 = vpop.permute.xlu0 %2398 }
 0x45c   : > { %2266 = vst [vmem:[#allocation4 + $0x2b0] sm:$0xff] %v2218_v1  ;;  %v2429_v46 = vsel %vm12427_vm3, %v2397_v63, %v2399_v57  ;;  %v1267_v33 = vmax.f32 %v1225_v44, %v8541_v21  ;;  %v1186_v63 = vmax.f32 %v12590_v22, %v1167_v53  ;;  %v1251_v21 = vsel %vm12591_vm8, %v12585_v29, %v8454_v45  ;;  %vm12599_vm8 = vmmov %vm12594_vm2 }
 0x45d   : > { %2474 = vst [vmem:[#allocation4 + $0x420] sm:$0xff] %v2429_v46 }
 0x45e   : > { %v1309_v40 = vmax.f32 %v1267_v33, %v12582_v59  ;;  %v1228_v43 = vmax.f32 %v1186_v63, %v1209_v28 }
 0x45f   : > { %1328 = vrot.lane.b32.xlu2 %v1306_v49, %s7176_s24  ;;  %1338 = vrot.lane.b32.xlu1 %v1311_v13, %s7176_s24 }
 0x460   : > { %v1270_v30 = vmax.f32 %v1228_v43, %v1251_v21 }
 0x461   : > { %v2559_v51 = vpop.permute.xlu2 %2558  ;;  %v2389_v15 = vpop.permute.xlu1 %2388 }
 0x462   : > { %v2426_v27 = vsel %vm12427_vm3, %v2389_v15, %v8681_v14  ;;  %v1312_v42 = vmax.f32 %v1270_v30, %v1293_v20 }
 0x463   : > { %2470 = vst [vmem:[#allocation4 + $0x400] sm:$0xff] %v2426_v27  ;;  %v2555_v25 = vpop.permute.xlu0 %2554 }
 0x464   : > { %v2590_v31 = vsel %vm12426_vm14, %v2553_v4, %v2555_v25  ;;  %v2591_v2 = vsel %vm12426_vm14, %v2555_v25, %v12589_v32 }
 0x465   : > { %2634 = vst [vmem:[#allocation4 + $0x4c8] sm:$0xff] %v2590_v31 }
 0x466   : > { %2635 = vst [vmem:[#allocation4 + $0x4d0] sm:$0xff] %v2591_v2 }
 0x467   : > { %1334 = vrot.lane.b32.xlu2 %v1309_v40, %s7176_s24 }
 0x469   : > { %v2710_v14 = vpop.permute.xlu2 %2709  ;;  %v2401_v24 = vpop.permute.xlu1 %2400 }
 0x46a   : > { %v2749_v34 = vsel %vm12594_vm2, %v12593_v35, %v2710_v14  ;;  %v2430_v3 = vsel %vm12427_vm3, %v2399_v57, %v2401_v24  ;;  %v2431_v8 = vsel %vm12427_vm3, %v2401_v24, %v12595_v17  ;;  %vm12603_vm3 = vmmov %vm12600_vm1 }
 0x46b   : > { %2792 = vst [vmem:[#allocation4 + $0x568] sm:$0xff] %v2749_v34  ;;  %v2712_v41 = vpop.permute.xlu0 %2711 }
 0x46c   : > { %2475 = vst [vmem:[#allocation4 + $0x428] sm:$0xff] %v2430_v3  ;;  %v2750_v45 = vsel %vm12596_vm4, %v2710_v14, %v2712_v41  ;;  %vm12601_vm4 = vmmov %vm12594_vm2 }
 0x46d   : > { %2476 = vst [vmem:[#allocation4 + $0x430] sm:$0xff] %v2431_v8 }
 0x46e   : > { %2793 = vst [vmem:[#allocation4 + $0x570] sm:$0xff] %v2750_v45 }
 0x46f   : > { %2794 = vst.msk [vmem:[#allocation4 + $0x578] sm:$0xff] %vm12597_vm6, %v2712_v41  ;;  %1340 = vrot.lane.b32.xlu2 %v1312_v42, %s7176_s24  ;;  %vm2907_vm6 = vcmask 875520  }
 0x471   : > { %v2716_v56 = vpop.permute.xlu2 %2715  ;;  %v2551_v5 = vpop.permute.xlu1 %2550 }
 0x472   : > { %v2589_v18 = vsel %vm12426_vm14, %v2551_v5, %v2553_v4 }
 0x473   : > { %2633 = vst [vmem:[#allocation4 + $0x4c0] sm:$0xff] %v2589_v18  ;;  %v2561_v11 = vpop.permute.xlu0 %2560 }
 0x474   : > { %v2592_v0 = vsel %vm12426_vm14, %v2559_v51, %v2561_v11 }
 0x475   : > { %2637 = vst [vmem:[#allocation4 + $0x4e0] sm:$0xff] %v2592_v0 }
 0x479   : > { %v2722_v54 = vpop.permute.xlu2 %2721  ;;  %v2563_v10 = vpop.permute.xlu1 %2562 }
 0x47a   : > { %v2593_v48 = vsel %vm12426_vm14, %v2561_v11, %v2563_v10  ;;  %v2594_v62 = vsel %vm12426_vm14, %v2563_v10, %v12598_v55  ;;  %vm12602_vm14 = vmmov %vm12594_vm2 }
 0x47b   : > { %2638 = vst [vmem:[#allocation4 + $0x4e8] sm:$0xff] %v2593_v48  ;;  %v2718_v59 = vpop.permute.xlu0 %2717 }
 0x47c   : > { %2639 = vst [vmem:[#allocation4 + $0x4f0] sm:$0xff] %v2594_v62  ;;  %v2752_v16 = vsel %vm12599_vm8, %v2716_v56, %v2718_v59  ;;  %vm12604_vm8 = vmmov %vm12600_vm1 }
 0x47d   : > { %2796 = vst [vmem:[#allocation4 + $0x588] sm:$0xff] %v2752_v16 }
 0x481   : > { %v2728_v9 = vpop.permute.xlu2 %2727  ;;  %v2714_v60 = vpop.permute.xlu1 %2713 }
 0x482   : > { %2802 = vst.msk [vmem:[#allocation4 + $0x5b8] sm:$0xff] %vm12600_vm1, %v2728_v9  ;;  %v2751_v12 = vsel %vm12594_vm2, %v2714_v60, %v2716_v56  ;;  %vm12605_vm1 = vmmov %vm12594_vm2 }
 0x483   : > { %2795 = vst [vmem:[#allocation4 + $0x580] sm:$0xff] %v2751_v12  ;;  %v2724_v7 = vpop.permute.xlu0 %2723  ;;  %vm12606_vm2 = vmmov %vm12605_vm1 }
 0x484   : > { %v2754_v29 = vsel %vm12601_vm4, %v2722_v54, %v2724_v7  ;;  %vm12608_vm4 = vmmov %vm12603_vm3 }
 0x485   : > { %2799 = vst [vmem:[#allocation4 + $0x5a0] sm:$0xff] %v2754_v29 }
 0x489   : > { %v2860_v6 = vpop.permute.xlu2 %2859  ;;  %v2720_v38 = vpop.permute.xlu1 %2719 }
 0x48a   : > { %v2753_v36 = vsel %vm12602_vm14, %v2718_v59, %v2720_v38  ;;  %2798 = vst.msk [vmem:[#allocation4 + $0x598] sm:$0xff] %vm12603_vm3, %v2720_v38  ;;  %vm12607_vm14 = vmmov %vm12603_vm3 }
 0x48b   : > { %2797 = vst [vmem:[#allocation4 + $0x590] sm:$0xff] %v2753_v36  ;;  %v2862_v4 = vpop.permute.xlu0 %2861 }
 0x48c   : > { %v2908_v61 = vsel %vm2907_vm6, %v2860_v6, %v2862_v4 }
 0x48d   : > { %2950 = vst [vmem:[#allocation4 + $0x600] sm:$0xff] %v2908_v61 }
 0x491   : > { %v2866_v23 = vpop.permute.xlu2 %2865  ;;  %v2726_v50 = vpop.permute.xlu1 %2725 }
 0x492   : > { %2953 = vst.msk [vmem:[#allocation4 + $0x618] sm:$0xff] %vm12604_vm8, %v2866_v23  ;;  %v2755_v37 = vsel %vm12605_vm1, %v2724_v7, %v2726_v50  ;;  %v2756_v39 = vsel %vm12606_vm2, %v2726_v50, %v2728_v9  ;;  %vm12609_vm8 = vcmask 15360   ;;  %vm12611_vm2 = vmmov %vm12603_vm3 }
 0x493   : > { %2800 = vst [vmem:[#allocation4 + $0x5a8] sm:$0xff] %v2755_v37  ;;  %v2868_v58 = vpop.permute.xlu0 %2867  ;;  %vm12610_vm1 = vmmov %vm12609_vm8 }
 0x494   : > { %2801 = vst [vmem:[#allocation4 + $0x5b0] sm:$0xff] %v2756_v39 }
 0x499   : > { %v2872_v1 = vpop.permute.xlu2 %2871  ;;  %v2864_v26 = vpop.permute.xlu1 %2863 }
 0x49a   : > { %v2909_v57 = vsel %vm2907_vm6, %v2862_v4, %v2864_v26  ;;  %v2910_v47 = vsel %vm2907_vm6, %v2864_v26, %v2866_v23 }
 0x49b   : > { %2951 = vst [vmem:[#allocation4 + $0x608] sm:$0xff] %v2909_v57  ;;  %v2874_v46 = vpop.permute.xlu0 %2873 }
 0x49c   : > { %2952 = vst [vmem:[#allocation4 + $0x610] sm:$0xff] %v2910_v47  ;;  %v2913_v19 = vsel %vm2907_vm6, %v2872_v1, %v2874_v46 }
 0x49d   : > { %2956 = vst [vmem:[#allocation4 + $0x630] sm:$0xff] %v2913_v19 }
 0x49e   : > { %2957 = vst.msk [vmem:[#allocation4 + $0x638] sm:$0xff] %vm12603_vm3, %v2874_v46  ;;  %vm12612_vm3 = vmmov %vm12610_vm1 }
 0x4a1   : > { %v2878_v49 = vpop.permute.xlu2 %2877  ;;  %v2870_v13 = vpop.permute.xlu1 %2869 }
 0x4a2   : > { %v2911_v44 = vsel %vm2907_vm6, %v2868_v58, %v2870_v13  ;;  %v2912_v51 = vsel %vm2907_vm6, %v2870_v13, %v2872_v1 }
 0x4a3   : > { %2954 = vst [vmem:[#allocation4 + $0x620] sm:$0xff] %v2911_v44  ;;  %v2880_v15 = vpop.permute.xlu0 %2879 }
 0x4a4   : > { %2955 = vst [vmem:[#allocation4 + $0x628] sm:$0xff] %v2912_v51  ;;  %v2915_v53 = vsel %vm2907_vm6, %v2878_v49, %v2880_v15 }
 0x4a5   : > { %2959 = vst [vmem:[#allocation4 + $0x648] sm:$0xff] %v2915_v53 }
 0x4a9   : > { %v2884_v27 = vpop.permute.xlu2 %2883  ;;  %v2876_v33 = vpop.permute.xlu1 %2875 }
 0x4aa   : > { %v2914_v25 = vsel %vm2907_vm6, %v2876_v33, %v2878_v49 }
 0x4ab   : > { %2958 = vst [vmem:[#allocation4 + $0x640] sm:$0xff] %v2914_v25  ;;  %v2886_v31 = vpop.permute.xlu0 %2885  ;;  %v12624_v25 = vld [vmem:[#allocation16_spill] sm:$0xff] }
 0x4ac   : > { %v2917_v32 = vsel %vm2907_vm6, %v2884_v27, %v2886_v31 }
 0x4ad   : > { %2962 = vst [vmem:[#allocation4 + $0x660] sm:$0xff] %v2917_v32 }
 0x4b1   : > { %v2890_v2 = vpop.permute.xlu2 %2889  ;;  %v2882_v22 = vpop.permute.xlu1 %2881 }
 0x4b2   : > { %2965 = vst.msk [vmem:[#allocation4 + $0x678] sm:$0xff] %vm12607_vm14, %v2890_v2  ;;  %v2916_v63 = vsel %vm2907_vm6, %v2880_v15, %v2882_v22  ;;  %vm12613_vm14 = vmmov %vm12610_vm1 }
 0x4b3   : > { %2960 = vst [vmem:[#allocation4 + $0x650] sm:$0xff] %v2916_v63  ;;  %v1343_v40 = vpop.permute.xlu0 %1342 }
 0x4b4   : > { %2961 = vst.msk [vmem:[#allocation4 + $0x658] sm:$0xff] %vm12608_vm4, %v2882_v22  ;;  %vm12614_vm4 = vmmov %vm12610_vm1 }
 0x4b9   : > { %v2888_v28 = vpop.permute.xlu1 %2887  ;;  %v1329_v21 = vpop.permute.xlu2 %1328 }
 0x4ba   : > { %v2918_v43 = vsel %vm2907_vm6, %v2886_v31, %v2888_v28  ;;  %v2919_v14 = vsel %vm2907_vm6, %v2888_v28, %v2890_v2 }
 0x4bb   : > { %2963 = vst [vmem:[#allocation4 + $0x668] sm:$0xff] %v2918_v43  ;;  %v1325_v24 = vpop.permute.xlu0 %1324  ;;  %v7136_v43 = vld [vmem:[#allocation2] sm:$0xff] }
 0x4bc   : > { %2964 = vst [vmem:[#allocation4 + $0x670] sm:$0xff] %v2919_v14 }
 0x4c1   : > { %v1333_v20 = vpop.permute.xlu1 %1332  ;;  %v1335_v35 = vpop.permute.xlu2 %1334 }
 0x4c3   : > { %v1331_v34 = vpop.permute.xlu0 %1330 }
 0x4c4   : > { %v8833_v3 = vsel %vm12609_vm8, %v1329_v21, %v1331_v34  ;;  %v1347_v17 = vsel %vm12610_vm1, %v1331_v34, %v1333_v20  ;;  %vm12615_vm8 = vmmov %vm12610_vm1 }
 0x4c5   : > { %1390 = vrot.lane.b32.xlu1 %v8833_v3, %s7168_s8  ;;  %1363 = vst.msk [vmem:[#allocation2 + $0x20] sm:$0xff] %vm12611_vm2, %v1347_v17  ;;  %vm12616_vm1 = vmmov %vm12611_vm2 }
 0x4c6   : > { %vm12617_vm2 = vmmov %vm12612_vm3 }
 0x4c9   : > { %v1327_v8 = vpop.permute.xlu1 %1326  ;;  %v1341_v30 = vpop.permute.xlu2 %1340 }
 0x4ca   : > { %v8840_v41 = vsel %vm12612_vm3, %v1325_v24, %v1327_v8  ;;  %v8843_v45 = vsel %vm12613_vm14, %v1327_v8, %v1329_v21  ;;  %v1351_v42 = vsel %vm12614_vm4, %v1341_v30, %v1343_v40  ;;  %vm12618_vm3 = vmmov %vm12617_vm2  ;;  %vm12619_vm14 = vcmask 883712  }
 0x4cb   : > { %v1337_v56 = vpop.permute.xlu0 %1336  ;;  %1388 = vrot.lane.b32.xlu0 %v8843_v45, %s7168_s8  ;;  %1386 = vrot.lane.b32.xlu2 %v8840_v41, %s7168_s8  ;;  %1367 = vst.msk [vmem:[#allocation2 + $0x50] sm:$0xff] %vm12616_vm1, %v1351_v42  ;;  %vm12620_vm4 = vcmask 719872   ;;  %vm12622_vm1 = vcmask 556032  }
 0x4cc   : > { %v8851_v5 = vsel %vm12615_vm8, %v1335_v35, %v1337_v56  ;;  %v1422_v54 = vld [vmem:[#allocation2 + $0x20] sm:$0xff]  ;;  %vm12621_vm8 = vmmov %vm12620_vm4 }
 0x4d1   : > { %v1339_v18 = vpop.permute.xlu1 %1338 }
 0x4d2   : > { %v8855_v11 = vsel %vm12617_vm2, %v1337_v56, %v1339_v18  ;;  %v8858_v0 = vsel %vm12618_vm3, %v1339_v18, %v1341_v30  ;;  %v1423_v10 = vld [vmem:[#allocation2 + $0x50] sm:$0xff]  ;;  %vm12623_vm2 = vmmov %vm12622_vm1 }
 0x4d3   : > { %1398 = vrot.lane.b32.xlu2 %v8858_v0, %s7168_s8  ;;  %1396 = vrot.lane.b32.xlu1 %v8855_v11, %s7168_s8  ;;  %vm12625_vm3 = vmmov %vm12619_vm14 }
 0x4d4   : > { %1394 = vrot.lane.b32.xlu0 %v8851_v5, %s7168_s8 }
 0x4db   : > { %1430 = vrot.lane.b32.xlu2 %v8833_v3, %s7178_s26  ;;  %1428 = vrot.lane.b32.xlu1 %v8843_v45, %s7178_s26 }
 0x4dc   : > { %1426 = vrot.lane.b32.xlu0 %v8840_v41, %s7178_s26 }
 0x4e3   : > { %1436 = vrot.lane.b32.xlu2 %v8855_v11, %s7178_s26  ;;  %1434 = vrot.lane.b32.xlu1 %v8851_v5, %s7178_s26 }
 0x4e4   : > { %1432 = vrot.lane.b32.xlu0 %v1422_v54, %s7178_s26 }
 0x4eb   : > { %1464 = vrot.lane.b32.xlu2 %v8840_v41, %s7179_s27  ;;  %1440 = vrot.lane.b32.xlu1 %v1423_v10, %s7178_s26 }
 0x4ec   : > { %1438 = vrot.lane.b32.xlu0 %v8858_v0, %s7178_s26 }
 0x4f3   : > { %1470 = vrot.lane.b32.xlu2 %v1422_v54, %s7179_s27  ;;  %1468 = vrot.lane.b32.xlu1 %v8833_v3, %s7179_s27 }
 0x4f4   : > { %1466 = vrot.lane.b32.xlu0 %v8843_v45, %s7179_s27 }
 0x4fb   : > { %1476 = vrot.lane.b32.xlu2 %v8858_v0, %s7179_s27  ;;  %1474 = vrot.lane.b32.xlu1 %v8855_v11, %s7179_s27 }
 0x4fc   : > { %1472 = vrot.lane.b32.xlu0 %v8851_v5, %s7179_s27 }
 0x503   : > { %1504 = vrot.lane.b32.xlu2 %v8843_v45, %s7180_s28  ;;  %1502 = vrot.lane.b32.xlu1 %v8840_v41, %s7180_s28 }
 0x504   : > { %1478 = vrot.lane.b32.xlu0 %v1423_v10, %s7179_s27 }
 0x50b   : > { %1510 = vrot.lane.b32.xlu2 %v8851_v5, %s7180_s28  ;;  %1508 = vrot.lane.b32.xlu1 %v1422_v54, %s7180_s28 }
 0x50c   : > { %1506 = vrot.lane.b32.xlu0 %v8833_v3, %s7180_s28 }
 0x513   : > { %1516 = vrot.lane.b32.xlu2 %v1423_v10, %s7180_s28  ;;  %1514 = vrot.lane.b32.xlu1 %v8858_v0, %s7180_s28 }
 0x514   : > { %1512 = vrot.lane.b32.xlu0 %v8855_v11, %s7180_s28 }
 0x525   : > { %v1387_v48 = vpop.permute.xlu2 %1386 }
 0x526   : > { %v1400_v31 = vsel %vm12625_vm3, %v12624_v25, %v1387_v48 }
 0x527   : > { %v1414_v14 = vmax.f32 %v7136_v43, %v1400_v31 }
 0x52d   : > { %v8908_v55 = vpop.permute.xlu2 %1398 }
 0x52e   : > { %v1421_v34 = vmax.f32 %v8858_v0, %v8908_v55 }
 0x535   : > { %v1431_v16 = vpop.permute.xlu2 %1430 }
 0x537   : > { %v1391_v62 = vpop.permute.xlu1 %1390 }
 0x538   : > { %v1417_v13 = vmax.f32 %v8833_v3, %v1391_v62 }
 0x53d   : > { %v1389_v59 = vpop.permute.xlu0 %1388  ;;  %v8912_v12 = vpop.permute.xlu2 %1436 }
 0x53e   : > { %v1402_v46 = vsel %vm12619_vm14, %v1389_v59, %v1391_v62  ;;  %vm12626_vm14 = vmmov %vm12625_vm3  ;;  %vm12631_vm3 = vcmask 556032  }
 0x53f   : > { %v1416_v44 = vmax.f32 %v8843_v45, %v1402_v46 }
 0x545   : > { %v1397_v9 = vpop.permute.xlu1 %1396  ;;  %v8914_v6 = vpop.permute.xlu2 %1464 }
 0x546   : > { %v8910_v60 = vpop.permute.xlu0 %1394 }
 0x547   : > { %v1404_v40 = vsel %vm12626_vm14, %v8910_v60, %v1397_v9  ;;  %vm12632_vm14 = vmmov %vm12631_vm3 }
 0x548   : > { %v1419_v17 = vmax.f32 %v8851_v5, %v1404_v40 }
 0x54d   : > { %v1429_v7 = vpop.permute.xlu1 %1428  ;;  %v1471_v4 = vpop.permute.xlu2 %1470 }
 0x54e   : > { %v1427_v29 = vpop.permute.xlu0 %1426  ;;  %v1443_v19 = vsel %vm12620_vm4, %v1429_v7, %v1431_v16  ;;  %vm12627_vm4 = vcmask 392192  }
 0x54f   : > { %v1458_v27 = vmax.f32 %v1416_v44, %v1443_v19  ;;  %v1456_v8 = vmax.f32 %v1414_v14, %v1427_v29  ;;  %v7143_v14 = vld [vmem:[#allocation4 + $0x328] sm:$0xff] }
 0x551   : > { %v1494_v5 = vmax.f32 %v1456_v8, %v8914_v6 }
 0x555   : > { %v8916_v38 = vpop.permute.xlu1 %1434  ;;  %v1477_v39 = vpop.permute.xlu2 %1476 }
 0x556   : > { %v1433_v36 = vpop.permute.xlu0 %1432 }
 0x557   : > { %v1444_v49 = vsel %vm12621_vm8, %v1431_v16, %v1433_v36  ;;  %vm12628_vm8 = vmmov %vm12627_vm4 }
 0x558   : > { %v1459_v33 = vmax.f32 %v1417_v13, %v1444_v49 }
 0x55d   : > { %v1441_v61 = vpop.permute.xlu1 %1440  ;;  %v1505_v26 = vpop.permute.xlu2 %1504 }
 0x55e   : > { %v1439_v23 = vpop.permute.xlu0 %1438 }
 0x565   : > { %v1469_v50 = vpop.permute.xlu1 %1468  ;;  %v8925_v51 = vpop.permute.xlu2 %1510 }
 0x566   : > { %v1467_v37 = vpop.permute.xlu0 %1466  ;;  %v1482_v15 = vsel %vm12622_vm1, %v1469_v50, %v1471_v4  ;;  %vm12629_vm1 = vcmask 719872  }
 0x567   : > { %v1481_v53 = vsel %vm12623_vm2, %v1467_v37, %v1469_v50  ;;  %v1497_v2 = vmax.f32 %v1459_v33, %v1482_v15  ;;  %v1447_v24 = vsel %vm12629_vm1, %v1439_v23, %v1441_v61  ;;  %vm12630_vm2 = vmmov %vm12629_vm1 }
 0x568   : > { %v1496_v22 = vmax.f32 %v1458_v27, %v1481_v53  ;;  %v1445_v3 = vsel %vm12630_vm2, %v8916_v38, %v8912_v12  ;;  %v1463_v45 = vmax.f32 %v1421_v34, %v1447_v24  ;;  %vm12635_vm2 = vmmov %vm12628_vm8 }
 0x569   : > { %v1461_v56 = vmax.f32 %v1419_v17, %v1445_v3 }
 0x56d   : > { %v1475_v58 = vpop.permute.xlu1 %1474  ;;  %v1517_v18 = vpop.permute.xlu2 %1516 }
 0x56e   : > { %v8918_v1 = vpop.permute.xlu0 %1472 }
 0x56f   : > { %v1483_v42 = vsel %vm12632_vm14, %v8918_v1, %v1475_v58 }
 0x570   : > { %v1499_v62 = vmax.f32 %v1461_v56, %v1483_v42  ;;  %v7138_v42 = vld [vmem:[#allocation4 + $0x340] sm:$0xff] }
 0x571   : > { %v7139_v56 = vld [vmem:[#allocation4 + $0x320] sm:$0xff] }
 0x575   : > { %v1503_v57 = vpop.permute.xlu1 %1502 }
 0x576   : > { %v1479_v47 = vpop.permute.xlu0 %1478  ;;  %v1532_v46 = vmax.f32 %v1494_v5, %v1503_v57 }
 0x577   : > { %v1485_v30 = vsel %vm12631_vm3, %v1477_v39, %v1479_v47  ;;  %vm12636_vm3 = vcmask 719872  }
 0x578   : > { %v1501_v0 = vmax.f32 %v1463_v45, %v1485_v30  ;;  %v1442_v47 = vsel %vm12636_vm3, %v1427_v29, %v1429_v7  ;;  %vm12637_vm14 = vmmov %vm12636_vm3  ;;  %v12640_v29 = vld [vmem:[#allocation13_spill] sm:$0xff] }
 0x579   : > { %vm12641_vm3 = vmmov %vm12635_vm2  ;;  %v7137_v45 = vld [vmem:[#allocation4 + $0x360] sm:$0xff] }
 0x57d   : > { %v1509_v32 = vpop.permute.xlu1 %1508 }
 0x57e   : > { %v1507_v63 = vpop.permute.xlu0 %1506 }
 0x57f   : > { %v1519_v28 = vsel %vm12627_vm4, %v1505_v26, %v1507_v63  ;;  %v1520_v21 = vsel %vm12628_vm8, %v1507_v63, %v1509_v32  ;;  %vm12633_vm4 = vcmask 883712  }
 0x580   : > { %v1534_v20 = vmax.f32 %v1496_v22, %v1519_v28  ;;  %v1535_v35 = vmax.f32 %v1497_v2, %v1520_v21  ;;  %v1401_v10 = vsel %vm12633_vm4, %v1387_v48, %v1389_v59  ;;  %vm12634_vm1 = vmmov %vm12633_vm4  ;;  %v1446_v48 = vsel %vm12637_vm14, %v8912_v12, %v1439_v23 }
 0x581   : > { %v1405_v4 = vsel %vm12634_vm1, %v1397_v9, %v8908_v55  ;;  %v1415_v49 = vmax.f32 %v8840_v41, %v1401_v10  ;;  %vm12638_vm4 = vcmask 556032   ;;  %v1403_v41 = vsel %vm12634_vm1, %v12640_v29, %v8910_v60 }
 0x582   : > { %1554 = vrot.lane.b32.xlu0 %v1535_v35, %s7181_s29  ;;  %1552 = vrot.lane.b32.xlu2 %v1534_v20, %s7181_s29  ;;  %v1420_v59 = vmax.f32 %v8855_v11, %v1405_v4  ;;  %v1480_v55 = vsel %vm12638_vm4, %v8914_v6, %v1467_v37  ;;  %v1518_v12 = vsel %vm12635_vm2, %v1503_v57, %v1505_v26  ;;  %vm12644_vm14 = vcmask 130048  }
 0x583   : > { %v1457_v9 = vmax.f32 %v1415_v49, %v1442_v47  ;;  %v1418_v6 = vmax.f32 %v8768_v52, %v1403_v41  ;;  %v12653_v47 = vld [vmem:[#allocation22_spill] sm:$0xff] }
 0x584   : > { %v1462_v13 = vmax.f32 %v1420_v59, %v1446_v48 }
 0x585   : > { %v1515_v54 = vpop.permute.xlu1 %1514  ;;  %v1495_v23 = vmax.f32 %v1457_v9, %v1480_v55  ;;  %v1460_v53 = vmax.f32 %v1418_v6, %v8916_v38  ;;  %v7148_v38 = vld [vmem:[#allocation4 + $0x310] sm:$0xff] }
 0x586   : > { %v1523_v16 = vsel %vm12628_vm8, %v1515_v54, %v1517_v18  ;;  %v1513_v36 = vpop.permute.xlu0 %1512  ;;  %vm12639_vm8 = vmmov %vm12638_vm4  ;;  %v7140_v18 = vld [vmem:[#allocation4 + $0x300] sm:$0xff] }
 0x587   : > { %v1539_v61 = vmax.f32 %v1501_v0, %v1523_v16  ;;  %v1521_v50 = vsel %vm12635_vm2, %v8925_v51, %v1513_v36  ;;  %v1484_v7 = vsel %vm12639_vm8, %v1475_v58, %v1477_v39  ;;  %v1522_v11 = vsel %vm12641_vm3, %v1513_v36, %v1515_v54  ;;  %vm12645_vm4 = vmmov %vm12644_vm14 }
 0x588   : > { %v1537_v19 = vmax.f32 %v1499_v62, %v1521_v50  ;;  %v1500_v44 = vmax.f32 %v1462_v13, %v1484_v7  ;;  %v1533_v37 = vmax.f32 %v1495_v23, %v1518_v12  ;;  %v1498_v39 = vmax.f32 %v1460_v53, %v8918_v1  ;;  %vm12646_vm8 = vmmov %vm12645_vm4  ;;  %v12650_v62 = vld [vmem:[#allocation20_spill] sm:$0xff]  ;;  %v12658_v7 = vld [vmem:[#allocation18_spill] sm:$0xff] }
 0x589   : > { %1562 = vrot.lane.b32.xlu1 %v1539_v61, %s7181_s29 }
 0x58a   : > { %1548 = vrot.lane.b32.xlu0 %v1532_v46, %s7181_s29  ;;  %1558 = vrot.lane.b32.xlu2 %v1537_v19, %s7181_s29  ;;  %v1538_v15 = vmax.f32 %v1500_v44, %v1522_v11  ;;  %v1536_v60 = vmax.f32 %v1498_v39, %v8925_v51  ;;  %v12661_v11 = vld [vmem:[#allocation10_spill] sm:$0xff] }
 0x591   : > { %1550 = vrot.lane.b32.xlu1 %v1533_v37, %s7181_s29 }
 0x592   : > { %1560 = vrot.lane.b32.xlu0 %v1538_v15, %s7181_s29 }
 0x599   : > { %1556 = vrot.lane.b32.xlu1 %v1536_v60, %s7181_s29  ;;  %v12663_v60 = vld [vmem:[#allocation19_spill] sm:$0xff] }
 0x5dc   : > { %v1553_v58 = vpop.permute.xlu2 %1552 }
 0x5e4   : > { %v1559_v2 = vpop.permute.xlu2 %1558 }
 0x5f4   : > { %v1555_v26 = vpop.permute.xlu0 %1554 }
 0x5f5   : > { %v8978_v57 = vsel %vm1073_vm0, %v1553_v58, %v1555_v26  ;;  %v1581_v27 = vsel %vm7400_vm12, %v1555_v26, 0.0 }
 0x5f6   : > { %v8985_v33 = vsel %vm7392_vm10, %v8978_v57, 0.0  ;;  %1589 = vst.msk [vmem:[#allocation3 + $0xe0] sm:$0xff] %vm12644_vm14, %v1581_v27 }
 0x5fb   : > { %v1563_v1 = vpop.permute.xlu1 %1562 }
 0x5fc   : > { %v1585_v51 = vsel %vm7400_vm12, %v1563_v1, 0.0  ;;  %v1549_v25 = vpop.permute.xlu0 %1548  ;;  %vm12649_vm12 = vmmov %vm12645_vm4 }
 0x5fd   : > { %1593 = vst.msk [vmem:[#allocation3 + $0x110] sm:$0xff] %vm12645_vm4, %v1585_v51  ;;  %v2343_v31 = vld [vmem:[#allocation3 + $0xe0] sm:$0xff] }
 0x5fe   : > { %2410 = vrot.lane.b32.xlu0 %v2343_v31, %s7167_s7  ;;  %2191 = vrot.lane.b32.xlu2 %v2343_v31, %s7175_s23  ;;  %2319 = vst.msk [vmem:[#allocation4 + $0x398] sm:$0xff] %vm12646_vm8, %v2343_v31 }
 0x603   : > { %v1551_v32 = vpop.permute.xlu1 %1550 }
 0x604   : > { %v1564_v22 = vsel %vm1073_vm0, %v1549_v25, %v1551_v32  ;;  %v8996_v63 = vsel %vm1073_vm0, %v1551_v32, %v1553_v58  ;;  %v1561_v40 = vpop.permute.xlu0 %1560  ;;  %v2112_v28 = vld [vmem:[#allocation3 + $0x110] sm:$0xff] }
 0x605   : > { %v9000_v43 = vsel %vm7372_vm5, %v1564_v22, 0.0  ;;  %v9005_v24 = vsel %vm7382_vm7, %v8996_v63, 0.0  ;;  %v9008_v20 = vsel %vm1073_vm0, %v1559_v2, %v1561_v40  ;;  %v9011_v35 = vsel %vm1073_vm0, %v1561_v40, %v1563_v1  ;;  %2201 = vrot.lane.b32.xlu1 %v2112_v28, %s7175_s23  ;;  %2323 = vst.msk [vmem:[#allocation4 + $0x3b8] sm:$0xff] %vm12649_vm12, %v2112_v28  ;;  %v12666_v40 = vld [vmem:[#allocation21_spill] sm:$0xff] }
 0x606   : > { %v9018_v34 = vsel %vm7382_vm7, %v9008_v20, 0.0  ;;  %v9023_v3 = vsel %vm7392_vm10, %v9011_v35, 0.0  ;;  %2572 = vrot.lane.b32.xlu0 %v2343_v31, %s7177_s25  ;;  %1678 = vrot.lane.b32.xlu2 %v9005_v24, %s7169_s15 }
 0x60b   : > { %v1557_v17 = vpop.permute.xlu1 %1556 }
 0x60c   : > { %v1567_v8 = vsel %vm1073_vm0, %v1557_v17, %v1559_v2  ;;  %vm12652_vm0 = vmmov %vm12645_vm4  ;;  %v3026_v17 = vld [vmem:[#allocation4 + $0x120] sm:$0xff] }
 0x60d   : > { %v9031_v30 = vsel %vm7372_vm5, %v1567_v8, 0.0  ;;  %2418 = vrot.lane.b32.xlu1 %v2112_v28, %s7167_s7  ;;  %7149 = vmatpush.msk.msra.mxu1 %vm7372_vm5, %v1567_v8  ;;  %vm12654_vm1 = vmmov %vm12652_vm0  ;;  %v3022_v8 = vld [vmem:[#allocation4 + $0x100] sm:$0xff] }
 0x60e   : > { %2735 = vrot.lane.b32.xlu0 %v2343_v31, %s7168_s8  ;;  %1684 = vrot.lane.b32.xlu2 %v9031_v30, %s7169_s15  ;;  %vm12655_vm2 = vmmov %vm12652_vm0 }
 0x60f   : > { %7150 = vmatpush.msk.msra.mxu1 %vm7372_vm5, %v1564_v22  ;;  %vm12651_vm5 = vmmov %vm12645_vm4 }
 0x610   : > { %vm12656_vm3 = vmmov %vm12652_vm0 }
 0x611   : > { %3251 = vmatpush.msra.mxu1 %v7137_v45  ;;  %vm12657_vm14 = vmmov %vm12652_vm0 }
 0x612   : > { %vm12659_vm4 = vmmov %vm12652_vm0 }
 0x613   : > { %3252 = vmatpush.msra.mxu1 %v7138_v42  ;;  %vm12660_vm8 = vmmov %vm12652_vm0 }
 0x614   : > { %vm12662_vm12 = vmmov %vm12652_vm0 }
 0x615   : > { %2580 = vrot.lane.b32.xlu1 %v2112_v28, %s7177_s25  ;;  %3253 = vmatpush.msra.mxu1 %v7139_v56 }
 0x616   : > { %2897 = vrot.lane.b32.xlu0 %v2343_v31, %s7182_s30  ;;  %1841 = vrot.lane.b32.xlu2 %v9005_v24, %s7173_s19 }
 0x617   : > { %3254 = vmatpush.msra.mxu1 %v7140_v18 }
 0x61d   : > { %2743 = vrot.lane.b32.xlu1 %v2112_v28, %s7168_s8 }
 0x61e   : > { %1680 = vrot.lane.b32.xlu0 %v8985_v33, %s7169_s15  ;;  %1847 = vrot.lane.b32.xlu2 %v9031_v30, %s7173_s19 }
 0x625   : > { %2905 = vrot.lane.b32.xlu1 %v2112_v28, %s7182_s30 }
 0x626   : > { %1686 = vrot.lane.b32.xlu0 %v9018_v34, %s7169_s15  ;;  %2004 = vrot.lane.b32.xlu2 %v9005_v24, %s7174_s20 }
 0x62d   : > { %1676 = vrot.lane.b32.xlu1 %v9000_v43, %s7169_s15 }
 0x62e   : > { %1843 = vrot.lane.b32.xlu0 %v8985_v33, %s7173_s19  ;;  %2010 = vrot.lane.b32.xlu2 %v9031_v30, %s7174_s20 }
 0x635   : > { %1688 = vrot.lane.b32.xlu1 %v9023_v3, %s7169_s15  ;;  %s7193_s15 = smov 104  }
 0x636   : > { %1849 = vrot.lane.b32.xlu0 %v9018_v34, %s7173_s19  ;;  %2185 = vrot.lane.b32.xlu2 %v9000_v43, %s7175_s23 }
 0x63d   : > { %1839 = vrot.lane.b32.xlu1 %v9000_v43, %s7173_s19 }
 0x63e   : > { %2006 = vrot.lane.b32.xlu0 %v8985_v33, %s7174_s20  ;;  %2197 = vrot.lane.b32.xlu2 %v9018_v34, %s7175_s23 }
 0x645   : > { %1851 = vrot.lane.b32.xlu1 %v9023_v3, %s7173_s19  ;;  %s7195_s19 = smov 24  }
 0x646   : > { %2012 = vrot.lane.b32.xlu0 %v9018_v34, %s7174_s20  ;;  %2408 = vrot.lane.b32.xlu2 %v8985_v33, %s7167_s7 }
 0x64d   : > { %2002 = vrot.lane.b32.xlu1 %v9000_v43, %s7174_s20 }
 0x64e   : > { %2187 = vrot.lane.b32.xlu0 %v9005_v24, %s7175_s23  ;;  %2414 = vrot.lane.b32.xlu2 %v9018_v34, %s7167_s7 }
 0x655   : > { %2014 = vrot.lane.b32.xlu1 %v9023_v3, %s7174_s20  ;;  %s7196_s20 = smov 44  }
 0x656   : > { %2199 = vrot.lane.b32.xlu0 %v9023_v3, %s7175_s23  ;;  %2570 = vrot.lane.b32.xlu2 %v8985_v33, %s7177_s25 }
 0x658   : > { %v9091_v0 = vpop.permute.xlu2 %2191 }
 0x65d   : > { %2189 = vrot.lane.b32.xlu1 %v8985_v33, %s7175_s23 }
 0x65e   : > { %2404 = vrot.lane.b32.xlu0 %v9000_v43, %s7167_s7  ;;  %2576 = vrot.lane.b32.xlu2 %v9018_v34, %s7177_s25 }
 0x660   : > { %v1679_v54 = vpop.permute.xlu2 %1678 }
 0x665   : > { %2195 = vrot.lane.b32.xlu1 %v9031_v30, %s7175_s23  ;;  %s7201_s23 = smov 112  }
 0x666   : > { %2416 = vrot.lane.b32.xlu0 %v9023_v3, %s7167_s7  ;;  %2733 = vrot.lane.b32.xlu2 %v8985_v33, %s7168_s8 }
 0x668   : > { %v1685_v10 = vpop.permute.xlu2 %1684 }
 0x669   : > { %v9107_v5 = vsel %vm1690_vm9, %v12650_v62, %v1685_v10  ;;  %v3002_v62 = vld [vmem:[#allocation4 + $0x60] sm:$0xff] }
 0x66d   : > { %2406 = vrot.lane.b32.xlu1 %v9005_v24, %s7167_s7 }
 0x66e   : > { %2566 = vrot.lane.b32.xlu0 %v9000_v43, %s7177_s25  ;;  %2739 = vrot.lane.b32.xlu2 %v9018_v34, %s7168_s8 }
 0x670   : > { %v2411_v16 = vpop.permute.xlu0 %2410  ;;  %v9115_v36 = vpop.permute.xlu2 %1841 }
 0x671   : > { %2481 = vst.msk [vmem:[#allocation4 + $0x458] sm:$0xff] %vm12651_vm5, %v2411_v16  ;;  %vm12664_vm5 = vcmask 1039360  }
 0x675   : > { %2412 = vrot.lane.b32.xlu1 %v9031_v30, %s7167_s7  ;;  %s7183_s7 = smov 8  }
 0x676   : > { %2578 = vrot.lane.b32.xlu0 %v9023_v3, %s7177_s25  ;;  %2895 = vrot.lane.b32.xlu2 %v8985_v33, %s7182_s30 }
 0x677   : > { %v9124_v4 = vpop.permute.xlu1 %2201 }
 0x678   : > { %v9126_v61 = vpop.permute.xlu0 %2572  ;;  %v1848_v50 = vpop.permute.xlu2 %1847 }
 0x679   : > { %2644 = vst.msk [vmem:[#allocation4 + $0x518] sm:$0xff] %vm12652_vm0, %v9126_v61  ;;  %v1869_v46 = vsel %vm1853_vm15, %v12653_v47, %v1848_v50 }
 0x67a   : > { %3222 = vmatpush.msra.mxu0 %v1869_v46 }
 0x67d   : > { %2568 = vrot.lane.b32.xlu1 %v9005_v24, %s7177_s25 }
 0x67e   : > { %2729 = vrot.lane.b32.xlu0 %v9000_v43, %s7168_s8  ;;  %2901 = vrot.lane.b32.xlu2 %v9018_v34, %s7182_s30 }
 0x67f   : > { %v9138_v19 = vpop.permute.xlu1 %2418 }
 0x680   : > { %2485 = vst.msk [vmem:[#allocation4 + $0x478] sm:$0xff] %vm12654_vm1, %v9138_v19  ;;  %v9142_v49 = vpop.permute.xlu0 %2735  ;;  %v9144_v48 = vpop.permute.xlu2 %2004  ;;  %vm12665_vm1 = vmmov %vm12652_vm0 }
 0x681   : > { %2806 = vst.msk [vmem:[#allocation4 + $0x5d8] sm:$0xff] %vm12655_vm2, %v9142_v49  ;;  %vm12668_vm2 = vmmov %vm12652_vm0 }
 0x685   : > { %2574 = vrot.lane.b32.xlu1 %v9031_v30, %s7177_s25 }
 0x686   : > { %2741 = vrot.lane.b32.xlu0 %v9023_v3, %s7168_s8 }
 0x687   : > { %v9152_v59 = vpop.permute.xlu1 %2580 }
 0x688   : > { %2648 = vst.msk [vmem:[#allocation4 + $0x538] sm:$0xff] %vm12656_vm3, %v9152_v59  ;;  %v9156_v55 = vpop.permute.xlu0 %2897  ;;  %v2011_v9 = vpop.permute.xlu2 %2010  ;;  %vm12669_vm3 = vmmov %vm12652_vm0 }
 0x689   : > { %2969 = vst.msk [vmem:[#allocation4 + $0x698] sm:$0xff] %vm12657_vm14, %v9156_v55  ;;  %v9162_v29 = vsel %vm2016_vm11, %v12658_v7, %v2011_v9  ;;  %vm12672_vm14 = vmmov %vm12652_vm0 }
 0x68d   : > { %2731 = vrot.lane.b32.xlu1 %v9005_v24, %s7168_s8 }
 0x68e   : > { %2891 = vrot.lane.b32.xlu0 %v9000_v43, %s7182_s30 }
 0x68f   : > { %v9168_v41 = vpop.permute.xlu1 %2743 }
 0x690   : > { %2810 = vst.msk [vmem:[#allocation4 + $0x5f8] sm:$0xff] %vm12659_vm4, %v9168_v41  ;;  %v1681_v13 = vpop.permute.xlu0 %1680  ;;  %v9172_v12 = vpop.permute.xlu2 %2185  ;;  %vm12673_vm4 = vmmov %vm12652_vm0 }
 0x691   : > { %v1705_v23 = vsel %vm1690_vm9, %v1679_v54, %v1681_v13  ;;  %1752 = vst.msk [vmem:[#allocation4 + $0x98] sm:$0xff] %vm12660_vm8, %v1681_v13  ;;  %v9179_v44 = vsel %vm2203_vm13, %v12661_v11, %v9172_v12  ;;  %v2994_v13 = vld [vmem:[#allocation4 + $0x20] sm:$0xff]  ;;  %v3115_v11 = vld [vmem:[#allocation4 + $0x3e8] sm:$0xff]  ;;  %vm12677_vm8 = vmmov %vm12664_vm5 }
 0x692   : > { %1751 = vst [vmem:[#allocation4 + $0x90] sm:$0xff] %v1705_v23  ;;  %v2990_v23 = vld [vmem:[#allocation4] sm:$0xff] }
 0x695   : > { %2737 = vrot.lane.b32.xlu1 %v9031_v30, %s7168_s8 }
 0x696   : > { %2903 = vrot.lane.b32.xlu0 %v9023_v3, %s7182_s30 }
 0x697   : > { %v9185_v6 = vpop.permute.xlu1 %2905 }
 0x698   : > { %2973 = vst.msk [vmem:[#allocation4 + $0x6b8] sm:$0xff] %vm12662_vm12, %v9185_v6  ;;  %v1687_v37 = vpop.permute.xlu0 %1686  ;;  %v9189_v15 = vpop.permute.xlu2 %2197  ;;  %vm12679_vm12 = vmmov %vm12664_vm5 }
 0x699   : > { %v9192_v53 = vsel %vm1690_vm9, %v1685_v10, %v1687_v37 }
 0x69d   : > { %2893 = vrot.lane.b32.xlu1 %v9005_v24, %s7182_s30 }
 0x69f   : > { %v1677_v39 = vpop.permute.xlu1 %1676 }
 0x6a0   : > { %v1703_v58 = vsel %vm1690_vm9, %v12663_v60, %v1677_v39  ;;  %v9199_v26 = vsel %vm1690_vm9, %v1677_v39, %v1679_v54  ;;  %v1844_v52 = vpop.permute.xlu0 %1843  ;;  %v9201_v27 = vpop.permute.xlu2 %2408  ;;  %v3014_v54 = vld [vmem:[#allocation4 + $0xc0] sm:$0xff] }
 0x6a1   : > { %v1868_v33 = vsel %vm1853_vm15, %v9115_v36, %v1844_v52  ;;  %v9207_v1 = vsel %vm12664_vm5, %v9201_v27, %v2411_v16  ;;  %1915 = vst.msk [vmem:[#allocation4 + $0x158] sm:$0xff] %vm12652_vm0, %v1844_v52  ;;  %v9283_v52 = vld [vmem:[%s12386_s4] sm:$0xff] }
 0x6a2   : > { %1914 = vst [vmem:[#allocation4 + $0x150] sm:$0xff] %v1868_v33  ;;  %v7141_v33 = vld [vmem:[#allocation4 + $0x368] sm:$0xff] }
 0x6a5   : > { %2899 = vrot.lane.b32.xlu1 %v9031_v30, %s7182_s30  ;;  %v3018_v30 = vld [vmem:[#allocation4 + $0xe0] sm:$0xff] }
 0x6a7   : > { %v1689_v51 = vpop.permute.xlu1 %1688 }
 0x6a8   : > { %v1708_v25 = vsel %vm1690_vm9, %v1687_v37, %v1689_v51  ;;  %1756 = vst.msk [vmem:[#allocation4 + $0xb8] sm:$0xff] %vm12665_vm1, %v1689_v51  ;;  %v1850_v31 = vpop.permute.xlu0 %1849  ;;  %v9214_v32 = vpop.permute.xlu2 %2414  ;;  %vm12667_vm9 = vcmask 891904   ;;  %v3111_v37 = vld [vmem:[#allocation4 + $0x3c8] sm:$0xff] }
 0x6a9   : > { %1755 = vst [vmem:[#allocation4 + $0xb0] sm:$0xff] %v1708_v25  ;;  %v9217_v2 = vsel %vm1853_vm15, %v1848_v50, %v1850_v31 }
 0x6af   : > { %v1840_v22 = vpop.permute.xlu1 %1839 }
 0x6b0   : > { %v1866_v28 = vsel %vm1853_vm15, %v12666_v40, %v1840_v22  ;;  %v9223_v21 = vsel %vm1853_vm15, %v1840_v22, %v9115_v36  ;;  %v2007_v43 = vpop.permute.xlu0 %2006  ;;  %v9225_v24 = vpop.permute.xlu2 %2570  ;;  %v12670_v36 = vld [vmem:[#allocation9_spill] sm:$0xff] }
 0x6b1   : > { %v9229_v34 = vsel %vm2016_vm11, %v9144_v48, %v2007_v43  ;;  %3223 = vmatpush.msra.mxu0 %v1866_v28  ;;  %v9234_v3 = vsel %vm12667_vm9, %v9225_v24, %v9126_v61  ;;  %2078 = vst.msk [vmem:[#allocation4 + $0x218] sm:$0xff] %vm12668_vm2, %v2007_v43  ;;  %v9305_v40 = vld [vmem:[%s12386_s4 + $0x20] sm:$0xff]  ;;  %v12675_v43 = vld [vmem:[#allocation23_spill] sm:$0xff] }
 0x6b3   : > { %3224 = vmatpush.msra.mxu0 %v3026_v17 }
 0x6b5   : > { %3225 = vmatpush.msra.mxu0 %v3022_v8 }
 0x6b7   : > { %v1852_v45 = vpop.permute.xlu1 %1851  ;;  %3226 = vmatpush.msra.mxu0 %v3018_v30 }
 0x6b8   : > { %v9238_v42 = vsel %vm1853_vm15, %v1850_v31, %v1852_v45  ;;  %1919 = vst.msk [vmem:[#allocation4 + $0x178] sm:$0xff] %vm12669_vm3, %v1852_v45  ;;  %v2013_v56 = vpop.permute.xlu0 %2012  ;;  %v9241_v18 = vpop.permute.xlu2 %2576  ;;  %vm12671_vm15 = vcmask 883712   ;;  %v7142_v31 = vld [vmem:[#allocation4 + $0x348] sm:$0xff] }
 0x6b9   : > { %v9244_v10 = vsel %vm2016_vm11, %v2011_v9, %v2013_v56  ;;  %3227 = vmatpush.msra.mxu0 %v3014_v54  ;;  %v2998_v9 = vld [vmem:[#allocation4 + $0x40] sm:$0xff]  ;;  %v3075_v54 = vld [vmem:[#allocation4 + $0x2a8] sm:$0xff]  ;;  %vm12685_vm3 = vmmov %vm12671_vm15 }
 0x6bb   : > { %3228 = vmatpush.msra.mxu0 %v9107_v5 }
 0x6bd   : > { %3229 = vmatpush.msra.mxu0 %v1703_v58 }
 0x6bf   : > { %v2003_v16 = vpop.permute.xlu1 %2002  ;;  %3230 = vmatpush.msra.mxu0 %v3002_v62  ;;  %v3070_v62 = vld [vmem:[#allocation4 + $0x280] sm:$0xff] }
 0x6c0   : > { %v9249_v61 = vsel %vm2016_vm11, %v12670_v36, %v2003_v16  ;;  %v9253_v50 = vsel %vm2016_vm11, %v2003_v16, %v9144_v48  ;;  %v2188_v47 = vpop.permute.xlu0 %2187  ;;  %v9255_v46 = vpop.permute.xlu2 %2733  ;;  %v3071_v16 = vld [vmem:[#allocation4 + $0x288] sm:$0xff] }
 0x6c1   : > { %v2221_v7 = vsel %vm2203_vm13, %v9172_v12, %v2188_v47  ;;  %v9262_v5 = vsel %vm12671_vm15, %v9255_v46, %v9142_v49  ;;  %3231 = vmatpush.msra.mxu0 %v2998_v9  ;;  %v3066_v9 = vld [vmem:[#allocation4 + $0x260] sm:$0xff]  ;;  %vm12686_vm15 = vmmov %vm12685_vm3 }
 0x6c3   : > { %3232 = vmatpush.msra.mxu0 %v2994_v13  ;;  %v3062_v13 = vld [vmem:[#allocation4 + $0x240] sm:$0xff] }
 0x6c5   : > { %3233 = vmatpush.msra.mxu0 %v2990_v23  ;;  %v3063_v23 = vld [vmem:[#allocation4 + $0x248] sm:$0xff] }
 0x6c6   : > { %3234 = vmatmul.f32.vlgmr.msra.gmra.mxu0 %v9283_v52 }
 0x6c7   : > { %3363 = vmatpush.msrb.mxu0 %v3115_v11  ;;  %v2015_v48 = vpop.permute.xlu1 %2014  ;;  %v9337_v11 = vld [vmem:[%s12386_s4 + $0x60] sm:$0xff] }
 0x6c8   : > { %v9265_v39 = vsel %vm2016_vm11, %v2013_v56, %v2015_v48  ;;  %2082 = vst.msk [vmem:[#allocation4 + $0x238] sm:$0xff] %vm12672_vm14, %v2015_v48  ;;  %v2200_v12 = vpop.permute.xlu0 %2199  ;;  %v9268_v60 = vpop.permute.xlu2 %2739  ;;  %vm12676_vm11 = vmmov %vm12664_vm5  ;;  %v9324_v56 = vld [vmem:[%s12386_s4 + $0x40] sm:$0xff]  ;;  %v3116_v48 = vld [vmem:[#allocation4 + $0x3f0] sm:$0xff] }
 0x6c9   : > { %3364 = vmatpush.msrb.mxu0 %v3111_v37  ;;  %v9272_v49 = vsel %vm2203_vm13, %v9189_v15, %v2200_v12  ;;  %v2227_v58 = vsel %vm2203_vm13, %v2200_v12, %v9124_v4  ;;  %vm12687_vm14 = vmmov %vm12685_vm3 }
 0x6ca   : > { %2275 = vst.msk [vmem:[#allocation4 + $0x2f8] sm:$0xff] %vm12673_vm4, %v2227_v58  ;;  %vm12688_vm4 = vmmov %vm12685_vm3 }
 0x6cb   : > { %7151 = vmatpush.msk.msrb.mxu0 %vm7382_vm7, %v9008_v20 }
 0x6cd   : > { %7152 = vmatpush.msk.msrb.mxu0 %vm7382_vm7, %v8996_v63  ;;  %vm12674_vm7 = vmmov %vm12652_vm0 }
 0x6ce   : > { %3237 = vmatmul.f32.gmra.mxu0 %v9305_v40  ;;  %vm12680_vm0 = vmmov %vm12667_vm9 }
 0x6cf   : > { %3367 = vmatpush.msrb.mxu0 %v7141_v33  ;;  %v2190_v4 = vpop.permute.xlu1 %2189  ;;  %vm12681_vm1 = vmmov %vm12680_vm0  ;;  %v7145_v33 = vld [vmem:[#allocation4 + $0x370] sm:$0xff] }
 0x6d0   : > { %v9290_v51 = vsel %vm2203_vm13, %v2188_v47, %v2190_v4  ;;  %v2223_v20 = vsel %vm2203_vm13, %v2190_v4, %v9091_v0  ;;  %v2405_v25 = vpop.permute.xlu0 %2404  ;;  %v9294_v22 = vpop.permute.xlu2 %2895  ;;  %v7144_v0 = vld [vmem:[#allocation4 + $0x308] sm:$0xff]  ;;  %vm12682_vm9 = vmmov %vm12680_vm0 }
 0x6d1   : > { %3368 = vmatpush.msrb.mxu0 %v7142_v31  ;;  %v9299_v63 = vsel %vm2907_vm6, %v9294_v22, %v9156_v55  ;;  %2271 = vst.msk [vmem:[#allocation4 + $0x2d8] sm:$0xff] %vm12674_vm7, %v2223_v20  ;;  %vm12683_vm2 = vmmov %vm12680_vm0  ;;  %v9372_v4 = vld [vmem:[%s12386_s4 + $0x8] sm:$0xff] }
 0x6d2   : > { %vm12689_vm7 = vmmov %vm12685_vm3 }
 0x6d3   : > { %3369 = vmatpush.msrb.mxu0 %v7143_v14 }
 0x6d5   : > { %3370 = vmatpush.msrb.mxu0 %v7144_v0  ;;  %v3076_v0 = vld [vmem:[#allocation4 + $0x2b0] sm:$0xff] }
 0x6d6   : > { %3240 = vmatmul.f32.gmra.mxu0 %v9324_v56 }
 0x6d7   : > { %v2196_v28 = vpop.permute.xlu1 %2195 }
 0x6d8   : > { %v2224_v17 = vsel %vm2203_vm13, %v12675_v43, %v2196_v28  ;;  %v2225_v55 = vsel %vm2203_vm13, %v2196_v28, %v9189_v15  ;;  %v2417_v8 = vpop.permute.xlu0 %2416  ;;  %v3074_v15 = vld [vmem:[#allocation4 + $0x2a0] sm:$0xff]  ;;  %vm12678_vm13 = vmmov %vm12664_vm5  ;;  %v3072_v28 = vld [vmem:[#allocation4 + $0x290] sm:$0xff] }
 0x6d9   : > { %v9314_v30 = vsel %vm12676_vm11, %v9214_v32, %v2417_v8  ;;  %v9318_v45 = vsel %vm12677_vm8, %v2417_v8, %v9138_v19  ;;  %3255 = vmatpush.msra.mxu1 %v2224_v17  ;;  %3371 = vmatpush.msrb.mxu0 %v2225_v55  ;;  %v3064_v8 = vld [vmem:[#allocation4 + $0x250] sm:$0xff] }
 0x6db   : > { %3256 = vmatpush.msra.mxu1 %v9179_v44  ;;  %3372 = vmatpush.msrb.mxu0 %v2221_v7  ;;  %v3067_v7 = vld [vmem:[#allocation4 + $0x268] sm:$0xff] }
 0x6dd   : > { %3257 = vmatpush.msra.mxu1 %v3074_v15  ;;  %3373 = vmatpush.msrb.mxu0 %v3075_v54  ;;  %v9395_v15 = vld [vmem:[%s12386_s4 + $0x28] sm:$0xff] }
 0x6de   : > { %3243 = vmatmul.f32.gmra.mxu0 %v9337_v11  ;;  %v3163_v54 = vld [vmem:[#allocation4 + $0x568] sm:$0xff] }
 0x6df   : > { %v2407_v19 = vpop.permute.xlu1 %2406  ;;  %3258 = vmatpush.msra.mxu1 %v3070_v62  ;;  %3374 = vmatpush.msrb.mxu0 %v3071_v16  ;;  %v2902_v16 = vpop.permute.xlu2 %2901 }
 0x6e0   : > { %v9328_v36 = vsel %vm12678_vm13, %v2405_v25, %v2407_v19  ;;  %v9332_v44 = vsel %vm12679_vm12, %v2407_v19, %v9201_v27  ;;  %v2567_v47 = vpop.permute.xlu0 %2566 }
 0x6e1   : > { %3259 = vmatpush.msra.mxu1 %v3066_v9  ;;  %3375 = vmatpush.msrb.mxu0 %v3067_v7  ;;  %v3113_v7 = vld [vmem:[#allocation4 + $0x3d8] sm:$0xff] }
 0x6e3   : > { %3260 = vmatpush.msra.mxu1 %v3062_v13  ;;  %3376 = vmatpush.msrb.mxu0 %v3063_v23  ;;  %v3109_v13 = vld [vmem:[#allocation4 + $0x3b8] sm:$0xff] }
 0x6e4   : > { %v3105_v23 = vld [vmem:[#allocation4 + $0x398] sm:$0xff] }
 0x6e5   : > { %3261 = vmatpush.msra.mxu1 %v9162_v29  ;;  %3377 = vmatpush.msrb.mxu0 %v9244_v10  ;;  %v3112_v10 = vld [vmem:[#allocation4 + $0x3d0] sm:$0xff] }
 0x6e7   : > { %v2413_v27 = vpop.permute.xlu1 %2412  ;;  %3262 = vmatpush.msra.mxu1 %v9249_v61  ;;  %3378 = vmatpush.msrb.mxu0 %v9253_v50 }
 0x6e8   : > { %v9346_v37 = vsel %vm12664_vm5, %v2413_v27, %v9214_v32  ;;  %v2579_v12 = vpop.permute.xlu0 %2578  ;;  %3263 = vmatmul.f32.vlgmr.msra.gmra.mxu1 %v9372_v4  ;;  %3379 = vmatmul.f32.vlgmr.msrb.gmra.mxu0 %v9372_v4  ;;  %v3166_v27 = vld [vmem:[#allocation4 + $0x580] sm:$0xff] }
 0x6e9   : > { %3479 = vmatpush.msra.mxu0 %v3116_v48  ;;  %v9350_v58 = vsel %vm12680_vm0, %v9241_v18, %v2579_v12  ;;  %v9354_v29 = vsel %vm12681_vm1, %v2579_v12, %v9152_v59  ;;  %v3147_v48 = vld [vmem:[#allocation4 + $0x4e8] sm:$0xff] }
 0x6eb   : > { %3480 = vmatpush.msra.mxu0 %v3112_v10  ;;  %v3101_v10 = vld [vmem:[#allocation4 + $0x378] sm:$0xff] }
 0x6ed   : > { %7153 = vmatpush.msk.msra.mxu0 %vm7392_vm10, %v9011_v35  ;;  %v7146_v35 = vld [vmem:[#allocation4 + $0x350] sm:$0xff] }
 0x6ef   : > { %7154 = vmatpush.msk.msra.mxu0 %vm7392_vm10, %v8978_v57  ;;  %v2569_v32 = vpop.permute.xlu1 %2568  ;;  %v7147_v57 = vld [vmem:[#allocation4 + $0x330] sm:$0xff]  ;;  %vm12684_vm10 = vmmov %vm12680_vm0 }
 0x6f0   : > { %v9363_v61 = vsel %vm12682_vm9, %v2567_v47, %v2569_v32  ;;  %v9367_v50 = vsel %vm12683_vm2, %v2569_v32, %v9225_v24  ;;  %v2730_v59 = vpop.permute.xlu0 %2729  ;;  %3266 = vmatmul.f32.gmra.mxu1 %v9395_v15  ;;  %v3159_v47 = vld [vmem:[#allocation4 + $0x548] sm:$0xff]  ;;  %3382 = vmatmul.f32.gmra.mxu0 %v9395_v15 }
 0x6f1   : > { %3483 = vmatpush.msra.mxu0 %v7145_v33  ;;  %v3097_v33 = vld [vmem:[#allocation4 + $0x358] sm:$0xff] }
 0x6f3   : > { %3484 = vmatpush.msra.mxu0 %v7146_v35  ;;  %v3158_v35 = vld [vmem:[#allocation4 + $0x540] sm:$0xff] }
 0x6f5   : > { %3485 = vmatpush.msra.mxu0 %v7147_v57  ;;  %v3139_v57 = vld [vmem:[#allocation4 + $0x4a8] sm:$0xff] }
 0x6f7   : > { %3486 = vmatpush.msra.mxu0 %v7148_v38  ;;  %v2575_v24 = vpop.permute.xlu1 %2574  ;;  %v3093_v38 = vld [vmem:[#allocation4 + $0x338] sm:$0xff] }
 0x6f8   : > { %v9378_v20 = vsel %vm12684_vm10, %v2575_v24, %v9241_v18  ;;  %v2742_v25 = vpop.permute.xlu0 %2741  ;;  %v3068_v18 = vld [vmem:[#allocation4 + $0x270] sm:$0xff]  ;;  %v3135_v24 = vld [vmem:[#allocation4 + $0x488] sm:$0xff] }
 0x6f9   : > { %3487 = vmatpush.msra.mxu0 %v9272_v49  ;;  %v2761_v31 = vsel %vm12685_vm3, %v9268_v60, %v2742_v25  ;;  %v9385_v14 = vsel %vm12686_vm15, %v2742_v25, %v9168_v41  ;;  %v3171_v41 = vld [vmem:[#allocation4 + $0x5a8] sm:$0xff] }
 0x6fa   : > { %3392 = vmatpush.msrb.mxu1 %v2761_v31  ;;  %v9426_v25 = vld [vmem:[%s12386_s4 + $0x68] sm:$0xff] }
 0x6fb   : > { %3488 = vmatpush.msra.mxu0 %v9290_v51  ;;  %v3167_v51 = vld [vmem:[#allocation4 + $0x588] sm:$0xff] }
 0x6fd   : > { %3489 = vmatpush.msra.mxu0 %v3076_v0  ;;  %v3085_v0 = vld [vmem:[#allocation4 + $0x2f8] sm:$0xff] }
 0x6ff   : > { %3490 = vmatpush.msra.mxu0 %v3072_v28  ;;  %v2732_v43 = vpop.permute.xlu1 %2731 }
 0x700   : > { %v2757_v17 = vsel %vm12687_vm14, %v2730_v59, %v2732_v43  ;;  %v2758_v49 = vsel %vm12688_vm4, %v2732_v43, %v9255_v46  ;;  %v2892_v55 = vpop.permute.xlu0 %2891  ;;  %v3117_v46 = vld [vmem:[#allocation4 + $0x3f8] sm:$0xff]  ;;  %v3143_v59 = vld [vmem:[#allocation4 + $0x4c8] sm:$0xff]  ;;  %v3146_v43 = vld [vmem:[#allocation4 + $0x4e0] sm:$0xff] }
 0x701   : > { %3491 = vmatpush.msra.mxu0 %v3068_v18  ;;  %3393 = vmatpush.msrb.mxu1 %v2758_v49  ;;  %v3142_v18 = vld [vmem:[#allocation4 + $0x4c0] sm:$0xff] }
 0x702   : > { %v3194_v49 = vld [vmem:[#allocation4 + $0x660] sm:$0xff] }
 0x703   : > { %3492 = vmatpush.msra.mxu0 %v3064_v8  ;;  %3394 = vmatpush.msrb.mxu1 %v3171_v41  ;;  %v3073_v8 = vld [vmem:[#allocation4 + $0x298] sm:$0xff]  ;;  %v3134_v41 = vld [vmem:[#allocation4 + $0x480] sm:$0xff] }
 0x705   : > { %3493 = vmatpush.msra.mxu0 %v9265_v39  ;;  %3395 = vmatpush.msrb.mxu1 %v3167_v51  ;;  %v3069_v51 = vld [vmem:[#allocation4 + $0x278] sm:$0xff] }
 0x707   : > { %3494 = vmatpush.msra.mxu0 %v9229_v34  ;;  %v2738_v62 = vpop.permute.xlu1 %2737  ;;  %3396 = vmatpush.msrb.mxu1 %v3163_v54  ;;  %v3186_v54 = vld [vmem:[#allocation4 + $0x620] sm:$0xff] }
 0x708   : > { %v2760_v39 = vsel %vm12689_vm7, %v2738_v62, %v9268_v60  ;;  %v2904_v19 = vpop.permute.xlu0 %2903  ;;  %v3170_v60 = vld [vmem:[#allocation4 + $0x5a0] sm:$0xff]  ;;  %v3172_v62 = vld [vmem:[#allocation4 + $0x5b0] sm:$0xff] }
 0x709   : > { %3595 = vmatpush.msrb.mxu0 %v3117_v46  ;;  %v9403_v9 = vsel %vm2907_vm6, %v2902_v16, %v2904_v19  ;;  %v9407_v34 = vsel %vm2907_vm6, %v2904_v19, %v9185_v6  ;;  %3276 = vmatpush.msra.mxu2 %v2760_v39  ;;  %v9414_v6 = vld [vmem:[%s12386_s4 + $0x48] sm:$0xff]  ;;  %v3065_v46 = vld [vmem:[#allocation4 + $0x258] sm:$0xff]  ;;  %v3168_v19 = vld [vmem:[#allocation4 + $0x590] sm:$0xff] }
 0x70a   : > { %3397 = vmatpush.msrb.mxu1 %v3159_v47  ;;  %v3061_v39 = vld [vmem:[#allocation4 + $0x238] sm:$0xff]  ;;  %v3122_v47 = vld [vmem:[#allocation4 + $0x420] sm:$0xff]  ;;  %3385 = vmatmul.f32.gmra.mxu0 %v9414_v6 }
 0x70b   : > { %3596 = vmatpush.msrb.mxu0 %v3113_v7  ;;  %3277 = vmatpush.msra.mxu2 %v2757_v17  ;;  %v3123_v17 = vld [vmem:[#allocation4 + $0x428] sm:$0xff] }
 0x70c   : > { %3398 = vmatpush.msrb.mxu1 %v9350_v58  ;;  %v3047_v7 = vld [vmem:[#allocation4 + $0x1c8] sm:$0xff] }
 0x70d   : > { %3597 = vmatpush.msrb.mxu0 %v3109_v13  ;;  %3278 = vmatpush.msra.mxu2 %v3170_v60  ;;  %v3164_v13 = vld [vmem:[#allocation4 + $0x570] sm:$0xff]  ;;  %v3118_v60 = vld [vmem:[#allocation4 + $0x400] sm:$0xff] }
 0x70e   : > { %3399 = vmatpush.msrb.mxu1 %v9367_v50  ;;  %v3162_v50 = vld [vmem:[#allocation4 + $0x560] sm:$0xff] }
 0x70f   : > { %3598 = vmatpush.msrb.mxu0 %v3105_v23  ;;  %v2894_v12 = vpop.permute.xlu1 %2893  ;;  %3279 = vmatpush.msra.mxu2 %v3166_v27  ;;  %v3043_v23 = vld [vmem:[#allocation4 + $0x1a8] sm:$0xff]  ;;  %v3160_v27 = vld [vmem:[#allocation4 + $0x550] sm:$0xff] }
 0x710   : > { %3400 = vmatpush.msrb.mxu1 %v3147_v48  ;;  %v2920_v58 = vsel %vm2907_vm6, %v2892_v55, %v2894_v12  ;;  %v9419_v32 = vsel %vm2907_vm6, %v2894_v12, %v9294_v22  ;;  %v3089_v22 = vld [vmem:[#allocation4 + $0x318] sm:$0xff]  ;;  %v3119_v55 = vld [vmem:[#allocation4 + $0x408] sm:$0xff] }
 0x711   : > { %3599 = vmatpush.msrb.mxu0 %v3101_v10  ;;  %3269 = vmatmul.f32.gmra.mxu1 %v9414_v6  ;;  %v3039_v48 = vld [vmem:[#allocation4 + $0x188] sm:$0xff] }
 0x712   : > { %3280 = vmatpush.msra.mxu2 %v3162_v50  ;;  %3401 = vmatpush.msrb.mxu1 %v3143_v59  ;;  %v3195_v12 = vld [vmem:[#allocation4 + $0x668] sm:$0xff]  ;;  %v3140_v59 = vld [vmem:[#allocation4 + $0x4b0] sm:$0xff] }
 0x713   : > { %3600 = vmatpush.msrb.mxu0 %v3097_v33  ;;  %v3191_v10 = vld [vmem:[#allocation4 + $0x648] sm:$0xff] }
 0x714   : > { %3281 = vmatpush.msra.mxu2 %v3158_v35  ;;  %3402 = vmatpush.msrb.mxu1 %v3139_v57  ;;  %v3183_v50 = vld [vmem:[#allocation4 + $0x608] sm:$0xff]  ;;  %v3136_v35 = vld [vmem:[#allocation4 + $0x490] sm:$0xff] }
 0x715   : > { %3601 = vmatpush.msrb.mxu0 %v3093_v38  ;;  %v3019_v33 = vld [vmem:[#allocation4 + $0xe8] sm:$0xff]  ;;  %v9477_v38 = vld [vmem:[%s12386_s4 + $0x50] sm:$0xff] }
 0x716   : > { %3282 = vmatpush.msra.mxu2 %v9378_v20  ;;  %3403 = vmatpush.msrb.mxu1 %v3135_v24  ;;  %v3081_v20 = vld [vmem:[#allocation4 + $0x2d8] sm:$0xff]  ;;  %v3015_v57 = vld [vmem:[#allocation4 + $0xc8] sm:$0xff]  ;;  %v3196_v24 = vld [vmem:[#allocation4 + $0x670] sm:$0xff] }
 0x717   : > { %3602 = vmatpush.msrb.mxu0 %v3089_v22  ;;  %v2900_v31 = vpop.permute.xlu1 %2899  ;;  %v9488_v22 = vld [vmem:[%s12386_s4 + $0x58] sm:$0xff] }
 0x718   : > { %3283 = vmatpush.msra.mxu2 %v9363_v61  ;;  %3404 = vmatpush.msrb.mxu1 %v9314_v30  ;;  %v2923_v28 = vsel %vm2907_vm6, %v2900_v31, %v2902_v16  ;;  %v3077_v61 = vld [vmem:[#allocation4 + $0x2b8] sm:$0xff]  ;;  %v3138_v30 = vld [vmem:[#allocation4 + $0x4a0] sm:$0xff]  ;;  %vm12690_vm6 = vcmask 392192   ;;  %v3003_v31 = vld [vmem:[#allocation4 + $0x68] sm:$0xff] }
 0x719   : > { %3603 = vmatpush.msrb.mxu0 %v3085_v0  ;;  %3272 = vmatmul.f32.gmra.mxu1 %v9426_v25  ;;  %v3182_v16 = vld [vmem:[#allocation4 + $0x600] sm:$0xff]  ;;  %vm12691_vm11 = vmmov %vm12690_vm6  ;;  %v3184_v0 = vld [vmem:[#allocation4 + $0x610] sm:$0xff] }
 0x71a   : > { %3284 = vmatpush.msra.mxu2 %v3146_v43  ;;  %3315 = vmatpush.msra.mxu3 %v2923_v28  ;;  %v3181_v28 = vld [vmem:[#allocation4 + $0x5f8] sm:$0xff]  ;;  %vm12692_vm8 = vmmov %vm12690_vm6 }
 0x71b   : > { %3405 = vmatpush.msrb.mxu1 %v9332_v44  ;;  %3604 = vmatpush.msrb.mxu0 %v3081_v20  ;;  %v3190_v44 = vld [vmem:[#allocation4 + $0x640] sm:$0xff]  ;;  %v3177_v43 = vld [vmem:[#allocation4 + $0x5d8] sm:$0xff]  ;;  %v2995_v20 = vld [vmem:[#allocation4 + $0x28] sm:$0xff] }
 0x71c   : > { %3285 = vmatpush.msra.mxu2 %v3142_v18  ;;  %3316 = vmatpush.msra.mxu3 %v2920_v58  ;;  %v3148_v58 = vld [vmem:[#allocation4 + $0x4f0] sm:$0xff]  ;;  %v3173_v18 = vld [vmem:[#allocation4 + $0x5b8] sm:$0xff]  ;;  %vm12693_vm13 = vmmov %vm12690_vm6 }
 0x71d   : > { %3406 = vmatpush.msrb.mxu1 %v3123_v17  ;;  %3605 = vmatpush.msrb.mxu0 %v3077_v61  ;;  %v2991_v17 = vld [vmem:[#allocation4 + $0x8] sm:$0xff]  ;;  %v9503_v61 = vld [vmem:[%s12386_s4 + $0x78] sm:$0xff]  ;;  %vm12694_vm12 = vmmov %vm12690_vm6 }
 0x71e   : > { %3286 = vmatpush.msra.mxu2 %v3138_v30  ;;  %3317 = vmatpush.msra.mxu3 %v3194_v49  ;;  %v3052_v30 = vld [vmem:[#allocation4 + $0x1f0] sm:$0xff]  ;;  %v3169_v49 = vld [vmem:[#allocation4 + $0x598] sm:$0xff]  ;;  %vm12695_vm5 = vmmov %vm12690_vm6 }
 0x71f   : > { %3407 = vmatpush.msrb.mxu1 %v3119_v55  ;;  %3606 = vmatpush.msrb.mxu0 %v3073_v8  ;;  %v3048_v55 = vld [vmem:[#allocation4 + $0x1d0] sm:$0xff]  ;;  %v3165_v8 = vld [vmem:[#allocation4 + $0x578] sm:$0xff]  ;;  %vm12696_vm0 = vmmov %vm12695_vm5 }
 0x720   : > { %3287 = vmatpush.msra.mxu2 %v3134_v41  ;;  %3318 = vmatpush.msra.mxu3 %v3190_v44  ;;  %v3044_v41 = vld [vmem:[#allocation4 + $0x1b0] sm:$0xff]  ;;  %v3161_v44 = vld [vmem:[#allocation4 + $0x558] sm:$0xff]  ;;  %vm12697_vm1 = vmmov %vm12696_vm0 }
 0x721   : > { %3508 = vmatpush.msra.mxu1 %v9385_v14  ;;  %3607 = vmatpush.msrb.mxu0 %v3069_v51  ;;  %v3051_v14 = vld [vmem:[#allocation4 + $0x1e8] sm:$0xff]  ;;  %v3205_v51 = vld [vmem:[#allocation4 + $0x6b8] sm:$0xff]  ;;  %vm12698_vm9 = vmmov %vm12696_vm0 }
 0x722   : > { %3288 = vmatpush.msra.mxu2 %v9346_v37  ;;  %3319 = vmatpush.msra.mxu3 %v3186_v54  ;;  %v9440_v37 = vld [vmem:[%s12386_s4 + $0x18] sm:$0xff]  ;;  %v3040_v54 = vld [vmem:[#allocation4 + $0x190] sm:$0xff]  ;;  %vm12699_vm2 = vmmov %vm12696_vm0 }
 0x723   : > { %3509 = vmatpush.msra.mxu1 %v9262_v5  ;;  %3608 = vmatpush.msrb.mxu0 %v3065_v46  ;;  %v3057_v5 = vld [vmem:[#allocation4 + $0x218] sm:$0xff]  ;;  %vm12700_vm10 = vmmov %vm12696_vm0 }
 0x724   : > { %3289 = vmatpush.msra.mxu2 %v9328_v36  ;;  %3320 = vmatpush.msra.mxu3 %v3182_v16  ;;  %v9445_v36 = vld [vmem:[%s12386_s4 + $0x10] sm:$0xff]  ;;  %v3157_v46 = vld [vmem:[#allocation4 + $0x538] sm:$0xff]  ;;  %vm12701_vm3 = vmmov %vm12696_vm0 }
 0x725   : > { %3510 = vmatpush.msra.mxu1 %v3172_v62  ;;  %3609 = vmatpush.msrb.mxu0 %v3061_v39  ;;  %v3201_v62 = vld [vmem:[#allocation4 + $0x698] sm:$0xff]  ;;  %vm12702_vm15 = vmmov %vm12696_vm0 }
 0x726   : > { %3334 = vmatpush.msrb.mxu3 %v3051_v14  ;;  %3290 = vmatpush.msra.mxu2 %v3122_v47  ;;  %v3153_v16 = vld [vmem:[#allocation4 + $0x518] sm:$0xff]  ;;  %v3032_v14 = vld [vmem:[#allocation4 + $0x150] sm:$0xff]  ;;  %vm12703_vm14 = vmmov %vm12696_vm0 }
 0x727   : > { %3511 = vmatpush.msra.mxu1 %v3168_v19  ;;  %3610 = vmatpush.msrb.mxu0 %v3057_v5  ;;  %v3197_v39 = vld [vmem:[#allocation4 + $0x678] sm:$0xff]  ;;  %v3028_v5 = vld [vmem:[#allocation4 + $0x130] sm:$0xff]  ;;  %vm12704_vm4 = vmmov %vm12696_vm0 }
 0x728   : > { %3335 = vmatpush.msrb.mxu3 %v3047_v7  ;;  %3291 = vmatpush.msra.mxu2 %v3118_v60  ;;  %v3149_v19 = vld [vmem:[#allocation4 + $0x4f8] sm:$0xff]  ;;  %v3024_v60 = vld [vmem:[#allocation4 + $0x110] sm:$0xff]  ;;  %vm12705_vm7 = vmmov %vm12696_vm0 }
 0x729   : > { %3512 = vmatpush.msra.mxu1 %v3164_v13  ;;  %6987 = vmatmul.msk.f32.vlgmr.msra.gmra.mxu3 %vm12690_vm6, %v9440_v37  ;;  %v3193_v47 = vld [vmem:[#allocation4 + $0x658] sm:$0xff]  ;;  %vm3965_vm6 = vcmask 1047556  }
 0x72a   : > { %3292 = vmatmul.f32.vlgmr.msra.gmra.mxu2 %v9445_v36  ;;  %3336 = vmatpush.msrb.mxu3 %v3043_v23  ;;  %v3145_v7 = vld [vmem:[#allocation4 + $0x4d8] sm:$0xff] }
 0x72b   : > { %3431 = vmatpush.msrb.mxu2 %v9403_v9  ;;  %3513 = vmatpush.msra.mxu1 %v3160_v27  ;;  %v9460_v9 = vld [vmem:[%s12386_s4 + $0x30] sm:$0xff]  ;;  %v3189_v13 = vld [vmem:[#allocation4 + $0x638] sm:$0xff] }
 0x72c   : > { %3337 = vmatpush.msrb.mxu3 %v3039_v48  ;;  %3408 = vmatmul.f32.vlgmr.msrb.gmra.mxu1 %v9445_v36  ;;  %v3185_v23 = vld [vmem:[#allocation4 + $0x618] sm:$0xff]  ;;  %v3020_v27 = vld [vmem:[#allocation4 + $0xf0] sm:$0xff] }
 0x72d   : > { %3432 = vmatpush.msrb.mxu2 %v9419_v32  ;;  %3514 = vmatpush.msra.mxu1 %v9354_v29  ;;  %v3027_v29 = vld [vmem:[#allocation4 + $0x128] sm:$0xff]  ;;  %v3144_v32 = vld [vmem:[#allocation4 + $0x4d0] sm:$0xff]  ;;  %v3137_v48 = vld [vmem:[#allocation4 + $0x498] sm:$0xff] }
 0x72e   : > { %3338 = vmatpush.msrb.mxu3 %v9217_v2  ;;  %v3187_v2 = vld [vmem:[#allocation4 + $0x628] sm:$0xff]  ;;  %3388 = vmatmul.f32.gmra.mxu0 %v9426_v25 }
 0x72f   : > { %3433 = vmatpush.msrb.mxu2 %v3195_v12  ;;  %3515 = vmatpush.msra.mxu1 %v9234_v3  ;;  %v3023_v3 = vld [vmem:[#allocation4 + $0x108] sm:$0xff]  ;;  %v3016_v12 = vld [vmem:[#allocation4 + $0xd0] sm:$0xff] }
 0x730   : > { %3339 = vmatpush.msrb.mxu3 %v9223_v21  ;;  %v9467_v21 = vld [vmem:[%s12386_s4 + $0x38] sm:$0xff] }
 0x731   : > { %3434 = vmatpush.msrb.mxu2 %v3191_v10  ;;  %3516 = vmatpush.msra.mxu1 %v3148_v58  ;;  %v3133_v10 = vld [vmem:[#allocation4 + $0x478] sm:$0xff]  ;;  %v3012_v58 = vld [vmem:[#allocation4 + $0xb0] sm:$0xff] }
 0x732   : > { %3295 = vmatmul.f32.gmra.mxu2 %v9460_v9  ;;  %3340 = vmatpush.msrb.mxu3 %v3027_v29  ;;  %v3129_v29 = vld [vmem:[#allocation4 + $0x458] sm:$0xff] }
 0x733   : > { %3435 = vmatpush.msrb.mxu2 %v3187_v2  ;;  %3517 = vmatpush.msra.mxu1 %v3144_v32  ;;  %v3008_v2 = vld [vmem:[#allocation4 + $0x90] sm:$0xff]  ;;  %v3125_v32 = vld [vmem:[#allocation4 + $0x438] sm:$0xff] }
 0x734   : > { %3341 = vmatpush.msrb.mxu3 %v3023_v3  ;;  %3411 = vmatmul.f32.gmra.mxu1 %v9460_v9  ;;  %v3004_v3 = vld [vmem:[#allocation4 + $0x70] sm:$0xff] }
 0x735   : > { %3436 = vmatpush.msrb.mxu2 %v3183_v50  ;;  %3518 = vmatpush.msra.mxu1 %v3140_v59  ;;  %v3121_v50 = vld [vmem:[#allocation4 + $0x418] sm:$0xff]  ;;  %v3000_v59 = vld [vmem:[#allocation4 + $0x50] sm:$0xff] }
 0x736   : > { %3342 = vmatpush.msrb.mxu3 %v3019_v33  ;;  %3495 = vmatmul.f32.vlgmr.msra.gmra.mxu0 %v9372_v4  ;;  %v2996_v33 = vld [vmem:[#allocation4 + $0x30] sm:$0xff] }
 0x737   : > { %3547 = vmatpush.msra.mxu2 %v9407_v34  ;;  %3519 = vmatpush.msra.mxu1 %v3136_v35  ;;  %v3192_v34 = vld [vmem:[#allocation4 + $0x650] sm:$0xff] }
 0x738   : > { %6988 = vmatmul.msk.f32.gmra.mxu3 %vm12691_vm11, %v9467_v21  ;;  %v2992_v35 = vld [vmem:[#allocation4 + $0x10] sm:$0xff]  ;;  %vm3766_vm11 = vcmask 64512  }
 0x739   : > { %3548 = vmatpush.msra.mxu2 %v9299_v63  ;;  %3343 = vmatpush.msrb.mxu3 %v3015_v57  ;;  %v3124_v63 = vld [vmem:[#allocation4 + $0x430] sm:$0xff]  ;;  %v3053_v57 = vld [vmem:[#allocation4 + $0x1f8] sm:$0xff] }
 0x73a   : > { %3520 = vmatpush.msra.mxu1 %v9318_v45  ;;  %3298 = vmatmul.f32.gmra.mxu2 %v9477_v38  ;;  %v3188_v45 = vld [vmem:[#allocation4 + $0x630] sm:$0xff] }
 0x73b   : > { %3549 = vmatpush.msra.mxu2 %v3196_v24  ;;  %3344 = vmatpush.msrb.mxu3 %v9192_v53  ;;  %v3120_v53 = vld [vmem:[#allocation4 + $0x410] sm:$0xff]  ;;  %v3049_v24 = vld [vmem:[#allocation4 + $0x1d8] sm:$0xff] }
 0x73c   : > { %3521 = vmatpush.msra.mxu1 %v9207_v1  ;;  %v9495_v1 = vld [vmem:[%s12386_s4 + $0x70] sm:$0xff] }
 0x73d   : > { %3550 = vmatpush.msra.mxu2 %v3192_v34  ;;  %3345 = vmatpush.msrb.mxu3 %v9199_v26  ;;  %v2999_v26 = vld [vmem:[#allocation4 + $0x48] sm:$0xff]  ;;  %v3045_v34 = vld [vmem:[#allocation4 + $0x1b8] sm:$0xff] }
 0x73e   : > { %3522 = vmatpush.msra.mxu1 %v3124_v63  ;;  %3498 = vmatmul.f32.gmra.mxu0 %v9395_v15  ;;  %v3041_v63 = vld [vmem:[#allocation4 + $0x198] sm:$0xff] }
 0x73f   : > { %3551 = vmatpush.msra.mxu2 %v3188_v45  ;;  %3346 = vmatpush.msrb.mxu3 %v3003_v31  ;;  %v3037_v45 = vld [vmem:[#allocation4 + $0x178] sm:$0xff] }
 0x740   : > { %3523 = vmatpush.msra.mxu1 %v3120_v53  ;;  %6989 = vmatmul.msk.f32.gmra.mxu3 %vm12692_vm8, %v9488_v22  ;;  %v3033_v31 = vld [vmem:[#allocation4 + $0x158] sm:$0xff]  ;;  %vm12739_vm8 = vcmask 130048  }
 0x741   : > { %3552 = vmatpush.msra.mxu2 %v3184_v0  ;;  %3347 = vmatpush.msrb.mxu3 %v2999_v26  ;;  %v3025_v53 = vld [vmem:[#allocation4 + $0x118] sm:$0xff] }
 0x742   : > { %3624 = vmatpush.msrb.mxu1 %v3181_v28  ;;  %3301 = vmatmul.f32.gmra.mxu2 %v9495_v1  ;;  %v3021_v0 = vld [vmem:[#allocation4 + $0xf8] sm:$0xff] }
 0x743   : > { %3414 = vmatmul.f32.gmra.mxu1 %v9477_v38  ;;  %3348 = vmatpush.msrb.mxu3 %v2995_v20  ;;  %v3017_v28 = vld [vmem:[#allocation4 + $0xd8] sm:$0xff] }
 0x744   : > { %3625 = vmatpush.msrb.mxu1 %v3177_v43  ;;  %v3009_v26 = vld [vmem:[#allocation4 + $0x98] sm:$0xff] }
 0x745   : > { %3349 = vmatpush.msrb.mxu3 %v2991_v17  ;;  %v3005_v43 = vld [vmem:[#allocation4 + $0x78] sm:$0xff] }
 0x746   : > { %3626 = vmatpush.msrb.mxu1 %v3173_v18  ;;  %3501 = vmatmul.f32.gmra.mxu0 %v9414_v6  ;;  %v3001_v20 = vld [vmem:[#allocation4 + $0x58] sm:$0xff] }
 0x747   : > { %3450 = vmatpush.msra.mxu3 %v3052_v30  ;;  %v2993_v18 = vld [vmem:[#allocation4 + $0x18] sm:$0xff] }
 0x748   : > { %3627 = vmatpush.msrb.mxu1 %v3169_v49  ;;  %6990 = vmatmul.msk.f32.gmra.mxu3 %vm12693_vm13, %v9503_v61  ;;  %vm5181_vm13 = vcmask 1045504  }
 0x749   : > { %3451 = vmatpush.msra.mxu3 %v3048_v55 }
 0x74a   : > { %3628 = vmatpush.msrb.mxu1 %v3165_v8  ;;  %6991 = vmatmul.msk.f32.vlgmr.msrb.gmra.mxu2 %vm12694_vm12, %v9440_v37  ;;  %vm12755_vm12 = vmmov %vm12739_vm8 }
 0x74b   : > { %3417 = vmatmul.f32.gmra.mxu1 %v9495_v1  ;;  %3452 = vmatpush.msra.mxu3 %v3044_v41 }
 0x74c   : > { %3629 = vmatpush.msrb.mxu1 %v3161_v44  ;;  %3663 = vmatpush.msrb.mxu2 %v3205_v51 }
 0x74d   : > { %3453 = vmatpush.msra.mxu3 %v3040_v54 }
 0x74e   : > { %3630 = vmatpush.msrb.mxu1 %v3157_v46  ;;  %3664 = vmatpush.msrb.mxu2 %v3201_v62 }
 0x74f   : > { %3454 = vmatpush.msra.mxu3 %v9238_v42  ;;  %v3141_v42 = vld [vmem:[#allocation4 + $0x4b8] sm:$0xff]  ;;  %3504 = vmatmul.f32.gmra.mxu0 %v9426_v25 }
 0x750   : > { %3631 = vmatpush.msrb.mxu1 %v3153_v16  ;;  %3350 = vmatmul.f32.vlgmr.msrb.gmra.mxu3 %v9283_v52 }
 0x751   : > { %3665 = vmatpush.msrb.mxu2 %v3197_v39  ;;  %3455 = vmatpush.msra.mxu3 %v3032_v14 }
 0x752   : > { %3632 = vmatpush.msrb.mxu1 %v3149_v19  ;;  %6992 = vmatmul.msk.f32.gmra.mxu2 %vm12695_vm5, %v9467_v21  ;;  %vm12798_vm5 = vmmov %vm12739_vm8 }
 0x753   : > { %3666 = vmatpush.msrb.mxu2 %v3193_v47  ;;  %3456 = vmatpush.msra.mxu3 %v3028_v5 }
 0x754   : > { %3633 = vmatpush.msrb.mxu1 %v3145_v7 }
 0x755   : > { %3667 = vmatpush.msrb.mxu2 %v3189_v13  ;;  %3457 = vmatpush.msra.mxu3 %v3024_v60 }
 0x756   : > { %3634 = vmatpush.msrb.mxu1 %v3141_v42 }
 0x757   : > { %3668 = vmatpush.msrb.mxu2 %v3185_v23  ;;  %3458 = vmatpush.msra.mxu3 %v3020_v27 }
 0x758   : > { %3635 = vmatpush.msrb.mxu1 %v3137_v48  ;;  %3353 = vmatmul.f32.gmra.mxu3 %v9305_v40 }
 0x759   : > { %3459 = vmatpush.msra.mxu3 %v3016_v12  ;;  %3524 = vmatmul.f32.vlgmr.msra.gmra.mxu1 %v9445_v36 }
 0x75a   : > { %3636 = vmatpush.msrb.mxu1 %v3133_v10  ;;  %6993 = vmatmul.msk.f32.gmra.mxu2 %vm12696_vm0, %v9488_v22  ;;  %vm3955_vm0 = vcmask 31744  }
 0x75b   : > { %3460 = vmatpush.msra.mxu3 %v3012_v58  ;;  %3611 = vmatmul.f32.vlgmr.msrb.gmra.mxu0 %v9372_v4  ;;  %v3029_v4 = vld [vmem:[#allocation4 + $0x138] sm:$0xff] }
 0x75c   : > { %3637 = vmatpush.msrb.mxu1 %v3129_v29 }
 0x75d   : > { %3461 = vmatpush.msra.mxu3 %v3008_v2 }
 0x75e   : > { %3638 = vmatpush.msrb.mxu1 %v3125_v32 }
 0x75f   : > { %3462 = vmatpush.msra.mxu3 %v3004_v3 }
 0x760   : > { %3639 = vmatpush.msrb.mxu1 %v3121_v50  ;;  %3356 = vmatmul.f32.gmra.mxu3 %v9324_v56 }
 0x761   : > { %3463 = vmatpush.msra.mxu3 %v3000_v59  ;;  %3527 = vmatmul.f32.gmra.mxu1 %v9460_v9 }
 0x762   : > { %6994 = vmatmul.msk.f32.gmra.mxu2 %vm12697_vm1, %v9503_v61  ;;  %vm12823_vm1 = vmmov %vm12798_vm5 }
 0x763   : > { %3464 = vmatpush.msra.mxu3 %v2996_v33  ;;  %3614 = vmatmul.f32.gmra.mxu0 %v9395_v15  ;;  %v3013_v15 = vld [vmem:[#allocation4 + $0xb8] sm:$0xff] }
 0x765   : > { %3465 = vmatpush.msra.mxu3 %v2992_v35 }
 0x767   : > { %3566 = vmatpush.msrb.mxu3 %v3053_v57 }
 0x768   : > { %3359 = vmatmul.f32.gmra.mxu3 %v9337_v11 }
 0x769   : > { %3567 = vmatpush.msrb.mxu3 %v3049_v24  ;;  %3530 = vmatmul.f32.gmra.mxu1 %v9477_v38 }
 0x76a   : > { %6995 = vmatmul.msk.f32.vlgmr.msra.gmra.mxu2 %vm12698_vm9, %v9440_v37  ;;  %vm12889_vm9 = vmmov %vm12823_vm1 }
 0x76b   : > { %3568 = vmatpush.msrb.mxu3 %v3045_v34  ;;  %3617 = vmatmul.f32.gmra.mxu0 %v9414_v6  ;;  %v2997_v6 = vld [vmem:[#allocation4 + $0x38] sm:$0xff] }
 0x76d   : > { %3569 = vmatpush.msrb.mxu3 %v3041_v63 }
 0x76f   : > { %3570 = vmatpush.msrb.mxu3 %v3037_v45 }
 0x770   : > { %3466 = vmatmul.f32.vlgmr.msra.gmra.mxu3 %v9283_v52 }
 0x771   : > { %3571 = vmatpush.msrb.mxu3 %v3033_v31  ;;  %3533 = vmatmul.f32.gmra.mxu1 %v9495_v1 }
 0x772   : > { %6996 = vmatmul.msk.f32.gmra.mxu2 %vm12699_vm2, %v9467_v21  ;;  %vm6658_vm2 = vcmask 261120  }
 0x773   : > { %3572 = vmatpush.msrb.mxu3 %v3029_v4  ;;  %3620 = vmatmul.f32.gmra.mxu0 %v9426_v25  ;;  %v3235_v25 = vpop.f32.mrf.mxu0 }
 0x775   : > { %3573 = vmatpush.msrb.mxu3 %v3025_v53 }
 0x777   : > { %3574 = vmatpush.msrb.mxu3 %v3021_v0 }
 0x778   : > { %3469 = vmatmul.f32.gmra.mxu3 %v9305_v40 }
 0x779   : > { %3575 = vmatpush.msrb.mxu3 %v3017_v28  ;;  %3640 = vmatmul.f32.vlgmr.msrb.gmra.mxu1 %v9445_v36  ;;  %v3264_v36 = vpop.f32.mrf.mxu1 }
 0x77a   : > { %6997 = vmatmul.msk.f32.gmra.mxu2 %vm12700_vm10, %v9488_v22  ;;  %vm12890_vm10 = vmmov %vm12823_vm1 }
 0x77b   : > { %3576 = vmatpush.msrb.mxu3 %v3013_v15 }
 0x77d   : > { %3577 = vmatpush.msrb.mxu3 %v3009_v26 }
 0x77f   : > { %3578 = vmatpush.msrb.mxu3 %v3005_v43 }
 0x780   : > { %3472 = vmatmul.f32.gmra.mxu3 %v9324_v56 }
 0x781   : > { %3579 = vmatpush.msrb.mxu3 %v3001_v20  ;;  %3643 = vmatmul.f32.gmra.mxu1 %v9460_v9 }
 0x782   : > { %6998 = vmatmul.msk.f32.gmra.mxu2 %vm12701_vm3, %v9503_v61  ;;  %vm6667_vm3 = vcmask 523264  }
 0x783   : > { %3580 = vmatpush.msrb.mxu3 %v2997_v6 }
 0x785   : > { %3581 = vmatpush.msrb.mxu3 %v2993_v18 }
 0x788   : > { %3475 = vmatmul.f32.gmra.mxu3 %v9337_v11 }
 0x789   : > { %3646 = vmatmul.f32.gmra.mxu1 %v9477_v38 }
 0x78a   : > { %6999 = vmatmul.msk.f32.vlgmr.msrb.gmra.mxu2 %vm12702_vm15, %v9440_v37  ;;  %vm6672_vm15 = vcmask 654336  }
 0x790   : > { %3582 = vmatmul.f32.vlgmr.msrb.gmra.mxu3 %v9283_v52  ;;  %v3265_v52 = vadd.f32 %v3264_v36, %v3235_v25 }
 0x791   : > { %3649 = vmatmul.f32.gmra.mxu1 %v9495_v1 }
 0x792   : > { %7000 = vmatmul.msk.f32.gmra.mxu2 %vm12703_vm14, %v9467_v21  ;;  %vm12891_vm14 = vmmov %vm12704_vm4 }
 0x798   : > { %3585 = vmatmul.f32.gmra.mxu3 %v9305_v40  ;;  %v3238_v40 = vpop.f32.mrf.mxu0 }
 0x79a   : > { %7001 = vmatmul.msk.f32.gmra.mxu2 %vm12704_vm4, %v9488_v22  ;;  %vm6677_vm4 = vcmask 785408  }
 0x7a0   : > { %3588 = vmatmul.f32.gmra.mxu3 %v9324_v56  ;;  %v3267_v56 = vpop.f32.mrf.mxu1 }
 0x7a1   : > { %v3268_v21 = vadd.f32 %v3267_v56, %v3238_v40 }
 0x7a2   : > { %7002 = vmatmul.msk.f32.gmra.mxu2 %vm12705_vm7, %v9503_v61  ;;  %v3241_v61 = vpop.f32.mrf.mxu0  ;;  %vm6682_vm7 = vcmask 916480  }
 0x7a8   : > { %3591 = vmatmul.f32.gmra.mxu3 %v9337_v11  ;;  %v3270_v30 = vpop.f32.mrf.mxu1 }
 0x7a9   : > { %v3271_v55 = vadd.f32 %v3270_v30, %v3241_v61 }
 0x7aa   : > { %v3244_v54 = vpop.f32.mrf.mxu0 }
 0x7ac   : > { %v3322_v9 = vpop.f32.mrf.mxu3 }
 0x7ad   : > { %v3293_v37 = vpop.f32.mrf.mxu2 }
 0x7ae   : > { %v3294_v38 = vadd.f32 %v3293_v37, %v3265_v52 }
 0x7b0   : > { %v9560_v1 = vadd.f32 %v3322_v9, %v3294_v38  ;;  %v3273_v46 = vpop.f32.mrf.mxu1 }
 0x7b1   : > { %v3274_v62 = vadd.f32 %v3273_v46, %v3244_v54 }
 0x7b2   : > { %3710 = vrot.lane.b32.xlu1 %v9560_v1, %s7179_s27  ;;  %3698 = vrot.lane.b32.xlu0 %v9560_v1, %s7178_s26  ;;  %v3380_v5 = vpop.f32.mrf.mxu0 }
 0x7b3   : > { %3686 = vrot.lane.b32.xlu2 %v9560_v1, %s7168_s8 }
 0x7b5   : > { %v3296_v22 = vpop.f32.mrf.mxu2 }
 0x7b6   : > { %v3297_v11 = vadd.f32 %v3296_v22, %v3268_v21 }
 0x7b8   : > { %v3409_v13 = vpop.f32.mrf.mxu1 }
 0x7ba   : > { %3750 = vrot.lane.b32.xlu1 %v9560_v1, %s7183_s7  ;;  %3734 = vrot.lane.b32.xlu0 %v9560_v1, %s7184_s9  ;;  %v3383_v48 = vpop.f32.mrf.mxu0 }
 0x7bb   : > { %v3325_v17 = vpop.f32.mrf.mxu3  ;;  %3722 = vrot.lane.b32.xlu2 %v9560_v1, %s7180_s28 }
 0x7bc   : > { %v9574_v49 = vadd.f32 %v3325_v17, %v3297_v11 }
 0x7bd   : > { %v3299_v8 = vpop.f32.mrf.mxu2 }
 0x7be   : > { %v3300_v41 = vadd.f32 %v3299_v8, %v3271_v55 }
 0x7c0   : > { %v3412_v12 = vpop.f32.mrf.mxu1 }
 0x7c2   : > { %3700 = vrot.lane.b32.xlu1 %v9574_v49, %s7178_s26  ;;  %3688 = vrot.lane.b32.xlu0 %v9574_v49, %s7168_s8  ;;  %v3386_v32 = vpop.f32.mrf.mxu0 }
 0x7c3   : > { %3712 = vrot.lane.b32.xlu2 %v9574_v49, %s7179_s27  ;;  %v3328_v44 = vpop.f32.mrf.mxu3 }
 0x7c4   : > { %v9582_v51 = vadd.f32 %v3328_v44, %v3300_v41 }
 0x7c5   : > { %v3302_v16 = vpop.f32.mrf.mxu2 }
 0x7c6   : > { %v3303_v39 = vadd.f32 %v3302_v16, %v3274_v62 }
 0x7c8   : > { %v3415_v59 = vpop.f32.mrf.mxu1 }
 0x7ca   : > { %3736 = vrot.lane.b32.xlu1 %v9574_v49, %s7184_s9  ;;  %3724 = vrot.lane.b32.xlu0 %v9574_v49, %s7180_s28  ;;  %v3389_v45 = vpop.f32.mrf.mxu0 }
 0x7cb   : > { %3702 = vrot.lane.b32.xlu2 %v9582_v51, %s7178_s26  ;;  %v3331_v14 = vpop.f32.mrf.mxu3 }
 0x7cc   : > { %v9602_v19 = vadd.f32 %v3331_v14, %v3303_v39 }
 0x7cd   : > { %v3438_v42 = vpop.f32.mrf.mxu2 }
 0x7d0   : > { %v3418_v53 = vpop.f32.mrf.mxu1 }
 0x7d2   : > { %3690 = vrot.lane.b32.xlu1 %v9582_v51, %s7168_s8  ;;  %3754 = vrot.lane.b32.xlu0 %v9574_v49, %s7183_s7  ;;  %v3496_v18 = vpop.f32.mrf.mxu0 }
 0x7d3   : > { %3738 = vrot.lane.b32.xlu2 %v9582_v51, %s7184_s9  ;;  %v3351_v47 = vpop.f32.mrf.mxu3 }
 0x7d4   : > { %v3381_v7 = vadd.f32 %v3380_v5, %v3351_v47 }
 0x7d5   : > { %v3441_v58 = vpop.f32.mrf.mxu2 }
 0x7d6   : > { %v3410_v60 = vadd.f32 %v3409_v13, %v3381_v7 }
 0x7d8   : > { %v3439_v23 = vadd.f32 %v3438_v42, %v3410_v60  ;;  %v3525_v9 = vpop.f32.mrf.mxu1  ;;  %v7197_v42 = vmov 1983009808  }
 0x7da   : > { %3726 = vrot.lane.b32.xlu1 %v9582_v51, %s7180_s28  ;;  %3714 = vrot.lane.b32.xlu0 %v9582_v51, %s7179_s27  ;;  %v3499_v8 = vpop.f32.mrf.mxu0 }
 0x7db   : > { %3758 = vrot.lane.b32.xlu2 %v9582_v51, %s7183_s7  ;;  %v3354_v27 = vpop.f32.mrf.mxu3 }
 0x7dc   : > { %v3384_v10 = vadd.f32 %v3383_v48, %v3354_v27 }
 0x7dd   : > { %v3444_v35 = vpop.f32.mrf.mxu2 }
 0x7de   : > { %v3413_v29 = vadd.f32 %v3412_v12, %v3384_v10 }
 0x7e0   : > { %v3442_v3 = vadd.f32 %v3441_v58, %v3413_v29  ;;  %v3528_v62 = vpop.f32.mrf.mxu1 }
 0x7e2   : > { %3716 = vrot.lane.b32.xlu1 %v9602_v19, %s7179_s27  ;;  %3704 = vrot.lane.b32.xlu0 %v9602_v19, %s7178_s26  ;;  %s7185_s26 = smov 96   ;;  %s7187_s27 = smov 36   ;;  %v3502_v60 = vpop.f32.mrf.mxu0 }
 0x7e3   : > { %3692 = vrot.lane.b32.xlu2 %v9602_v19, %s7168_s8  ;;  %s7186_s8 = smov 116   ;;  %v3357_v2 = vpop.f32.mrf.mxu3 }
 0x7e4   : > { %v3387_v50 = vadd.f32 %v3386_v32, %v3357_v2 }
 0x7e5   : > { %v3447_v28 = vpop.f32.mrf.mxu2 }
 0x7e6   : > { %v3416_v33 = vadd.f32 %v3415_v59, %v3387_v50 }
 0x7e8   : > { %v3445_v57 = vadd.f32 %v3444_v35, %v3416_v33  ;;  %v3531_v2 = vpop.f32.mrf.mxu1 }
 0x7ea   : > { %3762 = vrot.lane.b32.xlu1 %v9602_v19, %s7183_s7  ;;  %3740 = vrot.lane.b32.xlu0 %v9602_v19, %s7184_s9 }
 0x7eb   : > { %3728 = vrot.lane.b32.xlu2 %v9602_v19, %s7180_s28  ;;  %v3360_v63 = vpop.f32.mrf.mxu3 }
 0x7ec   : > { %v3390_v4 = vadd.f32 %v3389_v45, %v3360_v63 }
 0x7ed   : > { %v3554_v40 = vpop.f32.mrf.mxu2 }
 0x7ee   : > { %v3419_v0 = vadd.f32 %v3418_v53, %v3390_v4  ;;  %v4247_v53 = vrot.slane %v9574_v49, 4 }
 0x7f0   : > { %v3448_v20 = vadd.f32 %v3447_v28, %v3419_v0 }
 0x7f2   : > { %3787 = vrot.lane.b32.xlu1 %v3439_v23, %s7185_s26  ;;  %3775 = vrot.lane.b32.xlu0 %v3439_v23, %s7186_s8 }
 0x7f3   : > { %3752 = vrot.lane.b32.xlu2 %v3439_v23, %s7183_s7  ;;  %v3467_v6 = vpop.f32.mrf.mxu3 }
 0x7f4   : > { %v3497_v37 = vadd.f32 %v3496_v18, %v3467_v6  ;;  %v4527_v18 = vrot.slane %v9582_v51, 4 }
 0x7f5   : > { %v3557_v39 = vpop.f32.mrf.mxu2 }
 0x7f6   : > { %v3526_v38 = vadd.f32 %v3525_v9, %v3497_v37 }
 0x7f8   : > { %v3555_v11 = vadd.f32 %v3554_v40, %v3526_v38  ;;  %v7198_v38 = vmov 1934713408  }
 0x7f9   : > { %v4018_v40 = vunpack.c.l.s4 %v7198_v38 }
 0x7fa   : > { %3823 = vrot.lane.b32.xlu1 %v3439_v23, %s7187_s27  ;;  %3811 = vrot.lane.b32.xlu0 %v3439_v23, %s7188_s10 }
 0x7fb   : > { %3799 = vrot.lane.b32.xlu2 %v3439_v23, %s7189_s11  ;;  %v3470_v55 = vpop.f32.mrf.mxu3 }
 0x7fc   : > { %v3500_v46 = vadd.f32 %v3499_v8, %v3470_v55 }
 0x7fd   : > { %v3560_v63 = vpop.f32.mrf.mxu2 }
 0x7fe   : > { %v3529_v16 = vadd.f32 %v3528_v62, %v3500_v46 }
 0x800   : > { %v3558_v7 = vadd.f32 %v3557_v39, %v3529_v16 }
 0x802   : > { %3756 = vrot.lane.b32.xlu1 %v3442_v3, %s7183_s7  ;;  %3801 = vrot.lane.b32.xlu0 %v3442_v3, %s7189_s11 }
 0x803   : > { %3839 = vrot.lane.b32.xlu2 %v3439_v23, %s7190_s12  ;;  %v3473_v13 = vpop.f32.mrf.mxu3  ;;  %v3970_v23 = vunpack.c.l.s4 %v7197_v42 }
 0x804   : > { %v3503_v58 = vadd.f32 %v3502_v60, %v3473_v13 }
 0x805   : > { %v9705_v32 = vunpack.c.0.s8 %v3970_v23 }
 0x80a   : > { %3777 = vrot.lane.b32.xlu1 %v3442_v3, %s7186_s8  ;;  %3760 = vrot.lane.b32.xlu0 %v3445_v57, %s7183_s7 }
 0x80b   : > { %3789 = vrot.lane.b32.xlu2 %v3442_v3, %s7185_s26 }
 0x80d   : > { %v9628_v24 = vpop.permute.xlu2 %3686 }
 0x80e   : > { %v3979_v29 = vrot.slane %v9628_v24, 4 }
 0x812   : > { %3813 = vrot.lane.b32.xlu1 %v3442_v3, %s7188_s10  ;;  %3791 = vrot.lane.b32.xlu0 %v3445_v57, %s7185_s26 }
 0x813   : > { %3825 = vrot.lane.b32.xlu2 %v3442_v3, %s7187_s27 }
 0x815   : > { %v9633_v34 = vpop.permute.xlu2 %3722 }
 0x81a   : > { %3843 = vrot.lane.b32.xlu1 %v3442_v3, %s7190_s12  ;;  %3827 = vrot.lane.b32.xlu0 %v3445_v57, %s7187_s27  ;;  %v3967_v3 = vrot.slane %v9560_v1, 4 }
 0x81b   : > { %3779 = vrot.lane.b32.xlu2 %v3445_v57, %s7186_s8 }
 0x81d   : > { %v9638_v31 = vpop.permute.xlu2 %3712 }
 0x81e   : > { %v4257_v45 = vrot.slane %v9638_v31, 4 }
 0x822   : > { %3803 = vrot.lane.b32.xlu1 %v3445_v57, %s7189_s11  ;;  %3847 = vrot.lane.b32.xlu0 %v3445_v57, %s7190_s12 }
 0x823   : > { %3815 = vrot.lane.b32.xlu2 %v3445_v57, %s7188_s10  ;;  %v3532_v57 = vadd.f32 %v3531_v2, %v3503_v58 }
 0x824   : > { %v9643_v15 = vpop.permute.xlu1 %3710  ;;  %v9645_v26 = vpop.permute.xlu0 %3698 }
 0x825   : > { %v9647_v43 = vpop.permute.xlu2 %3702  ;;  %v3977_v10 = vrot.slane %v9643_v15, 4  ;;  %v3980_v50 = vsel %vm3965_vm6, %v9643_v15, %v3979_v29  ;;  %v3964_v59 = vrot.slane %v9645_v26, 4  ;;  %v3968_v35 = vsel %vm3965_vm6, %v9645_v26, %v3967_v3 }
 0x826   : > { %v3988_v4 = vperm.slane %v3980_v50, %v9705_v32  ;;  %v3976_v26 = vperm.slane %v3968_v35, %v9705_v32  ;;  %v4525_v37 = vrot.slane %v9647_v43, 4  ;;  %v9734_v9 = vadd.f32 %v3560_v63, %v3532_v57 }
 0x827   : > { %v3978_v33 = vsel %vm3965_vm6, %v3977_v10, %v9628_v24  ;;  %v3966_v15 = vsel %vm3965_vm6, %v3964_v59, %v9560_v1  ;;  %v4528_v16 = vsel %vm3965_vm6, %v9647_v43, %v4527_v18  ;;  %v3505_v59 = vpop.f32.mrf.mxu0  ;;  %v3991_v63 = vrot.slane %v9633_v34, 4 }
 0x828   : > { %v3984_v28 = vperm.slane %v3978_v33, %v9705_v32  ;;  %v4025_v8 = vrot.slane %v3988_v4, 4  ;;  %v3972_v46 = vperm.slane %v3966_v15, %v9705_v32  ;;  %v4027_v39 = vrot.slane %v3976_v26, 4 }
 0x829   : > { %v4526_v60 = vsel %vm3965_vm6, %v4525_v37, %v9582_v51  ;;  %v9768_v3 = vperm.slane %v4528_v16, %v9705_v32  ;;  %v3563_v16 = vpop.f32.mrf.mxu2 }
 0x82a   : > { %3793 = vrot.lane.b32.xlu1 %v3448_v20, %s7185_s26  ;;  %3781 = vrot.lane.b32.xlu0 %v3448_v20, %s7186_s8  ;;  %v4013_v62 = vrot.slane %v3984_v28, 4  ;;  %v4015_v23 = vrot.slane %v3972_v46, 4  ;;  %v4026_v51 = vsel %vm3965_vm6, %v4025_v8, %v3976_v26  ;;  %v9765_v2 = vperm.slane %v4526_v60, %v9705_v32  ;;  %s7014_s8 = sshll.u32 %s12909_s22, 6 }
 0x82b   : > { %3764 = vrot.lane.b32.xlu2 %v3448_v20, %s7183_s7  ;;  %v4587_v37 = vrot.slane %v9768_v3, 4  ;;  %s12310_s22 = scalar_lea.vmem %s12388_s6, %s7014_s8 }
 0x82c   : > { %v9652_v25 = vpop.permute.xlu1 %3750  ;;  %v9654_v36 = vpop.permute.xlu0 %3734  ;;  %v4016_v15 = vsel %vm3965_vm6, %v3984_v28, %v4015_v23  ;;  %v4575_v18 = vrot.slane %v9765_v2, 4 }
 0x82d   : > { %v9656_v52 = vpop.permute.xlu2 %3738 }
 0x832   : > { %3829 = vrot.lane.b32.xlu1 %v3448_v20, %s7187_s27  ;;  %3817 = vrot.lane.b32.xlu0 %v3448_v20, %s7188_s10 }
 0x833   : > { %3805 = vrot.lane.b32.xlu2 %v3448_v20, %s7189_s11 }
 0x834   : > { %v9661_v56 = vpop.permute.xlu1 %3700  ;;  %v9663_v21 = vpop.permute.xlu0 %3688 }
 0x835   : > { %v9665_v22 = vpop.permute.xlu2 %3758  ;;  %v4258_v1 = vsel %vm3965_vm6, %v4257_v45, %v9663_v21  ;;  %v4259_v55 = vrot.slane %v9663_v21, 4  ;;  %v9753_v21 = vunpack.c.0.s8 %v4018_v40 }
 0x836   : > { %v4264_v42 = vperm.slane %v4258_v1, %v9705_v32 }
 0x837   : > { %v4260_v43 = vsel %vm3965_vm6, %v9638_v31, %v4259_v55  ;;  %v4014_v31 = vsel %vm3965_vm6, %v4013_v62, %v3972_v46  ;;  %v9777_v45 = vperm.slane %v4026_v51, %v9753_v21  ;;  %v4003_v46 = vrot.slane %v9654_v36, 4 }
 0x838   : > { %v4268_v35 = vperm.slane %v4260_v43, %v9705_v32  ;;  %v4293_v57 = vrot.slane %v4264_v42, 4  ;;  %v9782_v26 = vperm.slane %v4014_v31, %v9753_v21 }
 0x83a   : > { %3863 = vrot.lane.b32.xlu1 %v3555_v11, %s7172_s18  ;;  %3841 = vrot.lane.b32.xlu0 %v3555_v11, %s7190_s12  ;;  %v4305_v55 = vrot.slane %v4268_v35, 4 }
 0x83b   : > { %3851 = vrot.lane.b32.xlu2 %v3448_v20, %s7190_s12  ;;  %v4245_v20 = vrot.slane %v9661_v56, 4 }
 0x83c   : > { %v9670_v17 = vpop.permute.xlu1 %3736  ;;  %v9672_v61 = vpop.permute.xlu0 %3724 }
 0x83d   : > { %v9674_v30 = vpop.permute.xlu2 %3692  ;;  %v4246_v13 = vsel %vm3965_vm6, %v4245_v20, %v9574_v49  ;;  %v3476_v49 = vpop.f32.mrf.mxu3 }
 0x83e   : > { %v4252_v10 = vperm.slane %v4246_v13, %v9705_v32 }
 0x840   : > { %v4295_v20 = vrot.slane %v4252_v10, 4  ;;  %v4294_v1 = vsel %vm3965_vm6, %v4293_v57, %v4252_v10  ;;  %v4819_v57 = vrot.slane %v9674_v30, 4 }
 0x842   : > { %3899 = vrot.lane.b32.xlu1 %v3555_v11, %s7191_s13  ;;  %3887 = vrot.lane.b32.xlu0 %v3555_v11, %s7192_s14  ;;  %v4296_v60 = vsel %vm3965_vm6, %v4264_v42, %v4295_v20  ;;  %v3506_v20 = vadd.f32 %v3505_v59, %v3476_v49 }
 0x843   : > { %3875 = vrot.lane.b32.xlu2 %v3555_v11, %s7193_s15 }
 0x844   : > { %v9679_v41 = vpop.permute.xlu1 %3690  ;;  %v9681_v44 = vpop.permute.xlu0 %3754 }
 0x845   : > { %v9683_v54 = vpop.permute.xlu2 %3728  ;;  %v4539_v38 = vrot.slane %v9679_v41, 4 }
 0x84a   : > { %3939 = vrot.lane.b32.xlu1 %v3555_v11, %s7194_s17  ;;  %3923 = vrot.lane.b32.xlu0 %v3555_v11, %s7195_s19 }
 0x84b   : > { %3911 = vrot.lane.b32.xlu2 %v3555_v11, %s7196_s20  ;;  %v4248_v11 = vsel %vm3965_vm6, %v9661_v56, %v4247_v53  ;;  %v4807_v53 = vrot.slane %v9602_v19, 4 }
 0x84c   : > { %v9688_v14 = vpop.permute.xlu1 %3726  ;;  %v9690_v47 = vpop.permute.xlu0 %3714  ;;  %v4256_v56 = vperm.slane %v4248_v11, %v9705_v32 }
 0x84d   : > { %v9692_v5 = vpop.permute.xlu2 %3752  ;;  %v4537_v40 = vrot.slane %v9690_v47, 4  ;;  %v3534_v11 = vpop.f32.mrf.mxu1  ;;  %v4540_v62 = vsel %vm3965_vm6, %v9690_v47, %v4539_v38  ;;  %v9815_v47 = vperm.slane %v4294_v1, %v9753_v21  ;;  %v9831_v38 = vperm.slane %v4296_v60, %v9753_v21 }
 0x84e   : > { %v4307_v33 = vrot.slane %v4256_v56, 4 }
 0x84f   : > { %v4538_v42 = vsel %vm3965_vm6, %v4537_v40, %v9679_v41 }
 0x850   : > { %v4308_v28 = vsel %vm3965_vm6, %v4268_v35, %v4307_v33  ;;  %v4306_v35 = vsel %vm3965_vm6, %v4305_v55, %v4256_v56  ;;  %v4544_v55 = vperm.slane %v4538_v42, %v9705_v32 }
 0x851   : > { %v9818_v31 = vperm.slane %v4308_v28, %v9753_v21  ;;  %v9849_v13 = vperm.slane %v4306_v35, %v9753_v21 }
 0x852   : > { %3889 = vrot.lane.b32.xlu1 %v3558_v7, %s7192_s14  ;;  %3877 = vrot.lane.b32.xlu0 %v3558_v7, %s7193_s15  ;;  %v4573_v35 = vrot.slane %v4544_v55, 4 }
 0x853   : > { %3845 = vrot.lane.b32.xlu2 %v3558_v7, %s7190_s12  ;;  %12707 = vst [vmem:[#allocation28_spill] sm:$0xff] %v9818_v31 }
 0x854   : > { %v9697_v27 = vpop.permute.xlu1 %3716  ;;  %v9699_v48 = vpop.permute.xlu0 %3704 }
 0x855   : > { %v9701_v12 = vpop.permute.xlu2 %3799  ;;  %v4817_v1 = vrot.slane %v9697_v27, 4  ;;  %v4805_v28 = vrot.slane %v9699_v48, 4  ;;  %v4820_v49 = vsel %vm3965_vm6, %v9697_v27, %v4819_v57  ;;  %v3535_v27 = vadd.f32 %v3534_v11, %v3506_v20 }
 0x857   : > { %v9889_v60 = vadd.f32 %v3563_v16, %v3535_v27 }
 0x85a   : > { %3925 = vrot.lane.b32.xlu1 %v3558_v7, %s7195_s19  ;;  %3913 = vrot.lane.b32.xlu0 %v3558_v7, %s7196_s20 }
 0x85b   : > { %3865 = vrot.lane.b32.xlu2 %v3558_v7, %s7172_s18 }
 0x85c   : > { %v9721_v0 = vpop.permute.xlu1 %3762  ;;  %v9723_v24 = vpop.permute.xlu0 %3740 }
 0x85d   : > { %v9730_v6 = vpop.permute.xlu2 %3839 }
 0x85e   : > { %12706 = vst [vmem:[#allocation12_spill] sm:$0xff] %v9730_v6 }
 0x862   : > { %3849 = vrot.lane.b32.xlu1 %v9734_v9, %s7190_s12  ;;  %3943 = vrot.lane.b32.xlu0 %v3558_v7, %s7194_s17 }
 0x863   : > { %3901 = vrot.lane.b32.xlu2 %v3558_v7, %s7191_s13  ;;  %v4028_v7 = vsel %vm3965_vm6, %v3988_v4, %v4027_v39  ;;  %v9804_v39 = vperm.slane %v4016_v15, %v9753_v21  ;;  %v4548_v15 = vperm.slane %v4540_v62, %v9705_v32  ;;  %v4808_v62 = vsel %vm3965_vm6, %v9699_v48, %v4807_v53 }
 0x864   : > { %v9760_v58 = vpop.permute.xlu1 %3787  ;;  %v9762_v29 = vpop.permute.xlu0 %3775  ;;  %v9785_v4 = vperm.slane %v4028_v7, %v9753_v21  ;;  %v3767_v7 = vsel %vm3766_vm11, %v9652_v25, %v9692_v5  ;;  %v4818_v48 = vsel %vm3965_vm6, %v4817_v1, %v9674_v30  ;;  %v4828_v53 = vperm.slane %v4820_v49, %v9705_v32 }
 0x865   : > { %v9772_v50 = vpop.permute.xlu2 %3789  ;;  %v9835_v25 = vpop.f32.mrf.mxu3  ;;  %v3989_v40 = vrot.slane %v3767_v7, 4  ;;  %v3992_v51 = vsel %vm3965_vm6, %v3767_v7, %v3991_v63  ;;  %v4588_v56 = vsel %vm3965_vm6, %v4548_v15, %v4587_v37  ;;  %v4585_v57 = vrot.slane %v4548_v15, 4 }
 0x866   : > { %v9837_v5 = vpop.f32.mrf.mxu0  ;;  %v4806_v63 = vsel %vm3965_vm6, %v4805_v28, %v9602_v19  ;;  %v9865_v37 = vpop.f32.mrf.mxu1  ;;  %v4816_v15 = vperm.slane %v4808_v62, %v9705_v32  ;;  %v4000_v1 = vperm.slane %v3992_v51, %v9705_v32  ;;  %v4576_v19 = vsel %vm3965_vm6, %v4544_v55, %v4575_v18 }
 0x867   : > { %v3990_v11 = vsel %vm3965_vm6, %v3989_v40, %v9633_v34  ;;  %v9880_v28 = vperm.slane %v4588_v56, %v9753_v21  ;;  %v4004_v49 = vsel %vm3965_vm6, %v9762_v29, %v4003_v46  ;;  %v4824_v40 = vperm.slane %v4818_v48, %v9705_v32  ;;  %v9891_v51 = vpop.f32.mrf.mxu2 }
 0x868   : > { %v4812_v62 = vperm.slane %v4806_v63, %v9705_v32  ;;  %v4001_v42 = vrot.slane %v9762_v29, 4  ;;  %v9894_v18 = vperm.slane %v3990_v11, %v9705_v32  ;;  %v4586_v56 = vsel %vm3965_vm6, %v4585_v57, %v9768_v3 }
 0x869   : > { %12708 = vst [vmem:[#allocation24_spill] sm:$0xff] %v9880_v28  ;;  %v4865_v55 = vrot.slane %v4828_v53, 4  ;;  %v4574_v48 = vsel %vm3965_vm6, %v4573_v35, %v9765_v2  ;;  %v9902_v63 = vperm.slane %v4576_v19, %v9753_v21  ;;  %v4867_v29 = vrot.slane %v4816_v15, 4 }
 0x86a   : > { %3879 = vrot.lane.b32.xlu1 %v9734_v9, %s7193_s15  ;;  %3867 = vrot.lane.b32.xlu0 %v9734_v9, %s7172_s18  ;;  %v4012_v16 = vperm.slane %v4004_v49, %v9705_v32  ;;  %v4051_v7 = vrot.slane %v4000_v1, 4  ;;  %v9909_v46 = vperm.slane %v4586_v56, %v9753_v21  ;;  %v4853_v41 = vrot.slane %v4824_v40, 4 }
 0x86b   : > { %3891 = vrot.lane.b32.xlu2 %v9734_v9, %s7192_s14  ;;  %12709 = vst [vmem:[#allocation11_spill] sm:$0xff] %v9902_v63  ;;  %v4855_v2 = vrot.slane %v4812_v62, 4  ;;  %v4002_v35 = vsel %vm3965_vm6, %v4001_v42, %v9654_v36  ;;  %v4091_v19 = vrot.slane %v9701_v12, 4  ;;  %v4866_v49 = vsel %vm3965_vm6, %v4865_v55, %v4816_v15 }
 0x86c   : > { %v9808_v43 = vpop.permute.xlu1 %3823  ;;  %v9810_v23 = vpop.permute.xlu0 %3811  ;;  %v4079_v59 = vrot.slane %v9760_v58, 4  ;;  %v9923_v56 = vperm.slane %v4574_v48, %v9753_v21  ;;  %v4039_v36 = vrot.slane %v9894_v18, 4  ;;  %v4868_v42 = vsel %vm3965_vm6, %v4828_v53, %v4867_v29 }
 0x86d   : > { %v9825_v33 = vpop.permute.xlu2 %3825  ;;  %v3586_v3 = vpop.f32.mrf.mxu3  ;;  %v4049_v27 = vrot.slane %v4012_v16, 4  ;;  %v4008_v15 = vperm.slane %v4002_v35, %v9705_v32  ;;  %v4089_v55 = vrot.slane %v9808_v43, 4  ;;  %v4854_v29 = vsel %vm3965_vm6, %v4853_v41, %v4812_v62 }
 0x86e   : > { %v3615_v57 = vpop.f32.mrf.mxu0  ;;  %v4080_v48 = vsel %vm3965_vm6, %v9810_v23, %v4079_v59  ;;  %v3644_v53 = vpop.f32.mrf.mxu1  ;;  %v4856_v6 = vsel %vm3965_vm6, %v4824_v40, %v4855_v2  ;;  %v9943_v31 = vperm.slane %v4866_v49, %v9753_v21  ;;  %v4077_v35 = vrot.slane %v9810_v23, 4 }
 0x86f   : > { %v4052_v10 = vsel %vm3965_vm6, %v4012_v16, %v4051_v7  ;;  %v9952_v63 = vperm.slane %v4868_v42, %v9753_v21  ;;  %v4050_v41 = vsel %vm3965_vm6, %v4049_v27, %v4000_v1  ;;  %v4088_v62 = vperm.slane %v4080_v48, %v9705_v32  ;;  %v3673_v2 = vpop.f32.mrf.mxu2 }
 0x870   : > { %12710 = vst [vmem:[#allocation17_spill] sm:$0xff] %v9943_v31  ;;  %v9958_v23 = vperm.slane %v4854_v29, %v9753_v21  ;;  %v4037_v7 = vrot.slane %v4008_v15, 4  ;;  %v4040_v49 = vsel %vm3965_vm6, %v4008_v15, %v4039_v36  ;;  %v9968_v1 = vperm.slane %v4052_v10, %v9753_v21 }
 0x871   : > { %12711 = vst [vmem:[#allocation32_spill] sm:$0xff] %v9952_v63  ;;  %v4078_v27 = vsel %vm3965_vm6, %v4077_v35, %v9760_v58  ;;  %v3616_v10 = vadd.f32 %v3615_v57, %v3586_v3  ;;  %v12716_v57 = vrot.slane %v9777_v45, 4  ;;  %v12718_v31 = vrot.slane %v9672_v61, 4 }
 0x872   : > { %3915 = vrot.lane.b32.xlu1 %v9734_v9, %s7196_s20  ;;  %3903 = vrot.lane.b32.xlu0 %v9734_v9, %s7191_s13  ;;  %12712 = vst [vmem:[#allocation30_spill] sm:$0xff] %v9958_v23  ;;  %v4038_v3 = vsel %vm3965_vm6, %v4037_v7, %v9894_v18 }
 0x873   : > { %3927 = vrot.lane.b32.xlu2 %v9734_v9, %s7195_s19  ;;  %v3645_v18 = vadd.f32 %v3644_v53, %v3616_v10  ;;  %v4369_v10 = vrot.slane %v9825_v33, 4 }
 0x874   : > { %v9871_v20 = vpop.permute.xlu1 %3756  ;;  %v9873_v30 = vpop.permute.xlu0 %3801 }
 0x875   : > { %v9884_v34 = vpop.permute.xlu2 %3779  ;;  %v3589_v36 = vpop.f32.mrf.mxu3 }
 0x876   : > { %v3618_v15 = vpop.f32.mrf.mxu0  ;;  %v3647_v7 = vpop.f32.mrf.mxu1 }
 0x87a   : > { %3869 = vrot.lane.b32.xlu1 %v9889_v60, %s7172_s18  ;;  %3853 = vrot.lane.b32.xlu0 %v9889_v60, %s7190_s12  ;;  %s7200_s18 = smov 32  }
 0x87b   : > { %3947 = vrot.lane.b32.xlu2 %v9734_v9, %s7194_s17  ;;  %v4092_v9 = vsel %vm3965_vm6, %v9808_v43, %v4091_v19  ;;  %v3613_v43 = vadd.f32 %v9837_v5, %v9835_v25  ;;  %v4090_v25 = vsel %vm3965_vm6, %v4089_v55, %v9701_v12  ;;  %v9963_v5 = vperm.slane %v4856_v6, %v9753_v21 }
 0x87c   : > { %v9927_v11 = vpop.permute.xlu1 %3777  ;;  %v9929_v8 = vpop.permute.xlu0 %3760  ;;  %v4100_v40 = vperm.slane %v4092_v9, %v9705_v32  ;;  %v9978_v6 = vperm.slane %v4050_v41, %v9753_v21  ;;  %v4096_v58 = vperm.slane %v4090_v25, %v9705_v32  ;;  %v4139_v9 = vrot.slane %v4088_v62, 4 }
 0x87d   : > { %v9938_v28 = vpop.permute.xlu2 %3815  ;;  %12713 = vst [vmem:[#allocation31_spill] sm:$0xff] %v9963_v5  ;;  %v3642_v42 = vadd.f32 %v9865_v37, %v3613_v43  ;;  %v4084_v41 = vperm.slane %v4078_v27, %v9705_v32  ;;  %v9993_v37 = vperm.slane %v4040_v49, %v9753_v21  ;;  %v3619_v25 = vadd.f32 %v3618_v15, %v3589_v36 }
 0x87e   : > { %v4137_v55 = vrot.slane %v4100_v40, 4  ;;  %v12714_v12 = vrot.slane %v9785_v4, 4  ;;  %v3768_v49 = vsel %vm3766_vm11, %v9681_v44, %v9871_v20  ;;  %v10014_v36 = vsel %vm3965_vm6, %v9978_v6, %v12716_v57  ;;  %v3621_v44 = vpop.f32.mrf.mxu0 }
 0x87f   : > { %v3671_v59 = vadd.f32 %v9891_v51, %v3642_v42  ;;  %v4125_v15 = vrot.slane %v4096_v58, 4  ;;  %v4140_v19 = vsel %vm3965_vm6, %v4100_v40, %v4139_v9  ;;  %v10019_v27 = vperm.slane %v4038_v3, %v9753_v21  ;;  %v3592_v42 = vpop.f32.mrf.mxu3 }
 0x880   : > { %v10003_v35 = vsel %vm3965_vm6, %v9968_v1, %v12714_v12  ;;  %v4138_v12 = vsel %vm3965_vm6, %v4137_v55, %v4088_v62  ;;  %v4127_v20 = vrot.slane %v4084_v41, 4  ;;  %v12717_v51 = vrot.slane %v9804_v39, 4  ;;  %v3676_v55 = vpop.f32.mrf.mxu2 }
 0x881   : > { %12715 = vst [vmem:[#allocation15_spill] sm:$0xff] %v10003_v35  ;;  %v4269_v57 = vrot.slane %v3768_v49, 4  ;;  %v4561_v62 = vrot.slane %v9884_v34, 4  ;;  %v3648_v40 = vadd.f32 %v3647_v7, %v3619_v25  ;;  %v10036_v9 = vperm.slane %v4138_v12, %v9753_v21 }
 0x882   : > { %3905 = vrot.lane.b32.xlu1 %v9889_v60, %s7191_s13  ;;  %3893 = vrot.lane.b32.xlu0 %v9889_v60, %s7192_s14  ;;  %v10026_v53 = vsel %vm3965_vm6, %v9993_v37, %v12717_v51  ;;  %v10039_v3 = vperm.slane %v4140_v19, %v9753_v21  ;;  %v3674_v51 = vadd.f32 %v3673_v2, %v3645_v18  ;;  %v12719_v2 = vrot.slane %v9782_v26, 4 }
 0x883   : > { %3881 = vrot.lane.b32.xlu2 %v9889_v60, %s7193_s15  ;;  %v4126_v23 = vsel %vm3965_vm6, %v4125_v15, %v4084_v41  ;;  %v4272_v25 = vsel %vm3965_vm6, %v3768_v49, %v12718_v31  ;;  %v4128_v18 = vsel %vm3965_vm6, %v4096_v58, %v4127_v20  ;;  %v12720_v41 = vrot.slane %v9656_v52, 4 }
 0x884   : > { %v9984_v48 = vpop.permute.xlu1 %3813  ;;  %v9986_v29 = vpop.permute.xlu0 %3791  ;;  %v4370_v31 = vsel %vm3965_vm6, %v4369_v10, %v9873_v30  ;;  %v4371_v49 = vrot.slane %v9873_v30, 4  ;;  %v4270_v19 = vsel %vm3965_vm6, %v4269_v57, %v9672_v61  ;;  %v3769_v58 = vsel %vm3766_vm11, %v9665_v22, %v9929_v8 }
 0x885   : > { %v9990_v16 = vpop.permute.xlu2 %3764  ;;  %v4564_v15 = vsel %vm3965_vm6, %v9884_v34, %v12720_v41  ;;  %v3677_v20 = vadd.f32 %v3676_v55, %v3648_v40  ;;  %v4280_v34 = vperm.slane %v4272_v25, %v9705_v32  ;;  %v12721_v41 = vrot.slane %v9670_v17, 4  ;;  %v3650_v57 = vpop.f32.mrf.mxu1 }
 0x886   : > { %v3622_v10 = vadd.f32 %v3621_v44, %v3592_v42  ;;  %v10083_v61 = vperm.slane %v4564_v15, %v9705_v32  ;;  %v10089_v22 = vperm.slane %v4128_v18, %v9753_v21  ;;  %v4065_v8 = vrot.slane %v9993_v37, 4 }
 0x887   : > { %v4284_v30 = vsel %vm3965_vm6, %v9927_v11, %v12721_v41  ;;  %v4281_v44 = vrot.slane %v9927_v11, 4  ;;  %v12722_v42 = vrot.slane %v9688_v14, 4  ;;  %v10103_v25 = vperm.slane %v4126_v23, %v9753_v21 }
 0x888   : > { %v4372_v37 = vsel %vm3965_vm6, %v9825_v33, %v4371_v49  ;;  %v4331_v15 = vrot.slane %v4280_v34, 4  ;;  %v4549_v11 = vrot.slane %v3769_v58, 4  ;;  %v3679_v23 = vpop.f32.mrf.mxu2  ;;  %v4609_v41 = vrot.slane %v10083_v61, 4 }
 0x889   : > { %v4552_v55 = vsel %vm3965_vm6, %v3769_v58, %v12722_v42 }
 0x88a   : > { %3951 = vrot.lane.b32.xlu1 %v9889_v60, %s7194_s17  ;;  %3929 = vrot.lane.b32.xlu0 %v9889_v60, %s7195_s19  ;;  %v4560_v33 = vperm.slane %v4552_v55, %v9705_v32  ;;  %v12725_v55 = vrot.slane %v9772_v50, 4 }
 0x88b   : > { %3917 = vrot.lane.b32.xlu2 %v9889_v60, %s7196_s20  ;;  %v10057_v60 = vsel %vm3965_vm6, %v10019_v27, %v12719_v2  ;;  %v4562_v2 = vsel %vm3965_vm6, %v4561_v62, %v9656_v52  ;;  %v10086_v52 = vperm.slane %v4370_v31, %v9705_v32  ;;  %v10093_v62 = vperm.slane %v4270_v19, %v9705_v32 }
 0x88c   : > { %v10048_v7 = vpop.permute.xlu1 %3843  ;;  %v10050_v12 = vpop.permute.xlu0 %3827  ;;  %v10096_v40 = vperm.slane %v4562_v2, %v9705_v32  ;;  %v4292_v19 = vperm.slane %v4284_v30, %v9705_v32  ;;  %v4357_v31 = vrot.slane %v9984_v48, 4  ;;  %v3651_v2 = vadd.f32 %v3650_v57, %v3622_v10 }
 0x88d   : > { %v10067_v43 = vpop.permute.xlu2 %3805  ;;  %v4405_v42 = vrot.slane %v10086_v52, 4  ;;  %v4319_v58 = vrot.slane %v10093_v62, 4  ;;  %v4282_v10 = vsel %vm3965_vm6, %v4281_v44, %v9670_v17  ;;  %v4360_v18 = vsel %vm3965_vm6, %v9984_v48, %v12725_v55 }
 0x88e   : > { %v4329_v63 = vrot.slane %v4292_v19, 4  ;;  %v4332_v5 = vsel %vm3965_vm6, %v4292_v19, %v4331_v15  ;;  %v4358_v17 = vsel %vm3965_vm6, %v4357_v31, %v9772_v50  ;;  %v3680_v44 = vadd.f32 %v3679_v23, %v3651_v2 }
 0x88f   : > { %v4610_v35 = vsel %vm3965_vm6, %v4609_v41, %v4560_v33  ;;  %v3770_v48 = vsel %vm3766_vm11, %v9721_v0, %v9990_v16  ;;  %v4368_v19 = vperm.slane %v4360_v18, %v9705_v32  ;;  %v10158_v31 = vperm.slane %v4332_v5, %v9753_v21  ;;  %vm12892_vm11 = vmmov %vm12891_vm14 }
 0x890   : > { %v4364_v16 = vperm.slane %v4358_v17, %v9705_v32  ;;  %v4611_v18 = vrot.slane %v4560_v33, 4  ;;  %v10166_v2 = vperm.slane %v4610_v35, %v9753_v21  ;;  %v4639_v5 = vrot.slane %v9986_v29, 4 }
 0x891   : > { %v4419_v33 = vrot.slane %v4368_v19, 4  ;;  %v12729_v15 = vrot.slane %v9815_v47, 4 }
 0x892   : > { %3945 = vrot.lane.b32.xlu1 %v3674_v51, %s7194_s17  ;;  %3949 = vrot.lane.b32.xlu0 %v3677_v20, %s7194_s17  ;;  %v4597_v20 = vrot.slane %v10096_v40, 4  ;;  %v10135_v51 = vsel %vm3965_vm6, %v4065_v8, %v9804_v39  ;;  %v4061_v39 = vrot.slane %v10019_v27, 4  ;;  %v4637_v27 = vrot.slane %v9938_v28, 4 }
 0x893   : > { %3941 = vrot.lane.b32.xlu2 %v3671_v59, %s7194_s17  ;;  %v4380_v59 = vperm.slane %v4372_v37, %v9705_v32  ;;  %v4550_v37 = vsel %vm3965_vm6, %v4549_v11, %v9688_v14  ;;  %v12726_v14 = vrot.slane %v9968_v1, 4  ;;  %v4330_v11 = vsel %vm3965_vm6, %v4329_v63, %v4280_v34 }
 0x894   : > { %v10116_v49 = vpop.permute.xlu1 %3803  ;;  %v10118_v30 = vpop.permute.xlu0 %3847  ;;  %v10161_v0 = vperm.slane %v4550_v37, %v9705_v32  ;;  %v4829_v1 = vrot.slane %v3770_v48, 4  ;;  %v4638_v55 = vsel %vm3965_vm6, %v4637_v27, %v9986_v29  ;;  %v4407_v17 = vrot.slane %v4364_v16, 4 }
 0x895   : > { %12723 = vst [vmem:[#allocation33_spill] sm:$0xff] %v10118_v30  ;;  %v10126_v57 = vpop.permute.xlu2 %3851  ;;  %v4417_v8 = vrot.slane %v4380_v59, 4  ;;  %v10154_v50 = vsel %vm3965_vm6, %v12726_v14, %v9785_v4  ;;  %v10202_v41 = vperm.slane %v4638_v55, %v9705_v32 }
 0x896   : > { %12724 = vst [vmem:[#allocation29_spill] sm:$0xff] %v10126_v57  ;;  %v4288_v57 = vperm.slane %v4282_v10, %v9705_v32  ;;  %v10177_v10 = vperm.slane %v4330_v11, %v9753_v21  ;;  %v4599_v11 = vrot.slane %v10161_v0, 4  ;;  %v4830_v29 = vsel %vm3965_vm6, %v4829_v1, %v9683_v54 }
 0x897   : > { %v4418_v35 = vsel %vm3965_vm6, %v4417_v8, %v4368_v19  ;;  %v4612_v8 = vsel %vm3965_vm6, %v10083_v61, %v4611_v18  ;;  %v4420_v61 = vsel %vm3965_vm6, %v4380_v59, %v4419_v33  ;;  %v4408_v1 = vsel %vm3965_vm6, %v10086_v52, %v4407_v17 }
 0x898   : > { %v4317_v4 = vrot.slane %v4288_v57, 4  ;;  %v4320_v63 = vsel %vm3965_vm6, %v4288_v57, %v4319_v58  ;;  %v4353_v58 = vrot.slane %v10158_v31, 4  ;;  %v4598_v57 = vsel %vm3965_vm6, %v4597_v20, %v10161_v0 }
 0x899   : > { %v10197_v27 = vperm.slane %v4418_v35, %v9753_v21  ;;  %v4640_v20 = vsel %vm3965_vm6, %v9938_v28, %v4639_v5  ;;  %v4406_v0 = vsel %vm3965_vm6, %v4405_v42, %v4364_v16  ;;  %v10215_v28 = vperm.slane %v4830_v29, %v9705_v32 }
 0x89a   : > { %v10219_v5 = vsel %vm3965_vm6, %v4061_v39, %v9782_v26  ;;  %v10223_v42 = vperm.slane %v4612_v8, %v9753_v21  ;;  %v10226_v59 = vperm.slane %v4640_v20, %v9705_v32  ;;  %v10231_v52 = vperm.slane %v4406_v0, %v9753_v21 }
 0x89b   : > { %3953 = vrot.lane.b32.xlu2 %v3680_v44, %s7194_s17  ;;  %v12727_v44 = vrot.slane %v9683_v54, 4  ;;  %v4069_v54 = vrot.slane %v9978_v6, 4  ;;  %v4649_v6 = vrot.slane %v10050_v12, 4  ;;  %v4687_v39 = vrot.slane %v10202_v41, 4 }
 0x89c   : > { %v10171_v34 = vpop.permute.xlu1 %3793  ;;  %v10173_v23 = vpop.permute.xlu0 %3781  ;;  %v4651_v29 = vrot.slane %v10116_v49, 4  ;;  %v4600_v20 = vsel %vm3965_vm6, %v10096_v40, %v4599_v11  ;;  %v4349_v8 = vrot.slane %v10177_v10, 4 }
 0x89d   : > { %v10182_v37 = vpop.permute.xlu2 %3875  ;;  %v4832_v14 = vsel %vm3965_vm6, %v3770_v48, %v12727_v44  ;;  %v4318_v48 = vsel %vm3965_vm6, %v4317_v4, %v10093_v62  ;;  %v4328_v62 = vperm.slane %v4320_v63, %v9753_v21  ;;  %v10234_v4 = vperm.slane %v4420_v61, %v9753_v21 }
 0x89e   : > { %v10209_v18 = vperm.slane %v4832_v14, %v9705_v32  ;;  %v4324_v16 = vperm.slane %v4318_v48, %v9753_v21  ;;  %v4650_v55 = vsel %vm3965_vm6, %v4649_v6, %v10116_v49  ;;  %v10249_v44 = vsel %vm3965_vm6, %v4069_v54, %v9777_v45  ;;  %v12733_v49 = vld [vmem:[#allocation28_spill] sm:$0xff] }
 0x89f   : > { %v10252_v14 = vperm.slane %v4408_v1, %v9753_v21  ;;  %v12728_v48 = vrot.slane %v9831_v38, 4  ;;  %v4699_v61 = vrot.slane %v10226_v59, 4  ;;  %v4656_v1 = vperm.slane %v4650_v55, %v9705_v32 }
 0x8a0   : > { %v4341_v54 = vrot.slane %v4324_v16, 4  ;;  %v10275_v6 = vsel %vm3965_vm6, %v4324_v16, %v12729_v15  ;;  %v12731_v45 = vrot.slane %v9849_v13, 4  ;;  %v4652_v26 = vsel %vm3965_vm6, %v10050_v12, %v4651_v29 }
 0x8a1   : > { %v10260_v0 = vsel %vm3965_vm6, %v4328_v62, %v12728_v48  ;;  %12730 = vst [vmem:[#allocation25_spill] sm:$0xff] %v10275_v6  ;;  %v12734_v40 = vrot.slane %v12733_v49, 4  ;;  %v4345_v48 = vrot.slane %v4328_v62, 4  ;;  %v10298_v16 = vsel %vm3965_vm6, %v4353_v58, %v12733_v49  ;;  %v12738_v49 = vld [vmem:[#allocation12_spill] sm:$0xff] }
 0x8a2   : > { %v10281_v55 = vsel %vm3965_vm6, %v10177_v10, %v12731_v45  ;;  %v10294_v15 = vsel %vm3965_vm6, %v4341_v54, %v9815_v47  ;;  %12737 = vst [vmem:[#allocation16_spill] sm:$0xff] %v10298_v16  ;;  %v10301_v45 = vperm.slane %v4600_v20, %v9753_v21  ;;  %v4604_v12 = vperm.slane %v4598_v57, %v9753_v21 }
 0x8a3   : > { %12732 = vst [vmem:[#allocation14_spill] sm:$0xff] %v10281_v55  ;;  %v10289_v11 = vsel %vm3965_vm6, %v10158_v31, %v12734_v40  ;;  %v4685_v29 = vrot.slane %v4656_v1, 4  ;;  %v4660_v47 = vperm.slane %v4652_v26, %v9705_v32  ;;  %v4688_v54 = vsel %vm3965_vm6, %v4656_v1, %v4687_v39  ;;  %v12740_v1 = vld [vmem:[#allocation11_spill] sm:$0xff] }
 0x8a4   : > { %v10238_v63 = vpop.permute.xlu1 %3829  ;;  %v10240_v35 = vpop.permute.xlu0 %3817  ;;  %12735 = vst [vmem:[#allocation26_spill] sm:$0xff] %v10289_v11  ;;  %v10317_v62 = vsel %vm3965_vm6, %v4345_v48, %v9831_v38  ;;  %v10322_v26 = vsel %vm3965_vm6, %v4349_v8, %v9849_v13  ;;  %v4101_v39 = vrot.slane %v10182_v37, 4  ;;  %v12741_v40 = vrot.slane %v12740_v1, 4 }
 0x8a5   : > { %v10245_v17 = vpop.permute.xlu2 %3911  ;;  %12736 = vst [vmem:[#allocation27_spill] sm:$0xff] %v10294_v15  ;;  %v12743_v38 = vrot.slane %v9909_v46, 4  ;;  %v4686_v13 = vsel %vm3965_vm6, %v4685_v29, %v10202_v41  ;;  %v10345_v8 = vperm.slane %v4688_v54, %v9753_v21  ;;  %v4697_v55 = vrot.slane %v4660_v47, 4 }
 0x8a6   : > { %v4621_v54 = vrot.slane %v4604_v12, 4  ;;  %v10360_v15 = vperm.slane %v4686_v13, %v9753_v21  ;;  %v12747_v13 = vrot.slane %v9723_v24, 4 }
 0x8a7   : > { %v10340_v48 = vsel %vm3965_vm6, %v10166_v2, %v12743_v38 }
 0x8a8   : > { %v10387_v38 = vsel %vm3965_vm6, %v4621_v54, %v9923_v56 }
 0x8ac   : > { %v3864_v30 = vpop.permute.xlu1 %3863  ;;  %v3842_v31 = vpop.permute.xlu0 %3841 }
 0x8ad   : > { %v10309_v58 = vpop.permute.xlu2 %3845  ;;  %v3855_v20 = vsel %vm12739_vm8, %v12738_v49, %v3842_v31  ;;  %v10329_v31 = vsel %vm3965_vm6, %v10301_v45, %v12741_v40  ;;  %v12742_v49 = vrot.slane %v9923_v56, 4  ;;  %v12744_v40 = vld [vmem:[#allocation24_spill] sm:$0xff]  ;;  %v4115_v6 = vrot.slane %v3864_v30, 4  ;;  %vm12894_vm8 = vmmov %vm12892_vm11 }
 0x8ae   : > { %v4103_v10 = vrot.slane %v3855_v20, 4  ;;  %v12745_v33 = vrot.slane %v12744_v40, 4  ;;  %v4102_v16 = vsel %vm3965_vm6, %v4101_v39, %v3855_v20  ;;  %v4625_v39 = vrot.slane %v10301_v45, 4 }
 0x8af   : > { %v10334_v57 = vsel %vm3965_vm6, %v4604_v12, %v12742_v49  ;;  %v4700_v49 = vsel %vm3965_vm6, %v4660_v47, %v4699_v61  ;;  %v4108_v41 = vperm.slane %v4102_v16, %v9705_v32  ;;  %v4841_v16 = vrot.slane %v10173_v23, 4 }
 0x8b0   : > { %v10351_v19 = vsel %vm3965_vm6, %v10223_v42, %v12745_v33  ;;  %v10365_v20 = vperm.slane %v4700_v49, %v9753_v21  ;;  %v4104_v47 = vsel %vm3965_vm6, %v10182_v37, %v4103_v10  ;;  %v4844_v33 = vsel %vm3965_vm6, %v10173_v23, %v12747_v13 }
 0x8b1   : > { %12746 = vst [vmem:[#allocation13_spill] sm:$0xff] %v10351_v19  ;;  %v4698_v37 = vsel %vm3965_vm6, %v4697_v55, %v10226_v59  ;;  %v4112_v13 = vperm.slane %v4104_v47, %v9705_v32  ;;  %v4633_v59 = vrot.slane %v10223_v42, 4  ;;  %v4852_v23 = vperm.slane %v4844_v33, %v9705_v32 }
 0x8b2   : > { %v4151_v55 = vrot.slane %v4108_v41, 4  ;;  %v3856_v54 = vsel %vm12755_vm12, %v10048_v7, %v10309_v58  ;;  %v12759_v7 = vrot.slane %v10103_v25, 4  ;;  %vm12896_vm12 = vmmov %vm12823_vm1 }
 0x8b3   : > { %v4163_v47 = vrot.slane %v4112_v13, 4 }
 0x8b4   : > { %v10371_v29 = vpop.permute.xlu1 %3899  ;;  %v3888_v12 = vpop.permute.xlu0 %3887 }
 0x8b5   : > { %v10377_v11 = vpop.permute.xlu2 %3865  ;;  %v4113_v61 = vrot.slane %v3888_v12, 4  ;;  %v4116_v49 = vsel %vm3965_vm6, %v3888_v12, %v4115_v6  ;;  %v12748_v6 = vrot.slane %v10166_v2, 4 }
 0x8b6   : > { %v4124_v10 = vperm.slane %v4116_v49, %v9705_v32 }
 0x8b7   : > { %v4114_v19 = vsel %vm3965_vm6, %v4113_v61, %v3864_v30  ;;  %v10395_v45 = vsel %vm3965_vm6, %v12748_v6, %v9909_v46  ;;  %v10403_v30 = vperm.slane %v4698_v37, %v9753_v21  ;;  %v4842_v46 = vsel %vm3965_vm6, %v4841_v16, %v9723_v24 }
 0x8b8   : > { %12749 = vst [vmem:[#allocation8_spill] sm:$0xff] %v10395_v45  ;;  %v4120_v12 = vperm.slane %v4114_v19, %v9705_v32  ;;  %v4161_v49 = vrot.slane %v4124_v10, 4  ;;  %v12750_v37 = vrot.slane %v10209_v18, 4 }
 0x8ba   : > { %v4149_v61 = vrot.slane %v4120_v12, 4  ;;  %v4152_v42 = vsel %vm3965_vm6, %v4120_v12, %v4151_v55  ;;  %v4162_v33 = vsel %vm3965_vm6, %v4161_v49, %v4112_v13  ;;  %v4892_v2 = vsel %vm3965_vm6, %v4852_v23, %v12750_v37 }
 0x8bb   : > { %v10411_v19 = vperm.slane %v4162_v33, %v9753_v21  ;;  %v4160_v6 = vperm.slane %v4152_v42, %v9753_v21  ;;  %v10425_v13 = vsel %vm3965_vm6, %v4625_v39, %v12740_v1  ;;  %v10429_v12 = vperm.slane %v4842_v46, %v9705_v32 }
 0x8bc   : > { %v10418_v56 = vpop.permute.xlu1 %3939  ;;  %v10420_v24 = vpop.permute.xlu0 %3923  ;;  %v4150_v16 = vsel %vm3965_vm6, %v4149_v61, %v4108_v41  ;;  %v4164_v49 = vsel %vm3965_vm6, %v4124_v10, %v4163_v47  ;;  %v12751_v33 = vrot.slane %v10036_v9, 4  ;;  %v12753_v41 = vrot.slane %v10089_v22, 4 }
 0x8bd   : > { %v10432_v42 = vpop.permute.xlu2 %3901  ;;  %v4889_v39 = vrot.slane %v4852_v23, 4  ;;  %v10449_v47 = vperm.slane %v4892_v2, %v9753_v21  ;;  %v4156_v55 = vperm.slane %v4150_v16, %v9753_v21  ;;  %v12756_v23 = vrot.slane %v10014_v36, 2 }
 0x8be   : > { %v10438_v37 = vsel %vm3965_vm6, %v10411_v19, %v12751_v33  ;;  %v10443_v1 = vsel %vm3965_vm6, %v4160_v6, %v12753_v41  ;;  %v4177_v33 = vrot.slane %v4160_v6, 4  ;;  %v4172_v41 = vperm.slane %v4164_v49, %v9753_v21 }
 0x8bf   : > { %12752 = vst [vmem:[#allocation7_spill] sm:$0xff] %v10438_v37  ;;  %v12450_v61 = vrot.slane %v10438_v37, 2  ;;  %v12757_v10 = vrot.slane %v10443_v1, 2  ;;  %v12758_v2 = vrot.slane %v10026_v53, 2  ;;  %v10471_v58 = vsel %vm3965_vm6, %v4156_v55, %v12759_v7 }
 0x8c0   : > { %12754 = vst [vmem:[#allocation5_spill] sm:$0xff] %v10443_v1  ;;  %v10475_v36 = vsel %vm3965_vm6, %v4177_v33, %v10089_v22  ;;  %v4173_v6 = vrot.slane %v4156_v55, 4  ;;  %v4877_v53 = vrot.slane %v10429_v12, 4  ;;  %v4890_v49 = vsel %vm3965_vm6, %v4889_v39, %v10209_v18 }
 0x8c1   : > { %v5209_v46 = vsel %vm5181_vm13, %v12756_v23, %v12450_v61  ;;  %v5199_v45 = vsel %vm5181_vm13, %v12758_v2, %v12757_v10  ;;  %12760 = vst [vmem:[#allocation6_spill] sm:$0xff] %v10471_v58  ;;  %v4383_v10 = vrot.slane %v3856_v54, 4  ;;  %v4395_v23 = vrot.slane %v10377_v11, 4 }
 0x8c2   : > { %5362 = vrot.lane.b32.xlu1 %v5209_v46, %s7170_s16  ;;  %5354 = vrot.lane.b32.xlu0 %v5199_v45, %s7170_s16  ;;  %12761 = vst [vmem:[#allocation20_spill] sm:$0xff] %v10475_v36  ;;  %v12451_v46 = vrot.slane %v10471_v58, 2  ;;  %v10484_v45 = vsel %vm3965_vm6, %v4633_v59, %v12744_v40  ;;  %v10490_v55 = vsel %vm3965_vm6, %v4173_v6, %v10103_v25  ;;  %v4185_v33 = vrot.slane %v4172_v41, 4 }
 0x8c3   : > { %12762 = vst [vmem:[#allocation22_spill] sm:$0xff] %v10490_v55  ;;  %v12763_v18 = vrot.slane %v10057_v60, 2  ;;  %v12764_v59 = vrot.slane %v10039_v3, 4  ;;  %v10513_v40 = vperm.slane %v4890_v49, %v9753_v21 }
 0x8c4   : > { %v3890_v2 = vpop.permute.xlu1 %3889  ;;  %v3878_v7 = vpop.permute.xlu0 %3877 }
 0x8c5   : > { %v5189_v39 = vsel %vm5181_vm13, %v12763_v18, %v12451_v46  ;;  %v10501_v61 = vsel %vm3965_vm6, %v4172_v41, %v12764_v59  ;;  %v4393_v25 = vrot.slane %v3890_v2, 4  ;;  %v4396_v6 = vsel %vm3965_vm6, %v3890_v2, %v4395_v23  ;;  %v10505_v16 = vpop.permute.xlu2 %3891 }
 0x8c6   : > { %12765 = vst [vmem:[#allocation18_spill] sm:$0xff] %v10501_v61  ;;  %5346 = vrot.lane.b32.xlu2 %v5189_v39, %s7170_s16  ;;  %v4381_v22 = vrot.slane %v3878_v7, 4  ;;  %v4384_v60 = vsel %vm3965_vm6, %v3878_v7, %v4383_v10  ;;  %v12766_v18 = vrot.slane %v10215_v28, 4  ;;  %v4929_v41 = vrot.slane %v10238_v63, 4 }
 0x8c7   : > { %v4404_v39 = vperm.slane %v4396_v6, %v9705_v32  ;;  %v4394_v23 = vsel %vm3965_vm6, %v4393_v25, %v10377_v11  ;;  %v12767_v59 = vrot.slane %v10475_v36, 2  ;;  %v12768_v10 = vrot.slane %v10135_v51, 2 }
 0x8c8   : > { %v4880_v46 = vsel %vm3965_vm6, %v10429_v12, %v12766_v18  ;;  %v4382_v2 = vsel %vm3965_vm6, %v4381_v22, %v3856_v54  ;;  %v12454_v12 = vrot.slane %v10501_v61, 2  ;;  %v4400_v49 = vperm.slane %v4394_v23, %v9705_v32 }
 0x8c9   : > { %v5194_v7 = vsel %vm5181_vm13, %v12768_v10, %v12767_v59  ;;  %v4388_v18 = vperm.slane %v4382_v2, %v9705_v32  ;;  %v4392_v58 = vperm.slane %v4384_v60, %v9705_v32  ;;  %v12769_v6 = vrot.slane %v10490_v55, 2 }
 0x8ca   : > { %v12770_v11 = vrot.slane %v10219_v5, 2  ;;  %5350 = vrot.lane.b32.xlu1 %v5194_v7, %s7170_s16  ;;  %v10539_v51 = vsel %vm3965_vm6, %v4185_v33, %v10039_v3  ;;  %v4181_v25 = vrot.slane %v10411_v19, 4  ;;  %v10543_v60 = vperm.slane %v4880_v46, %v9753_v21  ;;  %v12773_v46 = vld [vmem:[#allocation15_spill] sm:$0xff] }
 0x8cb   : > { %v12771_v23 = vrot.slane %v10067_v43, 4  ;;  %v4429_v2 = vrot.slane %v4400_v49, 4  ;;  %v4441_v59 = vrot.slane %v4404_v39, 4  ;;  %v4431_v10 = vrot.slane %v4388_v18, 4 }
 0x8cc   : > { %v5184_v54 = vsel %vm5181_vm13, %v12770_v11, %v12769_v6  ;;  %v4930_v7 = vsel %vm3965_vm6, %v4929_v41, %v10067_v43  ;;  %v4917_v6 = vrot.slane %v10240_v35, 4  ;;  %v12772_v3 = vrot.slane %v10171_v34, 4  ;;  %v10564_v22 = vpop.permute.xlu0 %3913 }
 0x8cd   : > { %5342 = vrot.lane.b32.xlu0 %v5184_v54, %s7170_s16  ;;  %v4932_v5 = vsel %vm3965_vm6, %v10238_v63, %v12771_v23  ;;  %v12774_v33 = vrot.slane %v12773_v46, 2  ;;  %v4430_v63 = vsel %vm3965_vm6, %v4429_v2, %v4388_v18  ;;  %v4443_v54 = vrot.slane %v4392_v58, 4  ;;  %v10562_v23 = vpop.permute.xlu1 %3925  ;;  %v12786_v18 = vld [vmem:[#allocation17_spill] sm:$0xff] }
 0x8ce   : > { %v4920_v19 = vsel %vm3965_vm6, %v10240_v35, %v12772_v3  ;;  %v12455_v43 = vrot.slane %v10539_v51, 2  ;;  %v4432_v41 = vsel %vm3965_vm6, %v4400_v49, %v4431_v10  ;;  %v4940_v37 = vperm.slane %v4932_v5, %v9705_v32  ;;  %v10570_v35 = vpop.permute.xlu2 %3927 }
 0x8cf   : > { %v5219_v11 = vsel %vm5181_vm13, %v12774_v33, %v12454_v12  ;;  %v10574_v3 = vsel %vm3965_vm6, %v4181_v25, %v10036_v9  ;;  %v4878_v2 = vsel %vm3965_vm6, %v4877_v53, %v10215_v28  ;;  %v4928_v46 = vperm.slane %v4920_v19, %v9705_v32  ;;  %v12776_v25 = vld [vmem:[#allocation31_spill] sm:$0xff]  ;;  %v12778_v28 = vld [vmem:[#allocation32_spill] sm:$0xff] }
 0x8d0   : > { %5370 = vrot.lane.b32.xlu2 %v5219_v11, %s7170_s16  ;;  %12775 = vst [vmem:[#allocation10_spill] sm:$0xff] %v10574_v3  ;;  %v4442_v33 = vsel %vm3965_vm6, %v4441_v59, %v4392_v58  ;;  %v10582_v49 = vperm.slane %v4432_v41, %v9753_v21  ;;  %v4436_v5 = vperm.slane %v4430_v63, %v9753_v21  ;;  %v12777_v11 = vrot.slane %v12776_v25, 4 }
 0x8d1   : > { %v4936_v10 = vperm.slane %v4930_v7, %v9705_v32  ;;  %v4918_v9 = vsel %vm3965_vm6, %v4917_v6, %v10171_v34  ;;  %v12779_v53 = vrot.slane %v12778_v28, 4  ;;  %v4444_v59 = vsel %vm3965_vm6, %v4404_v39, %v4443_v54 }
 0x8d2   : > { %v10592_v12 = vsel %vm3965_vm6, %v10543_v60, %v12777_v11  ;;  %v12781_v7 = vrot.slane %v10154_v50, 2  ;;  %v12782_v19 = vrot.slane %v10252_v14, 4  ;;  %v10614_v41 = vperm.slane %v4442_v33, %v9753_v21 }
 0x8d3   : > { %v10598_v58 = vsel %vm3965_vm6, %v10449_v47, %v12779_v53  ;;  %v12784_v54 = vrot.slane %v10231_v52, 4  ;;  %v4453_v11 = vrot.slane %v4436_v5, 4  ;;  %v4977_v53 = vrot.slane %v4940_v37, 4 }
 0x8d4   : > { %12780 = vst [vmem:[#allocation19_spill] sm:$0xff] %v10598_v58  ;;  %v5214_v34 = vsel %vm5181_vm13, %v12781_v7, %v12455_v43  ;;  %v10611_v63 = vsel %vm3965_vm6, %v10582_v49, %v12782_v19  ;;  %v4924_v7 = vperm.slane %v4918_v9, %v9705_v32  ;;  %v4979_v43 = vrot.slane %v4928_v46, 4  ;;  %v10646_v36 = vpop.permute.xlu0 %3943 }
 0x8d5   : > { %12783 = vst [vmem:[#allocation21_spill] sm:$0xff] %v10611_v63  ;;  %5366 = vrot.lane.b32.xlu0 %v5214_v34, %s7170_s16  ;;  %v12459_v39 = vrot.slane %v10611_v63, 2  ;;  %v10621_v50 = vsel %vm3965_vm6, %v4436_v5, %v12784_v54  ;;  %v12787_v19 = vrot.slane %v12786_v18, 4  ;;  %v4452_v6 = vperm.slane %v4444_v59, %v9753_v21  ;;  %v3850_v34 = vpop.permute.xlu1 %3849 }
 0x8d6   : > { %12785 = vst [vmem:[#allocation9_spill] sm:$0xff] %v10621_v50  ;;  %v12788_v54 = vrot.slane %v10260_v0, 2  ;;  %v10638_v1 = vperm.slane %v4878_v2, %v9753_v21  ;;  %v12789_v9 = vrot.slane %v10574_v3, 2  ;;  %v12790_v61 = vrot.slane %v10249_v44, 2  ;;  %v12795_v3 = vld [vmem:[#allocation30_spill] sm:$0xff] }
 0x8d7   : > { %v10628_v33 = vsel %vm3965_vm6, %v10513_v40, %v12787_v19  ;;  %v10651_v0 = vsel %vm3965_vm6, %v4453_v11, %v10231_v52  ;;  %v12792_v44 = vrot.slane %v10197_v27, 4  ;;  %v4967_v59 = vrot.slane %v4924_v7, 4 }
 0x8d8   : > { %v5239_v5 = vsel %vm5181_vm13, %v12788_v54, %v12459_v39  ;;  %v5204_v19 = vsel %vm5181_vm13, %v12790_v61, %v12789_v9  ;;  %v4965_v54 = vrot.slane %v4936_v10, 4  ;;  %v10655_v39 = vpop.permute.xlu2 %3947  ;;  %v4905_v9 = vrot.slane %v10543_v60, 4 }
 0x8d9   : > { %5386 = vrot.lane.b32.xlu1 %v5239_v5, %s7170_s16  ;;  %5358 = vrot.lane.b32.xlu2 %v5204_v19, %s7170_s16  ;;  %12791 = vst [vmem:[#allocation23_spill] sm:$0xff] %v10655_v39  ;;  %v10661_v61 = vsel %vm3965_vm6, %v10614_v41, %v12792_v44  ;;  %v4978_v52 = vsel %vm3965_vm6, %v4977_v53, %v4928_v46  ;;  %v12794_v63 = vrot.slane %v10234_v4, 4  ;;  %v4465_v44 = vrot.slane %v4452_v6, 4  ;;  %v12797_v5 = vld [vmem:[#allocation33_spill] sm:$0xff] }
 0x8da   : > { %12793 = vst [vmem:[#allocation28_spill] sm:$0xff] %v10661_v61  ;;  %v4980_v11 = vsel %vm3965_vm6, %v4940_v37, %v4979_v43  ;;  %v12796_v39 = vrot.slane %v12795_v3, 4  ;;  %v3857_v46 = vsel %vm12798_vm5, %v12797_v5, %v3850_v34  ;;  %v12799_v37 = vrot.slane %v10621_v50, 2  ;;  %v12800_v43 = vld [vmem:[#allocation25_spill] sm:$0xff]  ;;  %vm12897_vm5 = vmmov %vm12894_vm8 }
 0x8db   : > { %v10672_v55 = vsel %vm3965_vm6, %v4452_v6, %v12794_v63  ;;  %v12801_v53 = vrot.slane %v12800_v43, 2  ;;  %v4457_v63 = vrot.slane %v10582_v49, 4  ;;  %v4966_v6 = vsel %vm3965_vm6, %v4965_v54, %v4924_v7 }
 0x8dc   : > { %v10678_v60 = vsel %vm3965_vm6, %v10638_v1, %v12796_v39  ;;  %v10691_v58 = vperm.slane %v4978_v52, %v9753_v21  ;;  %v10694_v39 = vperm.slane %v4980_v11, %v9753_v21  ;;  %v4901_v34 = vrot.slane %v10638_v1, 4  ;;  %v3868_v50 = vpop.permute.xlu0 %3867 }
 0x8dd   : > { %v5229_v2 = vsel %vm5181_vm13, %v12801_v53, %v12799_v37  ;;  %v4968_v5 = vsel %vm3965_vm6, %v4936_v10, %v4967_v59  ;;  %v4673_v37 = vrot.slane %v10505_v16, 4  ;;  %v4461_v7 = vrot.slane %v10614_v41, 4  ;;  %v12803_v53 = vld [vmem:[#allocation27_spill] sm:$0xff]  ;;  %v3880_v43 = vpop.permute.xlu1 %3879 }
 0x8de   : > { %5378 = vrot.lane.b32.xlu0 %v5229_v2, %s7170_s16  ;;  %v4663_v54 = vrot.slane %v3857_v46, 4  ;;  %v12802_v52 = vrot.slane %v10651_v0, 2  ;;  %v12804_v11 = vrot.slane %v12803_v53, 2  ;;  %v10710_v1 = vsel %vm3965_vm6, %v4465_v44, %v10234_v4  ;;  %v12806_v2 = vld [vmem:[#allocation14_spill] sm:$0xff] }
 0x8df   : > { %v10713_v10 = vperm.slane %v4966_v6, %v9753_v21  ;;  %v12805_v59 = vrot.slane %v10661_v61, 2  ;;  %v12807_v49 = vrot.slane %v12806_v2, 2  ;;  %v10727_v4 = vsel %vm3965_vm6, %v4905_v9, %v12776_v25 }
 0x8e0   : > { %v5224_v19 = vsel %vm5181_vm13, %v12804_v11, %v12802_v52  ;;  %v10723_v52 = vsel %vm3965_vm6, %v4457_v63, %v10252_v14  ;;  %v4661_v44 = vrot.slane %v3880_v43, 4  ;;  %v4664_v6 = vsel %vm3965_vm6, %v3880_v43, %v4663_v54  ;;  %v10731_v53 = vpop.permute.xlu2 %3881  ;;  %v12809_v63 = vld [vmem:[#allocation26_spill] sm:$0xff] }
 0x8e1   : > { %v5249_v41 = vsel %vm5181_vm13, %v12807_v49, %v12805_v59  ;;  %5374 = vrot.lane.b32.xlu1 %v5224_v19, %s7170_s16  ;;  %v4674_v49 = vsel %vm3965_vm6, %v4673_v37, %v3868_v50  ;;  %v4675_v19 = vrot.slane %v3868_v50, 4  ;;  %v4672_v11 = vperm.slane %v4664_v6, %v9705_v32 }
 0x8e2   : > { %5394 = vrot.lane.b32.xlu2 %v5249_v41, %s7170_s16  ;;  %v4680_v59 = vperm.slane %v4674_v49, %v9705_v32  ;;  %v12808_v14 = vrot.slane %v10672_v55, 2  ;;  %v12810_v2 = vrot.slane %v12809_v63, 2  ;;  %v12467_v9 = vrot.slane %v10710_v1, 2 }
 0x8e3   : > { %v4662_v41 = vsel %vm3965_vm6, %v4661_v44, %v3857_v46  ;;  %v4676_v43 = vsel %vm3965_vm6, %v10505_v16, %v4675_v19  ;;  %v12466_v37 = vrot.slane %v10723_v52, 2  ;;  %v10748_v50 = vsel %vm3965_vm6, %v4461_v7, %v10197_v27 }
 0x8e4   : > { %v5259_v25 = vsel %vm5181_vm13, %v12810_v2, %v12808_v14  ;;  %v4668_v54 = vperm.slane %v4662_v41, %v9705_v32  ;;  %v4723_v6 = vrot.slane %v4672_v11, 4  ;;  %v4684_v49 = vperm.slane %v4676_v43, %v9705_v32  ;;  %v3904_v61 = vpop.permute.xlu0 %3903 }
 0x8e5   : > { %v4709_v63 = vrot.slane %v4680_v59, 4  ;;  %v10755_v46 = vperm.slane %v4968_v5, %v9753_v21  ;;  %v10760_v44 = vsel %vm3965_vm6, %v4901_v34, %v12795_v3  ;;  %v4191_v27 = vrot.slane %v10371_v29, 4  ;;  %v12811_v5 = vld [vmem:[#allocation16_spill] sm:$0xff] }
 0x8e6   : > { %5402 = vrot.lane.b32.xlu0 %v5259_v25, %s7170_s16  ;;  %v4711_v7 = vrot.slane %v4668_v54, 4  ;;  %v4721_v2 = vrot.slane %v4684_v49, 4  ;;  %v4749_v41 = vrot.slane %v10570_v35, 4  ;;  %v12812_v25 = vrot.slane %v12811_v5, 2 }
 0x8e7   : > { %v4710_v19 = vsel %vm3965_vm6, %v4709_v63, %v4668_v54  ;;  %v12470_v14 = vrot.slane %v10748_v50, 2  ;;  %v4724_v34 = vsel %vm3965_vm6, %v4684_v49, %v4723_v6  ;;  %v12813_v54 = vrot.slane %v10317_v62, 2 }
 0x8e8   : > { %v4716_v43 = vperm.slane %v4710_v19, %v9753_v21  ;;  %v5254_v16 = vsel %vm5181_vm13, %v12812_v25, %v12467_v9  ;;  %v4712_v3 = vsel %vm3965_vm6, %v4680_v59, %v4711_v7  ;;  %v10780_v19 = vpop.permute.xlu1 %3915  ;;  %v4722_v5 = vsel %vm3965_vm6, %v4721_v2, %v4672_v11  ;;  %v10785_v59 = vpop.permute.xlu2 %3917 }
 0x8e9   : > { %v5234_v63 = vsel %vm5181_vm13, %v12813_v54, %v12466_v37  ;;  %5398 = vrot.lane.b32.xlu1 %v5254_v16, %s7170_s16  ;;  %v4720_v25 = vperm.slane %v4712_v3, %v9753_v21  ;;  %v10788_v6 = vsel %vm3965_vm6, %v4749_v41, %v3904_v61  ;;  %v4909_v49 = vrot.slane %v10513_v40, 4 }
 0x8ea   : > { %5382 = vrot.lane.b32.xlu2 %v5234_v63, %s7170_s16  ;;  %v4189_v16 = vrot.slane %v10420_v24, 4  ;;  %v4192_v7 = vsel %vm3965_vm6, %v10420_v24, %v4191_v27  ;;  %v4751_v54 = vrot.slane %v3904_v61, 4  ;;  %v12814_v11 = vrot.slane %v10360_v15, 4 }
 0x8eb   : > { %v12815_v3 = vrot.slane %v10345_v8, 4  ;;  %v4728_v40 = vperm.slane %v4722_v5, %v9753_v21  ;;  %v10808_v37 = vperm.slane %v4724_v34, %v9753_v21  ;;  %v12816_v61 = vrot.slane %v10322_v26, 2 }
 0x8ec   : > { %v10798_v2 = vsel %vm3965_vm6, %v4716_v43, %v12814_v11  ;;  %v10812_v24 = vsel %vm3965_vm6, %v10570_v35, %v4751_v54  ;;  %v4733_v9 = vrot.slane %v4716_v43, 4  ;;  %v12817_v34 = vrot.slane %v10403_v30, 4 }
 0x8ed   : > { %v10803_v41 = vsel %vm3965_vm6, %v4720_v25, %v12815_v3  ;;  %v12468_v63 = vrot.slane %v10798_v2, 2  ;;  %v5244_v27 = vsel %vm5181_vm13, %v12816_v61, %v12470_v14  ;;  %v12818_v35 = vrot.slane %v10449_v47, 4 }
 0x8ee   : > { %v12469_v11 = vrot.slane %v10803_v41, 2  ;;  %5390 = vrot.lane.b32.xlu0 %v5244_v27, %s7170_s16  ;;  %v10825_v5 = vsel %vm3965_vm6, %v4728_v40, %v12817_v34  ;;  %v10835_v26 = vsel %vm3965_vm6, %v4909_v49, %v12786_v18  ;;  %v4190_v43 = vsel %vm3965_vm6, %v4189_v16, %v10371_v29 }
 0x8ef   : > { %v10831_v54 = vsel %vm3965_vm6, %v12818_v35, %v12778_v28  ;;  %v10840_v61 = vperm.slane %v4192_v7, %v9705_v32  ;;  %v12819_v27 = vrot.slane %v10329_v31, 2  ;;  %v4737_v28 = vrot.slane %v4720_v25, 4  ;;  %v3854_v7 = vpop.permute.xlu0 %3853 }
 0x8f0   : > { %v12820_v18 = vrot.slane %v10334_v57, 2  ;;  %v12821_v29 = vrot.slane %v10365_v20, 4  ;;  %v3870_v31 = vpop.permute.xlu1 %3869  ;;  %v12471_v35 = vrot.slane %v10825_v5, 2  ;;  %v10871_v14 = vsel %vm3965_vm6, %v4733_v9, %v10360_v15 }
 0x8f1   : > { %v5279_v34 = vsel %vm5181_vm13, %v12819_v27, %v12469_v11  ;;  %v12822_v11 = vld [vmem:[#allocation29_spill] sm:$0xff]  ;;  %v10874_v47 = vperm.slane %v4190_v43, %v9705_v32  ;;  %v4941_v27 = vrot.slane %v10731_v53, 4  ;;  %v12824_v25 = vrot.slane %v10245_v17, 4 }
 0x8f2   : > { %v5269_v49 = vsel %vm5181_vm13, %v12820_v18, %v12468_v63  ;;  %v10857_v16 = vsel %vm3965_vm6, %v10808_v37, %v12821_v29  ;;  %v4471_v18 = vrot.slane %v10432_v42, 4  ;;  %v4469_v63 = vrot.slane %v10562_v23, 4  ;;  %5418 = vrot.lane.b32.xlu2 %v5279_v34, %s7170_s16  ;;  %v3942_v29 = vpop.permute.xlu2 %3941 }
 0x8f3   : > { %5410 = vrot.lane.b32.xlu1 %v5269_v49, %s7170_s16  ;;  %v3858_v49 = vsel %vm12823_vm1, %v12822_v11, %v3854_v7  ;;  %v3956_v57 = vsel %vm3955_vm0, %v10418_v56, %v3942_v29  ;;  %v4227_v34 = vrot.slane %v10840_v61, 4  ;;  %v10886_v15 = vsel %vm3965_vm6, %v4737_v28, %v10345_v8 }
 0x8f4   : > { %v4204_v11 = vsel %vm3965_vm6, %v3956_v57, %v12824_v25  ;;  %v4741_v9 = vrot.slane %v4728_v40, 4  ;;  %v4942_v43 = vsel %vm3965_vm6, %v4941_v27, %v3858_v49  ;;  %v4943_v7 = vrot.slane %v3858_v49, 4 }
 0x8f5   : > { %v12825_v56 = vrot.slane %v10340_v48, 2  ;;  %v12472_v62 = vrot.slane %v10871_v14, 2  ;;  %v4470_v3 = vsel %vm3965_vm6, %v4469_v63, %v10432_v42  ;;  %v4472_v25 = vsel %vm3965_vm6, %v10562_v23, %v4471_v18 }
 0x8f6   : > { %v4201_v8 = vrot.slane %v3956_v57, 4  ;;  %v4745_v40 = vrot.slane %v10808_v37, 4  ;;  %v4215_v28 = vrot.slane %v10874_v47, 4  ;;  %v4483_v27 = vrot.slane %v10564_v22, 4 }
 0x8f7   : > { %v5289_v29 = vsel %vm5181_vm13, %v12825_v56, %v12471_v35  ;;  %v10904_v48 = vperm.slane %v4204_v11, %v9705_v32  ;;  %v12826_v49 = vrot.slane %v10857_v16, 2  ;;  %v12827_v56 = vld [vmem:[#allocation13_spill] sm:$0xff]  ;;  %v4955_v63 = vrot.slane %v3870_v31, 4 }
 0x8f8   : > { %5426 = vrot.lane.b32.xlu0 %v5289_v29, %s7170_s16  ;;  %v12828_v35 = vrot.slane %v12827_v56, 2  ;;  %v4948_v23 = vperm.slane %v4942_v43, %v9705_v32  ;;  %v12473_v57 = vrot.slane %v10886_v15, 2  ;;  %v10915_v37 = vsel %vm3965_vm6, %v4741_v9, %v10403_v30  ;;  %v3894_v30 = vpop.permute.xlu0 %3893 }
 0x8f9   : > { %v10918_v18 = vperm.slane %v4470_v3, %v9705_v32  ;;  %v10921_v11 = vperm.slane %v4472_v25, %v9705_v32  ;;  %v4944_v29 = vsel %vm3965_vm6, %v10731_v53, %v4943_v7  ;;  %v4202_v3 = vsel %vm3965_vm6, %v4201_v8, %v10245_v17 }
 0x8fa   : > { %v5299_v42 = vsel %vm5181_vm13, %v12828_v35, %v12826_v49  ;;  %v12829_v35 = vrot.slane %v10387_v38, 2  ;;  %v10931_v49 = vpop.permute.xlu1 %3905  ;;  %v4953_v9 = vrot.slane %v3894_v30, 4  ;;  %v4956_v25 = vsel %vm3965_vm6, %v3894_v30, %v4955_v63 }
 0x8fb   : > { %5434 = vrot.lane.b32.xlu1 %v5299_v42, %s7170_s16  ;;  %v10939_v53 = vsel %vm3965_vm6, %v4745_v40, %v10365_v20  ;;  %v10943_v38 = vperm.slane %v10788_v6, %v9705_v32  ;;  %v4228_v7 = vsel %vm3965_vm6, %v10904_v48, %v4227_v34  ;;  %v4964_v56 = vperm.slane %v4956_v25, %v9705_v32 }
 0x8fc   : > { %v5264_v43 = vsel %vm5181_vm13, %v12829_v35, %v12472_v62  ;;  %v12474_v17 = vrot.slane %v10915_v37, 2  ;;  %v4952_v8 = vperm.slane %v4944_v29, %v9705_v32  ;;  %v4991_v42 = vrot.slane %v4948_v23, 4 }
 0x8fd   : > { %5406 = vrot.lane.b32.xlu2 %v5264_v43, %s7170_s16  ;;  %v4954_v63 = vsel %vm3965_vm6, %v4953_v9, %v3870_v31  ;;  %v12830_v20 = vrot.slane %v10425_v13, 2  ;;  %v4208_v6 = vperm.slane %v4202_v3, %v9705_v32  ;;  %v5001_v34 = vrot.slane %v4964_v56, 4 }
 0x8fe   : > { %v4960_v35 = vperm.slane %v4954_v63, %v9705_v32  ;;  %v12475_v43 = vrot.slane %v10939_v53, 2  ;;  %v10964_v31 = vperm.slane %v4228_v7, %v9753_v21  ;;  %v12831_v63 = vld [vmem:[#allocation8_spill] sm:$0xff]  ;;  %v4225_v30 = vrot.slane %v10904_v48, 4 }
 0x8ff   : > { %v5274_v40 = vsel %vm5181_vm13, %v12830_v20, %v12473_v57  ;;  %v5002_v3 = vsel %vm3965_vm6, %v5001_v34, %v4952_v8  ;;  %v12832_v20 = vrot.slane %v12831_v63, 2  ;;  %v3954_v57 = vpop.permute.xlu2 %3953  ;;  %v5003_v29 = vrot.slane %v4952_v8, 4 }
 0x900   : > { %5414 = vrot.lane.b32.xlu0 %v5274_v40, %s7170_s16  ;;  %v4989_v13 = vrot.slane %v4960_v35, 4  ;;  %v4992_v9 = vsel %vm3965_vm6, %v4960_v35, %v4991_v42  ;;  %v10975_v40 = vperm.slane %v5002_v3, %v9753_v21  ;;  %v5043_v25 = vrot.slane %v10785_v59, 4  ;;  %v10986_v8 = vpop.permute.xlu0 %3929 }
 0x901   : > { %v5284_v62 = vsel %vm5181_vm13, %v12832_v20, %v12474_v17  ;;  %v5000_v7 = vperm.slane %v4992_v9, %v9753_v21  ;;  %v4213_v35 = vrot.slane %v4208_v6, 4  ;;  %v12833_v34 = vrot.slane %v10484_v45, 2 }
 0x902   : > { %v3952_v48 = vpop.permute.xlu1 %3951  ;;  %v10990_v3 = vperm.slane %v10812_v24, %v9705_v32  ;;  %v5004_v9 = vsel %vm3965_vm6, %v4964_v56, %v5003_v29  ;;  %v4990_v42 = vsel %vm3965_vm6, %v4989_v13, %v4948_v23  ;;  %v12835_v56 = vrot.slane %v10691_v58, 4 }
 0x903   : > { %5422 = vrot.lane.b32.xlu1 %v5284_v62, %s7170_s16  ;;  %v5294_v63 = vsel %vm5181_vm13, %v12833_v34, %v12475_v43  ;;  %v3959_v20 = vsel %vm3955_vm0, %v3952_v48, %v3954_v57  ;;  %v5215_v62 = vrot.slane %v10964_v31, 2  ;;  %v12834_v34 = vrot.slane %v10755_v46, 4 }
 0x904   : > { %v5041_v17 = vrot.slane %v3959_v20, 4  ;;  %v5044_v45 = vsel %vm3965_vm6, %v3959_v20, %v5043_v25  ;;  %v11008_v29 = vsel %vm3965_vm6, %v10975_v40, %v12835_v56  ;;  %v4226_v57 = vsel %vm3965_vm6, %v4225_v30, %v10840_v61 }
 0x905   : > { %5430 = vrot.lane.b32.xlu2 %v5294_v63, %s7170_s16  ;;  %v11000_v43 = vsel %vm3965_vm6, %v5000_v7, %v12834_v34  ;;  %v4216_v25 = vsel %vm3965_vm6, %v4208_v6, %v4215_v28  ;;  %v5012_v63 = vperm.slane %v5004_v9, %v9753_v21  ;;  %v12478_v13 = vrot.slane %v11008_v29, 2 }
 0x906   : > { %v12476_v24 = vrot.slane %v11000_v43, 2  ;;  %v11018_v23 = vsel %vm3965_vm6, %v5041_v17, %v10785_v59  ;;  %v4214_v48 = vsel %vm3965_vm6, %v4213_v35, %v10874_v47  ;;  %v4787_v20 = vrot.slane %v10990_v3, 4 }
 0x907   : > { %v5031_v34 = vrot.slane %v10931_v49, 4  ;;  %v12836_v61 = vrot.slane %v10592_v12, 2  ;;  %v4996_v6 = vperm.slane %v4990_v42, %v9753_v21  ;;  %v5017_v59 = vrot.slane %v5000_v7, 4 }
 0x908   : > { %v12837_v17 = vrot.slane %v10539_v51, 2  ;;  %v11038_v47 = vperm.slane %v4226_v57, %v9753_v21  ;;  %v11041_v35 = vperm.slane %v4216_v25, %v9753_v21  ;;  %v12838_v12 = vrot.slane %v10628_v33, 2 }
 0x909   : > { %v5319_v28 = vsel %vm5181_vm13, %v12836_v61, %v12476_v24  ;;  %v12839_v9 = vrot.slane %v10713_v10, 4  ;;  %v5013_v51 = vrot.slane %v4996_v6, 4  ;;  %v5025_v56 = vrot.slane %v5012_v63, 4  ;;  %v3950_v61 = vpop.permute.xlu0 %3949 }
 0x90a   : > { %5450 = vrot.lane.b32.xlu0 %v5319_v28, %s7170_s16  ;;  %v11035_v30 = vsel %vm5181_vm13, %v12837_v17, %v5215_v62  ;;  %v5329_v42 = vsel %vm5181_vm13, %v12838_v12, %v12478_v13  ;;  %v11054_v62 = vperm.slane %v4214_v48, %v9753_v21  ;;  %v3946_v25 = vpop.permute.xlu1 %3945  ;;  %v11060_v33 = vsel %vm3965_vm6, %v5017_v59, %v10755_v46 }
 0x90b   : > { %v11051_v7 = vsel %vm3965_vm6, %v4996_v6, %v12839_v9  ;;  %5458 = vrot.lane.b32.xlu1 %v5329_v42, %s7170_s16  ;;  %v4243_v28 = vrot.slane %v10964_v31, 4  ;;  %v3957_v17 = vsel %vm3955_vm0, %v10646_v36, %v3946_v25  ;;  %v12840_v6 = vld [vmem:[#allocation23_spill] sm:$0xff]  ;;  %v11069_v12 = vsel %vm3965_vm6, %v5013_v51, %v10713_v10 }
 0x90c   : > { %v12477_v57 = vrot.slane %v11051_v7, 2  ;;  %v3958_v48 = vsel %vm3955_vm0, %v12840_v6, %v3950_v61  ;;  %v12841_v42 = vrot.slane %v10694_v39, 4  ;;  %v12842_v46 = vrot.slane %v10678_v60, 2  ;;  %vm12898_vm0 = vmmov %vm12897_vm5 }
 0x90d   : > { %v4481_v59 = vrot.slane %v3957_v17, 4  ;;  %v4484_v36 = vsel %vm3965_vm6, %v3957_v17, %v4483_v27  ;;  %v4761_v25 = vrot.slane %v3958_v48, 4  ;;  %v12843_v51 = vrot.slane %v10780_v19, 4 }
 0x90e   : > { %v11074_v9 = vsel %vm3965_vm6, %v5012_v63, %v12841_v42  ;;  %v5309_v31 = vsel %vm5181_vm13, %v12842_v46, %v12477_v57  ;;  %v4492_v10 = vperm.slane %v4484_v36, %v9705_v32  ;;  %v5303_v61 = vrot.slane %v11069_v12, 2 }
 0x90f   : > { %5442 = vrot.lane.b32.xlu2 %v5309_v31, %s7170_s16  ;;  %v4764_v63 = vsel %vm3965_vm6, %v3958_v48, %v12843_v51  ;;  %v5313_v60 = vrot.slane %v11060_v33, 2  ;;  %v4482_v6 = vsel %vm3965_vm6, %v4481_v59, %v10564_v22  ;;  %v4762_v42 = vsel %vm3965_vm6, %v4761_v25, %v10780_v19 }
 0x910   : > { %v4772_v27 = vperm.slane %v4764_v63, %v9705_v32  ;;  %v5205_v17 = vrot.slane %v11038_v47, 2  ;;  %v5029_v46 = vrot.slane %v10986_v8, 4  ;;  %v4505_v31 = vrot.slane %v4492_v10, 4 }
 0x911   : > { %v12844_v36 = vrot.slane %v10921_v11, 4  ;;  %v5338_v51 = vrot.slane %v11074_v9, 2  ;;  %v5032_v24 = vsel %vm3965_vm6, %v10986_v8, %v5031_v34  ;;  %v4488_v22 = vperm.slane %v4482_v6, %v9705_v32 }
 0x912   : > { %v4788_v19 = vsel %vm3965_vm6, %v4772_v27, %v4787_v20  ;;  %v12845_v59 = vrot.slane %v10760_v44, 2  ;;  %v5021_v63 = vrot.slane %v10975_v40, 4  ;;  %v5052_v57 = vperm.slane %v5044_v45, %v9705_v32  ;;  %v12847_v44 = vld [vmem:[#allocation10_spill] sm:$0xff] }
 0x913   : > { %v4508_v48 = vsel %vm3965_vm6, %v4492_v10, %v12844_v36  ;;  %v12846_v8 = vrot.slane %v10727_v4, 2  ;;  %v11121_v20 = vsel %vm3965_vm6, %v5025_v56, %v10694_v39  ;;  %v12848_v10 = vrot.slane %v12847_v44, 2 }
 0x914   : > { %v5304_v25 = vsel %vm5181_vm13, %v12845_v59, %v5303_v61  ;;  %v5185_v45 = vrot.slane %v11054_v62, 2  ;;  %v5195_v6 = vrot.slane %v11041_v35, 2  ;;  %v4244_v36 = vsel %vm3965_vm6, 0.0, %v4243_v28 }
 0x915   : > { %5438 = vrot.lane.b32.xlu0 %v5304_v25, %s7170_s16  ;;  %v5314_v34 = vsel %vm5181_vm13, %v12846_v8, %v5313_v60  ;;  %v11127_v40 = vsel %vm5181_vm13, %v12848_v10, %v5205_v17  ;;  %v5030_v4 = vsel %vm3965_vm6, %v5029_v46, %v10931_v49  ;;  %v5040_v59 = vperm.slane %v5032_v24, %v9705_v32  ;;  %v12849_v17 = vld [vmem:[#allocation19_spill] sm:$0xff] }
 0x916   : > { %5446 = vrot.lane.b32.xlu1 %v5314_v34, %s7170_s16  ;;  %v4506_v39 = vsel %vm3965_vm6, %v4505_v31, %v10921_v11  ;;  %v11138_v56 = vperm.slane %v4508_v48, %v9753_v21  ;;  %v4493_v25 = vrot.slane %v4488_v22, 4  ;;  %v12850_v8 = vrot.slane %v12849_v17, 2 }
 0x917   : > { %v5333_v28 = vrot.slane %v11121_v20, 2  ;;  %v11147_v44 = vperm.slane %v4506_v39, %v9753_v21  ;;  %v5065_v49 = vrot.slane %v5052_v57, 4  ;;  %v4768_v24 = vperm.slane %v4762_v42, %v9705_v32 }
 0x918   : > { %v5339_v34 = vsel %vm5181_vm13, %v12850_v8, %v5338_v51  ;;  %v11153_v11 = vsel %vm3965_vm6, %v5021_v63, %v10691_v58  ;;  %v5255_v46 = vrot.slane %v11138_v56, 2  ;;  %v11157_v31 = vperm.slane %v5030_v4, %v9705_v32 }
 0x919   : > { %5466 = vrot.lane.b32.xlu2 %v5339_v34, %s7170_s16  ;;  %v4785_v48 = vrot.slane %v4772_v27, 4  ;;  %v5245_v10 = vrot.slane %v11147_v44, 2  ;;  %v12851_v39 = vrot.slane %v10918_v18, 4  ;;  %v11165_v42 = vperm.slane %v11018_v23, %v9705_v32 }
 0x91a   : > { %v5067_v8 = vrot.slane %v5040_v59, 4  ;;  %v12852_v58 = vrot.slane %v10710_v1, 2  ;;  %v12853_v27 = vrot.slane %v10831_v54, 2  ;;  %v12854_v23 = vrot.slane %v10748_v50, 2 }
 0x91b   : > { %v4496_v17 = vsel %vm3965_vm6, %v4488_v22, %v12851_v39  ;;  %v5323_v22 = vrot.slane %v11153_v11, 2  ;;  %v11188_v1 = vsel %vm3965_vm6, %v4493_v25, %v10918_v18  ;;  %v4239_v50 = vrot.slane %v11041_v35, 4  ;;  %v12856_v25 = vld [vmem:[#allocation22_spill] sm:$0xff]  ;;  %v12871_v11 = vld [vmem:[#allocation5_spill] sm:$0xff] }
 0x91c   : > { %v11170_v63 = vsel %vm5181_vm13, %v12852_v58, %v5255_v46  ;;  %v11173_v4 = vperm.slane %v4496_v17, %v9753_v21  ;;  %v5334_v34 = vsel %vm5181_vm13, %v12853_v27, %v5333_v28  ;;  %v11184_v39 = vsel %vm5181_vm13, %v12854_v23, %v5245_v10 }
 0x91d   : > { %v5066_v46 = vsel %vm3965_vm6, %v5065_v49, %v5040_v59  ;;  %v4773_v17 = vrot.slane %v4768_v24, 4  ;;  %5462 = vrot.lane.b32.xlu0 %v5334_v34, %s7170_s16  ;;  %v5220_v58 = vrot.slane %v4244_v36, 2  ;;  %v4796_v10 = vperm.slane %v4788_v19, %v9753_v21  ;;  %v12858_v34 = vld [vmem:[#allocation20_spill] sm:$0xff] }
 0x91e   : > { %v5235_v54 = vrot.slane %v11173_v4, 2  ;;  %5368 = vrot.lane.b32.xlu1 %v11035_v30, %s7170_s16  ;;  %v4786_v27 = vsel %vm3965_vm6, %v4785_v48, %v10990_v3  ;;  %v12855_v18 = vrot.slane %v10943_v38, 4  ;;  %v12857_v49 = vrot.slane %v12856_v25, 2  ;;  %v12862_v25 = vld [vmem:[#allocation18_spill] sm:$0xff] }
 0x91f   : > { %v12859_v23 = vrot.slane %v12858_v34, 2  ;;  %v4241_v30 = vrot.slane %v11038_v47, 4  ;;  %v12860_v35 = vrot.slane %v10723_v52, 2  ;;  %v5055_v3 = vrot.slane %v11157_v31, 4 }
 0x920   : > { %v4776_v59 = vsel %vm3965_vm6, %v4768_v24, %v12855_v18  ;;  %v5186_v36 = vsel %vm5181_vm13, %v12857_v49, %v5185_v45  ;;  %v5068_v48 = vsel %vm3965_vm6, %v5052_v57, %v5067_v8  ;;  %v12861_v24 = vrot.slane %v10835_v26, 2 }
 0x921   : > { %v5196_v13 = vsel %vm5181_vm13, %v12859_v23, %v5195_v6  ;;  %v11212_v19 = vsel %vm5181_vm13, %v12860_v35, %v5235_v54  ;;  %v5295_v18 = vrot.slane %v4796_v10, 2  ;;  %v5053_v6 = vrot.slane %v11165_v42, 4 }
 0x922   : > { %v5324_v45 = vsel %vm5181_vm13, %v12861_v24, %v5323_v22  ;;  %v5072_v47 = vperm.slane %v5066_v46, %v9753_v21  ;;  %v4792_v52 = vperm.slane %v4786_v27, %v9753_v21  ;;  %v4784_v54 = vperm.slane %v4776_v59, %v9753_v21 }
 0x923   : > { %5454 = vrot.lane.b32.xlu2 %v5324_v45, %s7170_s16  ;;  %v12863_v49 = vrot.slane %v12862_v25, 2  ;;  %v4240_v8 = vsel %vm3965_vm6, 0.0, %v4239_v50  ;;  %v12864_v26 = vrot.slane %v10939_v53, 2  ;;  %v4774_v46 = vsel %vm3965_vm6, %v4773_v17, %v10943_v38 }
 0x924   : > { %v4242_v23 = vsel %vm3965_vm6, 0.0, %v4241_v30  ;;  %v4237_v27 = vrot.slane %v11054_v62, 4  ;;  %v5285_v35 = vrot.slane %v4792_v52, 2  ;;  %v5275_v59 = vrot.slane %v4784_v54, 2 }
 0x925   : > { %v5221_v57 = vsel %vm5181_vm13, %v12863_v49, %v5220_v58  ;;  %v11233_v34 = vsel %vm5181_vm13, %v12864_v26, %v5295_v18  ;;  %v4780_v24 = vperm.slane %v4774_v46, %v9753_v21  ;;  %v4803_v45 = vrot.slane %v4796_v10, 4  ;;  %5360 = vrot.lane.b32.xlu0 %v11127_v40, %s7170_s16 }
 0x926   : > { %v4801_v58 = vrot.slane %v4792_v52, 4  ;;  %v4799_v25 = vrot.slane %v4784_v54, 4  ;;  %v5200_v53 = vrot.slane %v4240_v8, 2  ;;  %v12865_v50 = vrot.slane %v10915_v37, 2  ;;  %5344 = vrot.lane.b32.xlu1 %v5186_v36, %s7170_s16 }
 0x927   : > { %v12866_v38 = vrot.slane %v10886_v15, 2  ;;  %v5076_v17 = vperm.slane %v5068_v48, %v9753_v21  ;;  %v5265_v10 = vrot.slane %v4780_v24, 2  ;;  %v4804_v30 = vsel %vm3965_vm6, 0.0, %v4803_v45 }
 0x928   : > { %v11245_v18 = vsel %vm5181_vm13, %v12865_v50, %v5285_v35  ;;  %v4802_v40 = vsel %vm3965_vm6, 0.0, %v4801_v58  ;;  %v4800_v52 = vsel %vm3965_vm6, 0.0, %v4799_v25  ;;  %v5300_v37 = vrot.slane %v4804_v30, 2  ;;  %v11265_v35 = vpop.permute.xlu2 %5346 }
 0x929   : > { %v11250_v62 = vsel %vm5181_vm13, %v12866_v38, %v5275_v59  ;;  %v5290_v54 = vrot.slane %v4802_v40, 2  ;;  %v5280_v49 = vrot.slane %v4800_v52, 2  ;;  %v5335_v8 = vrot.slane %v5076_v17, 2 }
 0x92a   : > { %v12867_v15 = vrot.slane %v10871_v14, 2  ;;  %v4797_v46 = vrot.slane %v4780_v24, 4  ;;  %v5325_v48 = vrot.slane %v5072_v47, 2  ;;  %v5054_v36 = vsel %vm3965_vm6, %v5053_v6, %v11157_v31 }
 0x92b   : > { %5352 = vrot.lane.b32.xlu2 %v5196_v13, %s7170_s16  ;;  %v12868_v59 = vrot.slane %v10857_v16, 2  ;;  %v12869_v58 = vrot.slane %v10825_v5, 2  ;;  %v12870_v24 = vrot.slane %v10803_v41, 2  ;;  %v11285_v13 = vsel %vm5181_vm13, %v5333_v28, %v5335_v8 }
 0x92c   : > { %v11260_v26 = vsel %vm5181_vm13, %v12867_v15, %v5265_v10  ;;  %v5210_v31 = vrot.slane %v4242_v23, 2  ;;  %v4798_v16 = vsel %vm3965_vm6, 0.0, %v4797_v46  ;;  %v11291_v5 = vsel %vm5181_vm13, %v5323_v22, %v5325_v48 }
 0x92d   : > { %v11270_v45 = vsel %vm5181_vm13, %v12868_v59, %v5300_v37  ;;  %v11275_v14 = vsel %vm5181_vm13, %v12869_v58, %v5290_v54  ;;  %v11280_v25 = vsel %vm5181_vm13, %v12870_v24, %v5280_v49  ;;  %v5060_v6 = vperm.slane %v5054_v36, %v9753_v21  ;;  %5372 = vrot.lane.b32.xlu0 %v5221_v57, %s7170_s16 }
 0x92e   : > { %v5270_v50 = vrot.slane %v4798_v16, 2  ;;  %v5056_v41 = vsel %vm3965_vm6, %v11165_v42, %v5055_v3  ;;  %v5083_v38 = vrot.slane %v5076_v17, 4  ;;  %v5081_v10 = vrot.slane %v5072_v47, 4  ;;  %v12879_v16 = vld [vmem:[#allocation6_spill] sm:$0xff] }
 0x92f   : > { %v4238_v20 = vsel %vm3965_vm6, 0.0, %v4237_v27  ;;  %v5305_v28 = vrot.slane %v5060_v6, 2  ;;  %v5064_v23 = vperm.slane %v5056_v41, %v9753_v21  ;;  %v5077_v30 = vrot.slane %v5060_v6, 4 }
 0x930   : > { %v12872_v40 = vrot.slane %v12871_v11, 2  ;;  %v12873_v52 = vrot.slane %v10798_v2, 2  ;;  %v5084_v42 = vsel %vm3965_vm6, 0.0, %v5083_v38  ;;  %v5082_v3 = vsel %vm3965_vm6, 0.0, %v5081_v10  ;;  %v11331_v36 = vpop.permute.xlu2 %5370 }
 0x931   : > { %v11313_v47 = vsel %vm5181_vm13, %v5303_v61, %v5305_v28  ;;  %v5315_v57 = vrot.slane %v5064_v23, 2  ;;  %v5340_v27 = vrot.slane %v5084_v42, 2  ;;  %v5079_v17 = vrot.slane %v5064_v23, 4 }
 0x932   : > { %v5201_v22 = vsel %vm5181_vm13, %v12872_v40, %v5200_v53  ;;  %v11305_v37 = vsel %vm5181_vm13, %v12873_v52, %v5270_v50  ;;  %v12874_v53 = vld [vmem:[#allocation7_spill] sm:$0xff]  ;;  %v5190_v49 = vrot.slane %v4238_v20, 2  ;;  %v5330_v8 = vrot.slane %v5082_v3, 2  ;;  %v12883_v52 = vld [vmem:[#allocation28_spill] sm:$0xff] }
 0x933   : > { %5356 = vrot.lane.b32.xlu1 %v5201_v22, %s7170_s16  ;;  %v12875_v54 = vrot.slane %v12874_v53, 2  ;;  %v5078_v15 = vsel %vm3965_vm6, 0.0, %v5077_v30  ;;  %v11322_v46 = vsel %vm5181_vm13, %v5313_v60, %v5315_v57  ;;  %v11327_v12 = vsel %vm5181_vm13, %v5338_v51, %v5340_v27  ;;  %v12885_v57 = vld [vmem:[#allocation9_spill] sm:$0xff] }
 0x934   : > { %v5080_v61 = vsel %vm3965_vm6, 0.0, %v5079_v17  ;;  %v5310_v48 = vrot.slane %v5078_v15, 2  ;;  %v12876_v58 = vrot.slane %v11008_v29, 2  ;;  %v4523_v60 = vrot.slane %v11138_v56, 4  ;;  %v11368_v28 = vpop.permute.xlu0 %5354  ;;  %v11372_v23 = vpop.permute.xlu1 %5362 }
 0x935   : > { %v5211_v2 = vsel %vm5181_vm13, %v12875_v54, %v5210_v31  ;;  %v5320_v59 = vrot.slane %v5080_v61, 2  ;;  %v12877_v9 = vrot.slane %v11051_v7, 2  ;;  %v12878_v24 = vrot.slane %v11000_v43, 2 }
 0x936   : > { %5364 = vrot.lane.b32.xlu2 %v5211_v2, %s7170_s16  ;;  %v11336_v33 = vsel %vm5181_vm13, %v12876_v58, %v5330_v8  ;;  %v12880_v6 = vrot.slane %v12879_v16, 2  ;;  %v4524_v29 = vsel %vm3965_vm6, 0.0, %v4523_v60  ;;  %v4500_v7 = vperm.slane %v11188_v1, %v9753_v21  ;;  %v12887_v2 = vld [vmem:[#allocation21_spill] sm:$0xff] }
 0x937   : > { %v11342_v51 = vsel %vm5181_vm13, %v12877_v9, %v5310_v48  ;;  %v11347_v31 = vsel %vm5181_vm13, %v12878_v24, %v5320_v59  ;;  %v5260_v56 = vrot.slane %v4524_v29, 2  ;;  %v4521_v41 = vrot.slane %v11147_v44, 4 }
 0x938   : > { %v5191_v50 = vsel %vm5181_vm13, %v12880_v6, %v5190_v49  ;;  %v11360_v43 = vpop.permute.xlu2 %5358  ;;  %v4517_v38 = vrot.slane %v4500_v7, 4  ;;  %v5225_v10 = vrot.slane %v4500_v7, 2  ;;  %v12882_v30 = vrot.slane %v10651_v0, 2 }
 0x939   : > { %5348 = vrot.lane.b32.xlu0 %v5191_v50, %s7170_s16  ;;  %v4522_v1 = vsel %vm3965_vm6, 0.0, %v4521_v41  ;;  %v12886_v27 = vrot.slane %v12885_v57, 2  ;;  %v5570_v53 = vrot.slane %v11331_v36, 4  ;;  %v12888_v49 = vrot.slane %v12887_v2, 2 }
 0x93a   : > { %v4518_v44 = vsel %vm3965_vm6, 0.0, %v4517_v38  ;;  %v5250_v11 = vrot.slane %v4522_v1, 2  ;;  %v5546_v15 = vrot.slane %v11368_v28, 4 }
 0x93b   : > { %5392 = vrot.lane.b32.xlu1 %v11184_v39, %s7170_s16  ;;  %v12881_v39 = vrot.slane %v10672_v55, 2  ;;  %v5230_v40 = vrot.slane %v4518_v44, 2  ;;  %v5571_v48 = vsel %vm3965_vm6, %v5570_v53, %v11372_v23 }
 0x93c   : > { %v5351_v54 = vpop.permute.xlu1 %5350  ;;  %v11404_v58 = vperm.slane %v5571_v48, %v9705_v32  ;;  %v5547_v60 = vsel %vm3965_vm6, %v5546_v15, %v11265_v35 }
 0x93d   : > { %v5261_v20 = vsel %vm5181_vm13, %v12881_v39, %v5260_v56  ;;  %v5231_v0 = vsel %vm5181_vm13, %v12886_v27, %v5230_v40  ;;  %v5534_v59 = vrot.slane %v5351_v54, 4  ;;  %v11415_v6 = vperm.slane %v5547_v60, %v9705_v32 }
 0x93e   : > { %5400 = vrot.lane.b32.xlu2 %v11170_v63, %s7170_s16  ;;  %v4519_v63 = vrot.slane %v11173_v4, 4  ;;  %v12884_v4 = vrot.slane %v12883_v52, 2  ;;  %v5606_v7 = vrot.slane %v11404_v58, 4 }
 0x93f   : > { %v11390_v17 = vpop.permute.xlu0 %5342  ;;  %v5582_v38 = vrot.slane %v11415_v6, 4 }
 0x940   : > { %v11380_v55 = vpop.permute.xlu2 %5394  ;;  %v4520_v22 = vsel %vm3965_vm6, 0.0, %v4519_v63  ;;  %v5251_v42 = vsel %vm5181_vm13, %v12884_v4, %v5250_v11  ;;  %v5535_v16 = vsel %vm3965_vm6, %v5534_v59, %v11390_v17  ;;  %v5536_v52 = vrot.slane %v11390_v17, 4 }
 0x941   : > { %5384 = vrot.lane.b32.xlu0 %v11212_v19, %s7170_s16  ;;  %v5226_v19 = vsel %vm5181_vm13, %v12882_v30, %v5225_v10  ;;  %v5240_v3 = vrot.slane %v4520_v22, 2  ;;  %v11430_v56 = vperm.slane %v5535_v16, %v9705_v32  ;;  %v5572_v22 = vrot.slane %v11372_v23, 4 }
 0x942   : > { %v5548_v4 = vrot.slane %v11265_v35, 4  ;;  %v5560_v35 = vrot.slane %v11360_v43, 4  ;;  %v5537_v17 = vsel %vm3965_vm6, %v5351_v54, %v5536_v52 }
 0x943   : > { %5404 = vrot.lane.b32.xlu1 %v5261_v20, %s7170_s16  ;;  %v5241_v8 = vsel %vm5181_vm13, %v12888_v49, %v5240_v3  ;;  %v5583_v39 = vsel %vm3965_vm6, %v5582_v38, %v11430_v56  ;;  %v5545_v15 = vperm.slane %v5537_v17, %v9705_v32  ;;  %v5584_v38 = vrot.slane %v11430_v56, 4  ;;  %vm12895_vm13 = vmmov %vm12823_vm1 }
 0x944   : > { %v11450_v63 = vperm.slane %v5583_v39, %v9753_v21  ;;  %v5549_v23 = vsel %vm3965_vm6, %v11368_v28, %v5548_v4 }
 0x945   : > { %v5585_v56 = vsel %vm3965_vm6, %v11415_v6, %v5584_v38 }
 0x946   : > { %5376 = vrot.lane.b32.xlu2 %v5226_v19, %s7170_s16  ;;  %v5632_v52 = vrot.slane %v11450_v63, 4 }
 0x947   : > { %v5367_v9 = vpop.permute.xlu0 %5366 }
 0x948   : > { %v11399_v61 = vpop.permute.xlu2 %5382  ;;  %v5558_v24 = vrot.slane %v5367_v9, 4  ;;  %v5561_v54 = vsel %vm3965_vm6, %v5367_v9, %v5560_v35 }
 0x949   : > { %5396 = vrot.lane.b32.xlu0 %v5251_v42, %s7170_s16  ;;  %v5569_v9 = vperm.slane %v5561_v54, %v9705_v32 }
 0x94a   : > { %v5559_v50 = vsel %vm3965_vm6, %v5558_v24, %v11360_v43 }
 0x94b   : > { %5380 = vrot.lane.b32.xlu1 %v5231_v0, %s7170_s16  ;;  %v11419_v29 = vpop.permute.xlu1 %5386  ;;  %v5573_v0 = vsel %vm3965_vm6, %v11331_v36, %v5572_v22  ;;  %v5557_v36 = vperm.slane %v5549_v23, %v9705_v32 }
 0x94c   : > { %v5658_v30 = vrot.slane %v11419_v29, 4 }
 0x94d   : > { %v5594_v24 = vrot.slane %v5557_v36, 4 }
 0x94e   : > { %5388 = vrot.lane.b32.xlu2 %v5241_v8, %s7170_s16  ;;  %v5581_v8 = vperm.slane %v5573_v0, %v9705_v32 }
 0x950   : > { %v5618_v16 = vrot.slane %v5581_v8, 4 }
 0x951   : > { %5432 = vrot.lane.b32.xlu0 %v11233_v34, %s7170_s16  ;;  %v11425_v34 = vperm.slane %v5559_v50, %v9705_v32 }
 0x952   : > { %v5619_v39 = vsel %vm3965_vm6, %v5618_v16, %v5569_v9 }
 0x953   : > { %5416 = vrot.lane.b32.xlu1 %v11250_v62, %s7170_s16  ;;  %v11427_v62 = vpop.permute.xlu2 %5418  ;;  %v5607_v41 = vsel %vm3965_vm6, %v5606_v7, %v11425_v34  ;;  %v11446_v20 = vpop.permute.xlu1 %5374  ;;  %v5595_v7 = vsel %vm3965_vm6, %v5594_v24, %v5545_v15  ;;  %v5625_v22 = vperm.slane %v5619_v39, %v9753_v21 }
 0x954   : > { %v11436_v10 = vperm.slane %v5607_v41, %v9753_v21  ;;  %v5770_v23 = vrot.slane %v11427_v62, 4 }
 0x956   : > { %5424 = vrot.lane.b32.xlu2 %v11245_v18, %s7170_s16  ;;  %v11440_v18 = vpop.permute.xlu0 %5378  ;;  %v5630_v1 = vrot.slane %v11436_v10, 4 }
 0x959   : > { %5408 = vrot.lane.b32.xlu0 %v11260_v26, %s7170_s16  ;;  %v11458_v26 = vsel %vm3965_vm6, %v5630_v1, %v11450_v63 }
 0x95b   : > { %5428 = vrot.lane.b32.xlu1 %v11275_v14, %s7170_s16  ;;  %v11454_v44 = vpop.permute.xlu2 %5406  ;;  %v11472_v40 = vpop.permute.xlu1 %5398 }
 0x95e   : > { %5436 = vrot.lane.b32.xlu2 %v11270_v45, %s7170_s16  ;;  %v11462_v14 = vpop.permute.xlu0 %5402  ;;  %v5659_v45 = vsel %vm3965_vm6, %v5658_v30, %v11440_v18  ;;  %v5608_v30 = vrot.slane %v11425_v34, 4  ;;  %v5633_v34 = vsel %vm3965_vm6, %v11436_v10, %v5632_v52 }
 0x95f   : > { %v5682_v19 = vrot.slane %v11462_v14, 4  ;;  %v11483_v42 = vperm.slane %v5659_v45, %v9705_v32  ;;  %v5620_v45 = vrot.slane %v5569_v9, 4 }
 0x960   : > { %v5609_v6 = vsel %vm3965_vm6, %v11404_v58, %v5608_v30 }
 0x961   : > { %5420 = vrot.lane.b32.xlu0 %v11280_v25, %s7170_s16  ;;  %v5683_v11 = vsel %vm3965_vm6, %v5682_v19, %v11380_v55  ;;  %v5694_v28 = vrot.slane %v11483_v42, 4 }
 0x962   : > { %v11486_v3 = vperm.slane %v5683_v11, %v9705_v32 }
 0x963   : > { %5464 = vrot.lane.b32.xlu1 %v11285_v13, %s7170_s16  ;;  %v11476_v25 = vpop.permute.xlu2 %5430  ;;  %v5646_v13 = vrot.slane %v11399_v61, 4 }
 0x964   : > { %v5782_v10 = vrot.slane %v11476_v25, 4 }
 0x965   : > { %v5647_v57 = vsel %vm3965_vm6, %v5646_v13, %v11446_v20  ;;  %v11514_v49 = vpop.permute.xlu1 %5410  ;;  %v5660_v13 = vrot.slane %v11440_v18, 4  ;;  %v5593_v18 = vperm.slane %v5585_v56, %v9753_v21 }
 0x966   : > { %5412 = vrot.lane.b32.xlu2 %v11305_v37, %s7170_s16  ;;  %v5670_v37 = vrot.slane %v11472_v40, 4  ;;  %v11495_v27 = vpop.permute.xlu0 %5390  ;;  %v11507_v2 = vperm.slane %v5647_v57, %v9705_v32  ;;  %v5684_v57 = vrot.slane %v11380_v55, 4  ;;  %v5648_v55 = vrot.slane %v11446_v20, 4 }
 0x967   : > { %v5661_v58 = vsel %vm3965_vm6, %v11419_v29, %v5660_v13  ;;  %v5638_v29 = vrot.slane %v5625_v22, 4  ;;  %v5771_v20 = vsel %vm3965_vm6, %v5770_v23, %v11514_v49 }
 0x968   : > { %v5671_v53 = vsel %vm3965_vm6, %v5670_v37, %v11495_v27  ;;  %v5695_v59 = vsel %vm3965_vm6, %v5694_v28, %v11507_v2  ;;  %v5596_v37 = vrot.slane %v5545_v15, 4  ;;  %v5672_v28 = vrot.slane %v11495_v27, 4 }
 0x969   : > { %5456 = vrot.lane.b32.xlu0 %v11291_v5, %s7170_s16  ;;  %v5718_v5 = vrot.slane %v11486_v3, 4  ;;  %v11511_v43 = vperm.slane %v5671_v53, %v9705_v32  ;;  %v11536_v50 = vperm.slane %v5695_v59, %v9753_v21  ;;  %v5617_v53 = vperm.slane %v5609_v6, %v9753_v21 }
 0x96a   : > { %v11597_v15 = vperm.slane %v5661_v58, %v9705_v32  ;;  %v5685_v27 = vsel %vm3965_vm6, %v11462_v14, %v5684_v57  ;;  %v5649_v16 = vsel %vm3965_vm6, %v11399_v61, %v5648_v55  ;;  %v5673_v38 = vsel %vm3965_vm6, %v11472_v40, %v5672_v28 }
 0x96b   : > { %5440 = vrot.lane.b32.xlu1 %v11313_v47, %s7170_s16  ;;  %v5719_v47 = vsel %vm3965_vm6, %v5718_v5, %v11511_v43  ;;  %v11528_v60 = vpop.permute.xlu2 %5442  ;;  %v11615_v14 = vperm.slane %v5771_v20, %v9705_v32  ;;  %v5696_v61 = vrot.slane %v11507_v2, 4  ;;  %v5681_v2 = vperm.slane %v5673_v38, %v9705_v32 }
 0x96c   : > { %v11524_v48 = vperm.slane %v5719_v47, %v9753_v21  ;;  %v5636_v47 = vrot.slane %v5593_v18, 4  ;;  %v5706_v40 = vrot.slane %v11597_v15, 4 }
 0x96d   : > { %v11544_v1 = vpop.permute.xlu1 %5434  ;;  %v5806_v6 = vrot.slane %v11615_v14, 4  ;;  %v5697_v57 = vsel %vm3965_vm6, %v11483_v42, %v5696_v61  ;;  %v5732_v42 = vrot.slane %v5681_v2, 4 }
 0x96e   : > { %5448 = vrot.lane.b32.xlu2 %v11322_v46, %s7170_s16  ;;  %v11533_v46 = vpop.permute.xlu0 %5426  ;;  %v5742_v41 = vrot.slane %v11524_v48, 4  ;;  %v5794_v19 = vrot.slane %v11544_v1, 4 }
 0x970   : > { %v5795_v63 = vsel %vm3965_vm6, %v5794_v19, %v11533_v46  ;;  %v5693_v19 = vperm.slane %v5685_v27, %v9705_v32  ;;  %v5796_v27 = vrot.slane %v11533_v46, 4 }
 0x971   : > { %5468 = vrot.lane.b32.xlu0 %v11327_v12, %s7170_s16  ;;  %v11548_v12 = vsel %vm3965_vm6, %v5742_v41, %v11536_v50  ;;  %v11588_v5 = vperm.slane %v5795_v63, %v9705_v32  ;;  %v5634_v41 = vrot.slane %v5617_v53, 4  ;;  %v5720_v63 = vrot.slane %v11511_v43, 4 }
 0x973   : > { %5452 = vrot.lane.b32.xlu1 %v11347_v31, %s7170_s16  ;;  %v5601_v31 = vperm.slane %v5595_v7, %v9753_v21  ;;  %v11557_v11 = vpop.permute.xlu2 %5466  ;;  %v5830_v39 = vrot.slane %v11588_v5, 4  ;;  %v5635_v13 = vsel %vm3965_vm6, %v5634_v41, %v5593_v18  ;;  %v5760_v41 = vrot.slane %v11454_v44, 4 }
 0x975   : > { %v11583_v17 = vpop.permute.xlu1 %5422  ;;  %v5639_v30 = vsel %vm3965_vm6, %v5638_v29, %v5601_v31 }
 0x976   : > { %5460 = vrot.lane.b32.xlu2 %v11336_v33, %s7170_s16  ;;  %v5640_v33 = vrot.slane %v5601_v31, 4  ;;  %v11566_v4 = vpop.permute.xlu0 %5414  ;;  %v5783_v54 = vsel %vm3965_vm6, %v5782_v10, %v11583_v17 }
 0x977   : > { %v5758_v0 = vrot.slane %v11566_v4, 4  ;;  %v11602_v59 = vperm.slane %v5783_v54, %v9705_v32  ;;  %v5721_v54 = vsel %vm3965_vm6, %v11486_v3, %v5720_v63 }
 0x978   : > { %v5641_v35 = vsel %vm3965_vm6, %v5625_v22, %v5640_v33  ;;  %v11628_v22 = vperm.slane %v5649_v16, %v9705_v32 }
 0x979   : > { %5444 = vrot.lane.b32.xlu0 %v11342_v51, %s7170_s16  ;;  %v5621_v51 = vsel %vm3965_vm6, %v5581_v8, %v5620_v45  ;;  %s7199_s16 = smov 80   ;;  %v5597_v8 = vsel %vm3965_vm6, %v5557_v36, %v5596_v37  ;;  %v5759_v7 = vsel %vm3965_vm6, %v5758_v0, %v11454_v44  ;;  %v5637_v36 = vsel %vm3965_vm6, %v5617_v53, %v5636_v47 }
 0x97a   : > { %v5629_v9 = vperm.slane %v5621_v51, %v9753_v21  ;;  %v5605_v45 = vperm.slane %v5597_v8, %v9753_v21  ;;  %v11631_v52 = vperm.slane %v5759_v7, %v9705_v32  ;;  %v5831_v31 = vsel %vm3965_vm6, %v5830_v39, %v11602_v59 }
 0x97b   : > { %6434 = vrot.lane.b32.xlu1 %v5633_v34, %s7190_s12  ;;  %v5730_v37 = vrot.slane %v5693_v19, 4  ;;  %v11645_v51 = vperm.slane %v5831_v31, %v9753_v21  ;;  %v5707_v10 = vsel %vm3965_vm6, %v5706_v40, %v11628_v22  ;;  %v5744_v0 = vrot.slane %v11536_v50, 4 }
 0x97c   : > { %v5642_v34 = vrot.slane %v5629_v9, 4  ;;  %v5644_v18 = vrot.slane %v5605_v45, 4  ;;  %v5705_v53 = vperm.slane %v5697_v57, %v9753_v21  ;;  %v5713_v28 = vperm.slane %v5707_v10, %v9753_v21 }
 0x97d   : > { %v11604_v24 = vpop.permute.xlu2 %5454  ;;  %v11637_v33 = vpop.permute.xlu1 %5458  ;;  %v5731_v55 = vsel %vm3965_vm6, %v5730_v37, %v5681_v2  ;;  %v5854_v20 = vrot.slane %v11645_v51, 4  ;;  %v5772_v47 = vrot.slane %v11514_v49, 4  ;;  %v5729_v7 = vperm.slane %v5721_v54, %v9753_v21 }
 0x97e   : > { %6498 = vrot.lane.b32.xlu2 %v5641_v35, %s7199_s16  ;;  %v11623_v56 = vpop.permute.xlu0 %5450  ;;  %v5807_v35 = vsel %vm3965_vm6, %v5806_v6, %v11631_v52  ;;  %v5643_v58 = vsel %vm3965_vm6, %v5642_v34, %v5605_v45  ;;  %v5645_v43 = vsel %vm3965_vm6, %v5629_v9, %v5644_v18  ;;  %v5737_v50 = vperm.slane %v5731_v55, %v9753_v21 }
 0x97f   : > { %v11664_v29 = vperm.slane %v5807_v35, %v9753_v21  ;;  %v5745_v9 = vsel %vm3965_vm6, %v11524_v48, %v5744_v0  ;;  %v5733_v49 = vsel %vm3965_vm6, %v5693_v19, %v5732_v42  ;;  %v5752_v46 = vrot.slane %v5713_v28, 4 }
 0x980   : > { %v5748_v38 = vrot.slane %v5705_v53, 4  ;;  %v5773_v48 = vsel %vm3965_vm6, %v11427_v62, %v5772_v47  ;;  %v5906_v39 = vrot.slane %v11557_v11, 4  ;;  %v5750_v45 = vrot.slane %v5737_v50, 4 }
 0x981   : > { %6466 = vrot.lane.b32.xlu0 %v5637_v36, %s7180_s28  ;;  %v11678_v3 = vsel %vm3965_vm6, %v5854_v20, %v11664_v29  ;;  %v5708_v36 = vrot.slane %v11628_v22, 4  ;;  %v5797_v40 = vsel %vm3965_vm6, %v11544_v1, %v5796_v27  ;;  %v5753_v19 = vsel %vm3965_vm6, %v5737_v50, %v5752_v46 }
 0x982   : > { %v5741_v22 = vperm.slane %v5733_v49, %v9753_v21  ;;  %v5761_v44 = vsel %vm3965_vm6, %v11566_v4, %v5760_v41  ;;  %v5882_v31 = vrot.slane %v11623_v56, 4  ;;  %v5907_v62 = vsel %vm3965_vm6, %v5906_v39, %v11637_v33 }
 0x983   : > { %6482 = vrot.lane.b32.xlu1 %v5639_v30, %s7191_s13  ;;  %v5784_v30 = vrot.slane %v11583_v17, 4  ;;  %v5749_v17 = vsel %vm3965_vm6, %v5729_v7, %v5748_v38  ;;  %v11703_v2 = vperm.slane %v5773_v48, %v9705_v32  ;;  %v5746_v1 = vrot.slane %v5729_v7, 4 }
 0x984   : > { %v5805_v4 = vperm.slane %v5797_v40, %v9705_v32  ;;  %v5751_v57 = vsel %vm3965_vm6, %v5750_v45, %v5713_v28  ;;  %v11716_v63 = vperm.slane %v5761_v44, %v9705_v32  ;;  %v5808_v18 = vrot.slane %v11631_v52, 4 }
 0x985   : > { %v11647_v23 = vpop.permute.xlu2 %5352  ;;  %v5785_v34 = vsel %vm3965_vm6, %v11476_v25, %v5784_v30  ;;  %v11720_v10 = vperm.slane %v5907_v62, %v9705_v32  ;;  %v5883_v25 = vsel %vm3965_vm6, %v5882_v31, %v11528_v60  ;;  %v5818_v55 = vrot.slane %v11703_v2, 4 }
 0x986   : > { %6450 = vrot.lane.b32.xlu2 %v5635_v13, %s7200_s18  ;;  %v5709_v13 = vsel %vm3965_vm6, %v11597_v15, %v5708_v36  ;;  %v5793_v42 = vperm.slane %v5785_v34, %v9705_v32  ;;  %v5842_v0 = vrot.slane %v5805_v4, 4  ;;  %v5747_v47 = vsel %vm3965_vm6, %v5746_v1, %v5705_v53 }
 0x987   : > { %v11668_v8 = vpop.permute.xlu0 %5438  ;;  %v5819_v50 = vsel %vm3965_vm6, %v5818_v55, %v11716_v63  ;;  %v11744_v27 = vperm.slane %v5883_v25, %v9705_v32  ;;  %v5809_v7 = vsel %vm3965_vm6, %v11615_v14, %v5808_v18  ;;  %v5832_v49 = vrot.slane %v11602_v59, 4 }
 0x988   : > { %v11674_v16 = vpop.permute.xlu1 %5446  ;;  %v5843_v46 = vsel %vm3965_vm6, %v5842_v0, %v5793_v42  ;;  %v5825_v48 = vperm.slane %v5819_v50, %v9753_v21  ;;  %v5817_v59 = vperm.slane %v5809_v7, %v9753_v21  ;;  %v5856_v40 = vrot.slane %v11664_v29, 4 }
 0x989   : > { %6514 = vrot.lane.b32.xlu0 %v5643_v58, %s7185_s26  ;;  %v5870_v6 = vrot.slane %v11674_v16, 4  ;;  %v5754_v58 = vrot.slane %v5741_v22, 4  ;;  %v5918_v39 = vrot.slane %v11744_v27, 4  ;;  %v5849_v44 = vperm.slane %v5843_v46, %v9753_v21 }
 0x98a   : > { %v5833_v31 = vsel %vm3965_vm6, %v11588_v5, %v5832_v49  ;;  %v5860_v29 = vrot.slane %v5817_v59, 4  ;;  %v5884_v34 = vrot.slane %v11528_v60, 4  ;;  %v5820_v60 = vrot.slane %v11716_v63, 4 }
 0x98b   : > { %6530 = vrot.lane.b32.xlu1 %v5645_v43, %s7201_s23  ;;  %v5717_v43 = vperm.slane %v5709_v13, %v9753_v21  ;;  %v5871_v28 = vsel %vm3965_vm6, %v5870_v6, %v11668_v8  ;;  %v5864_v13 = vrot.slane %v5825_v48, 4  ;;  %v5872_v6 = vrot.slane %v11668_v8, 4 }
 0x98c   : > { %v11753_v41 = vperm.slane %v5871_v28, %v9705_v32  ;;  %v5841_v5 = vperm.slane %v5833_v31, %v9753_v21  ;;  %v5885_v8 = vsel %vm3965_vm6, %v11623_v56, %v5884_v34 }
 0x98d   : > { %v5755_v36 = vsel %vm3965_vm6, %v5754_v58, %v5717_v43  ;;  %v5756_v53 = vrot.slane %v5717_v43, 4  ;;  %v5865_v18 = vsel %vm3965_vm6, %v5849_v44, %v5864_v13  ;;  %v5873_v63 = vsel %vm3965_vm6, %v11674_v16, %v5872_v6 }
 0x98e   : > { %6436 = vrot.lane.b32.xlu2 %v5745_v9, %s7190_s12  ;;  %v5942_v9 = vrot.slane %v11720_v10, 4  ;;  %v5861_v55 = vsel %vm3965_vm6, %v5841_v5, %v5860_v29  ;;  %v5862_v43 = vrot.slane %v5849_v44, 4  ;;  %v5858_v0 = vrot.slane %v5841_v5, 4 }
 0x98f   : > { %v11713_v37 = vpop.permute.xlu0 %5462  ;;  %v5757_v30 = vsel %vm3965_vm6, %v5741_v22, %v5756_v53  ;;  %v5908_v22 = vrot.slane %v11637_v33, 4 }
 0x990   : > { %v11689_v61 = vpop.permute.xlu2 %5364  ;;  %v5894_v15 = vrot.slane %v11713_v37, 4  ;;  %v11723_v35 = vpop.permute.xlu1 %5368  ;;  %v5863_v53 = vsel %vm3965_vm6, %v5862_v43, %v5825_v48  ;;  %v5920_v48 = vrot.slane %v11753_v41, 4 }
 0x991   : > { %6500 = vrot.lane.b32.xlu0 %v5753_v19, %s7199_s16  ;;  %v5844_v19 = vrot.slane %v5793_v42, 4  ;;  %v5909_v58 = vsel %vm3965_vm6, %v11557_v11, %v5908_v22  ;;  %v5893_v11 = vperm.slane %v5885_v8, %v9705_v32 }
 0x992   : > { %v5895_v52 = vsel %vm3965_vm6, %v5894_v15, %v11604_v24  ;;  %v5917_v50 = vperm.slane %v5909_v58, %v9705_v32 }
 0x993   : > { %6468 = vrot.lane.b32.xlu1 %v5749_v17, %s7180_s28  ;;  %v11736_v54 = vperm.slane %v5895_v52, %v9705_v32  ;;  %v5919_v17 = vsel %vm3965_vm6, %v5918_v39, %v11753_v41  ;;  %v5845_v15 = vsel %vm3965_vm6, %v5805_v4, %v5844_v19  ;;  %v5982_v19 = vrot.slane %v11647_v23, 4 }
 0x994   : > { %v11789_v33 = vperm.slane %v5919_v17, %v9753_v21  ;;  %v5954_v31 = vrot.slane %v5917_v50, 4 }
 0x995   : > { %v5943_v38 = vsel %vm3965_vm6, %v5942_v9, %v11736_v54  ;;  %v5881_v9 = vperm.slane %v5873_v63, %v9705_v32 }
 0x996   : > { %6484 = vrot.lane.b32.xlu2 %v5751_v57, %s7191_s13  ;;  %v11773_v62 = vperm.slane %v5943_v38, %v9753_v21  ;;  %v5857_v57 = vsel %vm3965_vm6, %v11645_v51, %v5856_v40  ;;  %v5896_v51 = vrot.slane %v11604_v24, 4  ;;  %v5853_v24 = vperm.slane %v5845_v15, %v9753_v21 }
 0x997   : > { %v11760_v14 = vpop.permute.xlu0 %5360  ;;  %v5930_v38 = vrot.slane %v5893_v11, 4  ;;  %v5859_v40 = vsel %vm3965_vm6, %v5858_v0, %v5817_v59  ;;  %v5932_v15 = vrot.slane %v5881_v9, 4  ;;  %v5968_v58 = vrot.slane %v11789_v33, 4 }
 0x998   : > { %v11738_v20 = vpop.permute.xlu2 %5400  ;;  %v11765_v45 = vpop.permute.xlu1 %5344  ;;  %v5966_v25 = vrot.slane %v11773_v62, 4  ;;  %v5897_v28 = vsel %vm3965_vm6, %v11713_v37, %v5896_v51  ;;  %v5866_v46 = vrot.slane %v5853_v24, 4 }
 0x999   : > { %6452 = vrot.lane.b32.xlu0 %v5747_v47, %s7200_s18  ;;  %v6006_v47 = vrot.slane %v11723_v35, 4  ;;  %v5905_v39 = vperm.slane %v5897_v28, %v9705_v32  ;;  %v5931_v17 = vsel %vm3965_vm6, %v5930_v38, %v5881_v9  ;;  %v5983_v59 = vsel %vm3965_vm6, %v5982_v19, %v11765_v45 }
 0x99a   : > { %v11804_v42 = vsel %vm3965_vm6, %v5966_v25, %v11789_v33  ;;  %v5937_v25 = vperm.slane %v5931_v17, %v9753_v21  ;;  %v11860_v8 = vperm.slane %v5983_v59, %v9705_v32  ;;  %v6118_v17 = vrot.slane %v11738_v20, 4 }
 0x99b   : > { %6516 = vrot.lane.b32.xlu1 %v5755_v36, %s7185_s26  ;;  %v5821_v36 = vsel %vm3965_vm6, %v11703_v2, %v5820_v60  ;;  %v6007_v37 = vsel %vm3965_vm6, %v6006_v47, %v11760_v14  ;;  %v5955_v5 = vsel %vm3965_vm6, %v5954_v31, %v5905_v39  ;;  %v5956_v0 = vrot.slane %v5905_v39, 4 }
 0x99c   : > { %v5829_v2 = vperm.slane %v5821_v36, %v9753_v21  ;;  %v11842_v22 = vperm.slane %v6007_v37, %v9705_v32  ;;  %v5969_v47 = vsel %vm3965_vm6, %v11773_v62, %v5968_v58 }
 0x99d   : > { %v5957_v38 = vsel %vm3965_vm6, %v5917_v50, %v5956_v0 }
 0x99e   : > { %6532 = vrot.lane.b32.xlu2 %v5757_v30, %s7201_s23  ;;  %v5867_v29 = vsel %vm3965_vm6, %v5866_v46, %v5829_v2  ;;  %v5868_v60 = vrot.slane %v5829_v2, 4  ;;  %v6020_v46 = vrot.slane %v11689_v61, 4 }
 0x99f   : > { %v11800_v4 = vpop.permute.xlu0 %5372 }
 0x9a0   : > { %v11778_v1 = vpop.permute.xlu2 %5376  ;;  %v6018_v56 = vrot.slane %v11800_v4, 4  ;;  %v5869_v63 = vsel %vm3965_vm6, %v5853_v24, %v5868_v60 }
 0x9a1   : > { %6438 = vrot.lane.b32.xlu0 %v5857_v57, %s7190_s12  ;;  %v5944_v57 = vrot.slane %v11736_v54, 4 }
 0x9a2   : > { %v6019_v16 = vsel %vm3965_vm6, %v6018_v56, %v11689_v61  ;;  %v5961_v56 = vperm.slane %v5955_v5, %v9753_v21  ;;  %v6021_v61 = vsel %vm3965_vm6, %v11800_v4, %v6020_v46 }
 0x9a3   : > { %6502 = vrot.lane.b32.xlu1 %v5865_v18, %s7199_s16  ;;  %v11822_v7 = vperm.slane %v6019_v16, %v9705_v32  ;;  %v5945_v33 = vsel %vm3965_vm6, %v11720_v10, %v5944_v57  ;;  %v5933_v16 = vsel %vm3965_vm6, %v5893_v11, %v5932_v15  ;;  %v6056_v57 = vrot.slane %v11842_v22, 4 }
 0x9a4   : > { %v5953_v62 = vperm.slane %v5945_v33, %v9753_v21  ;;  %v5974_v11 = vrot.slane %v5961_v56, 4  ;;  %v5941_v39 = vperm.slane %v5933_v16, %v9753_v21  ;;  %v6029_v5 = vperm.slane %v6021_v61, %v9705_v32 }
 0x9a5   : > { %v11809_v52 = vpop.permute.xlu1 %5356  ;;  %v6054_v30 = vrot.slane %v11822_v7, 4  ;;  %v6057_v16 = vsel %vm3965_vm6, %v11822_v7, %v6056_v57 }
 0x9a6   : > { %6470 = vrot.lane.b32.xlu2 %v5861_v55, %s7180_s28  ;;  %v5994_v44 = vrot.slane %v11809_v52, 4  ;;  %v5921_v55 = vsel %vm3965_vm6, %v11744_v27, %v5920_v48  ;;  %v5976_v27 = vrot.slane %v5937_v25, 4  ;;  %v5970_v31 = vrot.slane %v5953_v62, 4 }
 0x9a7   : > { %v6055_v18 = vsel %vm3965_vm6, %v6054_v30, %v11842_v22  ;;  %v5929_v24 = vperm.slane %v5921_v55, %v9753_v21  ;;  %v6008_v30 = vrot.slane %v11760_v14, 4  ;;  %v5965_v48 = vperm.slane %v5957_v38, %v9753_v21 }
 0x9a8   : > { %v11824_v49 = vpop.permute.xlu2 %5388  ;;  %v11871_v43 = vperm.slane %v6055_v18, %v9753_v21  ;;  %v5977_v37 = vsel %vm3965_vm6, %v5961_v56, %v5976_v27  ;;  %v5975_v14 = vsel %vm3965_vm6, %v5974_v11, %v5937_v25  ;;  %v6065_v7 = vperm.slane %v6057_v16, %v9753_v21 }
 0x9a9   : > { %6486 = vrot.lane.b32.xlu0 %v5863_v53, %s7191_s13  ;;  %v5972_v19 = vrot.slane %v5929_v24, 4  ;;  %v6009_v59 = vsel %vm3965_vm6, %v11723_v35, %v6008_v30  ;;  %v6106_v18 = vrot.slane %v11824_v49, 4  ;;  %v6032_v35 = vrot.slane %v11860_v8, 4 }
 0x9aa   : > { %v6078_v10 = vrot.slane %v11871_v43, 4  ;;  %v6017_v56 = vperm.slane %v6009_v59, %v9705_v32  ;;  %v6096_v16 = vrot.slane %v11778_v1, 4 }
 0x9ab   : > { %6454 = vrot.lane.b32.xlu1 %v5859_v40, %s7200_s18  ;;  %v5349_v13 = vpop.permute.xlu0 %5348  ;;  %v5973_v50 = vsel %vm3965_vm6, %v5953_v62, %v5972_v19 }
 0x9ac   : > { %v5995_v34 = vsel %vm3965_vm6, %v5994_v44, %v5349_v13  ;;  %v5996_v40 = vrot.slane %v5349_v13, 4  ;;  %v5980_v13 = vrot.slane %v5941_v39, 4  ;;  %v6068_v19 = vrot.slane %v6017_v56, 4 }
 0x9ad   : > { %v11848_v6 = vpop.permute.xlu1 %5392  ;;  %v11854_v41 = vperm.slane %v5995_v34, %v9705_v32 }
 0x9ae   : > { %6518 = vrot.lane.b32.xlu2 %v5867_v29, %s7185_s26  ;;  %v5984_v29 = vrot.slane %v11765_v45, 4  ;;  %v5997_v4 = vsel %vm3965_vm6, %v11809_v52, %v5996_v40  ;;  %v5971_v45 = vsel %vm3965_vm6, %v5970_v31, %v5929_v24  ;;  %v6119_v22 = vsel %vm3965_vm6, %v6118_v17, %v11848_v6 }
 0x9af   : > { %v6030_v51 = vrot.slane %v11854_v41, 4  ;;  %v6005_v58 = vperm.slane %v5997_v4, %v9705_v32  ;;  %v6033_v0 = vsel %vm3965_vm6, %v11854_v41, %v6032_v35  ;;  %v5981_v38 = vsel %vm3965_vm6, %v5965_v48, %v5980_v13 }
 0x9b0   : > { %v11863_v54 = vpop.permute.xlu2 %5424  ;;  %v6041_v11 = vperm.slane %v6033_v0, %v9753_v21 }
 0x9b1   : > { %v6031_v28 = vsel %vm3965_vm6, %v6030_v51, %v11860_v8  ;;  %6534 = vrot.lane.b32.xlu0 %v5869_v63, %s7201_s23  ;;  %v5978_v51 = vrot.slane %v5965_v48, 4  ;;  %v5985_v8 = vsel %vm3965_vm6, %v11647_v23, %v5984_v29  ;;  %v6042_v46 = vrot.slane %v6005_v58, 4 }
 0x9b2   : > { %v11884_v9 = vperm.slane %v6031_v28, %v9753_v21  ;;  %v6069_v29 = vsel %vm3965_vm6, %v6029_v5, %v6068_v19 }
 0x9b3   : > { %6440 = vrot.lane.b32.xlu1 %v5969_v47, %s7190_s12  ;;  %v11886_v36 = vpop.permute.xlu0 %5384  ;;  %v6066_v47 = vrot.slane %v6029_v5, 4  ;;  %v5979_v62 = vsel %vm3965_vm6, %v5978_v51, %v5941_v39  ;;  %v6077_v5 = vperm.slane %v6069_v29, %v9753_v21  ;;  %v6120_v51 = vrot.slane %v11848_v6, 4 }
 0x9b4   : > { %v11900_v44 = vsel %vm3965_vm6, %v6078_v10, %v11884_v9  ;;  %v6094_v15 = vrot.slane %v11886_v36, 4  ;;  %v6080_v41 = vrot.slane %v11884_v9, 4  ;;  %v5993_v10 = vperm.slane %v5985_v8, %v9705_v32 }
 0x9b5   : > { %v11889_v53 = vpop.permute.xlu1 %5404  ;;  %v6067_v39 = vsel %vm3965_vm6, %v6066_v47, %v6017_v56 }
 0x9b6   : > { %6504 = vrot.lane.b32.xlu2 %v5977_v37, %s7199_s16  ;;  %v6130_v34 = vrot.slane %v11889_v53, 4  ;;  %v6095_v33 = vsel %vm3965_vm6, %v6094_v15, %v11778_v1  ;;  %v6125_v37 = vperm.slane %v6119_v22, %v9705_v32  ;;  %v6081_v31 = vsel %vm3965_vm6, %v11871_v43, %v6080_v41 }
 0x9b7   : > { %v6101_v30 = vperm.slane %v6095_v33, %v9705_v32  ;;  %v6044_v17 = vrot.slane %v5993_v10, 4  ;;  %v6043_v13 = vsel %vm3965_vm6, %v6042_v46, %v5993_v10  ;;  %v6073_v57 = vperm.slane %v6067_v39, %v9753_v21 }
 0x9b8   : > { %v11902_v2 = vpop.permute.xlu2 %5436  ;;  %v6049_v35 = vperm.slane %v6043_v13, %v9753_v21  ;;  %v6168_v22 = vrot.slane %v6125_v37, 4  ;;  %v6090_v10 = vrot.slane %v6077_v5, 4 }
 0x9b9   : > { %6472 = vrot.lane.b32.xlu0 %v5973_v50, %s7180_s28  ;;  %v6242_v47 = vrot.slane %v11902_v2, 4 }
 0x9bb   : > { %6488 = vrot.lane.b32.xlu1 %v5975_v14, %s7191_s13  ;;  %v5397_v25 = vpop.permute.xlu0 %5396  ;;  %v6084_v14 = vrot.slane %v6041_v11, 4 }
 0x9bc   : > { %v6131_v60 = vsel %vm3965_vm6, %v6130_v34, %v5397_v25  ;;  %v6132_v61 = vrot.slane %v5397_v25, 4  ;;  %v6082_v34 = vrot.slane %v6065_v7, 4 }
 0x9bd   : > { %v5381_v52 = vpop.permute.xlu1 %5380  ;;  %v6137_v55 = vperm.slane %v6131_v60, %v9705_v32  ;;  %v6085_v60 = vsel %vm3965_vm6, %v6065_v7, %v6084_v14 }
 0x9be   : > { %6456 = vrot.lane.b32.xlu2 %v5971_v45, %s7200_s18  ;;  %v6107_v63 = vsel %vm3965_vm6, %v6106_v18, %v5381_v52  ;;  %v6108_v4 = vrot.slane %v5381_v52, 4  ;;  %v6133_v15 = vsel %vm3965_vm6, %v11889_v53, %v6132_v61  ;;  %v6083_v25 = vsel %vm3965_vm6, %v6082_v34, %v6041_v11 }
 0x9bf   : > { %v11937_v28 = vperm.slane %v6107_v63, %v9705_v32  ;;  %v6166_v27 = vrot.slane %v6137_v55, 4  ;;  %v6045_v45 = vsel %vm3965_vm6, %v6005_v58, %v6044_v17  ;;  %v6086_v63 = vrot.slane %v6073_v57, 4 }
 0x9c0   : > { %v11941_v24 = vpop.permute.xlu2 %5412  ;;  %v6109_v53 = vsel %vm3965_vm6, %v11824_v49, %v6108_v4  ;;  %v6141_v56 = vperm.slane %v6133_v15, %v9705_v32  ;;  %v6053_v8 = vperm.slane %v6045_v45, %v9753_v21  ;;  %v6169_v6 = vsel %vm3965_vm6, %v6137_v55, %v6168_v22 }
 0x9c1   : > { %v6142_v23 = vrot.slane %v11937_v28, 4  ;;  %6520 = vrot.lane.b32.xlu0 %v5979_v62, %s7185_s26  ;;  %v6167_v40 = vsel %vm3965_vm6, %v6166_v27, %v6125_v37  ;;  %v6087_v33 = vsel %vm3965_vm6, %v6086_v63, %v6049_v35  ;;  %v6088_v27 = vrot.slane %v6049_v35, 4 }
 0x9c2   : > { %v11968_v59 = vperm.slane %v6167_v40, %v9753_v21  ;;  %v6117_v37 = vperm.slane %v6109_v53, %v9705_v32  ;;  %v6144_v62 = vrot.slane %v6101_v30, 4  ;;  %v6097_v55 = vsel %vm3965_vm6, %v11886_v36, %v6096_v16 }
 0x9c3   : > { %6536 = vrot.lane.b32.xlu1 %v5981_v38, %s7201_s23  ;;  %v11958_v9 = vpop.permute.xlu0 %5432  ;;  %v6143_v50 = vsel %vm3965_vm6, %v6142_v23, %v6101_v30  ;;  %v6121_v23 = vsel %vm3965_vm6, %v11738_v20, %v6120_v51  ;;  %v6178_v46 = vrot.slane %v6141_v56, 4  ;;  %v6092_v11 = vrot.slane %v6053_v8, 4 }
 0x9c4   : > { %v11975_v43 = vperm.slane %v6143_v50, %v9753_v21  ;;  %v6190_v52 = vrot.slane %v11968_v59, 4  ;;  %v6177_v1 = vperm.slane %v6169_v6, %v9753_v21  ;;  %v6145_v7 = vsel %vm3965_vm6, %v11937_v28, %v6144_v62 }
 0x9c5   : > { %v11963_v48 = vpop.permute.xlu1 %5416  ;;  %v6230_v40 = vrot.slane %v11958_v9, 4  ;;  %v6089_v20 = vsel %vm3965_vm6, %v6073_v57, %v6088_v27  ;;  %v6129_v30 = vperm.slane %v6121_v23, %v9705_v32  ;;  %v6154_v39 = vrot.slane %v6117_v37, 4 }
 0x9c6   : > { %6546 = vrot.lane.b32.xlu2 %v6081_v31, %s7190_s12  ;;  %v11996_v0 = vsel %vm3965_vm6, %v6190_v52, %v11975_v43  ;;  %v6091_v36 = vsel %vm3965_vm6, %v6090_v10, %v6053_v8  ;;  %v6105_v61 = vperm.slane %v6097_v55, %v9705_v32  ;;  %v6153_v28 = vperm.slane %v6145_v7, %v9753_v21 }
 0x9c7   : > { %v6093_v50 = vsel %vm3965_vm6, %v6077_v5, %v6092_v11  ;;  %v6194_v17 = vrot.slane %v6177_v1, 4  ;;  %v6179_v14 = vsel %vm3965_vm6, %v6178_v46, %v6129_v30  ;;  %v6231_v13 = vsel %vm3965_vm6, %v6230_v40, %v11863_v54 }
 0x9c8   : > { %v11972_v18 = vpop.permute.xlu2 %5448  ;;  %v6206_v29 = vrot.slane %v11963_v48, 4  ;;  %v6192_v57 = vrot.slane %v11975_v43, 4  ;;  %v6180_v35 = vrot.slane %v6129_v30, 4  ;;  %v6156_v45 = vrot.slane %v6105_v61, 4 }
 0x9c9   : > { %6562 = vrot.lane.b32.xlu0 %v6083_v25, %s7200_s18  ;;  %v6155_v25 = vsel %vm3965_vm6, %v6154_v39, %v6105_v61  ;;  %v6237_v52 = vperm.slane %v6231_v13, %v9705_v32  ;;  %v6196_v43 = vrot.slane %v6153_v28, 4  ;;  %v6185_v53 = vperm.slane %v6179_v14, %v9753_v21 }
 0x9ca   : > { %v6193_v8 = vsel %vm3965_vm6, %v11968_v59, %v6192_v57  ;;  %v6161_v6 = vperm.slane %v6155_v25, %v9753_v21  ;;  %v6181_v16 = vsel %vm3965_vm6, %v6141_v56, %v6180_v35 }
 0x9cb   : > { %6578 = vrot.lane.b32.xlu1 %v6085_v60, %s7180_s28  ;;  %v11991_v58 = vpop.permute.xlu0 %5408  ;;  %v6198_v59 = vrot.slane %v6185_v53, 4  ;;  %v6197_v46 = vsel %vm3965_vm6, %v6177_v1, %v6196_v43  ;;  %v6189_v56 = vperm.slane %v6181_v16, %v9753_v21  ;;  %v6280_v61 = vrot.slane %v6237_v52, 4 }
 0x9cc   : > { %v6207_v5 = vsel %vm3965_vm6, %v6206_v29, %v11991_v58 }
 0x9cd   : > { %v12001_v49 = vpop.permute.xlu1 %5428 }
 0x9ce   : > { %6594 = vrot.lane.b32.xlu2 %v6087_v33, %s7191_s13  ;;  %v6243_v41 = vsel %vm3965_vm6, %v6242_v47, %v12001_v49  ;;  %v6244_v63 = vrot.slane %v12001_v49, 4  ;;  %v6195_v47 = vsel %vm3965_vm6, %v6194_v17, %v6153_v28  ;;  %v6213_v33 = vperm.slane %v6207_v5, %v9705_v32 }
 0x9cf   : > { %v12021_v19 = vperm.slane %v6243_v41, %v9705_v32  ;;  %v6220_v49 = vrot.slane %v11941_v24, 4  ;;  %v6157_v41 = vsel %vm3965_vm6, %v6117_v37, %v6156_v45  ;;  %v6200_v37 = vrot.slane %v6161_v6, 4 }
 0x9d0   : > { %v12012_v38 = vpop.permute.xlu2 %5460  ;;  %v6245_v55 = vsel %vm3965_vm6, %v11902_v2, %v6244_v63  ;;  %v6256_v17 = vrot.slane %v6213_v33, 4 }
 0x9d1   : > { %6610 = vrot.lane.b32.xlu0 %v6089_v20, %s7199_s16  ;;  %v6278_v15 = vrot.slane %v12021_v19, 4  ;;  %v6208_v20 = vrot.slane %v11991_v58, 4  ;;  %v12078_v1 = vperm.slane %v6245_v55, %v9705_v32  ;;  %v6201_v58 = vsel %vm3965_vm6, %v6185_v53, %v6200_v37 }
 0x9d2   : > { %v6281_v14 = vsel %vm3965_vm6, %v12021_v19, %v6280_v61  ;;  %v6318_v55 = vrot.slane %v11972_v18, 4  ;;  %v6356_v61 = vrot.slane %v12012_v38, 4 }
 0x9d3   : > { %6626 = vrot.lane.b32.xlu1 %v6091_v36, %s7185_s26  ;;  %v5421_v31 = vpop.permute.xlu0 %5420  ;;  %v6279_v23 = vsel %vm3965_vm6, %v6278_v15, %v6237_v52  ;;  %v6199_v36 = vsel %vm3965_vm6, %v6198_v59, %v6161_v6 }
 0x9d4   : > { %v6218_v4 = vrot.slane %v5421_v31, 4  ;;  %v6285_v7 = vperm.slane %v6279_v23, %v9753_v21  ;;  %v6221_v40 = vsel %vm3965_vm6, %v5421_v31, %v6220_v49 }
 0x9d5   : > { %v12033_v34 = vpop.permute.xlu1 %5464  ;;  %v6229_v28 = vperm.slane %v6221_v40, %v9705_v32 }
 0x9d6   : > { %6642 = vrot.lane.b32.xlu2 %v6093_v50, %s7201_s23  ;;  %v6219_v60 = vsel %vm3965_vm6, %v6218_v4, %v11941_v24  ;;  %v6232_v24 = vrot.slane %v11863_v54, 4  ;;  %v6165_v54 = vperm.slane %v6157_v41, %v9753_v21  ;;  %v6202_v50 = vrot.slane %v6189_v56, 4 }
 0x9d7   : > { %v6225_v51 = vperm.slane %v6219_v60, %v9705_v32  ;;  %v6302_v31 = vrot.slane %v6285_v7, 4  ;;  %v6290_v4 = vrot.slane %v12078_v1, 4  ;;  %v6266_v25 = vrot.slane %v6229_v28, 4 }
 0x9d8   : > { %v12045_v22 = vpop.permute.xlu2 %6498  ;;  %v6233_v2 = vsel %vm3965_vm6, %v11958_v9, %v6232_v24  ;;  %v6209_v9 = vsel %vm3965_vm6, %v11963_v48, %v6208_v20  ;;  %v6204_v15 = vrot.slane %v6165_v54, 4  ;;  %v6203_v35 = vsel %vm3965_vm6, %v6202_v50, %v6165_v54 }
 0x9d9   : > { %v6254_v27 = vrot.slane %v6225_v51, 4  ;;  %6548 = vrot.lane.b32.xlu0 %v6193_v8, %s7190_s12  ;;  %v6241_v29 = vperm.slane %v6233_v2, %v9705_v32  ;;  %v6257_v5 = vsel %vm3965_vm6, %v6225_v51, %v6256_v17  ;;  %v6217_v19 = vperm.slane %v6209_v9, %v9705_v32 }
 0x9da   : > { %v6289_v60 = vperm.slane %v6281_v14, %v9753_v21  ;;  %v6342_v52 = vrot.slane %v12033_v34, 4  ;;  %v6265_v51 = vperm.slane %v6257_v5, %v9753_v21  ;;  %v6205_v23 = vsel %vm3965_vm6, %v6189_v56, %v6204_v15 }
 0x9db   : > { %6564 = vrot.lane.b32.xlu1 %v6195_v47, %s7200_s18  ;;  %v12059_v62 = vpop.permute.xlu0 %5456  ;;  %v6255_v10 = vsel %vm3965_vm6, %v6254_v27, %v6213_v33  ;;  %v6291_v6 = vsel %vm3965_vm6, %v6290_v4, %v6241_v29  ;;  %v6292_v33 = vrot.slane %v6241_v29, 4  ;;  %v6267_v27 = vsel %vm3965_vm6, %v6266_v25, %v6217_v19 }
 0x9dc   : > { %v6261_v30 = vperm.slane %v6255_v10, %v9753_v21  ;;  %v6343_v63 = vsel %vm3965_vm6, %v6342_v52, %v12059_v62  ;;  %v6268_v49 = vrot.slane %v6217_v19, 4  ;;  %v6306_v41 = vrot.slane %v6289_v60, 4 }
 0x9dd   : > { %v12066_v11 = vpop.permute.xlu1 %5440  ;;  %v6273_v20 = vperm.slane %v6267_v27, %v9753_v21  ;;  %v6293_v17 = vsel %vm3965_vm6, %v12078_v1, %v6292_v33  ;;  %v6344_v25 = vrot.slane %v12059_v62, 4 }
 0x9de   : > { %6580 = vrot.lane.b32.xlu2 %v6197_v46, %s7180_s28  ;;  %v12093_v13 = vsel %vm3965_vm6, %v6302_v31, %v6261_v30  ;;  %v6304_v43 = vrot.slane %v6261_v30, 4  ;;  %v6349_v46 = vperm.slane %v6343_v63, %v9705_v32  ;;  %v6269_v40 = vsel %vm3965_vm6, %v6229_v28, %v6268_v49 }
 0x9df   : > { %v6307_v56 = vsel %vm3965_vm6, %v6306_v41, %v6265_v51  ;;  %v6277_v9 = vperm.slane %v6269_v40, %v9753_v21  ;;  %v6301_v5 = vperm.slane %v6293_v17, %v9753_v21  ;;  %v6345_v63 = vsel %vm3965_vm6, %v12033_v34, %v6344_v25 }
 0x9e0   : > { %v12080_v39 = vpop.permute.xlu2 %6450  ;;  %v6305_v10 = vsel %vm3965_vm6, %v6285_v7, %v6304_v43  ;;  %v6319_v7 = vsel %vm3965_vm6, %v6318_v55, %v12066_v11  ;;  %v6392_v33 = vrot.slane %v6349_v46, 4 }
 0x9e1   : > { %6596 = vrot.lane.b32.xlu0 %v6199_v36, %s7191_s13  ;;  %v6308_v36 = vrot.slane %v6265_v51, 4  ;;  %v6325_v14 = vperm.slane %v6319_v7, %v9705_v32  ;;  %v6316_v52 = vrot.slane %v6277_v9, 4 }
 0x9e3   : > { %6612 = vrot.lane.b32.xlu1 %v6201_v58, %s7199_s16  ;;  %v5469_v57 = vpop.permute.xlu0 %5468 }
 0x9e4   : > { %v6354_v45 = vrot.slane %v5469_v57, 4 }
 0x9e5   : > { %v5453_v48 = vpop.permute.xlu1 %5452 }
 0x9e6   : > { %6628 = vrot.lane.b32.xlu2 %v6203_v35, %s7185_s26  ;;  %v6355_v53 = vsel %vm3965_vm6, %v6354_v45, %v12012_v38  ;;  %v6330_v24 = vrot.slane %v5453_v48, 4  ;;  %v6309_v35 = vsel %vm3965_vm6, %v6289_v60, %v6308_v36 }
 0x9e7   : > { %v12108_v8 = vperm.slane %v6355_v53, %v9705_v32 }
 0x9e8   : > { %v6437_v47 = vpop.permute.xlu2 %6436 }
 0x9e9   : > { %v12115_v16 = vsel %vm12889_vm9, %v11548_v12, %v6437_v47  ;;  %v6390_v59 = vrot.slane %v12108_v8, 4  ;;  %6644 = vrot.lane.b32.xlu0 %v6205_v23, %s7201_s23  ;;  %v6297_v12 = vperm.slane %v6291_v6, %v9753_v21  ;;  %v6368_v47 = vrot.slane %v6325_v14, 4  ;;  %vm12899_vm9 = vmmov %vm12898_vm0 }
 0x9ea   : > { %v6393_v55 = vsel %vm3965_vm6, %v12108_v8, %v6392_v33 }
 0x9eb   : > { %6550 = vrot.lane.b32.xlu1 %v6305_v10, %s7190_s12  ;;  %v5445_v37 = vpop.permute.xlu0 %5444  ;;  %v6391_v54 = vsel %vm3965_vm6, %v6390_v59, %v6349_v46  ;;  %v6310_v4 = vrot.slane %v6297_v12, 4  ;;  %v6314_v59 = vrot.slane %v6301_v5, 4  ;;  %v6353_v46 = vperm.slane %v6345_v63, %v9705_v32 }
 0x9ec   : > { %v6331_v30 = vsel %vm3965_vm6, %v6330_v24, %v5445_v37  ;;  %v6332_v31 = vrot.slane %v5445_v37, 4  ;;  %v6397_v15 = vperm.slane %v6391_v54, %v9753_v21  ;;  %v6317_v37 = vsel %vm3965_vm6, %v6301_v5, %v6316_v52 }
 0x9ed   : > { %v6435_v2 = vpop.permute.xlu1 %6434  ;;  %v6337_v28 = vperm.slane %v6331_v30, %v9705_v32  ;;  %v6311_v1 = vsel %vm3965_vm6, %v6310_v4, %v6273_v20  ;;  %v6401_v8 = vperm.slane %v6393_v55, %v9753_v21  ;;  %v6718_v55 = vld [vmem:[%s12387_s5 + $0x18] sm:$0xff] }
 0x9ee   : > { %6566 = vrot.lane.b32.xlu2 %v6307_v56, %s7200_s18  ;;  %v6654_v50 = vsel %vm12890_vm10, %v11458_v26, %v6435_v2  ;;  %v6357_v26 = vsel %vm3965_vm6, %v5469_v57, %v6356_v61  ;;  %v6333_v19 = vsel %vm3965_vm6, %v5453_v48, %v6332_v31  ;;  %v6320_v57 = vrot.slane %v12066_v11, 4  ;;  %vm12900_vm10 = vmmov %vm12823_vm1 }
 0x9ef   : > { %v6659_v58 = vsel %vm6658_vm2, %v6654_v50, %v12080_v39  ;;  %v6366_v29 = vrot.slane %v6337_v28, 4  ;;  %v6312_v39 = vrot.slane %v6273_v20, 4  ;;  %v6365_v60 = vperm.slane %v6357_v26, %v9705_v32 }
 0x9f0   : > { %v12143_v38 = vpop.permute.xlu2 %6484  ;;  %v6414_v53 = vrot.slane %v6397_v15, 4  ;;  %v6341_v27 = vperm.slane %v6333_v19, %v9705_v32  ;;  %v6369_v49 = vsel %vm3965_vm6, %v6337_v28, %v6368_v47  ;;  %v6321_v24 = vsel %vm3965_vm6, %v11972_v18, %v6320_v57 }
 0x9f1   : > { %v6367_v45 = vsel %vm3965_vm6, %v6366_v29, %v6325_v14  ;;  %6582 = vrot.lane.b32.xlu0 %v6309_v35, %s7180_s28  ;;  %v6313_v51 = vsel %vm3965_vm6, %v6297_v12, %v6312_v39  ;;  %v6402_v41 = vrot.slane %v6365_v60, 4  ;;  %v6315_v12 = vsel %vm3965_vm6, %v6314_v59, %v6277_v9 }
 0x9f2   : > { %v6373_v62 = vperm.slane %v6367_v45, %v9753_v21  ;;  %v6378_v56 = vrot.slane %v6341_v27, 4  ;;  %v6329_v20 = vperm.slane %v6321_v24, %v9705_v32  ;;  %v6404_v50 = vrot.slane %v6353_v46, 4 }
 0x9f3   : > { %6598 = vrot.lane.b32.xlu1 %v6311_v1, %s7191_s13  ;;  %v6467_v43 = vpop.permute.xlu0 %6466  ;;  %v6403_v7 = vsel %vm3965_vm6, %v6402_v41, %v6353_v46  ;;  %v6418_v31 = vrot.slane %v6401_v8, 4 }
 0x9f4   : > { %v6663_v48 = vsel %vm12891_vm14, %v6659_v58, %v6467_v43  ;;  %v12166_v23 = vsel %vm3965_vm6, %v6414_v53, %v6373_v62  ;;  %v6416_v40 = vrot.slane %v6373_v62, 4  ;;  %v6379_v61 = vsel %vm3965_vm6, %v6378_v56, %v6329_v20  ;;  %vm12901_vm14 = vmmov %vm12898_vm0 }
 0x9f5   : > { %v6483_v6 = vpop.permute.xlu1 %6482  ;;  %v6409_v32 = vperm.slane %v6403_v7, %v9753_v21  ;;  %v6380_v58 = vrot.slane %v6329_v20, 4  ;;  %v6405_v17 = vsel %vm3965_vm6, %v6365_v60, %v6404_v50  ;;  %v6385_v29 = vperm.slane %v6379_v61, %v9753_v21 }
 0x9f6   : > { %6614 = vrot.lane.b32.xlu2 %v6313_v51, %s7199_s16  ;;  %v6668_v11 = vsel %vm6667_vm3, %v6663_v48, %v6483_v6  ;;  %v6417_v30 = vsel %vm3965_vm6, %v6397_v15, %v6416_v40  ;;  %v6413_v26 = vperm.slane %v6405_v17, %v9753_v21  ;;  %v6715_v48 = vld [vmem:[%s12387_s5] sm:$0xff] }
 0x9f7   : > { %v6673_v34 = vsel %vm6672_vm15, %v6668_v11, %v12045_v22  ;;  %v6377_v22 = vperm.slane %v6369_v49, %v9753_v21  ;;  %v6381_v15 = vsel %vm3965_vm6, %v6341_v27, %v6380_v58  ;;  %v6422_v25 = vrot.slane %v6409_v32, 4  ;;  %v6716_v27 = vld [vmem:[%s12387_s5 + $0x8] sm:$0xff] }
 0x9f8   : > { %v12171_v10 = vpop.permute.xlu2 %6532  ;;  %v6424_v1 = vrot.slane %v6385_v29, 4  ;;  %v6389_v5 = vperm.slane %v6381_v15, %v9753_v21  ;;  %v6426_v52 = vrot.slane %v6413_v26, 4 }
 0x9f9   : > { %6630 = vrot.lane.b32.xlu0 %v6315_v12, %s7185_s26  ;;  %v6420_v54 = vrot.slane %v6377_v22, 4  ;;  %v6419_v14 = vsel %vm3965_vm6, %v6418_v31, %v6377_v22  ;;  %v6423_v39 = vsel %vm3965_vm6, %v6422_v25, %v6385_v29 }
 0x9fa   : > { %v6425_v62 = vsel %vm3965_vm6, %v6409_v32, %v6424_v1  ;;  %v6428_v57 = vrot.slane %v6389_v5, 4  ;;  %v6427_v60 = vsel %vm3965_vm6, %v6426_v52, %v6389_v5 }
 0x9fb   : > { %6646 = vrot.lane.b32.xlu1 %v6317_v37, %s7201_s23  ;;  %v6515_v18 = vpop.permute.xlu0 %6514  ;;  %v6421_v4 = vsel %vm3965_vm6, %v6401_v8, %v6420_v54 }
 0x9fc   : > { %v6678_v2 = vsel %vm6677_vm4, %v6673_v34, %v6515_v18  ;;  %v6429_v53 = vsel %vm3965_vm6, %v6413_v26, %v6428_v57  ;;  %vm12893_vm6 = vmmov %vm12823_vm1 }
 0x9fd   : > { %v6531_v36 = vpop.permute.xlu1 %6530 }
 0x9fe   : > { %6552 = vrot.lane.b32.xlu2 %v6417_v30, %s7190_s12  ;;  %v12191_v28 = vsel %vm6682_vm7, %v6678_v2, %v6531_v36 }
 0xa00   : > { %v6471_v9 = vpop.permute.xlu2 %6470 }
 0xa01   : > { %6568 = vrot.lane.b32.xlu0 %v6419_v14, %s7200_s18 }
 0xa03   : > { %6584 = vrot.lane.b32.xlu1 %v6421_v4, %s7180_s28  ;;  %v6501_v35 = vpop.permute.xlu0 %6500 }
 0xa05   : > { %v6469_v45 = vpop.permute.xlu1 %6468 }
 0xa06   : > { %6600 = vrot.lane.b32.xlu2 %v6423_v39, %s7191_s13 }
 0xa08   : > { %v6519_v19 = vpop.permute.xlu2 %6518 }
 0xa09   : > { %6616 = vrot.lane.b32.xlu0 %v6425_v62, %s7199_s16 }
 0xa0b   : > { %6632 = vrot.lane.b32.xlu1 %v6427_v60, %s7185_s26  ;;  %v6453_v43 = vpop.permute.xlu0 %6452 }
 0xa0c   : > { %v6660_v63 = vsel %vm6658_vm2, %v12115_v16, %v6453_v43 }
 0xa0d   : > { %v6517_v21 = vpop.permute.xlu1 %6516  ;;  %v6664_v47 = vsel %vm12892_vm11, %v6660_v63, %v6469_v45  ;;  %vm12902_vm11 = vmmov %vm12823_vm1 }
 0xa0e   : > { %6648 = vrot.lane.b32.xlu2 %v6429_v53, %s7201_s23  ;;  %v6669_v51 = vsel %vm6667_vm3, %v6664_v47, %v12143_v38  ;;  %v6717_v38 = vld [vmem:[%s12387_s5 + $0x10] sm:$0xff] }
 0xa0f   : > { %v6674_v6 = vsel %vm6672_vm15, %v6669_v51, %v6501_v35 }
 0xa10   : > { %v6505_v33 = vpop.permute.xlu2 %6504  ;;  %v6679_v16 = vsel %vm6677_vm4, %v6674_v6, %v6517_v21 }
 0xa11   : > { %6721 = vperm.xlu0 %7065, %v6715_v48   ;;  %v12226_v11 = vsel %vm6682_vm7, %v6679_v16, %v12171_v10 }
 0xa13   : > { %6726 = vperm.xlu1 %7068, %v6716_v27   ;;  %v6439_v49 = vpop.permute.xlu0 %6438 }
 0xa14   : > { %v6656_v59 = vsel %vm12893_vm6, %v11678_v3, %v6439_v49  ;;  %vm12903_vm6 = vmmov %vm12898_vm0 }
 0xa15   : > { %v6503_v34 = vpop.permute.xlu1 %6502 }
 0xa16   : > { %6731 = vperm.xlu2 %7067, %v6717_v38  }
 0xa18   : > { %v6457_v41 = vpop.permute.xlu2 %6456 }
 0xa1b   : > { %6736 = vperm.xlu1 %7068, %v6718_v55   ;;  %v6487_v46 = vpop.permute.xlu0 %6486 }
 0xa1d   : > { %v6455_v10 = vpop.permute.xlu1 %6454 }
 0xa1e   : > { %v6661_v24 = vsel %vm6658_vm2, %v6656_v59, %v6455_v10 }
 0xa1f   : > { %v6665_v12 = vsel %vm12894_vm8, %v6661_v24, %v6471_v9 }
 0xa20   : > { %v6670_v40 = vsel %vm6667_vm3, %v6665_v12, %v6487_v46  ;;  %v6547_v56 = vpop.permute.xlu2 %6546 }
 0xa21   : > { %v6687_v3 = vsel %vm12895_vm13, %v11900_v44, %v6547_v56  ;;  %v6675_v37 = vsel %vm6672_vm15, %v6670_v40, %v6503_v34 }
 0xa22   : > { %v6680_v22 = vsel %vm6677_vm4, %v6675_v37, %v6519_v19 }
 0xa23   : > { %v6535_v8 = vpop.permute.xlu0 %6534 }
 0xa24   : > { %v6685_v7 = vsel %vm6682_vm7, %v6680_v22, %v6535_v8 }
 0xa25   : > { %v6441_v20 = vpop.permute.xlu1 %6440 }
 0xa26   : > { %v6657_v18 = vsel %vm12896_vm12, %v11804_v42, %v6441_v20 }
 0xa27   : > { %v6662_v30 = vsel %vm6658_vm2, %v6657_v18, %v6457_v41 }
 0xa28   : > { %v6595_v2 = vpop.permute.xlu2 %6594 }
 0xa2b   : > { %v6473_v36 = vpop.permute.xlu0 %6472 }
 0xa2c   : > { %v6666_v54 = vsel %vm12897_vm5, %v6662_v30, %v6473_v36 }
 0xa2d   : > { %v6489_v61 = vpop.permute.xlu1 %6488 }
 0xa2e   : > { %v6671_v44 = vsel %vm6667_vm3, %v6666_v54, %v6489_v61 }
 0xa2f   : > { %v6676_v50 = vsel %vm6672_vm15, %v6671_v44, %v6505_v33 }
 0xa30   : > { %v6643_v31 = vpop.permute.xlu2 %6642 }
 0xa33   : > { %v6521_v32 = vpop.permute.xlu0 %6520 }
 0xa34   : > { %v6681_v58 = vsel %vm6677_vm4, %v6676_v50, %v6521_v32 }
 0xa35   : > { %v6537_v9 = vpop.permute.xlu1 %6536 }
 0xa36   : > { %v12252_v17 = vsel %vm6682_vm7, %v6681_v58, %v6537_v9 }
 0xa38   : > { %v6581_v42 = vpop.permute.xlu2 %6580 }
 0xa3b   : > { %v6563_v14 = vpop.permute.xlu0 %6562 }
 0xa3c   : > { %v6691_v29 = vsel %vm6658_vm2, %v6687_v3, %v6563_v14 }
 0xa3d   : > { %v6579_v4 = vpop.permute.xlu1 %6578 }
 0xa3e   : > { %v6695_v15 = vsel %vm12898_vm0, %v6691_v29, %v6579_v4 }
 0xa3f   : > { %v6699_v25 = vsel %vm6667_vm3, %v6695_v15, %v6595_v2 }
 0xa40   : > { %v6629_v26 = vpop.permute.xlu2 %6628 }
 0xa43   : > { %v6611_v35 = vpop.permute.xlu0 %6610 }
 0xa44   : > { %v6703_v39 = vsel %vm6672_vm15, %v6699_v25, %v6611_v35 }
 0xa45   : > { %v6627_v45 = vpop.permute.xlu1 %6626 }
 0xa46   : > { %v6707_v1 = vsel %vm6677_vm4, %v6703_v39, %v6627_v45 }
 0xa47   : > { %v6711_v5 = vsel %vm6682_vm7, %v6707_v1, %v6643_v31 }
 0xa48   : > { %v6567_v19 = vpop.permute.xlu2 %6566 }
 0xa4b   : > { %v6549_v52 = vpop.permute.xlu0 %6548 }
 0xa4c   : > { %v6688_v62 = vsel %vm12823_vm1, %v11996_v0, %v6549_v52 }
 0xa4d   : > { %v6565_v57 = vpop.permute.xlu1 %6564 }
 0xa4e   : > { %v6692_v60 = vsel %vm6658_vm2, %v6688_v62, %v6565_v57 }
 0xa4f   : > { %v6696_v43 = vsel %vm12899_vm9, %v6692_v60, %v6581_v42 }
 0xa50   : > { %v6615_v53 = vpop.permute.xlu2 %6614 }
 0xa53   : > { %v6597_v63 = vpop.permute.xlu0 %6596 }
 0xa54   : > { %v6700_v21 = vsel %vm6667_vm3, %v6696_v43, %v6597_v63 }
 0xa55   : > { %v6613_v47 = vpop.permute.xlu1 %6612 }
 0xa56   : > { %v6704_v51 = vsel %vm6672_vm15, %v6700_v21, %v6613_v47 }
 0xa57   : > { %v6708_v48 = vsel %vm6677_vm4, %v6704_v51, %v6629_v26 }
 0xa58   : > { %v6553_v6 = vpop.permute.xlu2 %6552 }
 0xa5b   : > { %v6645_v33 = vpop.permute.xlu0 %6644 }
 0xa5c   : > { %v6712_v32 = vsel %vm6682_vm7, %v6708_v48, %v6645_v33 }
 0xa5d   : > { %v6551_v27 = vpop.permute.xlu1 %6550 }
 0xa5e   : > { %v6689_v0 = vsel %vm12900_vm10, %v12093_v13, %v6551_v27 }
 0xa5f   : > { %v6693_v49 = vsel %vm6658_vm2, %v6689_v0, %v6567_v19 }
 0xa60   : > { %v6601_v16 = vpop.permute.xlu2 %6600 }
 0xa63   : > { %v6583_v38 = vpop.permute.xlu0 %6582 }
 0xa64   : > { %v6697_v34 = vsel %vm12901_vm14, %v6693_v49, %v6583_v38 }
 0xa65   : > { %v6599_v59 = vpop.permute.xlu1 %6598 }
 0xa66   : > { %v6701_v55 = vsel %vm6667_vm3, %v6697_v34, %v6599_v59 }
 0xa67   : > { %v6705_v46 = vsel %vm6672_vm15, %v6701_v55, %v6615_v53 }
 0xa68   : > { %v12271_v41 = vpop.permute.xlu2 %6648 }
 0xa6b   : > { %v6631_v10 = vpop.permute.xlu0 %6630 }
 0xa6c   : > { %v6709_v24 = vsel %vm6677_vm4, %v6705_v46, %v6631_v10 }
 0xa6d   : > { %v6647_v12 = vpop.permute.xlu1 %6646 }
 0xa6e   : > { %v6713_v40 = vsel %vm6682_vm7, %v6709_v24, %v6647_v12 }
 0xa70   : > { %v6732_v56 = vpop.permute.xlu2 %6731 }
 0xa71   : > { %v12277_v13 = vadd.f32 %v6732_v56, %v6685_v7  ;;  %v12279_v3 = vadd.f32 %v6732_v56, %v6713_v40  ;;  %v6690_v7 = vsel %vm12902_vm11, %v12166_v23, %v6553_v6 }
 0xa73   : > { %v7007_v37 = vmul.f32 -1.442695, %v12277_v13  ;;  %v7008_v22 = vmul.f32 -1.442695, %v12279_v3  ;;  %v6569_v8 = vpop.permute.xlu0 %6568 }
 0xa74   : > { %v6694_v44 = vsel %vm6658_vm2, %v6690_v7, %v6569_v8 }
 0xa75   : > { %7101 = vpow2.f32 %v7007_v37  ;;  %v6585_v20 = vpop.permute.xlu1 %6584 }
 0xa76   : > { %7103 = vpow2.f32 %v7008_v22  ;;  %v6698_v50 = vsel %vm12903_vm6, %v6694_v44, %v6585_v20 }
 0xa77   : > { %v6702_v14 = vsel %vm6667_vm3, %v6698_v50, %v6601_v16 }
 0xa7b   : > { %v7102_v18 = vpop.eup %7101  ;;  %v6617_v36 = vpop.permute.xlu0 %6616 }
 0xa7c   : > { %v7104_v30 = vpop.eup %7103  ;;  %v6775_v2 = vadd.f32 1.0, %v7102_v18  ;;  %v6706_v45 = vsel %vm6672_vm15, %v6702_v14, %v6617_v36 }
 0xa7d   : > { %v6776_v54 = vadd.f32 1.0, %v7104_v30  ;;  %v6633_v61 = vpop.permute.xlu1 %6632 }
 0xa7e   : > { %7105 = vrcp.f32 %v6775_v2  ;;  %v6848_v15 = vand.u32 2147483647, %v6775_v2  ;;  %vm6844_vm15 = vweird.f32 %v6775_v2  ;;  %v6710_v47 = vsel %vm6677_vm4, %v6706_v45, %v6633_v61 }
 0xa7f   : > { %7107 = vrcp.f32 %v6776_v54  ;;  %v6863_v43 = vand.u32 2147483647, %v6776_v54  ;;  %vm6859_vm8 = vweird.f32 %v6776_v54  ;;  %v6714_v59 = vsel %vm6682_vm7, %v6710_v47, %v12271_v41 }
 0xa80   : > { %vm6849_vm12 = vcmp.eq.f32.partialorder %v6848_v15, 8.507059e+37 }
 0xa81   : > { %vm6864_vm0 = vcmp.eq.f32.partialorder %v6863_v43, 8.507059e+37 }
 0xa83   : > { %v6722_v58 = vpop.permute.xlu0 %6721 }
 0xa84   : > { %v7106_v31 = vpop.eup %7105  ;;  %v12290_v29 = vadd.f32 %v6722_v58, %v12191_v28  ;;  %v12292_v4 = vadd.f32 %v6722_v58, %v6711_v5  ;;  %v6850_v28 = vand.u32 2147483648, %v6775_v2 }
 0xa85   : > { %v7108_v9 = vpop.eup %7107  ;;  %v6840_v42 = vmul.f32 %v7106_v31, %v6775_v2  ;;  %v6727_v23 = vpop.permute.xlu1 %6726  ;;  %vm6845_vm2 = vweird.f32 %v7106_v31 }
 0xa86   : > { %v6855_v25 = vmul.f32 %v7108_v9, %v6776_v54  ;;  %v12295_v26 = vadd.f32 %v6727_v23, %v12226_v11  ;;  %v12297_v35 = vadd.f32 %v6727_v23, %v6712_v32  ;;  %v7003_v1 = vmul.f32 -1.442695, %v12290_v29  ;;  %vm6846_vm13 = vmor %vm6844_vm15, %vm6845_vm2 }
 0xa87   : > { %v6841_v39 = vsub.f32 1.0, %v6840_v42  ;;  %v7004_v19 = vmul.f32 -1.442695, %v12292_v4  ;;  %v6865_v11 = vand.u32 2147483648, %v6776_v54  ;;  %vm6860_vm3 = vweird.f32 %v7108_v9 }
 0xa88   : > { %v6856_v52 = vsub.f32 1.0, %v6855_v25  ;;  %v7005_v5 = vmul.f32 -1.442695, %v12295_v26  ;;  %v7006_v62 = vmul.f32 -1.442695, %v12297_v35  ;;  %7109 = vpow2.f32 %v7003_v1  ;;  %vm6861_vm5 = vmor %vm6859_vm8, %vm6860_vm3 }
 0xa89   : > { %v6842_v57 = vmul.f32 %v7106_v31, %v6841_v39  ;;  %7111 = vpow2.f32 %v7004_v19  ;;  %v6851_v63 = vor.u32 1.1754944e-38, %v6850_v28  ;;  %v6866_v48 = vor.u32 1.1754944e-38, %v6865_v11 }
 0xa8a   : > { %v6857_v60 = vmul.f32 %v7108_v9, %v6856_v52  ;;  %7113 = vpow2.f32 %v7005_v5 }
 0xa8b   : > { %v6843_v53 = vadd.f32 %v7106_v31, %v6842_v57  ;;  %7115 = vpow2.f32 %v7006_v62 }
 0xa8c   : > { %v6858_v21 = vadd.f32 %v7108_v9, %v6857_v60 }
 0xa8d   : > { %v6847_v51 = vsel %vm6846_vm13, %v7106_v31, %v6843_v53  ;;  %v6737_v6 = vpop.permute.xlu1 %6736 }
 0xa8e   : > { %v6852_v33 = vsel %vm6849_vm12, %v6851_v63, %v6847_v51  ;;  %v6862_v27 = vsel %vm6861_vm5, %v7108_v9, %v6858_v21  ;;  %v12313_v16 = vadd.f32 %v6737_v6, %v12252_v17  ;;  %v7110_v0 = vpop.eup %7109  ;;  %v12319_v10 = vadd.f32 %v6737_v6, %v6714_v59 }
 0xa8f   : > { %v6867_v38 = vsel %vm6864_vm0, %v6866_v48, %v6862_v27  ;;  %v6903_v49 = vmul.f32 %v6852_v33, %v12277_v13  ;;  %v7112_v34 = vpop.eup %7111  ;;  %v6771_v46 = vadd.f32 1.0, %v7110_v0 }
 0xa90   : > { %v6904_v55 = vmul.f32 %v6867_v38, %v12279_v3  ;;  %v7114_v24 = vpop.eup %7113  ;;  %v6772_v12 = vadd.f32 1.0, %v7112_v34  ;;  %v7009_v40 = vmul.f32 -1.442695, %v12313_v16  ;;  %v7010_v41 = vmul.f32 -1.442695, %v12319_v10 }
 0xa91   : > { %6911 = vst [vmem:[%s12310_s22 + $0x20] sm:$0xff] %v6903_v49  ;;  %v7116_v17 = vpop.eup %7115  ;;  %7117 = vrcp.f32 %v6771_v46  ;;  %v12324_v56 = vadd.f32 1.0, %v7114_v24  ;;  %v6788_v3 = vand.u32 2147483647, %v6771_v46  ;;  %v6790_v37 = vand.u32 2147483648, %v6771_v46 }
 0xa92   : > { %6912 = vst [vmem:[%s12310_s22 + $0x28] sm:$0xff] %v6904_v55  ;;  %7119 = vrcp.f32 %v6772_v12  ;;  %v12326_v13 = vadd.f32 1.0, %v7116_v17  ;;  %v6803_v8 = vand.u32 2147483647, %v6772_v12  ;;  %v6805_v20 = vand.u32 2147483648, %v6772_v12 }
 0xa93   : > { %7121 = vpow2.f32 %v7009_v40  ;;  %vm6784_vm4 = vweird.f32 %v6771_v46  ;;  %vm12331_vm7 = vcmp.eq.f32.partialorder %v6788_v3, 8.507059e+37  ;;  %v6791_v7 = vor.u32 1.1754944e-38, %v6790_v37 }
 0xa94   : > { %7123 = vrcp.f32 %v12324_v56  ;;  %vm6799_vm1 = vweird.f32 %v6772_v12  ;;  %vm12335_vm9 = vcmp.eq.f32.partialorder %v6803_v8, 8.507059e+37  ;;  %v6806_v32 = vor.u32 1.1754944e-38, %v6805_v20 }
 0xa95   : > { %7125 = vrcp.f32 %v12326_v13  ;;  %v6818_v23 = vand.u32 2147483647, %v12324_v56  ;;  %v6820_v19 = vand.u32 2147483648, %v12324_v56  ;;  %v6833_v62 = vand.u32 2147483647, %v12326_v13 }
 0xa96   : > { %7127 = vpow2.f32 %v7010_v41  ;;  %v6835_v57 = vand.u32 2147483648, %v12326_v13  ;;  %vm6814_vm15 = vweird.f32 %v12324_v56  ;;  %vm6829_vm13 = vweird.f32 %v12326_v13 }
 0xa97   : > { %v7118_v22 = vpop.eup %7117  ;;  %v6821_v33 = vor.u32 1.1754944e-38, %v6820_v19  ;;  %vm6819_vm12 = vcmp.eq.f32.partialorder %v6818_v23, 8.507059e+37  ;;  %vm6834_vm0 = vcmp.eq.f32.partialorder %v6833_v62, 8.507059e+37 }
 0xa98   : > { %v7120_v18 = vpop.eup %7119  ;;  %v6780_v30 = vmul.f32 %v7118_v22, %v6771_v46  ;;  %vm6785_vm10 = vweird.f32 %v7118_v22  ;;  %v6836_v38 = vor.u32 1.1754944e-38, %v6835_v57 }
 0xa99   : > { %v6795_v2 = vmul.f32 %v7120_v18, %v6772_v12  ;;  %v7122_v36 = vpop.eup %7121  ;;  %vm6800_vm14 = vweird.f32 %v7120_v18  ;;  %vm6786_vm11 = vmor %vm6784_vm4, %vm6785_vm10 }
 0xa9a   : > { %v6781_v54 = vsub.f32 1.0, %v6780_v30  ;;  %v7124_v44 = vpop.eup %7123  ;;  %v12339_v58 = vadd.f32 1.0, %v7122_v36  ;;  %vm6801_vm6 = vmor %vm6799_vm1, %vm6800_vm14 }
 0xa9b   : > { %v6796_v50 = vsub.f32 1.0, %v6795_v2  ;;  %v7126_v9 = vpop.eup %7125  ;;  %v6810_v14 = vmul.f32 %v7124_v44, %v12324_v56  ;;  %vm6815_vm2 = vweird.f32 %v7124_v44 }
 0xa9c   : > { %v6782_v42 = vmul.f32 %v7118_v22, %v6781_v54  ;;  %v7128_v15 = vpop.eup %7127  ;;  %v6825_v39 = vmul.f32 %v7126_v9, %v12326_v13  ;;  %7129 = vrcp.f32 %v12339_v58  ;;  %vm6830_vm3 = vweird.f32 %v7126_v9  ;;  %vm6816_vm8 = vmor %vm6814_vm15, %vm6815_vm2 }
 0xa9d   : > { %v6797_v25 = vmul.f32 %v7120_v18, %v6796_v50  ;;  %v6811_v1 = vsub.f32 1.0, %v6810_v14  ;;  %v12346_v28 = vadd.f32 1.0, %v7128_v15  ;;  %vm6831_vm5 = vmor %vm6829_vm13, %vm6830_vm3  ;;  %v6880_v12 = vand.u32 2147483648, %v12339_v58 }
 0xa9e   : > { %v6783_v45 = vadd.f32 %v7118_v22, %v6782_v42  ;;  %v6826_v5 = vsub.f32 1.0, %v6825_v39  ;;  %v6878_v56 = vand.u32 2147483647, %v12339_v58 }
 0xa9f   : > { %v6798_v52 = vadd.f32 %v7120_v18, %v6797_v25  ;;  %v6812_v60 = vmul.f32 %v7124_v44, %v6811_v1  ;;  %7131 = vrcp.f32 %v12346_v28  ;;  %v6895_v3 = vand.u32 2147483648, %v12346_v28 }
 0xaa0   : > { %v6787_v11 = vsel %vm6786_vm11, %v7118_v22, %v6783_v45  ;;  %v6827_v63 = vmul.f32 %v7126_v9, %v6826_v5  ;;  %v6893_v37 = vand.u32 2147483647, %v12346_v28  ;;  %vm6879_vm10 = vcmp.eq.f32.partialorder %v6878_v56, 8.507059e+37 }
 0xaa1   : > { %v6792_v43 = vsel %vm12331_vm7, %v6791_v7, %v6787_v11  ;;  %v6802_v53 = vsel %vm6801_vm6, %v7120_v18, %v6798_v52  ;;  %v6813_v51 = vadd.f32 %v7124_v44, %v6812_v60  ;;  %vm6874_vm7 = vweird.f32 %v12339_v58 }
 0xaa2   : > { %v6807_v21 = vsel %vm12335_vm9, %v6806_v32, %v6802_v53  ;;  %v6899_v47 = vmul.f32 %v6792_v43, %v12290_v29  ;;  %v7130_v48 = vpop.eup %7129  ;;  %v6828_v27 = vadd.f32 %v7126_v9, %v6827_v63  ;;  %vm6889_vm14 = vweird.f32 %v12346_v28 }
 0xaa3   : > { %v6900_v6 = vmul.f32 %v6807_v21, %v12292_v4  ;;  %v6817_v0 = vsel %vm6816_vm8, %v7124_v44, %v6813_v51  ;;  %v6870_v49 = vmul.f32 %v7130_v48, %v12339_v58  ;;  %vm6875_vm4 = vweird.f32 %v7130_v48 }
 0xaa4   : > { %6907 = vst [vmem:[%s12310_s22] sm:$0xff] %v6899_v47  ;;  %v6822_v29 = vsel %vm6819_vm12, %v6821_v33, %v6817_v0  ;;  %v6832_v59 = vsel %vm6831_vm5, %v7126_v9, %v6828_v27  ;;  %vm6876_vm1 = vmor %vm6874_vm7, %vm6875_vm4  ;;  %v6896_v18 = vor.u32 1.1754944e-38, %v6895_v3  ;;  %vm6894_vm6 = vcmp.eq.f32.partialorder %v6893_v37, 8.507059e+37 }
 0xaa5   : > { %6908 = vst [vmem:[%s12310_s22 + $0x8] sm:$0xff] %v6900_v6  ;;  %v7132_v34 = vpop.eup %7131  ;;  %v6837_v4 = vsel %vm6834_vm0, %v6836_v38, %v6832_v59  ;;  %v6901_v55 = vmul.f32 %v6822_v29, %v12295_v26  ;;  %v6871_v46 = vsub.f32 1.0, %v6870_v49  ;;  %v6881_v26 = vor.u32 1.1754944e-38, %v6880_v12 }
 0xaa6   : > { %v6902_v24 = vmul.f32 %v6837_v4, %v12297_v35  ;;  %v6885_v40 = vmul.f32 %v7132_v34, %v12346_v28  ;;  %vm6890_vm9 = vweird.f32 %v7132_v34 }
 0xaa7   : > { %6909 = vst [vmem:[%s12310_s22 + $0x10] sm:$0xff] %v6901_v55  ;;  %v6872_v17 = vmul.f32 %v7130_v48, %v6871_v46  ;;  %vm6891_vm11 = vmor %vm6889_vm14, %vm6890_vm9 }
 0xaa8   : > { %6910 = vst [vmem:[%s12310_s22 + $0x18] sm:$0xff] %v6902_v24  ;;  %v6886_v13 = vsub.f32 1.0, %v6885_v40 }
 0xaa9   : > { %v6873_v41 = vadd.f32 %v7130_v48, %v6872_v17 }
 0xaaa   : > { %v6887_v35 = vmul.f32 %v7132_v34, %v6886_v13 }
 0xaab   : > { %v6877_v22 = vsel %vm6876_vm1, %v7130_v48, %v6873_v41 }
 0xaac   : > { %v6882_v8 = vsel %vm6879_vm10, %v6881_v26, %v6877_v22  ;;  %v6888_v20 = vadd.f32 %v7132_v34, %v6887_v35 }
 0xaad   : > { %v6905_v30 = vmul.f32 %v6882_v8, %v12313_v16 }
 0xaae   : > { %v6892_v2 = vsel %vm6891_vm11, %v7132_v34, %v6888_v20 }
 0xaaf   : > { %v6897_v36 = vsel %vm6894_vm6, %v6896_v18, %v6892_v2  ;;  %6913 = vst [vmem:[%s12310_s22 + $0x30] sm:$0xff] %v6905_v30 }
 0xab0   : > { %v6906_v54 = vmul.f32 %v6897_v36, %v12319_v10 }
 0xab2   : > { %6914 = vst [vmem:[%s12310_s22 + $0x38] sm:$0xff] %v6906_v54 }
 0xab3 PF: > { %s16_s21 = sadd.s32 1, %s7161_s21  }
 0xab4   : > { %p13_p4 = scmp.ge.s32.totalorder %s16_s21, 4  }
 0xab6   :  { %15 = sbr.rel (!%p13_p4) target bundleno = 1 (0x1), region = 74 }

</bundles_post_ra>
